<compile_context>
chip_gen: v7x
topology: tpu7x:2x2x1
jax: 0.10.0
libtpu: 0.0.40
codegen_flags: <defaults>
</compile_context>

<pallas_src>
import functools

import jax
import jax.numpy as jnp
from jax import lax
from jax.experimental import pallas as pl
from jax.experimental.pallas import tpu as pltpu

EMB_DIM = 4            # embedding_dim
FF_DIM = 2048          # nn.TransformerEncoderLayer default dim_feedforward
NUM_ENC_LAYERS = 2
NUM_DEC_LAYERS = 2
NUM_FF_LAYERS = NUM_ENC_LAYERS + NUM_DEC_LAYERS
LN_EPS = 1e-5
SLAB_W = 16            # lane width of the small parameter slab
SUBLANE = 8            # every small-slab block starts at an 8-row boundary
BIG_ROWS = 16          # rows per FF block in the big slab
FF_B1_ROW = 8          # b1 row inside a big-slab block (8-aligned)
FF_CHUNK = 512         # FF hidden dim processed in 512-lane chunks


# ---------------------------------------------------------------------------
# the Pallas kernel: full forward for G independent examples per grid step
# ---------------------------------------------------------------------------
def tfnet_kernel(ids_ref, small_ref, big_ref, w2t_ref, y_ref, *,
                 offs, L, N, G, V):
    """One grid step = G independent examples, each (L, N) tokens.

    Activation row layout: row = l*(G*N) + g*N + n  (L-major blocks).
    Everything is 2-D (L*G*N, E); attention over the L positions is computed
    with aligned L-block slices + per-row reductions.
    """
    M = G * N                      # rows per attention position (one L-block)
    R = L * M                      # rows per grid step
    E = EMB_DIM
    inv_sqrt_e = 1.0 / float(E) ** 0.5

    def P(name):
        off, r, c = offs[name]
        return small_ref[off:off + r, 0:c]      # 8-row-aligned static slice

    def linear(x, w_t, b):
        # y = x @ W^T + b, with W^T pre-packed as (in, out): the contraction is
        # always over the RHS sublane axis (MXU friendly, no relayout).
        return jnp.dot(x, w_t, preferred_element_type=jnp.float32) + b

    def layer_norm(x, w, b):
        mu = jnp.mean(x, axis=-1, keepdims=True)
        var = jnp.mean((x - mu) ** 2, axis=-1, keepdims=True)
        return (x - mu) * lax.rsqrt(var + LN_EPS) * w + b

    def attention(q, k, v):
        # Single-head attention over the L positions of each (example, n)
        # group; members of a group sit at the same row offset in every
        # L-block, so the scores are per-row lane reductions (no 3-D einsums).
        qs = [q[i * M:(i + 1) * M] for i in range(L)]
        ks = [k[i * M:(i + 1) * M] for i in range(L)]
        vs = [v[i * M:(i + 1) * M] for i in range(L)]
        outs = []
        for i in range(L):
            s = [jnp.sum(qs[i] * ks[j], axis=-1, keepdims=True) * inv_sqrt_e
                 for j in range(L)]                               # L x (M, 1)
            m = s[0]
            for j in range(1, L):
                m = jnp.maximum(m, s[j])
            e = [jnp.exp(sj - m) for sj in s]
            den = e[0]
            for j in range(1, L):
                den = den + e[j]
            o = e[0] * vs[0]
            for j in range(1, L):
                o = o + e[j] * vs[j]
            outs.append(o / den)               # exact divide (review note)
        return jnp.concatenate(outs, axis=0)                      # (R, E)

    def self_attn(x, pfx):
        qkv = linear(x, P(pfx + '_in_wT'), P(pfx + '_in_b'))      # fused QKV
        q = qkv[:, 0:E]
        k = qkv[:, E:2 * E]
        v = qkv[:, 2 * E:3 * E]
        o = attention(q, k, v)
        return linear(o, P(pfx + '_out_wT'), P(pfx + '_out_b'))

    def cross_attn(x, mem, pfx):
        q = linear(x, P(pfx + '_q_wT'), P(pfx + '_q_b'))
        kv = linear(mem, P(pfx + '_kv_wT'), P(pfx + '_kv_b'))     # fused KV
        k = kv[:, 0:E]
        v = kv[:, E:2 * E]
        o = attention(q, k, v)
        return linear(o, P(pfx + '_out_wT'), P(pfx + '_out_b'))

    def ffn(x, lff, b2):
        # FF hidden dim in 512-lane chunks: both matmuls contract over aligned
        # axes (W1^T lane-dense, W2^T (FF, E) -> K on the RHS sublane axis) and
        # the (R, 2048) hidden activation is never fully live at once.
        acc = jnp.zeros((x.shape[0], E), jnp.float32)
        for c0 in range(0, FF_DIM, FF_CHUNK):
            w1t_c = big_ref[lff, 0:E, c0:c0 + FF_CHUNK]           # (E, 512)
            b1_c = big_ref[lff, FF_B1_ROW:FF_B1_ROW + 1, c0:c0 + FF_CHUNK]
            h = jnp.dot(x, w1t_c, preferred_element_type=jnp.float32) + b1_c
            h = jnp.maximum(h, 0.0)
            w2t_c = w2t_ref[lff, c0:c0 + FF_CHUNK, :]             # (512, E)
            acc = acc + jnp.dot(h, w2t_c,
                                preferred_element_type=jnp.float32)
        return acc + b2

    # ---- embedding lookup: one-hot matmul over the whole chunk ----
    ids = ids_ref[...]                                            # (R, 1) i32
    iota_v = lax.broadcasted_iota(jnp.int32, (R, V), 1)
    onehot = (ids == iota_v).astype(jnp.float32)                  # (R, V)
    x2 = jnp.dot(onehot, P('embedding'),
                 preferred_element_type=jnp.float32)              # (R, E)

    # ---- TransformerEncoder: 2 post-LN layers, nhead=1, ReLU FFN ----
    # TODO(synk): dropout (p=0.1) is a train-mode op; eval-mode no-op here.
    src = x2
    for l in range(NUM_ENC_LAYERS):
        pfx = f'enc{l}'
        a = self_attn(src, pfx + '_sa')
        src = layer_norm(src + a, P(pfx + '_ln1_w'), P(pfx + '_ln1_b'))
        f = ffn(src, l, P(pfx + '_ff_b2'))
        src = layer_norm(src + f, P(pfx + '_ln2_w'), P(pfx + '_ln2_b'))
    memory = src                                                  # encoder_feats

    # ---- TransformerDecoder: 2 post-LN layers (self, cross, FFN) ----
    tgt = x2
    for l in range(NUM_DEC_LAYERS):
        pfx = f'dec{l}'
        a = self_attn(tgt, pfx + '_sa')
        tgt = layer_norm(tgt + a, P(pfx + '_ln1_w'), P(pfx + '_ln1_b'))
        a = cross_attn(tgt, memory, pfx + '_ca')
        tgt = layer_norm(tgt + a, P(pfx + '_ln2_w'), P(pfx + '_ln2_b'))
        f = ffn(tgt, NUM_ENC_LAYERS + l, P(pfx + '_ff_b2'))
        tgt = layer_norm(tgt + f, P(pfx + '_ln3_w'), P(pfx + '_ln3_b'))

    # ---- fusion -> mean over the N (torch dim 1) positions -> classifier ----
    fused = jnp.concatenate(
        [memory, tgt, memory * tgt, jnp.abs(memory - tgt)], axis=-1)  # (R, 4E)
    LG = L * G
    cols = lax.broadcasted_iota(jnp.int32, (LG, R), 1)
    grp0 = lax.broadcasted_iota(jnp.int32, (LG, R), 0) * N
    pool = jnp.where((cols >= grp0) & (cols < grp0 + N),
                     1.0 / N, 0.0).astype(jnp.float32)            # (LG, R)
    pooled = jnp.dot(pool, fused, preferred_element_type=jnp.float32)  # (LG,4E)
    h = jnp.maximum(linear(pooled, P('cls1_wT'), P('cls1_b')), 0.0)
    y = jnp.maximum(linear(h, P('cls2_wT'), P('cls2_b')), 0.0)
    y_ref[...] = y                                                # (LG, C)


# ---------------------------------------------------------------------------
# parameter init (deterministic, synthetic, PyTorch-shaped) and host packing
# ---------------------------------------------------------------------------
def init_params(key, vocab, num_classes):
    keys = iter(jax.random.split(key, 128))

    def nrm(shape, scale=0.1):
        return (scale * jax.random.normal(next(keys), shape)).astype(jnp.float32)

    p = {'embedding': nrm((vocab, EMB_DIM), 1.0)}

    def attn(prefix):
        p[prefix + '_in_w'] = nrm((3 * EMB_DIM, EMB_DIM))
        p[prefix + '_in_b'] = nrm((3 * EMB_DIM,))
        p[prefix + '_out_w'] = nrm((EMB_DIM, EMB_DIM))
        p[prefix + '_out_b'] = nrm((EMB_DIM,))

    def ln(prefix):
        p[prefix + '_w'] = jnp.ones((EMB_DIM,), jnp.float32)
        p[prefix + '_b'] = jnp.zeros((EMB_DIM,), jnp.float32)

    def ff(prefix):
        p[prefix + '_w1'] = nrm((FF_DIM, EMB_DIM))   # PyTorch (out, in)
        p[prefix + '_b1'] = nrm((FF_DIM,))
        p[prefix + '_w2'] = nrm((EMB_DIM, FF_DIM))
        p[prefix + '_b2'] = nrm((EMB_DIM,))

    for l in range(NUM_ENC_LAYERS):
        attn(f'enc{l}_sa'); ln(f'enc{l}_ln1'); ff(f'enc{l}_ff'); ln(f'enc{l}_ln2')
    for l in range(NUM_DEC_LAYERS):
        attn(f'dec{l}_sa'); ln(f'dec{l}_ln1')
        attn(f'dec{l}_ca'); ln(f'dec{l}_ln2')
        ff(f'dec{l}_ff'); ln(f'dec{l}_ln3')
    p['cls1_w'] = nrm((num_classes, 4 * EMB_DIM))
    p['cls1_b'] = nrm((num_classes,))
    p['cls2_w'] = nrm((num_classes, num_classes))
    p['cls2_b'] = nrm((num_classes,))
    return p


def pack_params(p):
    """Pack all parameters into three slabs + a static offset table.

    * small slab (rows, 16): every tensor pre-transposed to (in, out) where
      relevant, zero-padded so every block starts at an 8-row-aligned offset.
    * big slab (num_ff, 16, FF): per FF layer, W1^T (lane-dense, rows 0..E-1)
      and b1 at row 8.
    * w2t slab (num_ff, FF, E): per FF layer W2^T, so the 2048-deep contraction
      sits on the RHS sublane axis (no in-kernel relayout).
    """
    E = EMB_DIM
    rows, offsets = [], {}
    cursor = 0

    def add(name, arr):
        nonlocal cursor
        a = jnp.asarray(arr, jnp.float32)
        if a.ndim == 1:
            a = a[None, :]
        r, c = a.shape
        assert c <= SLAB_W, (name, a.shape)
        offsets[name] = (cursor, r, c)
        pad_r = (-r) % SUBLANE                 # keep the NEXT block 8-aligned
        rows.append(jnp.pad(a, ((0, pad_r), (0, SLAB_W - c))))
        cursor += r + pad_r

    add('embedding', p['embedding'])
    for l in range(NUM_ENC_LAYERS):
        pf = f'enc{l}'
        add(pf + '_sa_in_wT', p[pf + '_sa_in_w'].T)
        add(pf + '_sa_in_b', p[pf + '_sa_in_b'])
        add(pf + '_sa_out_wT', p[pf + '_sa_out_w'].T)
        add(pf + '_sa_out_b', p[pf + '_sa_out_b'])
        add(pf + '_ln1_w', p[pf + '_ln1_w'])
        add(pf + '_ln1_b', p[pf + '_ln1_b'])
        add(pf + '_ff_b2', p[pf + '_ff_b2'])
        add(pf + '_ln2_w', p[pf + '_ln2_w'])
        add(pf + '_ln2_b', p[pf + '_ln2_b'])
    for l in range(NUM_DEC_LAYERS):
        pf = f'dec{l}'
        add(pf + '_sa_in_wT', p[pf + '_sa_in_w'].T)
        add(pf + '_sa_in_b', p[pf + '_sa_in_b'])
        add(pf + '_sa_out_wT', p[pf + '_sa_out_w'].T)
        add(pf + '_sa_out_b', p[pf + '_sa_out_b'])
        add(pf + '_ln1_w', p[pf + '_ln1_w'])
        add(pf + '_ln1_b', p[pf + '_ln1_b'])
        ca_w, ca_b = p[pf + '_ca_in_w'], p[pf + '_ca_in_b']
        add(pf + '_ca_q_wT', ca_w[:E].T)          # (E, E)
        add(pf + '_ca_q_b', ca_b[:E])
        add(pf + '_ca_kv_wT', ca_w[E:].T)         # (E, 2E)
        add(pf + '_ca_kv_b', ca_b[E:])
        add(pf + '_ca_out_wT', p[pf + '_ca_out_w'].T)
        add(pf + '_ca_out_b', p[pf + '_ca_out_b'])
        add(pf + '_ln2_w', p[pf + '_ln2_w'])
        add(pf + '_ln2_b', p[pf + '_ln2_b'])
        add(pf + '_ff_b2', p[pf + '_ff_b2'])
        add(pf + '_ln3_w', p[pf + '_ln3_w'])
        add(pf + '_ln3_b', p[pf + '_ln3_b'])
    add('cls1_wT', p['cls1_w'].T)                 # (4E, C)
    add('cls1_b', p['cls1_b'])
    add('cls2_wT', p['cls2_w'].T)                 # (C, C)
    add('cls2_b', p['cls2_b'])
    small = jnp.concatenate(rows, axis=0)

    ff_names = ([f'enc{l}_ff' for l in range(NUM_ENC_LAYERS)]
                + [f'dec{l}_ff' for l in range(NUM_DEC_LAYERS)])
    big_blocks, w2t_blocks = [], []
    for name in ff_names:
        w1t = jnp.transpose(p[name + '_w1'])          # (E, FF), lane-dense
        b1 = p[name + '_b1'][None, :]                 # (1, FF)
        blk = jnp.concatenate(
            [w1t,
             jnp.zeros((FF_B1_ROW - E, FF_DIM), jnp.float32),
             b1,
             jnp.zeros((BIG_ROWS - FF_B1_ROW - 1, FF_DIM), jnp.float32)],
            axis=0)                                   # (16, FF)
        big_blocks.append(blk)
        w2t_blocks.append(jnp.transpose(p[name + '_w2']))  # (FF, E)
    big = jnp.stack(big_blocks, axis=0)               # (num_ff, 16, FF)
    w2t = jnp.stack(w2t_blocks, axis=0)               # (num_ff, FF, E)
    return small, big, w2t, offsets


# ---------------------------------------------------------------------------
# wrappers
# ---------------------------------------------------------------------------
def tfnet_forward_batched(packed, xs, num_classes, examples_per_step=8):
    """Run TfNet.forward on a stack of independent examples.

    xs: (num_examples, batch, seq, 1) integer tokens.
    Returns (num_examples, batch, num_classes) float32.
    """
    small, big, w2t, offs = packed
    num_ex, L, N, _ = xs.shape          # L = torch batch (= attention length),
    V = offs['embedding'][1]            # N = torch seq (= pooled dim)
    G = max(1, min(examples_per_step, num_ex))
    pad = (-num_ex) % G
    ids = jnp.squeeze(xs, axis=-1).astype(jnp.int32)          # (num_ex, L, N)
    if pad:
        ids = jnp.concatenate([ids, jnp.zeros((pad, L, N), jnp.int32)], axis=0)
    num_ex_p = num_ex + pad
    num_chunks = num_ex_p // G
    R = L * G * N
    LG = L * G
    # Per-chunk rows ordered (l, example-in-chunk, n) -> aligned L-blocks.
    ids = ids.reshape(num_chunks, G, L, N).transpose(0, 2, 1, 3)
    ids = ids.reshape(num_chunks * R, 1)

    kernel = functools.partial(tfnet_kernel, offs=offs, L=L, N=N, G=G, V=V)
    y = pl.pallas_call(
        kernel,
        out_shape=jax.ShapeDtypeStruct((num_chunks * LG, num_classes),
                                       jnp.float32),
        grid=(num_chunks,),
        in_specs=[
            pl.BlockSpec((R, 1), lambda c: (c, 0)),
            pl.BlockSpec(small.shape, lambda c: (0, 0)),
            pl.BlockSpec(big.shape, lambda c: (0, 0, 0)),
            pl.BlockSpec(w2t.shape, lambda c: (0, 0, 0)),
        ],
        out_specs=pl.BlockSpec((LG, num_classes), lambda c: (c, 0)),
        compiler_params=pltpu.CompilerParams(
            dimension_semantics=("parallel",)),
    )(ids, small, big, w2t)

    y = y.reshape(num_chunks, L, G, num_classes).transpose(0, 2, 1, 3)
    return y.reshape(num_ex_p, L, num_classes)[:num_ex]


def tfnet_forward(packed, x, num_classes):
    """Single-example TfNet.forward: x is (batch, seq, 1) integer tokens."""
    return tfnet_forward_batched(packed, x[None], num_classes,
                                 examples_per_step=1)[0]


if __name__ == "__main__":
    VOCAB = 16            # out_size (embedding vocab)
    NUM_CLASSES = 8
    BATCH, SEQ = 2, 8     # x: (batch, seq, 1) int tokens
    NUM_EXAMPLES = 16     # batched path: 2 grid steps of 8 examples (128 rows)

    key = jax.random.PRNGKey(0)
    pkey, xkey, bkey = jax.random.split(key, 3)
    params = init_params(pkey, VOCAB, NUM_CLASSES)
    packed = pack_params(params)                  # one-time host-side packing

    x = jax.random.randint(xkey, (BATCH, SEQ, 1), 0, VOCAB, dtype=jnp.int32)

    # single forward (matches TfNet.forward(x))
    y = jax.block_until_ready(tfnet_forward(packed, x, NUM_CLASSES))
    assert y.shape == (BATCH, NUM_CLASSES)
    assert bool(jnp.all(jnp.isfinite(y)))

    # batched path: many independent examples per pallas_call, parallel grid
    xs = jax.random.randint(bkey, (NUM_EXAMPLES, BATCH, SEQ, 1), 0, VOCAB,
                            dtype=jnp.int32)
    xs = xs.at[0].set(x)
    yb = jax.block_until_ready(
        tfnet_forward_batched(packed, xs, NUM_CLASSES, examples_per_step=8))
    assert yb.shape == (NUM_EXAMPLES, BATCH, NUM_CLASSES)
    assert bool(jnp.all(jnp.isfinite(yb)))
    assert bool(jnp.allclose(yb[0], y, atol=1e-3, rtol=1e-3))
    print("KERNEL_OK")
</pallas_src>

<mosaic_0001>
module attributes {stable_mosaic.version = 11 : i64} {
  func.func @tfnet_kernel(%arg0: i32, %arg1: memref<16x1xi32, #tpu.memory_space<vmem>>, %arg2: memref<472x16xf32, #tpu.memory_space<vmem>>, %arg3: memref<4x16x2048xf32, #tpu.memory_space<vmem>>, %arg4: memref<4x2048x4xf32, #tpu.memory_space<vmem>>, %arg5: memref<2x8xf32, #tpu.memory_space<vmem>>) attributes {dimension_semantics = [#tpu.dimension_semantics<parallel>], iteration_bounds = array<i64: 1>, scalar_prefetch = 0 : i64, scratch_operands = 0 : i64, tpu.core_type = #tpu.core_type<tc>, window_params = [{transform_indices = @transform_0, window_bounds = array<i64: 16, 1>}, {pipeline_mode = #tpu.pipeline_mode<synchronous>, transform_indices = @transform_1, window_bounds = array<i64: 472, 16>}, {pipeline_mode = #tpu.pipeline_mode<synchronous>, transform_indices = @transform_2, window_bounds = array<i64: 4, 16, 2048>}, {pipeline_mode = #tpu.pipeline_mode<synchronous>, transform_indices = @transform_3, window_bounds = array<i64: 4, 2048, 4>}, {transform_indices = @transform_4, window_bounds = array<i64: 2, 8>}]} {
    %c0 = arith.constant 0 : index
    %c0_0 = arith.constant 0 : index
    %0 = vector.load %arg1[%c0, %c0_0] : memref<16x1xi32, #tpu.memory_space<vmem>>, vector<16x1xi32>
    %1 = tpu.iota {dimensions = array<i32: 1>} : vector<16x16xi32>
    %2 = vector.broadcast %0 : vector<16x1xi32> to vector<16x16xi32>
    %3 = arith.cmpi eq, %2, %1 : vector<16x16xi32>
    %4 = arith.extui %3 : vector<16x16xi1> to vector<16x16xi32>
    %5 = arith.sitofp %4 : vector<16x16xi32> to vector<16x16xf32>
    %c0_1 = arith.constant 0 : index
    %c0_2 = arith.constant 0 : index
    %6 = vector.load %arg2[%c0_1, %c0_2] : memref<472x16xf32, #tpu.memory_space<vmem>>, vector<16x4xf32>
    %cst = arith.constant dense<0.000000e+00> : vector<16x4xf32>
    %7 = tpu.matmul %5, %6, %cst {dimension_numbers = #tpu.dot_dimension_numbers<[1], [0], [0], [1], [0, 0, 1, 1], [], []>} : vector<16x16xf32>, vector<16x4xf32>, vector<16x4xf32> -> vector<16x4xf32>
    %c16 = arith.constant 16 : index
    %c0_3 = arith.constant 0 : index
    %8 = vector.load %arg2[%c16, %c0_3] : memref<472x16xf32, #tpu.memory_space<vmem>>, vector<4x12xf32>
    %c24 = arith.constant 24 : index
    %c0_4 = arith.constant 0 : index
    %9 = vector.load %arg2[%c24, %c0_4] : memref<472x16xf32, #tpu.memory_space<vmem>>, vector<1x12xf32>
    %cst_5 = arith.constant dense<0.000000e+00> : vector<16x12xf32>
    %10 = tpu.matmul %7, %8, %cst_5 {dimension_numbers = #tpu.dot_dimension_numbers<[1], [0], [0], [1], [0, 0, 1, 1], [], []>} : vector<16x4xf32>, vector<4x12xf32>, vector<16x12xf32> -> vector<16x12xf32>
    %11 = vector.broadcast %9 : vector<1x12xf32> to vector<16x12xf32>
    %12 = arith.addf %10, %11 : vector<16x12xf32>
    %13 = vector.extract_strided_slice %12 {offsets = [0, 0], sizes = [16, 4], strides = [1, 1]} : vector<16x12xf32> to vector<16x4xf32>
    %14 = vector.extract_strided_slice %12 {offsets = [0, 4], sizes = [16, 4], strides = [1, 1]} : vector<16x12xf32> to vector<16x4xf32>
    %15 = vector.extract_strided_slice %12 {offsets = [0, 8], sizes = [16, 4], strides = [1, 1]} : vector<16x12xf32> to vector<16x4xf32>
    %16 = vector.extract_strided_slice %13 {offsets = [0, 0], sizes = [8, 4], strides = [1, 1]} : vector<16x4xf32> to vector<8x4xf32>
    %17 = vector.extract_strided_slice %13 {offsets = [8, 0], sizes = [8, 4], strides = [1, 1]} : vector<16x4xf32> to vector<8x4xf32>
    %18 = vector.extract_strided_slice %14 {offsets = [0, 0], sizes = [8, 4], strides = [1, 1]} : vector<16x4xf32> to vector<8x4xf32>
    %19 = vector.extract_strided_slice %14 {offsets = [8, 0], sizes = [8, 4], strides = [1, 1]} : vector<16x4xf32> to vector<8x4xf32>
    %20 = vector.extract_strided_slice %15 {offsets = [0, 0], sizes = [8, 4], strides = [1, 1]} : vector<16x4xf32> to vector<8x4xf32>
    %21 = vector.extract_strided_slice %15 {offsets = [8, 0], sizes = [8, 4], strides = [1, 1]} : vector<16x4xf32> to vector<8x4xf32>
    %22 = arith.mulf %16, %18 : vector<8x4xf32>
    %cst_6 = arith.constant dense<0.000000e+00> : vector<8xf32>
    %23 = vector.multi_reduction <add>, %22, %cst_6 [1] : vector<8x4xf32> to vector<8xf32>
    %24 = vector.shape_cast %23 : vector<8xf32> to vector<8x1xf32>
    %cst_7 = arith.constant 5.000000e-01 : f32
    %25 = vector.broadcast %cst_7 : f32 to vector<8x1xf32>
    %26 = arith.mulf %24, %25 : vector<8x1xf32>
    %27 = arith.mulf %16, %19 : vector<8x4xf32>
    %cst_8 = arith.constant dense<0.000000e+00> : vector<8xf32>
    %28 = vector.multi_reduction <add>, %27, %cst_8 [1] : vector<8x4xf32> to vector<8xf32>
    %29 = vector.shape_cast %28 : vector<8xf32> to vector<8x1xf32>
    %cst_9 = arith.constant 5.000000e-01 : f32
    %30 = vector.broadcast %cst_9 : f32 to vector<8x1xf32>
    %31 = arith.mulf %29, %30 : vector<8x1xf32>
    %32 = arith.maximumf %26, %31 : vector<8x1xf32>
    %33 = arith.subf %26, %32 : vector<8x1xf32>
    %34 = math.exp %33 : vector<8x1xf32>
    %35 = arith.subf %31, %32 : vector<8x1xf32>
    %36 = math.exp %35 : vector<8x1xf32>
    %37 = arith.addf %34, %36 : vector<8x1xf32>
    %38 = vector.broadcast %34 : vector<8x1xf32> to vector<8x4xf32>
    %39 = arith.mulf %38, %20 : vector<8x4xf32>
    %40 = vector.broadcast %36 : vector<8x1xf32> to vector<8x4xf32>
    %41 = arith.mulf %40, %21 : vector<8x4xf32>
    %42 = arith.addf %39, %41 : vector<8x4xf32>
    %43 = vector.broadcast %37 : vector<8x1xf32> to vector<8x4xf32>
    %44 = arith.divf %42, %43 : vector<8x4xf32>
    %45 = arith.mulf %17, %18 : vector<8x4xf32>
    %cst_10 = arith.constant dense<0.000000e+00> : vector<8xf32>
    %46 = vector.multi_reduction <add>, %45, %cst_10 [1] : vector<8x4xf32> to vector<8xf32>
    %47 = vector.shape_cast %46 : vector<8xf32> to vector<8x1xf32>
    %cst_11 = arith.constant 5.000000e-01 : f32
    %48 = vector.broadcast %cst_11 : f32 to vector<8x1xf32>
    %49 = arith.mulf %47, %48 : vector<8x1xf32>
    %50 = arith.mulf %17, %19 : vector<8x4xf32>
    %cst_12 = arith.constant dense<0.000000e+00> : vector<8xf32>
    %51 = vector.multi_reduction <add>, %50, %cst_12 [1] : vector<8x4xf32> to vector<8xf32>
    %52 = vector.shape_cast %51 : vector<8xf32> to vector<8x1xf32>
    %cst_13 = arith.constant 5.000000e-01 : f32
    %53 = vector.broadcast %cst_13 : f32 to vector<8x1xf32>
    %54 = arith.mulf %52, %53 : vector<8x1xf32>
    %55 = arith.maximumf %49, %54 : vector<8x1xf32>
    %56 = arith.subf %49, %55 : vector<8x1xf32>
    %57 = math.exp %56 : vector<8x1xf32>
    %58 = arith.subf %54, %55 : vector<8x1xf32>
    %59 = math.exp %58 : vector<8x1xf32>
    %60 = arith.addf %57, %59 : vector<8x1xf32>
    %61 = vector.broadcast %57 : vector<8x1xf32> to vector<8x4xf32>
    %62 = arith.mulf %61, %20 : vector<8x4xf32>
    %63 = vector.broadcast %59 : vector<8x1xf32> to vector<8x4xf32>
    %64 = arith.mulf %63, %21 : vector<8x4xf32>
    %65 = arith.addf %62, %64 : vector<8x4xf32>
    %66 = vector.broadcast %60 : vector<8x1xf32> to vector<8x4xf32>
    %67 = arith.divf %65, %66 : vector<8x4xf32>
    %68 = tpu.concatenate %44, %67 in 0 : vector<8x4xf32>, vector<8x4xf32> -> vector<16x4xf32>
    %c32 = arith.constant 32 : index
    %c0_14 = arith.constant 0 : index
    %69 = vector.load %arg2[%c32, %c0_14] : memref<472x16xf32, #tpu.memory_space<vmem>>, vector<4x4xf32>
    %c40 = arith.constant 40 : index
    %c0_15 = arith.constant 0 : index
    %70 = vector.load %arg2[%c40, %c0_15] : memref<472x16xf32, #tpu.memory_space<vmem>>, vector<1x4xf32>
    %cst_16 = arith.constant dense<0.000000e+00> : vector<16x4xf32>
    %71 = tpu.matmul %68, %69, %cst_16 {dimension_numbers = #tpu.dot_dimension_numbers<[1], [0], [0], [1], [0, 0, 1, 1], [], []>} : vector<16x4xf32>, vector<4x4xf32>, vector<16x4xf32> -> vector<16x4xf32>
    %72 = vector.broadcast %70 : vector<1x4xf32> to vector<16x4xf32>
    %73 = arith.addf %71, %72 : vector<16x4xf32>
    %74 = arith.addf %7, %73 : vector<16x4xf32>
    %c48 = arith.constant 48 : index
    %c0_17 = arith.constant 0 : index
    %75 = vector.load %arg2[%c48, %c0_17] : memref<472x16xf32, #tpu.memory_space<vmem>>, vector<1x4xf32>
    %c56 = arith.constant 56 : index
    %c0_18 = arith.constant 0 : index
    %76 = vector.load %arg2[%c56, %c0_18] : memref<472x16xf32, #tpu.memory_space<vmem>>, vector<1x4xf32>
    %cst_19 = arith.constant dense<0.000000e+00> : vector<16xf32>
    %77 = vector.multi_reduction <add>, %74, %cst_19 [1] : vector<16x4xf32> to vector<16xf32>
    %78 = vector.shape_cast %77 : vector<16xf32> to vector<16x1xf32>
    %cst_20 = arith.constant 4.000000e+00 : f32
    %79 = vector.broadcast %cst_20 : f32 to vector<16x1xf32>
    %80 = arith.divf %78, %79 : vector<16x1xf32>
    %81 = vector.broadcast %80 : vector<16x1xf32> to vector<16x4xf32>
    %82 = arith.subf %74, %81 : vector<16x4xf32>
    %83 = arith.mulf %82, %82 : vector<16x4xf32>
    %cst_21 = arith.constant dense<0.000000e+00> : vector<16xf32>
    %84 = vector.multi_reduction <add>, %83, %cst_21 [1] : vector<16x4xf32> to vector<16xf32>
    %85 = vector.shape_cast %84 : vector<16xf32> to vector<16x1xf32>
    %cst_22 = arith.constant 4.000000e+00 : f32
    %86 = vector.broadcast %cst_22 : f32 to vector<16x1xf32>
    %87 = arith.divf %85, %86 : vector<16x1xf32>
    %88 = vector.broadcast %80 : vector<16x1xf32> to vector<16x4xf32>
    %89 = arith.subf %74, %88 : vector<16x4xf32>
    %cst_23 = arith.constant 9.99999974E-6 : f32
    %90 = vector.broadcast %cst_23 : f32 to vector<16x1xf32>
    %91 = arith.addf %87, %90 : vector<16x1xf32>
    %92 = math.rsqrt %91 : vector<16x1xf32>
    %93 = vector.broadcast %92 : vector<16x1xf32> to vector<16x4xf32>
    %94 = arith.mulf %89, %93 : vector<16x4xf32>
    %95 = vector.broadcast %75 : vector<1x4xf32> to vector<16x4xf32>
    %96 = arith.mulf %94, %95 : vector<16x4xf32>
    %97 = vector.broadcast %76 : vector<1x4xf32> to vector<16x4xf32>
    %98 = arith.addf %96, %97 : vector<16x4xf32>
    %c64 = arith.constant 64 : index
    %c0_24 = arith.constant 0 : index
    %99 = vector.load %arg2[%c64, %c0_24] : memref<472x16xf32, #tpu.memory_space<vmem>>, vector<1x4xf32>
    %cst_25 = arith.constant 0.000000e+00 : f32
    %100 = vector.broadcast %cst_25 : f32 to vector<16x4xf32>
    %c0_26 = arith.constant 0 : index
    %c0_27 = arith.constant 0 : index
    %c0_28 = arith.constant 0 : index
    %101 = vector.load %arg3[%c0_26, %c0_27, %c0_28] : memref<4x16x2048xf32, #tpu.memory_space<vmem>>, vector<1x4x512xf32>
    %102 = vector.shape_cast %101 : vector<1x4x512xf32> to vector<4x512xf32>
    %c0_29 = arith.constant 0 : index
    %c8 = arith.constant 8 : index
    %c0_30 = arith.constant 0 : index
    %103 = vector.load %arg3[%c0_29, %c8, %c0_30] : memref<4x16x2048xf32, #tpu.memory_space<vmem>>, vector<1x1x512xf32>
    %104 = vector.shape_cast %103 : vector<1x1x512xf32> to vector<1x512xf32>
    %cst_31 = arith.constant dense<0.000000e+00> : vector<16x512xf32>
    %105 = tpu.matmul %98, %102, %cst_31 {dimension_numbers = #tpu.dot_dimension_numbers<[1], [0], [0], [1], [0, 0, 1, 1], [], []>} : vector<16x4xf32>, vector<4x512xf32>, vector<16x512xf32> -> vector<16x512xf32>
    %106 = vector.broadcast %104 : vector<1x512xf32> to vector<16x512xf32>
    %107 = arith.addf %105, %106 : vector<16x512xf32>
    %cst_32 = arith.constant 0.000000e+00 : f32
    %108 = vector.broadcast %cst_32 : f32 to vector<16x512xf32>
    %109 = arith.maximumf %107, %108 : vector<16x512xf32>
    %c0_33 = arith.constant 0 : index
    %c0_34 = arith.constant 0 : index
    %c0_35 = arith.constant 0 : index
    %110 = vector.load %arg4[%c0_33, %c0_34, %c0_35] : memref<4x2048x4xf32, #tpu.memory_space<vmem>>, vector<1x512x4xf32>
    %111 = vector.shape_cast %110 : vector<1x512x4xf32> to vector<512x4xf32>
    %cst_36 = arith.constant dense<0.000000e+00> : vector<16x4xf32>
    %112 = tpu.matmul %109, %111, %cst_36 {dimension_numbers = #tpu.dot_dimension_numbers<[1], [0], [0], [1], [0, 0, 1, 1], [], []>} : vector<16x512xf32>, vector<512x4xf32>, vector<16x4xf32> -> vector<16x4xf32>
    %113 = arith.addf %100, %112 : vector<16x4xf32>
    %c0_37 = arith.constant 0 : index
    %c0_38 = arith.constant 0 : index
    %c512 = arith.constant 512 : index
    %114 = vector.load %arg3[%c0_37, %c0_38, %c512] : memref<4x16x2048xf32, #tpu.memory_space<vmem>>, vector<1x4x512xf32>
    %115 = vector.shape_cast %114 : vector<1x4x512xf32> to vector<4x512xf32>
    %c0_39 = arith.constant 0 : index
    %c8_40 = arith.constant 8 : index
    %c512_41 = arith.constant 512 : index
    %116 = vector.load %arg3[%c0_39, %c8_40, %c512_41] : memref<4x16x2048xf32, #tpu.memory_space<vmem>>, vector<1x1x512xf32>
    %117 = vector.shape_cast %116 : vector<1x1x512xf32> to vector<1x512xf32>
    %cst_42 = arith.constant dense<0.000000e+00> : vector<16x512xf32>
    %118 = tpu.matmul %98, %115, %cst_42 {dimension_numbers = #tpu.dot_dimension_numbers<[1], [0], [0], [1], [0, 0, 1, 1], [], []>} : vector<16x4xf32>, vector<4x512xf32>, vector<16x512xf32> -> vector<16x512xf32>
    %119 = vector.broadcast %117 : vector<1x512xf32> to vector<16x512xf32>
    %120 = arith.addf %118, %119 : vector<16x512xf32>
    %cst_43 = arith.constant 0.000000e+00 : f32
    %121 = vector.broadcast %cst_43 : f32 to vector<16x512xf32>
    %122 = arith.maximumf %120, %121 : vector<16x512xf32>
    %c0_44 = arith.constant 0 : index
    %c512_45 = arith.constant 512 : index
    %c0_46 = arith.constant 0 : index
    %123 = vector.load %arg4[%c0_44, %c512_45, %c0_46] : memref<4x2048x4xf32, #tpu.memory_space<vmem>>, vector<1x512x4xf32>
    %124 = vector.shape_cast %123 : vector<1x512x4xf32> to vector<512x4xf32>
    %cst_47 = arith.constant dense<0.000000e+00> : vector<16x4xf32>
    %125 = tpu.matmul %122, %124, %cst_47 {dimension_numbers = #tpu.dot_dimension_numbers<[1], [0], [0], [1], [0, 0, 1, 1], [], []>} : vector<16x512xf32>, vector<512x4xf32>, vector<16x4xf32> -> vector<16x4xf32>
    %126 = arith.addf %113, %125 : vector<16x4xf32>
    %c0_48 = arith.constant 0 : index
    %c0_49 = arith.constant 0 : index
    %c1024 = arith.constant 1024 : index
    %127 = vector.load %arg3[%c0_48, %c0_49, %c1024] : memref<4x16x2048xf32, #tpu.memory_space<vmem>>, vector<1x4x512xf32>
    %128 = vector.shape_cast %127 : vector<1x4x512xf32> to vector<4x512xf32>
    %c0_50 = arith.constant 0 : index
    %c8_51 = arith.constant 8 : index
    %c1024_52 = arith.constant 1024 : index
    %129 = vector.load %arg3[%c0_50, %c8_51, %c1024_52] : memref<4x16x2048xf32, #tpu.memory_space<vmem>>, vector<1x1x512xf32>
    %130 = vector.shape_cast %129 : vector<1x1x512xf32> to vector<1x512xf32>
    %cst_53 = arith.constant dense<0.000000e+00> : vector<16x512xf32>
    %131 = tpu.matmul %98, %128, %cst_53 {dimension_numbers = #tpu.dot_dimension_numbers<[1], [0], [0], [1], [0, 0, 1, 1], [], []>} : vector<16x4xf32>, vector<4x512xf32>, vector<16x512xf32> -> vector<16x512xf32>
    %132 = vector.broadcast %130 : vector<1x512xf32> to vector<16x512xf32>
    %133 = arith.addf %131, %132 : vector<16x512xf32>
    %cst_54 = arith.constant 0.000000e+00 : f32
    %134 = vector.broadcast %cst_54 : f32 to vector<16x512xf32>
    %135 = arith.maximumf %133, %134 : vector<16x512xf32>
    %c0_55 = arith.constant 0 : index
    %c1024_56 = arith.constant 1024 : index
    %c0_57 = arith.constant 0 : index
    %136 = vector.load %arg4[%c0_55, %c1024_56, %c0_57] : memref<4x2048x4xf32, #tpu.memory_space<vmem>>, vector<1x512x4xf32>
    %137 = vector.shape_cast %136 : vector<1x512x4xf32> to vector<512x4xf32>
    %cst_58 = arith.constant dense<0.000000e+00> : vector<16x4xf32>
    %138 = tpu.matmul %135, %137, %cst_58 {dimension_numbers = #tpu.dot_dimension_numbers<[1], [0], [0], [1], [0, 0, 1, 1], [], []>} : vector<16x512xf32>, vector<512x4xf32>, vector<16x4xf32> -> vector<16x4xf32>
    %139 = arith.addf %126, %138 : vector<16x4xf32>
    %c0_59 = arith.constant 0 : index
    %c0_60 = arith.constant 0 : index
    %c1536 = arith.constant 1536 : index
    %140 = vector.load %arg3[%c0_59, %c0_60, %c1536] : memref<4x16x2048xf32, #tpu.memory_space<vmem>>, vector<1x4x512xf32>
    %141 = vector.shape_cast %140 : vector<1x4x512xf32> to vector<4x512xf32>
    %c0_61 = arith.constant 0 : index
    %c8_62 = arith.constant 8 : index
    %c1536_63 = arith.constant 1536 : index
    %142 = vector.load %arg3[%c0_61, %c8_62, %c1536_63] : memref<4x16x2048xf32, #tpu.memory_space<vmem>>, vector<1x1x512xf32>
    %143 = vector.shape_cast %142 : vector<1x1x512xf32> to vector<1x512xf32>
    %cst_64 = arith.constant dense<0.000000e+00> : vector<16x512xf32>
    %144 = tpu.matmul %98, %141, %cst_64 {dimension_numbers = #tpu.dot_dimension_numbers<[1], [0], [0], [1], [0, 0, 1, 1], [], []>} : vector<16x4xf32>, vector<4x512xf32>, vector<16x512xf32> -> vector<16x512xf32>
    %145 = vector.broadcast %143 : vector<1x512xf32> to vector<16x512xf32>
    %146 = arith.addf %144, %145 : vector<16x512xf32>
    %cst_65 = arith.constant 0.000000e+00 : f32
    %147 = vector.broadcast %cst_65 : f32 to vector<16x512xf32>
    %148 = arith.maximumf %146, %147 : vector<16x512xf32>
    %c0_66 = arith.constant 0 : index
    %c1536_67 = arith.constant 1536 : index
    %c0_68 = arith.constant 0 : index
    %149 = vector.load %arg4[%c0_66, %c1536_67, %c0_68] : memref<4x2048x4xf32, #tpu.memory_space<vmem>>, vector<1x512x4xf32>
    %150 = vector.shape_cast %149 : vector<1x512x4xf32> to vector<512x4xf32>
    %cst_69 = arith.constant dense<0.000000e+00> : vector<16x4xf32>
    %151 = tpu.matmul %148, %150, %cst_69 {dimension_numbers = #tpu.dot_dimension_numbers<[1], [0], [0], [1], [0, 0, 1, 1], [], []>} : vector<16x512xf32>, vector<512x4xf32>, vector<16x4xf32> -> vector<16x4xf32>
    %152 = arith.addf %139, %151 : vector<16x4xf32>
    %153 = vector.broadcast %99 : vector<1x4xf32> to vector<16x4xf32>
    %154 = arith.addf %152, %153 : vector<16x4xf32>
    %155 = arith.addf %98, %154 : vector<16x4xf32>
    %c72 = arith.constant 72 : index
    %c0_70 = arith.constant 0 : index
    %156 = vector.load %arg2[%c72, %c0_70] : memref<472x16xf32, #tpu.memory_space<vmem>>, vector<1x4xf32>
    %c80 = arith.constant 80 : index
    %c0_71 = arith.constant 0 : index
    %157 = vector.load %arg2[%c80, %c0_71] : memref<472x16xf32, #tpu.memory_space<vmem>>, vector<1x4xf32>
    %cst_72 = arith.constant dense<0.000000e+00> : vector<16xf32>
    %158 = vector.multi_reduction <add>, %155, %cst_72 [1] : vector<16x4xf32> to vector<16xf32>
    %159 = vector.shape_cast %158 : vector<16xf32> to vector<16x1xf32>
    %cst_73 = arith.constant 4.000000e+00 : f32
    %160 = vector.broadcast %cst_73 : f32 to vector<16x1xf32>
    %161 = arith.divf %159, %160 : vector<16x1xf32>
    %162 = vector.broadcast %161 : vector<16x1xf32> to vector<16x4xf32>
    %163 = arith.subf %155, %162 : vector<16x4xf32>
    %164 = arith.mulf %163, %163 : vector<16x4xf32>
    %cst_74 = arith.constant dense<0.000000e+00> : vector<16xf32>
    %165 = vector.multi_reduction <add>, %164, %cst_74 [1] : vector<16x4xf32> to vector<16xf32>
    %166 = vector.shape_cast %165 : vector<16xf32> to vector<16x1xf32>
    %cst_75 = arith.constant 4.000000e+00 : f32
    %167 = vector.broadcast %cst_75 : f32 to vector<16x1xf32>
    %168 = arith.divf %166, %167 : vector<16x1xf32>
    %169 = vector.broadcast %161 : vector<16x1xf32> to vector<16x4xf32>
    %170 = arith.subf %155, %169 : vector<16x4xf32>
    %cst_76 = arith.constant 9.99999974E-6 : f32
    %171 = vector.broadcast %cst_76 : f32 to vector<16x1xf32>
    %172 = arith.addf %168, %171 : vector<16x1xf32>
    %173 = math.rsqrt %172 : vector<16x1xf32>
    %174 = vector.broadcast %173 : vector<16x1xf32> to vector<16x4xf32>
    %175 = arith.mulf %170, %174 : vector<16x4xf32>
    %176 = vector.broadcast %156 : vector<1x4xf32> to vector<16x4xf32>
    %177 = arith.mulf %175, %176 : vector<16x4xf32>
    %178 = vector.broadcast %157 : vector<1x4xf32> to vector<16x4xf32>
    %179 = arith.addf %177, %178 : vector<16x4xf32>
    %c88 = arith.constant 88 : index
    %c0_77 = arith.constant 0 : index
    %180 = vector.load %arg2[%c88, %c0_77] : memref<472x16xf32, #tpu.memory_space<vmem>>, vector<4x12xf32>
    %c96 = arith.constant 96 : index
    %c0_78 = arith.constant 0 : index
    %181 = vector.load %arg2[%c96, %c0_78] : memref<472x16xf32, #tpu.memory_space<vmem>>, vector<1x12xf32>
    %cst_79 = arith.constant dense<0.000000e+00> : vector<16x12xf32>
    %182 = tpu.matmul %179, %180, %cst_79 {dimension_numbers = #tpu.dot_dimension_numbers<[1], [0], [0], [1], [0, 0, 1, 1], [], []>} : vector<16x4xf32>, vector<4x12xf32>, vector<16x12xf32> -> vector<16x12xf32>
    %183 = vector.broadcast %181 : vector<1x12xf32> to vector<16x12xf32>
    %184 = arith.addf %182, %183 : vector<16x12xf32>
    %185 = vector.extract_strided_slice %184 {offsets = [0, 0], sizes = [16, 4], strides = [1, 1]} : vector<16x12xf32> to vector<16x4xf32>
    %186 = vector.extract_strided_slice %184 {offsets = [0, 4], sizes = [16, 4], strides = [1, 1]} : vector<16x12xf32> to vector<16x4xf32>
    %187 = vector.extract_strided_slice %184 {offsets = [0, 8], sizes = [16, 4], strides = [1, 1]} : vector<16x12xf32> to vector<16x4xf32>
    %188 = vector.extract_strided_slice %185 {offsets = [0, 0], sizes = [8, 4], strides = [1, 1]} : vector<16x4xf32> to vector<8x4xf32>
    %189 = vector.extract_strided_slice %185 {offsets = [8, 0], sizes = [8, 4], strides = [1, 1]} : vector<16x4xf32> to vector<8x4xf32>
    %190 = vector.extract_strided_slice %186 {offsets = [0, 0], sizes = [8, 4], strides = [1, 1]} : vector<16x4xf32> to vector<8x4xf32>
    %191 = vector.extract_strided_slice %186 {offsets = [8, 0], sizes = [8, 4], strides = [1, 1]} : vector<16x4xf32> to vector<8x4xf32>
    %192 = vector.extract_strided_slice %187 {offsets = [0, 0], sizes = [8, 4], strides = [1, 1]} : vector<16x4xf32> to vector<8x4xf32>
    %193 = vector.extract_strided_slice %187 {offsets = [8, 0], sizes = [8, 4], strides = [1, 1]} : vector<16x4xf32> to vector<8x4xf32>
    %194 = arith.mulf %188, %190 : vector<8x4xf32>
    %cst_80 = arith.constant dense<0.000000e+00> : vector<8xf32>
    %195 = vector.multi_reduction <add>, %194, %cst_80 [1] : vector<8x4xf32> to vector<8xf32>
    %196 = vector.shape_cast %195 : vector<8xf32> to vector<8x1xf32>
    %cst_81 = arith.constant 5.000000e-01 : f32
    %197 = vector.broadcast %cst_81 : f32 to vector<8x1xf32>
    %198 = arith.mulf %196, %197 : vector<8x1xf32>
    %199 = arith.mulf %188, %191 : vector<8x4xf32>
    %cst_82 = arith.constant dense<0.000000e+00> : vector<8xf32>
    %200 = vector.multi_reduction <add>, %199, %cst_82 [1] : vector<8x4xf32> to vector<8xf32>
    %201 = vector.shape_cast %200 : vector<8xf32> to vector<8x1xf32>
    %cst_83 = arith.constant 5.000000e-01 : f32
    %202 = vector.broadcast %cst_83 : f32 to vector<8x1xf32>
    %203 = arith.mulf %201, %202 : vector<8x1xf32>
    %204 = arith.maximumf %198, %203 : vector<8x1xf32>
    %205 = arith.subf %198, %204 : vector<8x1xf32>
    %206 = math.exp %205 : vector<8x1xf32>
    %207 = arith.subf %203, %204 : vector<8x1xf32>
    %208 = math.exp %207 : vector<8x1xf32>
    %209 = arith.addf %206, %208 : vector<8x1xf32>
    %210 = vector.broadcast %206 : vector<8x1xf32> to vector<8x4xf32>
    %211 = arith.mulf %210, %192 : vector<8x4xf32>
    %212 = vector.broadcast %208 : vector<8x1xf32> to vector<8x4xf32>
    %213 = arith.mulf %212, %193 : vector<8x4xf32>
    %214 = arith.addf %211, %213 : vector<8x4xf32>
    %215 = vector.broadcast %209 : vector<8x1xf32> to vector<8x4xf32>
    %216 = arith.divf %214, %215 : vector<8x4xf32>
    %217 = arith.mulf %189, %190 : vector<8x4xf32>
    %cst_84 = arith.constant dense<0.000000e+00> : vector<8xf32>
    %218 = vector.multi_reduction <add>, %217, %cst_84 [1] : vector<8x4xf32> to vector<8xf32>
    %219 = vector.shape_cast %218 : vector<8xf32> to vector<8x1xf32>
    %cst_85 = arith.constant 5.000000e-01 : f32
    %220 = vector.broadcast %cst_85 : f32 to vector<8x1xf32>
    %221 = arith.mulf %219, %220 : vector<8x1xf32>
    %222 = arith.mulf %189, %191 : vector<8x4xf32>
    %cst_86 = arith.constant dense<0.000000e+00> : vector<8xf32>
    %223 = vector.multi_reduction <add>, %222, %cst_86 [1] : vector<8x4xf32> to vector<8xf32>
    %224 = vector.shape_cast %223 : vector<8xf32> to vector<8x1xf32>
    %cst_87 = arith.constant 5.000000e-01 : f32
    %225 = vector.broadcast %cst_87 : f32 to vector<8x1xf32>
    %226 = arith.mulf %224, %225 : vector<8x1xf32>
    %227 = arith.maximumf %221, %226 : vector<8x1xf32>
    %228 = arith.subf %221, %227 : vector<8x1xf32>
    %229 = math.exp %228 : vector<8x1xf32>
    %230 = arith.subf %226, %227 : vector<8x1xf32>
    %231 = math.exp %230 : vector<8x1xf32>
    %232 = arith.addf %229, %231 : vector<8x1xf32>
    %233 = vector.broadcast %229 : vector<8x1xf32> to vector<8x4xf32>
    %234 = arith.mulf %233, %192 : vector<8x4xf32>
    %235 = vector.broadcast %231 : vector<8x1xf32> to vector<8x4xf32>
    %236 = arith.mulf %235, %193 : vector<8x4xf32>
    %237 = arith.addf %234, %236 : vector<8x4xf32>
    %238 = vector.broadcast %232 : vector<8x1xf32> to vector<8x4xf32>
    %239 = arith.divf %237, %238 : vector<8x4xf32>
    %240 = tpu.concatenate %216, %239 in 0 : vector<8x4xf32>, vector<8x4xf32> -> vector<16x4xf32>
    %c104 = arith.constant 104 : index
    %c0_88 = arith.constant 0 : index
    %241 = vector.load %arg2[%c104, %c0_88] : memref<472x16xf32, #tpu.memory_space<vmem>>, vector<4x4xf32>
    %c112 = arith.constant 112 : index
    %c0_89 = arith.constant 0 : index
    %242 = vector.load %arg2[%c112, %c0_89] : memref<472x16xf32, #tpu.memory_space<vmem>>, vector<1x4xf32>
    %cst_90 = arith.constant dense<0.000000e+00> : vector<16x4xf32>
    %243 = tpu.matmul %240, %241, %cst_90 {dimension_numbers = #tpu.dot_dimension_numbers<[1], [0], [0], [1], [0, 0, 1, 1], [], []>} : vector<16x4xf32>, vector<4x4xf32>, vector<16x4xf32> -> vector<16x4xf32>
    %244 = vector.broadcast %242 : vector<1x4xf32> to vector<16x4xf32>
    %245 = arith.addf %243, %244 : vector<16x4xf32>
    %246 = arith.addf %179, %245 : vector<16x4xf32>
    %c120 = arith.constant 120 : index
    %c0_91 = arith.constant 0 : index
    %247 = vector.load %arg2[%c120, %c0_91] : memref<472x16xf32, #tpu.memory_space<vmem>>, vector<1x4xf32>
    %c128 = arith.constant 128 : index
    %c0_92 = arith.constant 0 : index
    %248 = vector.load %arg2[%c128, %c0_92] : memref<472x16xf32, #tpu.memory_space<vmem>>, vector<1x4xf32>
    %cst_93 = arith.constant dense<0.000000e+00> : vector<16xf32>
    %249 = vector.multi_reduction <add>, %246, %cst_93 [1] : vector<16x4xf32> to vector<16xf32>
    %250 = vector.shape_cast %249 : vector<16xf32> to vector<16x1xf32>
    %cst_94 = arith.constant 4.000000e+00 : f32
    %251 = vector.broadcast %cst_94 : f32 to vector<16x1xf32>
    %252 = arith.divf %250, %251 : vector<16x1xf32>
    %253 = vector.broadcast %252 : vector<16x1xf32> to vector<16x4xf32>
    %254 = arith.subf %246, %253 : vector<16x4xf32>
    %255 = arith.mulf %254, %254 : vector<16x4xf32>
    %cst_95 = arith.constant dense<0.000000e+00> : vector<16xf32>
    %256 = vector.multi_reduction <add>, %255, %cst_95 [1] : vector<16x4xf32> to vector<16xf32>
    %257 = vector.shape_cast %256 : vector<16xf32> to vector<16x1xf32>
    %cst_96 = arith.constant 4.000000e+00 : f32
    %258 = vector.broadcast %cst_96 : f32 to vector<16x1xf32>
    %259 = arith.divf %257, %258 : vector<16x1xf32>
    %260 = vector.broadcast %252 : vector<16x1xf32> to vector<16x4xf32>
    %261 = arith.subf %246, %260 : vector<16x4xf32>
    %cst_97 = arith.constant 9.99999974E-6 : f32
    %262 = vector.broadcast %cst_97 : f32 to vector<16x1xf32>
    %263 = arith.addf %259, %262 : vector<16x1xf32>
    %264 = math.rsqrt %263 : vector<16x1xf32>
    %265 = vector.broadcast %264 : vector<16x1xf32> to vector<16x4xf32>
    %266 = arith.mulf %261, %265 : vector<16x4xf32>
    %267 = vector.broadcast %247 : vector<1x4xf32> to vector<16x4xf32>
    %268 = arith.mulf %266, %267 : vector<16x4xf32>
    %269 = vector.broadcast %248 : vector<1x4xf32> to vector<16x4xf32>
    %270 = arith.addf %268, %269 : vector<16x4xf32>
    %c136 = arith.constant 136 : index
    %c0_98 = arith.constant 0 : index
    %271 = vector.load %arg2[%c136, %c0_98] : memref<472x16xf32, #tpu.memory_space<vmem>>, vector<1x4xf32>
    %cst_99 = arith.constant 0.000000e+00 : f32
    %272 = vector.broadcast %cst_99 : f32 to vector<16x4xf32>
    %c1 = arith.constant 1 : index
    %c0_100 = arith.constant 0 : index
    %c0_101 = arith.constant 0 : index
    %273 = vector.load %arg3[%c1, %c0_100, %c0_101] : memref<4x16x2048xf32, #tpu.memory_space<vmem>>, vector<1x4x512xf32>
    %274 = vector.shape_cast %273 : vector<1x4x512xf32> to vector<4x512xf32>
    %c1_102 = arith.constant 1 : index
    %c8_103 = arith.constant 8 : index
    %c0_104 = arith.constant 0 : index
    %275 = vector.load %arg3[%c1_102, %c8_103, %c0_104] : memref<4x16x2048xf32, #tpu.memory_space<vmem>>, vector<1x1x512xf32>
    %276 = vector.shape_cast %275 : vector<1x1x512xf32> to vector<1x512xf32>
    %cst_105 = arith.constant dense<0.000000e+00> : vector<16x512xf32>
    %277 = tpu.matmul %270, %274, %cst_105 {dimension_numbers = #tpu.dot_dimension_numbers<[1], [0], [0], [1], [0, 0, 1, 1], [], []>} : vector<16x4xf32>, vector<4x512xf32>, vector<16x512xf32> -> vector<16x512xf32>
    %278 = vector.broadcast %276 : vector<1x512xf32> to vector<16x512xf32>
    %279 = arith.addf %277, %278 : vector<16x512xf32>
    %cst_106 = arith.constant 0.000000e+00 : f32
    %280 = vector.broadcast %cst_106 : f32 to vector<16x512xf32>
    %281 = arith.maximumf %279, %280 : vector<16x512xf32>
    %c1_107 = arith.constant 1 : index
    %c0_108 = arith.constant 0 : index
    %c0_109 = arith.constant 0 : index
    %282 = vector.load %arg4[%c1_107, %c0_108, %c0_109] : memref<4x2048x4xf32, #tpu.memory_space<vmem>>, vector<1x512x4xf32>
    %283 = vector.shape_cast %282 : vector<1x512x4xf32> to vector<512x4xf32>
    %cst_110 = arith.constant dense<0.000000e+00> : vector<16x4xf32>
    %284 = tpu.matmul %281, %283, %cst_110 {dimension_numbers = #tpu.dot_dimension_numbers<[1], [0], [0], [1], [0, 0, 1, 1], [], []>} : vector<16x512xf32>, vector<512x4xf32>, vector<16x4xf32> -> vector<16x4xf32>
    %285 = arith.addf %272, %284 : vector<16x4xf32>
    %c1_111 = arith.constant 1 : index
    %c0_112 = arith.constant 0 : index
    %c512_113 = arith.constant 512 : index
    %286 = vector.load %arg3[%c1_111, %c0_112, %c512_113] : memref<4x16x2048xf32, #tpu.memory_space<vmem>>, vector<1x4x512xf32>
    %287 = vector.shape_cast %286 : vector<1x4x512xf32> to vector<4x512xf32>
    %c1_114 = arith.constant 1 : index
    %c8_115 = arith.constant 8 : index
    %c512_116 = arith.constant 512 : index
    %288 = vector.load %arg3[%c1_114, %c8_115, %c512_116] : memref<4x16x2048xf32, #tpu.memory_space<vmem>>, vector<1x1x512xf32>
    %289 = vector.shape_cast %288 : vector<1x1x512xf32> to vector<1x512xf32>
    %cst_117 = arith.constant dense<0.000000e+00> : vector<16x512xf32>
    %290 = tpu.matmul %270, %287, %cst_117 {dimension_numbers = #tpu.dot_dimension_numbers<[1], [0], [0], [1], [0, 0, 1, 1], [], []>} : vector<16x4xf32>, vector<4x512xf32>, vector<16x512xf32> -> vector<16x512xf32>
    %291 = vector.broadcast %289 : vector<1x512xf32> to vector<16x512xf32>
    %292 = arith.addf %290, %291 : vector<16x512xf32>
    %cst_118 = arith.constant 0.000000e+00 : f32
    %293 = vector.broadcast %cst_118 : f32 to vector<16x512xf32>
    %294 = arith.maximumf %292, %293 : vector<16x512xf32>
    %c1_119 = arith.constant 1 : index
    %c512_120 = arith.constant 512 : index
    %c0_121 = arith.constant 0 : index
    %295 = vector.load %arg4[%c1_119, %c512_120, %c0_121] : memref<4x2048x4xf32, #tpu.memory_space<vmem>>, vector<1x512x4xf32>
    %296 = vector.shape_cast %295 : vector<1x512x4xf32> to vector<512x4xf32>
    %cst_122 = arith.constant dense<0.000000e+00> : vector<16x4xf32>
    %297 = tpu.matmul %294, %296, %cst_122 {dimension_numbers = #tpu.dot_dimension_numbers<[1], [0], [0], [1], [0, 0, 1, 1], [], []>} : vector<16x512xf32>, vector<512x4xf32>, vector<16x4xf32> -> vector<16x4xf32>
    %298 = arith.addf %285, %297 : vector<16x4xf32>
    %c1_123 = arith.constant 1 : index
    %c0_124 = arith.constant 0 : index
    %c1024_125 = arith.constant 1024 : index
    %299 = vector.load %arg3[%c1_123, %c0_124, %c1024_125] : memref<4x16x2048xf32, #tpu.memory_space<vmem>>, vector<1x4x512xf32>
    %300 = vector.shape_cast %299 : vector<1x4x512xf32> to vector<4x512xf32>
    %c1_126 = arith.constant 1 : index
    %c8_127 = arith.constant 8 : index
    %c1024_128 = arith.constant 1024 : index
    %301 = vector.load %arg3[%c1_126, %c8_127, %c1024_128] : memref<4x16x2048xf32, #tpu.memory_space<vmem>>, vector<1x1x512xf32>
    %302 = vector.shape_cast %301 : vector<1x1x512xf32> to vector<1x512xf32>
    %cst_129 = arith.constant dense<0.000000e+00> : vector<16x512xf32>
    %303 = tpu.matmul %270, %300, %cst_129 {dimension_numbers = #tpu.dot_dimension_numbers<[1], [0], [0], [1], [0, 0, 1, 1], [], []>} : vector<16x4xf32>, vector<4x512xf32>, vector<16x512xf32> -> vector<16x512xf32>
    %304 = vector.broadcast %302 : vector<1x512xf32> to vector<16x512xf32>
    %305 = arith.addf %303, %304 : vector<16x512xf32>
    %cst_130 = arith.constant 0.000000e+00 : f32
    %306 = vector.broadcast %cst_130 : f32 to vector<16x512xf32>
    %307 = arith.maximumf %305, %306 : vector<16x512xf32>
    %c1_131 = arith.constant 1 : index
    %c1024_132 = arith.constant 1024 : index
    %c0_133 = arith.constant 0 : index
    %308 = vector.load %arg4[%c1_131, %c1024_132, %c0_133] : memref<4x2048x4xf32, #tpu.memory_space<vmem>>, vector<1x512x4xf32>
    %309 = vector.shape_cast %308 : vector<1x512x4xf32> to vector<512x4xf32>
    %cst_134 = arith.constant dense<0.000000e+00> : vector<16x4xf32>
    %310 = tpu.matmul %307, %309, %cst_134 {dimension_numbers = #tpu.dot_dimension_numbers<[1], [0], [0], [1], [0, 0, 1, 1], [], []>} : vector<16x512xf32>, vector<512x4xf32>, vector<16x4xf32> -> vector<16x4xf32>
    %311 = arith.addf %298, %310 : vector<16x4xf32>
    %c1_135 = arith.constant 1 : index
    %c0_136 = arith.constant 0 : index
    %c1536_137 = arith.constant 1536 : index
    %312 = vector.load %arg3[%c1_135, %c0_136, %c1536_137] : memref<4x16x2048xf32, #tpu.memory_space<vmem>>, vector<1x4x512xf32>
    %313 = vector.shape_cast %312 : vector<1x4x512xf32> to vector<4x512xf32>
    %c1_138 = arith.constant 1 : index
    %c8_139 = arith.constant 8 : index
    %c1536_140 = arith.constant 1536 : index
    %314 = vector.load %arg3[%c1_138, %c8_139, %c1536_140] : memref<4x16x2048xf32, #tpu.memory_space<vmem>>, vector<1x1x512xf32>
    %315 = vector.shape_cast %314 : vector<1x1x512xf32> to vector<1x512xf32>
    %cst_141 = arith.constant dense<0.000000e+00> : vector<16x512xf32>
    %316 = tpu.matmul %270, %313, %cst_141 {dimension_numbers = #tpu.dot_dimension_numbers<[1], [0], [0], [1], [0, 0, 1, 1], [], []>} : vector<16x4xf32>, vector<4x512xf32>, vector<16x512xf32> -> vector<16x512xf32>
    %317 = vector.broadcast %315 : vector<1x512xf32> to vector<16x512xf32>
    %318 = arith.addf %316, %317 : vector<16x512xf32>
    %cst_142 = arith.constant 0.000000e+00 : f32
    %319 = vector.broadcast %cst_142 : f32 to vector<16x512xf32>
    %320 = arith.maximumf %318, %319 : vector<16x512xf32>
    %c1_143 = arith.constant 1 : index
    %c1536_144 = arith.constant 1536 : index
    %c0_145 = arith.constant 0 : index
    %321 = vector.load %arg4[%c1_143, %c1536_144, %c0_145] : memref<4x2048x4xf32, #tpu.memory_space<vmem>>, vector<1x512x4xf32>
    %322 = vector.shape_cast %321 : vector<1x512x4xf32> to vector<512x4xf32>
    %cst_146 = arith.constant dense<0.000000e+00> : vector<16x4xf32>
    %323 = tpu.matmul %320, %322, %cst_146 {dimension_numbers = #tpu.dot_dimension_numbers<[1], [0], [0], [1], [0, 0, 1, 1], [], []>} : vector<16x512xf32>, vector<512x4xf32>, vector<16x4xf32> -> vector<16x4xf32>
    %324 = arith.addf %311, %323 : vector<16x4xf32>
    %325 = vector.broadcast %271 : vector<1x4xf32> to vector<16x4xf32>
    %326 = arith.addf %324, %325 : vector<16x4xf32>
    %327 = arith.addf %270, %326 : vector<16x4xf32>
    %c144 = arith.constant 144 : index
    %c0_147 = arith.constant 0 : index
    %328 = vector.load %arg2[%c144, %c0_147] : memref<472x16xf32, #tpu.memory_space<vmem>>, vector<1x4xf32>
    %c152 = arith.constant 152 : index
    %c0_148 = arith.constant 0 : index
    %329 = vector.load %arg2[%c152, %c0_148] : memref<472x16xf32, #tpu.memory_space<vmem>>, vector<1x4xf32>
    %cst_149 = arith.constant dense<0.000000e+00> : vector<16xf32>
    %330 = vector.multi_reduction <add>, %327, %cst_149 [1] : vector<16x4xf32> to vector<16xf32>
    %331 = vector.shape_cast %330 : vector<16xf32> to vector<16x1xf32>
    %cst_150 = arith.constant 4.000000e+00 : f32
    %332 = vector.broadcast %cst_150 : f32 to vector<16x1xf32>
    %333 = arith.divf %331, %332 : vector<16x1xf32>
    %334 = vector.broadcast %333 : vector<16x1xf32> to vector<16x4xf32>
    %335 = arith.subf %327, %334 : vector<16x4xf32>
    %336 = arith.mulf %335, %335 : vector<16x4xf32>
    %cst_151 = arith.constant dense<0.000000e+00> : vector<16xf32>
    %337 = vector.multi_reduction <add>, %336, %cst_151 [1] : vector<16x4xf32> to vector<16xf32>
    %338 = vector.shape_cast %337 : vector<16xf32> to vector<16x1xf32>
    %cst_152 = arith.constant 4.000000e+00 : f32
    %339 = vector.broadcast %cst_152 : f32 to vector<16x1xf32>
    %340 = arith.divf %338, %339 : vector<16x1xf32>
    %341 = vector.broadcast %333 : vector<16x1xf32> to vector<16x4xf32>
    %342 = arith.subf %327, %341 : vector<16x4xf32>
    %cst_153 = arith.constant 9.99999974E-6 : f32
    %343 = vector.broadcast %cst_153 : f32 to vector<16x1xf32>
    %344 = arith.addf %340, %343 : vector<16x1xf32>
    %345 = math.rsqrt %344 : vector<16x1xf32>
    %346 = vector.broadcast %345 : vector<16x1xf32> to vector<16x4xf32>
    %347 = arith.mulf %342, %346 : vector<16x4xf32>
    %348 = vector.broadcast %328 : vector<1x4xf32> to vector<16x4xf32>
    %349 = arith.mulf %347, %348 : vector<16x4xf32>
    %350 = vector.broadcast %329 : vector<1x4xf32> to vector<16x4xf32>
    %351 = arith.addf %349, %350 : vector<16x4xf32>
    %c160 = arith.constant 160 : index
    %c0_154 = arith.constant 0 : index
    %352 = vector.load %arg2[%c160, %c0_154] : memref<472x16xf32, #tpu.memory_space<vmem>>, vector<4x12xf32>
    %c168 = arith.constant 168 : index
    %c0_155 = arith.constant 0 : index
    %353 = vector.load %arg2[%c168, %c0_155] : memref<472x16xf32, #tpu.memory_space<vmem>>, vector<1x12xf32>
    %cst_156 = arith.constant dense<0.000000e+00> : vector<16x12xf32>
    %354 = tpu.matmul %7, %352, %cst_156 {dimension_numbers = #tpu.dot_dimension_numbers<[1], [0], [0], [1], [0, 0, 1, 1], [], []>} : vector<16x4xf32>, vector<4x12xf32>, vector<16x12xf32> -> vector<16x12xf32>
    %355 = vector.broadcast %353 : vector<1x12xf32> to vector<16x12xf32>
    %356 = arith.addf %354, %355 : vector<16x12xf32>
    %357 = vector.extract_strided_slice %356 {offsets = [0, 0], sizes = [16, 4], strides = [1, 1]} : vector<16x12xf32> to vector<16x4xf32>
    %358 = vector.extract_strided_slice %356 {offsets = [0, 4], sizes = [16, 4], strides = [1, 1]} : vector<16x12xf32> to vector<16x4xf32>
    %359 = vector.extract_strided_slice %356 {offsets = [0, 8], sizes = [16, 4], strides = [1, 1]} : vector<16x12xf32> to vector<16x4xf32>
    %360 = vector.extract_strided_slice %357 {offsets = [0, 0], sizes = [8, 4], strides = [1, 1]} : vector<16x4xf32> to vector<8x4xf32>
    %361 = vector.extract_strided_slice %357 {offsets = [8, 0], sizes = [8, 4], strides = [1, 1]} : vector<16x4xf32> to vector<8x4xf32>
    %362 = vector.extract_strided_slice %358 {offsets = [0, 0], sizes = [8, 4], strides = [1, 1]} : vector<16x4xf32> to vector<8x4xf32>
    %363 = vector.extract_strided_slice %358 {offsets = [8, 0], sizes = [8, 4], strides = [1, 1]} : vector<16x4xf32> to vector<8x4xf32>
    %364 = vector.extract_strided_slice %359 {offsets = [0, 0], sizes = [8, 4], strides = [1, 1]} : vector<16x4xf32> to vector<8x4xf32>
    %365 = vector.extract_strided_slice %359 {offsets = [8, 0], sizes = [8, 4], strides = [1, 1]} : vector<16x4xf32> to vector<8x4xf32>
    %366 = arith.mulf %360, %362 : vector<8x4xf32>
    %cst_157 = arith.constant dense<0.000000e+00> : vector<8xf32>
    %367 = vector.multi_reduction <add>, %366, %cst_157 [1] : vector<8x4xf32> to vector<8xf32>
    %368 = vector.shape_cast %367 : vector<8xf32> to vector<8x1xf32>
    %cst_158 = arith.constant 5.000000e-01 : f32
    %369 = vector.broadcast %cst_158 : f32 to vector<8x1xf32>
    %370 = arith.mulf %368, %369 : vector<8x1xf32>
    %371 = arith.mulf %360, %363 : vector<8x4xf32>
    %cst_159 = arith.constant dense<0.000000e+00> : vector<8xf32>
    %372 = vector.multi_reduction <add>, %371, %cst_159 [1] : vector<8x4xf32> to vector<8xf32>
    %373 = vector.shape_cast %372 : vector<8xf32> to vector<8x1xf32>
    %cst_160 = arith.constant 5.000000e-01 : f32
    %374 = vector.broadcast %cst_160 : f32 to vector<8x1xf32>
    %375 = arith.mulf %373, %374 : vector<8x1xf32>
    %376 = arith.maximumf %370, %375 : vector<8x1xf32>
    %377 = arith.subf %370, %376 : vector<8x1xf32>
    %378 = math.exp %377 : vector<8x1xf32>
    %379 = arith.subf %375, %376 : vector<8x1xf32>
    %380 = math.exp %379 : vector<8x1xf32>
    %381 = arith.addf %378, %380 : vector<8x1xf32>
    %382 = vector.broadcast %378 : vector<8x1xf32> to vector<8x4xf32>
    %383 = arith.mulf %382, %364 : vector<8x4xf32>
    %384 = vector.broadcast %380 : vector<8x1xf32> to vector<8x4xf32>
    %385 = arith.mulf %384, %365 : vector<8x4xf32>
    %386 = arith.addf %383, %385 : vector<8x4xf32>
    %387 = vector.broadcast %381 : vector<8x1xf32> to vector<8x4xf32>
    %388 = arith.divf %386, %387 : vector<8x4xf32>
    %389 = arith.mulf %361, %362 : vector<8x4xf32>
    %cst_161 = arith.constant dense<0.000000e+00> : vector<8xf32>
    %390 = vector.multi_reduction <add>, %389, %cst_161 [1] : vector<8x4xf32> to vector<8xf32>
    %391 = vector.shape_cast %390 : vector<8xf32> to vector<8x1xf32>
    %cst_162 = arith.constant 5.000000e-01 : f32
    %392 = vector.broadcast %cst_162 : f32 to vector<8x1xf32>
    %393 = arith.mulf %391, %392 : vector<8x1xf32>
    %394 = arith.mulf %361, %363 : vector<8x4xf32>
    %cst_163 = arith.constant dense<0.000000e+00> : vector<8xf32>
    %395 = vector.multi_reduction <add>, %394, %cst_163 [1] : vector<8x4xf32> to vector<8xf32>
    %396 = vector.shape_cast %395 : vector<8xf32> to vector<8x1xf32>
    %cst_164 = arith.constant 5.000000e-01 : f32
    %397 = vector.broadcast %cst_164 : f32 to vector<8x1xf32>
    %398 = arith.mulf %396, %397 : vector<8x1xf32>
    %399 = arith.maximumf %393, %398 : vector<8x1xf32>
    %400 = arith.subf %393, %399 : vector<8x1xf32>
    %401 = math.exp %400 : vector<8x1xf32>
    %402 = arith.subf %398, %399 : vector<8x1xf32>
    %403 = math.exp %402 : vector<8x1xf32>
    %404 = arith.addf %401, %403 : vector<8x1xf32>
    %405 = vector.broadcast %401 : vector<8x1xf32> to vector<8x4xf32>
    %406 = arith.mulf %405, %364 : vector<8x4xf32>
    %407 = vector.broadcast %403 : vector<8x1xf32> to vector<8x4xf32>
    %408 = arith.mulf %407, %365 : vector<8x4xf32>
    %409 = arith.addf %406, %408 : vector<8x4xf32>
    %410 = vector.broadcast %404 : vector<8x1xf32> to vector<8x4xf32>
    %411 = arith.divf %409, %410 : vector<8x4xf32>
    %412 = tpu.concatenate %388, %411 in 0 : vector<8x4xf32>, vector<8x4xf32> -> vector<16x4xf32>
    %c176 = arith.constant 176 : index
    %c0_165 = arith.constant 0 : index
    %413 = vector.load %arg2[%c176, %c0_165] : memref<472x16xf32, #tpu.memory_space<vmem>>, vector<4x4xf32>
    %c184 = arith.constant 184 : index
    %c0_166 = arith.constant 0 : index
    %414 = vector.load %arg2[%c184, %c0_166] : memref<472x16xf32, #tpu.memory_space<vmem>>, vector<1x4xf32>
    %cst_167 = arith.constant dense<0.000000e+00> : vector<16x4xf32>
    %415 = tpu.matmul %412, %413, %cst_167 {dimension_numbers = #tpu.dot_dimension_numbers<[1], [0], [0], [1], [0, 0, 1, 1], [], []>} : vector<16x4xf32>, vector<4x4xf32>, vector<16x4xf32> -> vector<16x4xf32>
    %416 = vector.broadcast %414 : vector<1x4xf32> to vector<16x4xf32>
    %417 = arith.addf %415, %416 : vector<16x4xf32>
    %418 = arith.addf %7, %417 : vector<16x4xf32>
    %c192 = arith.constant 192 : index
    %c0_168 = arith.constant 0 : index
    %419 = vector.load %arg2[%c192, %c0_168] : memref<472x16xf32, #tpu.memory_space<vmem>>, vector<1x4xf32>
    %c200 = arith.constant 200 : index
    %c0_169 = arith.constant 0 : index
    %420 = vector.load %arg2[%c200, %c0_169] : memref<472x16xf32, #tpu.memory_space<vmem>>, vector<1x4xf32>
    %cst_170 = arith.constant dense<0.000000e+00> : vector<16xf32>
    %421 = vector.multi_reduction <add>, %418, %cst_170 [1] : vector<16x4xf32> to vector<16xf32>
    %422 = vector.shape_cast %421 : vector<16xf32> to vector<16x1xf32>
    %cst_171 = arith.constant 4.000000e+00 : f32
    %423 = vector.broadcast %cst_171 : f32 to vector<16x1xf32>
    %424 = arith.divf %422, %423 : vector<16x1xf32>
    %425 = vector.broadcast %424 : vector<16x1xf32> to vector<16x4xf32>
    %426 = arith.subf %418, %425 : vector<16x4xf32>
    %427 = arith.mulf %426, %426 : vector<16x4xf32>
    %cst_172 = arith.constant dense<0.000000e+00> : vector<16xf32>
    %428 = vector.multi_reduction <add>, %427, %cst_172 [1] : vector<16x4xf32> to vector<16xf32>
    %429 = vector.shape_cast %428 : vector<16xf32> to vector<16x1xf32>
    %cst_173 = arith.constant 4.000000e+00 : f32
    %430 = vector.broadcast %cst_173 : f32 to vector<16x1xf32>
    %431 = arith.divf %429, %430 : vector<16x1xf32>
    %432 = vector.broadcast %424 : vector<16x1xf32> to vector<16x4xf32>
    %433 = arith.subf %418, %432 : vector<16x4xf32>
    %cst_174 = arith.constant 9.99999974E-6 : f32
    %434 = vector.broadcast %cst_174 : f32 to vector<16x1xf32>
    %435 = arith.addf %431, %434 : vector<16x1xf32>
    %436 = math.rsqrt %435 : vector<16x1xf32>
    %437 = vector.broadcast %436 : vector<16x1xf32> to vector<16x4xf32>
    %438 = arith.mulf %433, %437 : vector<16x4xf32>
    %439 = vector.broadcast %419 : vector<1x4xf32> to vector<16x4xf32>
    %440 = arith.mulf %438, %439 : vector<16x4xf32>
    %441 = vector.broadcast %420 : vector<1x4xf32> to vector<16x4xf32>
    %442 = arith.addf %440, %441 : vector<16x4xf32>
    %c208 = arith.constant 208 : index
    %c0_175 = arith.constant 0 : index
    %443 = vector.load %arg2[%c208, %c0_175] : memref<472x16xf32, #tpu.memory_space<vmem>>, vector<4x4xf32>
    %c216 = arith.constant 216 : index
    %c0_176 = arith.constant 0 : index
    %444 = vector.load %arg2[%c216, %c0_176] : memref<472x16xf32, #tpu.memory_space<vmem>>, vector<1x4xf32>
    %cst_177 = arith.constant dense<0.000000e+00> : vector<16x4xf32>
    %445 = tpu.matmul %442, %443, %cst_177 {dimension_numbers = #tpu.dot_dimension_numbers<[1], [0], [0], [1], [0, 0, 1, 1], [], []>} : vector<16x4xf32>, vector<4x4xf32>, vector<16x4xf32> -> vector<16x4xf32>
    %446 = vector.broadcast %444 : vector<1x4xf32> to vector<16x4xf32>
    %447 = arith.addf %445, %446 : vector<16x4xf32>
    %c224 = arith.constant 224 : index
    %c0_178 = arith.constant 0 : index
    %448 = vector.load %arg2[%c224, %c0_178] : memref<472x16xf32, #tpu.memory_space<vmem>>, vector<4x8xf32>
    %c232 = arith.constant 232 : index
    %c0_179 = arith.constant 0 : index
    %449 = vector.load %arg2[%c232, %c0_179] : memref<472x16xf32, #tpu.memory_space<vmem>>, vector<1x8xf32>
    %cst_180 = arith.constant dense<0.000000e+00> : vector<16x8xf32>
    %450 = tpu.matmul %351, %448, %cst_180 {dimension_numbers = #tpu.dot_dimension_numbers<[1], [0], [0], [1], [0, 0, 1, 1], [], []>} : vector<16x4xf32>, vector<4x8xf32>, vector<16x8xf32> -> vector<16x8xf32>
    %451 = vector.broadcast %449 : vector<1x8xf32> to vector<16x8xf32>
    %452 = arith.addf %450, %451 : vector<16x8xf32>
    %453 = vector.extract_strided_slice %452 {offsets = [0, 0], sizes = [16, 4], strides = [1, 1]} : vector<16x8xf32> to vector<16x4xf32>
    %454 = vector.extract_strided_slice %452 {offsets = [0, 4], sizes = [16, 4], strides = [1, 1]} : vector<16x8xf32> to vector<16x4xf32>
    %455 = vector.extract_strided_slice %447 {offsets = [0, 0], sizes = [8, 4], strides = [1, 1]} : vector<16x4xf32> to vector<8x4xf32>
    %456 = vector.extract_strided_slice %447 {offsets = [8, 0], sizes = [8, 4], strides = [1, 1]} : vector<16x4xf32> to vector<8x4xf32>
    %457 = vector.extract_strided_slice %453 {offsets = [0, 0], sizes = [8, 4], strides = [1, 1]} : vector<16x4xf32> to vector<8x4xf32>
    %458 = vector.extract_strided_slice %453 {offsets = [8, 0], sizes = [8, 4], strides = [1, 1]} : vector<16x4xf32> to vector<8x4xf32>
    %459 = vector.extract_strided_slice %454 {offsets = [0, 0], sizes = [8, 4], strides = [1, 1]} : vector<16x4xf32> to vector<8x4xf32>
    %460 = vector.extract_strided_slice %454 {offsets = [8, 0], sizes = [8, 4], strides = [1, 1]} : vector<16x4xf32> to vector<8x4xf32>
    %461 = arith.mulf %455, %457 : vector<8x4xf32>
    %cst_181 = arith.constant dense<0.000000e+00> : vector<8xf32>
    %462 = vector.multi_reduction <add>, %461, %cst_181 [1] : vector<8x4xf32> to vector<8xf32>
    %463 = vector.shape_cast %462 : vector<8xf32> to vector<8x1xf32>
    %cst_182 = arith.constant 5.000000e-01 : f32
    %464 = vector.broadcast %cst_182 : f32 to vector<8x1xf32>
    %465 = arith.mulf %463, %464 : vector<8x1xf32>
    %466 = arith.mulf %455, %458 : vector<8x4xf32>
    %cst_183 = arith.constant dense<0.000000e+00> : vector<8xf32>
    %467 = vector.multi_reduction <add>, %466, %cst_183 [1] : vector<8x4xf32> to vector<8xf32>
    %468 = vector.shape_cast %467 : vector<8xf32> to vector<8x1xf32>
    %cst_184 = arith.constant 5.000000e-01 : f32
    %469 = vector.broadcast %cst_184 : f32 to vector<8x1xf32>
    %470 = arith.mulf %468, %469 : vector<8x1xf32>
    %471 = arith.maximumf %465, %470 : vector<8x1xf32>
    %472 = arith.subf %465, %471 : vector<8x1xf32>
    %473 = math.exp %472 : vector<8x1xf32>
    %474 = arith.subf %470, %471 : vector<8x1xf32>
    %475 = math.exp %474 : vector<8x1xf32>
    %476 = arith.addf %473, %475 : vector<8x1xf32>
    %477 = vector.broadcast %473 : vector<8x1xf32> to vector<8x4xf32>
    %478 = arith.mulf %477, %459 : vector<8x4xf32>
    %479 = vector.broadcast %475 : vector<8x1xf32> to vector<8x4xf32>
    %480 = arith.mulf %479, %460 : vector<8x4xf32>
    %481 = arith.addf %478, %480 : vector<8x4xf32>
    %482 = vector.broadcast %476 : vector<8x1xf32> to vector<8x4xf32>
    %483 = arith.divf %481, %482 : vector<8x4xf32>
    %484 = arith.mulf %456, %457 : vector<8x4xf32>
    %cst_185 = arith.constant dense<0.000000e+00> : vector<8xf32>
    %485 = vector.multi_reduction <add>, %484, %cst_185 [1] : vector<8x4xf32> to vector<8xf32>
    %486 = vector.shape_cast %485 : vector<8xf32> to vector<8x1xf32>
    %cst_186 = arith.constant 5.000000e-01 : f32
    %487 = vector.broadcast %cst_186 : f32 to vector<8x1xf32>
    %488 = arith.mulf %486, %487 : vector<8x1xf32>
    %489 = arith.mulf %456, %458 : vector<8x4xf32>
    %cst_187 = arith.constant dense<0.000000e+00> : vector<8xf32>
    %490 = vector.multi_reduction <add>, %489, %cst_187 [1] : vector<8x4xf32> to vector<8xf32>
    %491 = vector.shape_cast %490 : vector<8xf32> to vector<8x1xf32>
    %cst_188 = arith.constant 5.000000e-01 : f32
    %492 = vector.broadcast %cst_188 : f32 to vector<8x1xf32>
    %493 = arith.mulf %491, %492 : vector<8x1xf32>
    %494 = arith.maximumf %488, %493 : vector<8x1xf32>
    %495 = arith.subf %488, %494 : vector<8x1xf32>
    %496 = math.exp %495 : vector<8x1xf32>
    %497 = arith.subf %493, %494 : vector<8x1xf32>
    %498 = math.exp %497 : vector<8x1xf32>
    %499 = arith.addf %496, %498 : vector<8x1xf32>
    %500 = vector.broadcast %496 : vector<8x1xf32> to vector<8x4xf32>
    %501 = arith.mulf %500, %459 : vector<8x4xf32>
    %502 = vector.broadcast %498 : vector<8x1xf32> to vector<8x4xf32>
    %503 = arith.mulf %502, %460 : vector<8x4xf32>
    %504 = arith.addf %501, %503 : vector<8x4xf32>
    %505 = vector.broadcast %499 : vector<8x1xf32> to vector<8x4xf32>
    %506 = arith.divf %504, %505 : vector<8x4xf32>
    %507 = tpu.concatenate %483, %506 in 0 : vector<8x4xf32>, vector<8x4xf32> -> vector<16x4xf32>
    %c240 = arith.constant 240 : index
    %c0_189 = arith.constant 0 : index
    %508 = vector.load %arg2[%c240, %c0_189] : memref<472x16xf32, #tpu.memory_space<vmem>>, vector<4x4xf32>
    %c248 = arith.constant 248 : index
    %c0_190 = arith.constant 0 : index
    %509 = vector.load %arg2[%c248, %c0_190] : memref<472x16xf32, #tpu.memory_space<vmem>>, vector<1x4xf32>
    %cst_191 = arith.constant dense<0.000000e+00> : vector<16x4xf32>
    %510 = tpu.matmul %507, %508, %cst_191 {dimension_numbers = #tpu.dot_dimension_numbers<[1], [0], [0], [1], [0, 0, 1, 1], [], []>} : vector<16x4xf32>, vector<4x4xf32>, vector<16x4xf32> -> vector<16x4xf32>
    %511 = vector.broadcast %509 : vector<1x4xf32> to vector<16x4xf32>
    %512 = arith.addf %510, %511 : vector<16x4xf32>
    %513 = arith.addf %442, %512 : vector<16x4xf32>
    %c256 = arith.constant 256 : index
    %c0_192 = arith.constant 0 : index
    %514 = vector.load %arg2[%c256, %c0_192] : memref<472x16xf32, #tpu.memory_space<vmem>>, vector<1x4xf32>
    %c264 = arith.constant 264 : index
    %c0_193 = arith.constant 0 : index
    %515 = vector.load %arg2[%c264, %c0_193] : memref<472x16xf32, #tpu.memory_space<vmem>>, vector<1x4xf32>
    %cst_194 = arith.constant dense<0.000000e+00> : vector<16xf32>
    %516 = vector.multi_reduction <add>, %513, %cst_194 [1] : vector<16x4xf32> to vector<16xf32>
    %517 = vector.shape_cast %516 : vector<16xf32> to vector<16x1xf32>
    %cst_195 = arith.constant 4.000000e+00 : f32
    %518 = vector.broadcast %cst_195 : f32 to vector<16x1xf32>
    %519 = arith.divf %517, %518 : vector<16x1xf32>
    %520 = vector.broadcast %519 : vector<16x1xf32> to vector<16x4xf32>
    %521 = arith.subf %513, %520 : vector<16x4xf32>
    %522 = arith.mulf %521, %521 : vector<16x4xf32>
    %cst_196 = arith.constant dense<0.000000e+00> : vector<16xf32>
    %523 = vector.multi_reduction <add>, %522, %cst_196 [1] : vector<16x4xf32> to vector<16xf32>
    %524 = vector.shape_cast %523 : vector<16xf32> to vector<16x1xf32>
    %cst_197 = arith.constant 4.000000e+00 : f32
    %525 = vector.broadcast %cst_197 : f32 to vector<16x1xf32>
    %526 = arith.divf %524, %525 : vector<16x1xf32>
    %527 = vector.broadcast %519 : vector<16x1xf32> to vector<16x4xf32>
    %528 = arith.subf %513, %527 : vector<16x4xf32>
    %cst_198 = arith.constant 9.99999974E-6 : f32
    %529 = vector.broadcast %cst_198 : f32 to vector<16x1xf32>
    %530 = arith.addf %526, %529 : vector<16x1xf32>
    %531 = math.rsqrt %530 : vector<16x1xf32>
    %532 = vector.broadcast %531 : vector<16x1xf32> to vector<16x4xf32>
    %533 = arith.mulf %528, %532 : vector<16x4xf32>
    %534 = vector.broadcast %514 : vector<1x4xf32> to vector<16x4xf32>
    %535 = arith.mulf %533, %534 : vector<16x4xf32>
    %536 = vector.broadcast %515 : vector<1x4xf32> to vector<16x4xf32>
    %537 = arith.addf %535, %536 : vector<16x4xf32>
    %c272 = arith.constant 272 : index
    %c0_199 = arith.constant 0 : index
    %538 = vector.load %arg2[%c272, %c0_199] : memref<472x16xf32, #tpu.memory_space<vmem>>, vector<1x4xf32>
    %cst_200 = arith.constant 0.000000e+00 : f32
    %539 = vector.broadcast %cst_200 : f32 to vector<16x4xf32>
    %c2 = arith.constant 2 : index
    %c0_201 = arith.constant 0 : index
    %c0_202 = arith.constant 0 : index
    %540 = vector.load %arg3[%c2, %c0_201, %c0_202] : memref<4x16x2048xf32, #tpu.memory_space<vmem>>, vector<1x4x512xf32>
    %541 = vector.shape_cast %540 : vector<1x4x512xf32> to vector<4x512xf32>
    %c2_203 = arith.constant 2 : index
    %c8_204 = arith.constant 8 : index
    %c0_205 = arith.constant 0 : index
    %542 = vector.load %arg3[%c2_203, %c8_204, %c0_205] : memref<4x16x2048xf32, #tpu.memory_space<vmem>>, vector<1x1x512xf32>
    %543 = vector.shape_cast %542 : vector<1x1x512xf32> to vector<1x512xf32>
    %cst_206 = arith.constant dense<0.000000e+00> : vector<16x512xf32>
    %544 = tpu.matmul %537, %541, %cst_206 {dimension_numbers = #tpu.dot_dimension_numbers<[1], [0], [0], [1], [0, 0, 1, 1], [], []>} : vector<16x4xf32>, vector<4x512xf32>, vector<16x512xf32> -> vector<16x512xf32>
    %545 = vector.broadcast %543 : vector<1x512xf32> to vector<16x512xf32>
    %546 = arith.addf %544, %545 : vector<16x512xf32>
    %cst_207 = arith.constant 0.000000e+00 : f32
    %547 = vector.broadcast %cst_207 : f32 to vector<16x512xf32>
    %548 = arith.maximumf %546, %547 : vector<16x512xf32>
    %c2_208 = arith.constant 2 : index
    %c0_209 = arith.constant 0 : index
    %c0_210 = arith.constant 0 : index
    %549 = vector.load %arg4[%c2_208, %c0_209, %c0_210] : memref<4x2048x4xf32, #tpu.memory_space<vmem>>, vector<1x512x4xf32>
    %550 = vector.shape_cast %549 : vector<1x512x4xf32> to vector<512x4xf32>
    %cst_211 = arith.constant dense<0.000000e+00> : vector<16x4xf32>
    %551 = tpu.matmul %548, %550, %cst_211 {dimension_numbers = #tpu.dot_dimension_numbers<[1], [0], [0], [1], [0, 0, 1, 1], [], []>} : vector<16x512xf32>, vector<512x4xf32>, vector<16x4xf32> -> vector<16x4xf32>
    %552 = arith.addf %539, %551 : vector<16x4xf32>
    %c2_212 = arith.constant 2 : index
    %c0_213 = arith.constant 0 : index
    %c512_214 = arith.constant 512 : index
    %553 = vector.load %arg3[%c2_212, %c0_213, %c512_214] : memref<4x16x2048xf32, #tpu.memory_space<vmem>>, vector<1x4x512xf32>
    %554 = vector.shape_cast %553 : vector<1x4x512xf32> to vector<4x512xf32>
    %c2_215 = arith.constant 2 : index
    %c8_216 = arith.constant 8 : index
    %c512_217 = arith.constant 512 : index
    %555 = vector.load %arg3[%c2_215, %c8_216, %c512_217] : memref<4x16x2048xf32, #tpu.memory_space<vmem>>, vector<1x1x512xf32>
    %556 = vector.shape_cast %555 : vector<1x1x512xf32> to vector<1x512xf32>
    %cst_218 = arith.constant dense<0.000000e+00> : vector<16x512xf32>
    %557 = tpu.matmul %537, %554, %cst_218 {dimension_numbers = #tpu.dot_dimension_numbers<[1], [0], [0], [1], [0, 0, 1, 1], [], []>} : vector<16x4xf32>, vector<4x512xf32>, vector<16x512xf32> -> vector<16x512xf32>
    %558 = vector.broadcast %556 : vector<1x512xf32> to vector<16x512xf32>
    %559 = arith.addf %557, %558 : vector<16x512xf32>
    %cst_219 = arith.constant 0.000000e+00 : f32
    %560 = vector.broadcast %cst_219 : f32 to vector<16x512xf32>
    %561 = arith.maximumf %559, %560 : vector<16x512xf32>
    %c2_220 = arith.constant 2 : index
    %c512_221 = arith.constant 512 : index
    %c0_222 = arith.constant 0 : index
    %562 = vector.load %arg4[%c2_220, %c512_221, %c0_222] : memref<4x2048x4xf32, #tpu.memory_space<vmem>>, vector<1x512x4xf32>
    %563 = vector.shape_cast %562 : vector<1x512x4xf32> to vector<512x4xf32>
    %cst_223 = arith.constant dense<0.000000e+00> : vector<16x4xf32>
    %564 = tpu.matmul %561, %563, %cst_223 {dimension_numbers = #tpu.dot_dimension_numbers<[1], [0], [0], [1], [0, 0, 1, 1], [], []>} : vector<16x512xf32>, vector<512x4xf32>, vector<16x4xf32> -> vector<16x4xf32>
    %565 = arith.addf %552, %564 : vector<16x4xf32>
    %c2_224 = arith.constant 2 : index
    %c0_225 = arith.constant 0 : index
    %c1024_226 = arith.constant 1024 : index
    %566 = vector.load %arg3[%c2_224, %c0_225, %c1024_226] : memref<4x16x2048xf32, #tpu.memory_space<vmem>>, vector<1x4x512xf32>
    %567 = vector.shape_cast %566 : vector<1x4x512xf32> to vector<4x512xf32>
    %c2_227 = arith.constant 2 : index
    %c8_228 = arith.constant 8 : index
    %c1024_229 = arith.constant 1024 : index
    %568 = vector.load %arg3[%c2_227, %c8_228, %c1024_229] : memref<4x16x2048xf32, #tpu.memory_space<vmem>>, vector<1x1x512xf32>
    %569 = vector.shape_cast %568 : vector<1x1x512xf32> to vector<1x512xf32>
    %cst_230 = arith.constant dense<0.000000e+00> : vector<16x512xf32>
    %570 = tpu.matmul %537, %567, %cst_230 {dimension_numbers = #tpu.dot_dimension_numbers<[1], [0], [0], [1], [0, 0, 1, 1], [], []>} : vector<16x4xf32>, vector<4x512xf32>, vector<16x512xf32> -> vector<16x512xf32>
    %571 = vector.broadcast %569 : vector<1x512xf32> to vector<16x512xf32>
    %572 = arith.addf %570, %571 : vector<16x512xf32>
    %cst_231 = arith.constant 0.000000e+00 : f32
    %573 = vector.broadcast %cst_231 : f32 to vector<16x512xf32>
    %574 = arith.maximumf %572, %573 : vector<16x512xf32>
    %c2_232 = arith.constant 2 : index
    %c1024_233 = arith.constant 1024 : index
    %c0_234 = arith.constant 0 : index
    %575 = vector.load %arg4[%c2_232, %c1024_233, %c0_234] : memref<4x2048x4xf32, #tpu.memory_space<vmem>>, vector<1x512x4xf32>
    %576 = vector.shape_cast %575 : vector<1x512x4xf32> to vector<512x4xf32>
    %cst_235 = arith.constant dense<0.000000e+00> : vector<16x4xf32>
    %577 = tpu.matmul %574, %576, %cst_235 {dimension_numbers = #tpu.dot_dimension_numbers<[1], [0], [0], [1], [0, 0, 1, 1], [], []>} : vector<16x512xf32>, vector<512x4xf32>, vector<16x4xf32> -> vector<16x4xf32>
    %578 = arith.addf %565, %577 : vector<16x4xf32>
    %c2_236 = arith.constant 2 : index
    %c0_237 = arith.constant 0 : index
    %c1536_238 = arith.constant 1536 : index
    %579 = vector.load %arg3[%c2_236, %c0_237, %c1536_238] : memref<4x16x2048xf32, #tpu.memory_space<vmem>>, vector<1x4x512xf32>
    %580 = vector.shape_cast %579 : vector<1x4x512xf32> to vector<4x512xf32>
    %c2_239 = arith.constant 2 : index
    %c8_240 = arith.constant 8 : index
    %c1536_241 = arith.constant 1536 : index
    %581 = vector.load %arg3[%c2_239, %c8_240, %c1536_241] : memref<4x16x2048xf32, #tpu.memory_space<vmem>>, vector<1x1x512xf32>
    %582 = vector.shape_cast %581 : vector<1x1x512xf32> to vector<1x512xf32>
    %cst_242 = arith.constant dense<0.000000e+00> : vector<16x512xf32>
    %583 = tpu.matmul %537, %580, %cst_242 {dimension_numbers = #tpu.dot_dimension_numbers<[1], [0], [0], [1], [0, 0, 1, 1], [], []>} : vector<16x4xf32>, vector<4x512xf32>, vector<16x512xf32> -> vector<16x512xf32>
    %584 = vector.broadcast %582 : vector<1x512xf32> to vector<16x512xf32>
    %585 = arith.addf %583, %584 : vector<16x512xf32>
    %cst_243 = arith.constant 0.000000e+00 : f32
    %586 = vector.broadcast %cst_243 : f32 to vector<16x512xf32>
    %587 = arith.maximumf %585, %586 : vector<16x512xf32>
    %c2_244 = arith.constant 2 : index
    %c1536_245 = arith.constant 1536 : index
    %c0_246 = arith.constant 0 : index
    %588 = vector.load %arg4[%c2_244, %c1536_245, %c0_246] : memref<4x2048x4xf32, #tpu.memory_space<vmem>>, vector<1x512x4xf32>
    %589 = vector.shape_cast %588 : vector<1x512x4xf32> to vector<512x4xf32>
    %cst_247 = arith.constant dense<0.000000e+00> : vector<16x4xf32>
    %590 = tpu.matmul %587, %589, %cst_247 {dimension_numbers = #tpu.dot_dimension_numbers<[1], [0], [0], [1], [0, 0, 1, 1], [], []>} : vector<16x512xf32>, vector<512x4xf32>, vector<16x4xf32> -> vector<16x4xf32>
    %591 = arith.addf %578, %590 : vector<16x4xf32>
    %592 = vector.broadcast %538 : vector<1x4xf32> to vector<16x4xf32>
    %593 = arith.addf %591, %592 : vector<16x4xf32>
    %594 = arith.addf %537, %593 : vector<16x4xf32>
    %c280 = arith.constant 280 : index
    %c0_248 = arith.constant 0 : index
    %595 = vector.load %arg2[%c280, %c0_248] : memref<472x16xf32, #tpu.memory_space<vmem>>, vector<1x4xf32>
    %c288 = arith.constant 288 : index
    %c0_249 = arith.constant 0 : index
    %596 = vector.load %arg2[%c288, %c0_249] : memref<472x16xf32, #tpu.memory_space<vmem>>, vector<1x4xf32>
    %cst_250 = arith.constant dense<0.000000e+00> : vector<16xf32>
    %597 = vector.multi_reduction <add>, %594, %cst_250 [1] : vector<16x4xf32> to vector<16xf32>
    %598 = vector.shape_cast %597 : vector<16xf32> to vector<16x1xf32>
    %cst_251 = arith.constant 4.000000e+00 : f32
    %599 = vector.broadcast %cst_251 : f32 to vector<16x1xf32>
    %600 = arith.divf %598, %599 : vector<16x1xf32>
    %601 = vector.broadcast %600 : vector<16x1xf32> to vector<16x4xf32>
    %602 = arith.subf %594, %601 : vector<16x4xf32>
    %603 = arith.mulf %602, %602 : vector<16x4xf32>
    %cst_252 = arith.constant dense<0.000000e+00> : vector<16xf32>
    %604 = vector.multi_reduction <add>, %603, %cst_252 [1] : vector<16x4xf32> to vector<16xf32>
    %605 = vector.shape_cast %604 : vector<16xf32> to vector<16x1xf32>
    %cst_253 = arith.constant 4.000000e+00 : f32
    %606 = vector.broadcast %cst_253 : f32 to vector<16x1xf32>
    %607 = arith.divf %605, %606 : vector<16x1xf32>
    %608 = vector.broadcast %600 : vector<16x1xf32> to vector<16x4xf32>
    %609 = arith.subf %594, %608 : vector<16x4xf32>
    %cst_254 = arith.constant 9.99999974E-6 : f32
    %610 = vector.broadcast %cst_254 : f32 to vector<16x1xf32>
    %611 = arith.addf %607, %610 : vector<16x1xf32>
    %612 = math.rsqrt %611 : vector<16x1xf32>
    %613 = vector.broadcast %612 : vector<16x1xf32> to vector<16x4xf32>
    %614 = arith.mulf %609, %613 : vector<16x4xf32>
    %615 = vector.broadcast %595 : vector<1x4xf32> to vector<16x4xf32>
    %616 = arith.mulf %614, %615 : vector<16x4xf32>
    %617 = vector.broadcast %596 : vector<1x4xf32> to vector<16x4xf32>
    %618 = arith.addf %616, %617 : vector<16x4xf32>
    %c296 = arith.constant 296 : index
    %c0_255 = arith.constant 0 : index
    %619 = vector.load %arg2[%c296, %c0_255] : memref<472x16xf32, #tpu.memory_space<vmem>>, vector<4x12xf32>
    %c304 = arith.constant 304 : index
    %c0_256 = arith.constant 0 : index
    %620 = vector.load %arg2[%c304, %c0_256] : memref<472x16xf32, #tpu.memory_space<vmem>>, vector<1x12xf32>
    %cst_257 = arith.constant dense<0.000000e+00> : vector<16x12xf32>
    %621 = tpu.matmul %618, %619, %cst_257 {dimension_numbers = #tpu.dot_dimension_numbers<[1], [0], [0], [1], [0, 0, 1, 1], [], []>} : vector<16x4xf32>, vector<4x12xf32>, vector<16x12xf32> -> vector<16x12xf32>
    %622 = vector.broadcast %620 : vector<1x12xf32> to vector<16x12xf32>
    %623 = arith.addf %621, %622 : vector<16x12xf32>
    %624 = vector.extract_strided_slice %623 {offsets = [0, 0], sizes = [16, 4], strides = [1, 1]} : vector<16x12xf32> to vector<16x4xf32>
    %625 = vector.extract_strided_slice %623 {offsets = [0, 4], sizes = [16, 4], strides = [1, 1]} : vector<16x12xf32> to vector<16x4xf32>
    %626 = vector.extract_strided_slice %623 {offsets = [0, 8], sizes = [16, 4], strides = [1, 1]} : vector<16x12xf32> to vector<16x4xf32>
    %627 = vector.extract_strided_slice %624 {offsets = [0, 0], sizes = [8, 4], strides = [1, 1]} : vector<16x4xf32> to vector<8x4xf32>
    %628 = vector.extract_strided_slice %624 {offsets = [8, 0], sizes = [8, 4], strides = [1, 1]} : vector<16x4xf32> to vector<8x4xf32>
    %629 = vector.extract_strided_slice %625 {offsets = [0, 0], sizes = [8, 4], strides = [1, 1]} : vector<16x4xf32> to vector<8x4xf32>
    %630 = vector.extract_strided_slice %625 {offsets = [8, 0], sizes = [8, 4], strides = [1, 1]} : vector<16x4xf32> to vector<8x4xf32>
    %631 = vector.extract_strided_slice %626 {offsets = [0, 0], sizes = [8, 4], strides = [1, 1]} : vector<16x4xf32> to vector<8x4xf32>
    %632 = vector.extract_strided_slice %626 {offsets = [8, 0], sizes = [8, 4], strides = [1, 1]} : vector<16x4xf32> to vector<8x4xf32>
    %633 = arith.mulf %627, %629 : vector<8x4xf32>
    %cst_258 = arith.constant dense<0.000000e+00> : vector<8xf32>
    %634 = vector.multi_reduction <add>, %633, %cst_258 [1] : vector<8x4xf32> to vector<8xf32>
    %635 = vector.shape_cast %634 : vector<8xf32> to vector<8x1xf32>
    %cst_259 = arith.constant 5.000000e-01 : f32
    %636 = vector.broadcast %cst_259 : f32 to vector<8x1xf32>
    %637 = arith.mulf %635, %636 : vector<8x1xf32>
    %638 = arith.mulf %627, %630 : vector<8x4xf32>
    %cst_260 = arith.constant dense<0.000000e+00> : vector<8xf32>
    %639 = vector.multi_reduction <add>, %638, %cst_260 [1] : vector<8x4xf32> to vector<8xf32>
    %640 = vector.shape_cast %639 : vector<8xf32> to vector<8x1xf32>
    %cst_261 = arith.constant 5.000000e-01 : f32
    %641 = vector.broadcast %cst_261 : f32 to vector<8x1xf32>
    %642 = arith.mulf %640, %641 : vector<8x1xf32>
    %643 = arith.maximumf %637, %642 : vector<8x1xf32>
    %644 = arith.subf %637, %643 : vector<8x1xf32>
    %645 = math.exp %644 : vector<8x1xf32>
    %646 = arith.subf %642, %643 : vector<8x1xf32>
    %647 = math.exp %646 : vector<8x1xf32>
    %648 = arith.addf %645, %647 : vector<8x1xf32>
    %649 = vector.broadcast %645 : vector<8x1xf32> to vector<8x4xf32>
    %650 = arith.mulf %649, %631 : vector<8x4xf32>
    %651 = vector.broadcast %647 : vector<8x1xf32> to vector<8x4xf32>
    %652 = arith.mulf %651, %632 : vector<8x4xf32>
    %653 = arith.addf %650, %652 : vector<8x4xf32>
    %654 = vector.broadcast %648 : vector<8x1xf32> to vector<8x4xf32>
    %655 = arith.divf %653, %654 : vector<8x4xf32>
    %656 = arith.mulf %628, %629 : vector<8x4xf32>
    %cst_262 = arith.constant dense<0.000000e+00> : vector<8xf32>
    %657 = vector.multi_reduction <add>, %656, %cst_262 [1] : vector<8x4xf32> to vector<8xf32>
    %658 = vector.shape_cast %657 : vector<8xf32> to vector<8x1xf32>
    %cst_263 = arith.constant 5.000000e-01 : f32
    %659 = vector.broadcast %cst_263 : f32 to vector<8x1xf32>
    %660 = arith.mulf %658, %659 : vector<8x1xf32>
    %661 = arith.mulf %628, %630 : vector<8x4xf32>
    %cst_264 = arith.constant dense<0.000000e+00> : vector<8xf32>
    %662 = vector.multi_reduction <add>, %661, %cst_264 [1] : vector<8x4xf32> to vector<8xf32>
    %663 = vector.shape_cast %662 : vector<8xf32> to vector<8x1xf32>
    %cst_265 = arith.constant 5.000000e-01 : f32
    %664 = vector.broadcast %cst_265 : f32 to vector<8x1xf32>
    %665 = arith.mulf %663, %664 : vector<8x1xf32>
    %666 = arith.maximumf %660, %665 : vector<8x1xf32>
    %667 = arith.subf %660, %666 : vector<8x1xf32>
    %668 = math.exp %667 : vector<8x1xf32>
    %669 = arith.subf %665, %666 : vector<8x1xf32>
    %670 = math.exp %669 : vector<8x1xf32>
    %671 = arith.addf %668, %670 : vector<8x1xf32>
    %672 = vector.broadcast %668 : vector<8x1xf32> to vector<8x4xf32>
    %673 = arith.mulf %672, %631 : vector<8x4xf32>
    %674 = vector.broadcast %670 : vector<8x1xf32> to vector<8x4xf32>
    %675 = arith.mulf %674, %632 : vector<8x4xf32>
    %676 = arith.addf %673, %675 : vector<8x4xf32>
    %677 = vector.broadcast %671 : vector<8x1xf32> to vector<8x4xf32>
    %678 = arith.divf %676, %677 : vector<8x4xf32>
    %679 = tpu.concatenate %655, %678 in 0 : vector<8x4xf32>, vector<8x4xf32> -> vector<16x4xf32>
    %c312 = arith.constant 312 : index
    %c0_266 = arith.constant 0 : index
    %680 = vector.load %arg2[%c312, %c0_266] : memref<472x16xf32, #tpu.memory_space<vmem>>, vector<4x4xf32>
    %c320 = arith.constant 320 : index
    %c0_267 = arith.constant 0 : index
    %681 = vector.load %arg2[%c320, %c0_267] : memref<472x16xf32, #tpu.memory_space<vmem>>, vector<1x4xf32>
    %cst_268 = arith.constant dense<0.000000e+00> : vector<16x4xf32>
    %682 = tpu.matmul %679, %680, %cst_268 {dimension_numbers = #tpu.dot_dimension_numbers<[1], [0], [0], [1], [0, 0, 1, 1], [], []>} : vector<16x4xf32>, vector<4x4xf32>, vector<16x4xf32> -> vector<16x4xf32>
    %683 = vector.broadcast %681 : vector<1x4xf32> to vector<16x4xf32>
    %684 = arith.addf %682, %683 : vector<16x4xf32>
    %685 = arith.addf %618, %684 : vector<16x4xf32>
    %c328 = arith.constant 328 : index
    %c0_269 = arith.constant 0 : index
    %686 = vector.load %arg2[%c328, %c0_269] : memref<472x16xf32, #tpu.memory_space<vmem>>, vector<1x4xf32>
    %c336 = arith.constant 336 : index
    %c0_270 = arith.constant 0 : index
    %687 = vector.load %arg2[%c336, %c0_270] : memref<472x16xf32, #tpu.memory_space<vmem>>, vector<1x4xf32>
    %cst_271 = arith.constant dense<0.000000e+00> : vector<16xf32>
    %688 = vector.multi_reduction <add>, %685, %cst_271 [1] : vector<16x4xf32> to vector<16xf32>
    %689 = vector.shape_cast %688 : vector<16xf32> to vector<16x1xf32>
    %cst_272 = arith.constant 4.000000e+00 : f32
    %690 = vector.broadcast %cst_272 : f32 to vector<16x1xf32>
    %691 = arith.divf %689, %690 : vector<16x1xf32>
    %692 = vector.broadcast %691 : vector<16x1xf32> to vector<16x4xf32>
    %693 = arith.subf %685, %692 : vector<16x4xf32>
    %694 = arith.mulf %693, %693 : vector<16x4xf32>
    %cst_273 = arith.constant dense<0.000000e+00> : vector<16xf32>
    %695 = vector.multi_reduction <add>, %694, %cst_273 [1] : vector<16x4xf32> to vector<16xf32>
    %696 = vector.shape_cast %695 : vector<16xf32> to vector<16x1xf32>
    %cst_274 = arith.constant 4.000000e+00 : f32
    %697 = vector.broadcast %cst_274 : f32 to vector<16x1xf32>
    %698 = arith.divf %696, %697 : vector<16x1xf32>
    %699 = vector.broadcast %691 : vector<16x1xf32> to vector<16x4xf32>
    %700 = arith.subf %685, %699 : vector<16x4xf32>
    %cst_275 = arith.constant 9.99999974E-6 : f32
    %701 = vector.broadcast %cst_275 : f32 to vector<16x1xf32>
    %702 = arith.addf %698, %701 : vector<16x1xf32>
    %703 = math.rsqrt %702 : vector<16x1xf32>
    %704 = vector.broadcast %703 : vector<16x1xf32> to vector<16x4xf32>
    %705 = arith.mulf %700, %704 : vector<16x4xf32>
    %706 = vector.broadcast %686 : vector<1x4xf32> to vector<16x4xf32>
    %707 = arith.mulf %705, %706 : vector<16x4xf32>
    %708 = vector.broadcast %687 : vector<1x4xf32> to vector<16x4xf32>
    %709 = arith.addf %707, %708 : vector<16x4xf32>
    %c344 = arith.constant 344 : index
    %c0_276 = arith.constant 0 : index
    %710 = vector.load %arg2[%c344, %c0_276] : memref<472x16xf32, #tpu.memory_space<vmem>>, vector<4x4xf32>
    %c352 = arith.constant 352 : index
    %c0_277 = arith.constant 0 : index
    %711 = vector.load %arg2[%c352, %c0_277] : memref<472x16xf32, #tpu.memory_space<vmem>>, vector<1x4xf32>
    %cst_278 = arith.constant dense<0.000000e+00> : vector<16x4xf32>
    %712 = tpu.matmul %709, %710, %cst_278 {dimension_numbers = #tpu.dot_dimension_numbers<[1], [0], [0], [1], [0, 0, 1, 1], [], []>} : vector<16x4xf32>, vector<4x4xf32>, vector<16x4xf32> -> vector<16x4xf32>
    %713 = vector.broadcast %711 : vector<1x4xf32> to vector<16x4xf32>
    %714 = arith.addf %712, %713 : vector<16x4xf32>
    %c360 = arith.constant 360 : index
    %c0_279 = arith.constant 0 : index
    %715 = vector.load %arg2[%c360, %c0_279] : memref<472x16xf32, #tpu.memory_space<vmem>>, vector<4x8xf32>
    %c368 = arith.constant 368 : index
    %c0_280 = arith.constant 0 : index
    %716 = vector.load %arg2[%c368, %c0_280] : memref<472x16xf32, #tpu.memory_space<vmem>>, vector<1x8xf32>
    %cst_281 = arith.constant dense<0.000000e+00> : vector<16x8xf32>
    %717 = tpu.matmul %351, %715, %cst_281 {dimension_numbers = #tpu.dot_dimension_numbers<[1], [0], [0], [1], [0, 0, 1, 1], [], []>} : vector<16x4xf32>, vector<4x8xf32>, vector<16x8xf32> -> vector<16x8xf32>
    %718 = vector.broadcast %716 : vector<1x8xf32> to vector<16x8xf32>
    %719 = arith.addf %717, %718 : vector<16x8xf32>
    %720 = vector.extract_strided_slice %719 {offsets = [0, 0], sizes = [16, 4], strides = [1, 1]} : vector<16x8xf32> to vector<16x4xf32>
    %721 = vector.extract_strided_slice %719 {offsets = [0, 4], sizes = [16, 4], strides = [1, 1]} : vector<16x8xf32> to vector<16x4xf32>
    %722 = vector.extract_strided_slice %714 {offsets = [0, 0], sizes = [8, 4], strides = [1, 1]} : vector<16x4xf32> to vector<8x4xf32>
    %723 = vector.extract_strided_slice %714 {offsets = [8, 0], sizes = [8, 4], strides = [1, 1]} : vector<16x4xf32> to vector<8x4xf32>
    %724 = vector.extract_strided_slice %720 {offsets = [0, 0], sizes = [8, 4], strides = [1, 1]} : vector<16x4xf32> to vector<8x4xf32>
    %725 = vector.extract_strided_slice %720 {offsets = [8, 0], sizes = [8, 4], strides = [1, 1]} : vector<16x4xf32> to vector<8x4xf32>
    %726 = vector.extract_strided_slice %721 {offsets = [0, 0], sizes = [8, 4], strides = [1, 1]} : vector<16x4xf32> to vector<8x4xf32>
    %727 = vector.extract_strided_slice %721 {offsets = [8, 0], sizes = [8, 4], strides = [1, 1]} : vector<16x4xf32> to vector<8x4xf32>
    %728 = arith.mulf %722, %724 : vector<8x4xf32>
    %cst_282 = arith.constant dense<0.000000e+00> : vector<8xf32>
    %729 = vector.multi_reduction <add>, %728, %cst_282 [1] : vector<8x4xf32> to vector<8xf32>
    %730 = vector.shape_cast %729 : vector<8xf32> to vector<8x1xf32>
    %cst_283 = arith.constant 5.000000e-01 : f32
    %731 = vector.broadcast %cst_283 : f32 to vector<8x1xf32>
    %732 = arith.mulf %730, %731 : vector<8x1xf32>
    %733 = arith.mulf %722, %725 : vector<8x4xf32>
    %cst_284 = arith.constant dense<0.000000e+00> : vector<8xf32>
    %734 = vector.multi_reduction <add>, %733, %cst_284 [1] : vector<8x4xf32> to vector<8xf32>
    %735 = vector.shape_cast %734 : vector<8xf32> to vector<8x1xf32>
    %cst_285 = arith.constant 5.000000e-01 : f32
    %736 = vector.broadcast %cst_285 : f32 to vector<8x1xf32>
    %737 = arith.mulf %735, %736 : vector<8x1xf32>
    %738 = arith.maximumf %732, %737 : vector<8x1xf32>
    %739 = arith.subf %732, %738 : vector<8x1xf32>
    %740 = math.exp %739 : vector<8x1xf32>
    %741 = arith.subf %737, %738 : vector<8x1xf32>
    %742 = math.exp %741 : vector<8x1xf32>
    %743 = arith.addf %740, %742 : vector<8x1xf32>
    %744 = vector.broadcast %740 : vector<8x1xf32> to vector<8x4xf32>
    %745 = arith.mulf %744, %726 : vector<8x4xf32>
    %746 = vector.broadcast %742 : vector<8x1xf32> to vector<8x4xf32>
    %747 = arith.mulf %746, %727 : vector<8x4xf32>
    %748 = arith.addf %745, %747 : vector<8x4xf32>
    %749 = vector.broadcast %743 : vector<8x1xf32> to vector<8x4xf32>
    %750 = arith.divf %748, %749 : vector<8x4xf32>
    %751 = arith.mulf %723, %724 : vector<8x4xf32>
    %cst_286 = arith.constant dense<0.000000e+00> : vector<8xf32>
    %752 = vector.multi_reduction <add>, %751, %cst_286 [1] : vector<8x4xf32> to vector<8xf32>
    %753 = vector.shape_cast %752 : vector<8xf32> to vector<8x1xf32>
    %cst_287 = arith.constant 5.000000e-01 : f32
    %754 = vector.broadcast %cst_287 : f32 to vector<8x1xf32>
    %755 = arith.mulf %753, %754 : vector<8x1xf32>
    %756 = arith.mulf %723, %725 : vector<8x4xf32>
    %cst_288 = arith.constant dense<0.000000e+00> : vector<8xf32>
    %757 = vector.multi_reduction <add>, %756, %cst_288 [1] : vector<8x4xf32> to vector<8xf32>
    %758 = vector.shape_cast %757 : vector<8xf32> to vector<8x1xf32>
    %cst_289 = arith.constant 5.000000e-01 : f32
    %759 = vector.broadcast %cst_289 : f32 to vector<8x1xf32>
    %760 = arith.mulf %758, %759 : vector<8x1xf32>
    %761 = arith.maximumf %755, %760 : vector<8x1xf32>
    %762 = arith.subf %755, %761 : vector<8x1xf32>
    %763 = math.exp %762 : vector<8x1xf32>
    %764 = arith.subf %760, %761 : vector<8x1xf32>
    %765 = math.exp %764 : vector<8x1xf32>
    %766 = arith.addf %763, %765 : vector<8x1xf32>
    %767 = vector.broadcast %763 : vector<8x1xf32> to vector<8x4xf32>
    %768 = arith.mulf %767, %726 : vector<8x4xf32>
    %769 = vector.broadcast %765 : vector<8x1xf32> to vector<8x4xf32>
    %770 = arith.mulf %769, %727 : vector<8x4xf32>
    %771 = arith.addf %768, %770 : vector<8x4xf32>
    %772 = vector.broadcast %766 : vector<8x1xf32> to vector<8x4xf32>
    %773 = arith.divf %771, %772 : vector<8x4xf32>
    %774 = tpu.concatenate %750, %773 in 0 : vector<8x4xf32>, vector<8x4xf32> -> vector<16x4xf32>
    %c376 = arith.constant 376 : index
    %c0_290 = arith.constant 0 : index
    %775 = vector.load %arg2[%c376, %c0_290] : memref<472x16xf32, #tpu.memory_space<vmem>>, vector<4x4xf32>
    %c384 = arith.constant 384 : index
    %c0_291 = arith.constant 0 : index
    %776 = vector.load %arg2[%c384, %c0_291] : memref<472x16xf32, #tpu.memory_space<vmem>>, vector<1x4xf32>
    %cst_292 = arith.constant dense<0.000000e+00> : vector<16x4xf32>
    %777 = tpu.matmul %774, %775, %cst_292 {dimension_numbers = #tpu.dot_dimension_numbers<[1], [0], [0], [1], [0, 0, 1, 1], [], []>} : vector<16x4xf32>, vector<4x4xf32>, vector<16x4xf32> -> vector<16x4xf32>
    %778 = vector.broadcast %776 : vector<1x4xf32> to vector<16x4xf32>
    %779 = arith.addf %777, %778 : vector<16x4xf32>
    %780 = arith.addf %709, %779 : vector<16x4xf32>
    %c392 = arith.constant 392 : index
    %c0_293 = arith.constant 0 : index
    %781 = vector.load %arg2[%c392, %c0_293] : memref<472x16xf32, #tpu.memory_space<vmem>>, vector<1x4xf32>
    %c400 = arith.constant 400 : index
    %c0_294 = arith.constant 0 : index
    %782 = vector.load %arg2[%c400, %c0_294] : memref<472x16xf32, #tpu.memory_space<vmem>>, vector<1x4xf32>
    %cst_295 = arith.constant dense<0.000000e+00> : vector<16xf32>
    %783 = vector.multi_reduction <add>, %780, %cst_295 [1] : vector<16x4xf32> to vector<16xf32>
    %784 = vector.shape_cast %783 : vector<16xf32> to vector<16x1xf32>
    %cst_296 = arith.constant 4.000000e+00 : f32
    %785 = vector.broadcast %cst_296 : f32 to vector<16x1xf32>
    %786 = arith.divf %784, %785 : vector<16x1xf32>
    %787 = vector.broadcast %786 : vector<16x1xf32> to vector<16x4xf32>
    %788 = arith.subf %780, %787 : vector<16x4xf32>
    %789 = arith.mulf %788, %788 : vector<16x4xf32>
    %cst_297 = arith.constant dense<0.000000e+00> : vector<16xf32>
    %790 = vector.multi_reduction <add>, %789, %cst_297 [1] : vector<16x4xf32> to vector<16xf32>
    %791 = vector.shape_cast %790 : vector<16xf32> to vector<16x1xf32>
    %cst_298 = arith.constant 4.000000e+00 : f32
    %792 = vector.broadcast %cst_298 : f32 to vector<16x1xf32>
    %793 = arith.divf %791, %792 : vector<16x1xf32>
    %794 = vector.broadcast %786 : vector<16x1xf32> to vector<16x4xf32>
    %795 = arith.subf %780, %794 : vector<16x4xf32>
    %cst_299 = arith.constant 9.99999974E-6 : f32
    %796 = vector.broadcast %cst_299 : f32 to vector<16x1xf32>
    %797 = arith.addf %793, %796 : vector<16x1xf32>
    %798 = math.rsqrt %797 : vector<16x1xf32>
    %799 = vector.broadcast %798 : vector<16x1xf32> to vector<16x4xf32>
    %800 = arith.mulf %795, %799 : vector<16x4xf32>
    %801 = vector.broadcast %781 : vector<1x4xf32> to vector<16x4xf32>
    %802 = arith.mulf %800, %801 : vector<16x4xf32>
    %803 = vector.broadcast %782 : vector<1x4xf32> to vector<16x4xf32>
    %804 = arith.addf %802, %803 : vector<16x4xf32>
    %c408 = arith.constant 408 : index
    %c0_300 = arith.constant 0 : index
    %805 = vector.load %arg2[%c408, %c0_300] : memref<472x16xf32, #tpu.memory_space<vmem>>, vector<1x4xf32>
    %cst_301 = arith.constant 0.000000e+00 : f32
    %806 = vector.broadcast %cst_301 : f32 to vector<16x4xf32>
    %c3 = arith.constant 3 : index
    %c0_302 = arith.constant 0 : index
    %c0_303 = arith.constant 0 : index
    %807 = vector.load %arg3[%c3, %c0_302, %c0_303] : memref<4x16x2048xf32, #tpu.memory_space<vmem>>, vector<1x4x512xf32>
    %808 = vector.shape_cast %807 : vector<1x4x512xf32> to vector<4x512xf32>
    %c3_304 = arith.constant 3 : index
    %c8_305 = arith.constant 8 : index
    %c0_306 = arith.constant 0 : index
    %809 = vector.load %arg3[%c3_304, %c8_305, %c0_306] : memref<4x16x2048xf32, #tpu.memory_space<vmem>>, vector<1x1x512xf32>
    %810 = vector.shape_cast %809 : vector<1x1x512xf32> to vector<1x512xf32>
    %cst_307 = arith.constant dense<0.000000e+00> : vector<16x512xf32>
    %811 = tpu.matmul %804, %808, %cst_307 {dimension_numbers = #tpu.dot_dimension_numbers<[1], [0], [0], [1], [0, 0, 1, 1], [], []>} : vector<16x4xf32>, vector<4x512xf32>, vector<16x512xf32> -> vector<16x512xf32>
    %812 = vector.broadcast %810 : vector<1x512xf32> to vector<16x512xf32>
    %813 = arith.addf %811, %812 : vector<16x512xf32>
    %cst_308 = arith.constant 0.000000e+00 : f32
    %814 = vector.broadcast %cst_308 : f32 to vector<16x512xf32>
    %815 = arith.maximumf %813, %814 : vector<16x512xf32>
    %c3_309 = arith.constant 3 : index
    %c0_310 = arith.constant 0 : index
    %c0_311 = arith.constant 0 : index
    %816 = vector.load %arg4[%c3_309, %c0_310, %c0_311] : memref<4x2048x4xf32, #tpu.memory_space<vmem>>, vector<1x512x4xf32>
    %817 = vector.shape_cast %816 : vector<1x512x4xf32> to vector<512x4xf32>
    %cst_312 = arith.constant dense<0.000000e+00> : vector<16x4xf32>
    %818 = tpu.matmul %815, %817, %cst_312 {dimension_numbers = #tpu.dot_dimension_numbers<[1], [0], [0], [1], [0, 0, 1, 1], [], []>} : vector<16x512xf32>, vector<512x4xf32>, vector<16x4xf32> -> vector<16x4xf32>
    %819 = arith.addf %806, %818 : vector<16x4xf32>
    %c3_313 = arith.constant 3 : index
    %c0_314 = arith.constant 0 : index
    %c512_315 = arith.constant 512 : index
    %820 = vector.load %arg3[%c3_313, %c0_314, %c512_315] : memref<4x16x2048xf32, #tpu.memory_space<vmem>>, vector<1x4x512xf32>
    %821 = vector.shape_cast %820 : vector<1x4x512xf32> to vector<4x512xf32>
    %c3_316 = arith.constant 3 : index
    %c8_317 = arith.constant 8 : index
    %c512_318 = arith.constant 512 : index
    %822 = vector.load %arg3[%c3_316, %c8_317, %c512_318] : memref<4x16x2048xf32, #tpu.memory_space<vmem>>, vector<1x1x512xf32>
    %823 = vector.shape_cast %822 : vector<1x1x512xf32> to vector<1x512xf32>
    %cst_319 = arith.constant dense<0.000000e+00> : vector<16x512xf32>
    %824 = tpu.matmul %804, %821, %cst_319 {dimension_numbers = #tpu.dot_dimension_numbers<[1], [0], [0], [1], [0, 0, 1, 1], [], []>} : vector<16x4xf32>, vector<4x512xf32>, vector<16x512xf32> -> vector<16x512xf32>
    %825 = vector.broadcast %823 : vector<1x512xf32> to vector<16x512xf32>
    %826 = arith.addf %824, %825 : vector<16x512xf32>
    %cst_320 = arith.constant 0.000000e+00 : f32
    %827 = vector.broadcast %cst_320 : f32 to vector<16x512xf32>
    %828 = arith.maximumf %826, %827 : vector<16x512xf32>
    %c3_321 = arith.constant 3 : index
    %c512_322 = arith.constant 512 : index
    %c0_323 = arith.constant 0 : index
    %829 = vector.load %arg4[%c3_321, %c512_322, %c0_323] : memref<4x2048x4xf32, #tpu.memory_space<vmem>>, vector<1x512x4xf32>
    %830 = vector.shape_cast %829 : vector<1x512x4xf32> to vector<512x4xf32>
    %cst_324 = arith.constant dense<0.000000e+00> : vector<16x4xf32>
    %831 = tpu.matmul %828, %830, %cst_324 {dimension_numbers = #tpu.dot_dimension_numbers<[1], [0], [0], [1], [0, 0, 1, 1], [], []>} : vector<16x512xf32>, vector<512x4xf32>, vector<16x4xf32> -> vector<16x4xf32>
    %832 = arith.addf %819, %831 : vector<16x4xf32>
    %c3_325 = arith.constant 3 : index
    %c0_326 = arith.constant 0 : index
    %c1024_327 = arith.constant 1024 : index
    %833 = vector.load %arg3[%c3_325, %c0_326, %c1024_327] : memref<4x16x2048xf32, #tpu.memory_space<vmem>>, vector<1x4x512xf32>
    %834 = vector.shape_cast %833 : vector<1x4x512xf32> to vector<4x512xf32>
    %c3_328 = arith.constant 3 : index
    %c8_329 = arith.constant 8 : index
    %c1024_330 = arith.constant 1024 : index
    %835 = vector.load %arg3[%c3_328, %c8_329, %c1024_330] : memref<4x16x2048xf32, #tpu.memory_space<vmem>>, vector<1x1x512xf32>
    %836 = vector.shape_cast %835 : vector<1x1x512xf32> to vector<1x512xf32>
    %cst_331 = arith.constant dense<0.000000e+00> : vector<16x512xf32>
    %837 = tpu.matmul %804, %834, %cst_331 {dimension_numbers = #tpu.dot_dimension_numbers<[1], [0], [0], [1], [0, 0, 1, 1], [], []>} : vector<16x4xf32>, vector<4x512xf32>, vector<16x512xf32> -> vector<16x512xf32>
    %838 = vector.broadcast %836 : vector<1x512xf32> to vector<16x512xf32>
    %839 = arith.addf %837, %838 : vector<16x512xf32>
    %cst_332 = arith.constant 0.000000e+00 : f32
    %840 = vector.broadcast %cst_332 : f32 to vector<16x512xf32>
    %841 = arith.maximumf %839, %840 : vector<16x512xf32>
    %c3_333 = arith.constant 3 : index
    %c1024_334 = arith.constant 1024 : index
    %c0_335 = arith.constant 0 : index
    %842 = vector.load %arg4[%c3_333, %c1024_334, %c0_335] : memref<4x2048x4xf32, #tpu.memory_space<vmem>>, vector<1x512x4xf32>
    %843 = vector.shape_cast %842 : vector<1x512x4xf32> to vector<512x4xf32>
    %cst_336 = arith.constant dense<0.000000e+00> : vector<16x4xf32>
    %844 = tpu.matmul %841, %843, %cst_336 {dimension_numbers = #tpu.dot_dimension_numbers<[1], [0], [0], [1], [0, 0, 1, 1], [], []>} : vector<16x512xf32>, vector<512x4xf32>, vector<16x4xf32> -> vector<16x4xf32>
    %845 = arith.addf %832, %844 : vector<16x4xf32>
    %c3_337 = arith.constant 3 : index
    %c0_338 = arith.constant 0 : index
    %c1536_339 = arith.constant 1536 : index
    %846 = vector.load %arg3[%c3_337, %c0_338, %c1536_339] : memref<4x16x2048xf32, #tpu.memory_space<vmem>>, vector<1x4x512xf32>
    %847 = vector.shape_cast %846 : vector<1x4x512xf32> to vector<4x512xf32>
    %c3_340 = arith.constant 3 : index
    %c8_341 = arith.constant 8 : index
    %c1536_342 = arith.constant 1536 : index
    %848 = vector.load %arg3[%c3_340, %c8_341, %c1536_342] : memref<4x16x2048xf32, #tpu.memory_space<vmem>>, vector<1x1x512xf32>
    %849 = vector.shape_cast %848 : vector<1x1x512xf32> to vector<1x512xf32>
    %cst_343 = arith.constant dense<0.000000e+00> : vector<16x512xf32>
    %850 = tpu.matmul %804, %847, %cst_343 {dimension_numbers = #tpu.dot_dimension_numbers<[1], [0], [0], [1], [0, 0, 1, 1], [], []>} : vector<16x4xf32>, vector<4x512xf32>, vector<16x512xf32> -> vector<16x512xf32>
    %851 = vector.broadcast %849 : vector<1x512xf32> to vector<16x512xf32>
    %852 = arith.addf %850, %851 : vector<16x512xf32>
    %cst_344 = arith.constant 0.000000e+00 : f32
    %853 = vector.broadcast %cst_344 : f32 to vector<16x512xf32>
    %854 = arith.maximumf %852, %853 : vector<16x512xf32>
    %c3_345 = arith.constant 3 : index
    %c1536_346 = arith.constant 1536 : index
    %c0_347 = arith.constant 0 : index
    %855 = vector.load %arg4[%c3_345, %c1536_346, %c0_347] : memref<4x2048x4xf32, #tpu.memory_space<vmem>>, vector<1x512x4xf32>
    %856 = vector.shape_cast %855 : vector<1x512x4xf32> to vector<512x4xf32>
    %cst_348 = arith.constant dense<0.000000e+00> : vector<16x4xf32>
    %857 = tpu.matmul %854, %856, %cst_348 {dimension_numbers = #tpu.dot_dimension_numbers<[1], [0], [0], [1], [0, 0, 1, 1], [], []>} : vector<16x512xf32>, vector<512x4xf32>, vector<16x4xf32> -> vector<16x4xf32>
    %858 = arith.addf %845, %857 : vector<16x4xf32>
    %859 = vector.broadcast %805 : vector<1x4xf32> to vector<16x4xf32>
    %860 = arith.addf %858, %859 : vector<16x4xf32>
    %861 = arith.addf %804, %860 : vector<16x4xf32>
    %c416 = arith.constant 416 : index
    %c0_349 = arith.constant 0 : index
    %862 = vector.load %arg2[%c416, %c0_349] : memref<472x16xf32, #tpu.memory_space<vmem>>, vector<1x4xf32>
    %c424 = arith.constant 424 : index
    %c0_350 = arith.constant 0 : index
    %863 = vector.load %arg2[%c424, %c0_350] : memref<472x16xf32, #tpu.memory_space<vmem>>, vector<1x4xf32>
    %cst_351 = arith.constant dense<0.000000e+00> : vector<16xf32>
    %864 = vector.multi_reduction <add>, %861, %cst_351 [1] : vector<16x4xf32> to vector<16xf32>
    %865 = vector.shape_cast %864 : vector<16xf32> to vector<16x1xf32>
    %cst_352 = arith.constant 4.000000e+00 : f32
    %866 = vector.broadcast %cst_352 : f32 to vector<16x1xf32>
    %867 = arith.divf %865, %866 : vector<16x1xf32>
    %868 = vector.broadcast %867 : vector<16x1xf32> to vector<16x4xf32>
    %869 = arith.subf %861, %868 : vector<16x4xf32>
    %870 = arith.mulf %869, %869 : vector<16x4xf32>
    %cst_353 = arith.constant dense<0.000000e+00> : vector<16xf32>
    %871 = vector.multi_reduction <add>, %870, %cst_353 [1] : vector<16x4xf32> to vector<16xf32>
    %872 = vector.shape_cast %871 : vector<16xf32> to vector<16x1xf32>
    %cst_354 = arith.constant 4.000000e+00 : f32
    %873 = vector.broadcast %cst_354 : f32 to vector<16x1xf32>
    %874 = arith.divf %872, %873 : vector<16x1xf32>
    %875 = vector.broadcast %867 : vector<16x1xf32> to vector<16x4xf32>
    %876 = arith.subf %861, %875 : vector<16x4xf32>
    %cst_355 = arith.constant 9.99999974E-6 : f32
    %877 = vector.broadcast %cst_355 : f32 to vector<16x1xf32>
    %878 = arith.addf %874, %877 : vector<16x1xf32>
    %879 = math.rsqrt %878 : vector<16x1xf32>
    %880 = vector.broadcast %879 : vector<16x1xf32> to vector<16x4xf32>
    %881 = arith.mulf %876, %880 : vector<16x4xf32>
    %882 = vector.broadcast %862 : vector<1x4xf32> to vector<16x4xf32>
    %883 = arith.mulf %881, %882 : vector<16x4xf32>
    %884 = vector.broadcast %863 : vector<1x4xf32> to vector<16x4xf32>
    %885 = arith.addf %883, %884 : vector<16x4xf32>
    %886 = arith.mulf %351, %885 : vector<16x4xf32>
    %887 = arith.subf %351, %885 : vector<16x4xf32>
    %888 = math.absf %887 : vector<16x4xf32>
    %889 = tpu.concatenate %351, %885, %886, %888 in 1 : vector<16x4xf32>, vector<16x4xf32>, vector<16x4xf32>, vector<16x4xf32> -> vector<16x16xf32>
    %890 = tpu.iota {dimensions = array<i32: 1>} : vector<2x16xi32>
    %891 = tpu.iota {dimensions = array<i32: 0>} : vector<2x16xi32>
    %c8_i32 = arith.constant 8 : i32
    %892 = vector.broadcast %c8_i32 : i32 to vector<2x16xi32>
    %893 = arith.muli %891, %892 : vector<2x16xi32>
    %894 = arith.cmpi sge, %890, %893 : vector<2x16xi32>
    %c8_i32_356 = arith.constant 8 : i32
    %895 = vector.broadcast %c8_i32_356 : i32 to vector<2x16xi32>
    %896 = arith.addi %893, %895 : vector<2x16xi32>
    %897 = arith.cmpi slt, %890, %896 : vector<2x16xi32>
    %898 = arith.andi %894, %897 : vector<2x16xi1>
    %cst_357 = arith.constant 1.250000e-01 : f32
    %cst_358 = arith.constant 0.000000e+00 : f32
    %899 = vector.broadcast %cst_357 : f32 to vector<2x16xf32>
    %900 = vector.broadcast %cst_358 : f32 to vector<2x16xf32>
    %901 = arith.select %898, %899, %900 : vector<2x16xi1>, vector<2x16xf32>
    %cst_359 = arith.constant dense<0.000000e+00> : vector<2x16xf32>
    %902 = tpu.matmul %901, %889, %cst_359 {dimension_numbers = #tpu.dot_dimension_numbers<[1], [0], [0], [1], [0, 0, 1, 1], [], []>} : vector<2x16xf32>, vector<16x16xf32>, vector<2x16xf32> -> vector<2x16xf32>
    %c432 = arith.constant 432 : index
    %c0_360 = arith.constant 0 : index
    %903 = vector.load %arg2[%c432, %c0_360] : memref<472x16xf32, #tpu.memory_space<vmem>>, vector<16x8xf32>
    %c448 = arith.constant 448 : index
    %c0_361 = arith.constant 0 : index
    %904 = vector.load %arg2[%c448, %c0_361] : memref<472x16xf32, #tpu.memory_space<vmem>>, vector<1x8xf32>
    %cst_362 = arith.constant dense<0.000000e+00> : vector<2x8xf32>
    %905 = tpu.matmul %902, %903, %cst_362 {dimension_numbers = #tpu.dot_dimension_numbers<[1], [0], [0], [1], [0, 0, 1, 1], [], []>} : vector<2x16xf32>, vector<16x8xf32>, vector<2x8xf32> -> vector<2x8xf32>
    %906 = vector.broadcast %904 : vector<1x8xf32> to vector<2x8xf32>
    %907 = arith.addf %905, %906 : vector<2x8xf32>
    %cst_363 = arith.constant 0.000000e+00 : f32
    %908 = vector.broadcast %cst_363 : f32 to vector<2x8xf32>
    %909 = arith.maximumf %907, %908 : vector<2x8xf32>
    %c456 = arith.constant 456 : index
    %c0_364 = arith.constant 0 : index
    %910 = vector.load %arg2[%c456, %c0_364] : memref<472x16xf32, #tpu.memory_space<vmem>>, vector<8x8xf32>
    %c464 = arith.constant 464 : index
    %c0_365 = arith.constant 0 : index
    %911 = vector.load %arg2[%c464, %c0_365] : memref<472x16xf32, #tpu.memory_space<vmem>>, vector<1x8xf32>
    %cst_366 = arith.constant dense<0.000000e+00> : vector<2x8xf32>
    %912 = tpu.matmul %909, %910, %cst_366 {dimension_numbers = #tpu.dot_dimension_numbers<[1], [0], [0], [1], [0, 0, 1, 1], [], []>} : vector<2x8xf32>, vector<8x8xf32>, vector<2x8xf32> -> vector<2x8xf32>
    %913 = vector.broadcast %911 : vector<1x8xf32> to vector<2x8xf32>
    %914 = arith.addf %912, %913 : vector<2x8xf32>
    %cst_367 = arith.constant 0.000000e+00 : f32
    %915 = vector.broadcast %cst_367 : f32 to vector<2x8xf32>
    %916 = arith.maximumf %914, %915 : vector<2x8xf32>
    %c0_368 = arith.constant 0 : index
    %c0_369 = arith.constant 0 : index
    %917 = vector.load %arg5[%c0_368, %c0_369] : memref<2x8xf32, #tpu.memory_space<vmem>>, vector<2x8xf32>
    tpu.vector_store %arg5[%c0_368, %c0_369], %916 {strides = array<i32>} : memref<2x8xf32, #tpu.memory_space<vmem>>, vector<2x8xf32>,
    return
  }
  func.func @transform_0(%arg0: i32) -> (i32, i32) {
    %c0_i32 = arith.constant 0 : i32
    %c0_i32_0 = arith.constant 0 : i32
    return %arg0, %c0_i32 : i32, i32
  }
  func.func @transform_1(%arg0: i32) -> (i32, i32) {
    %c0_i32 = arith.constant 0 : i32
    %c0_i32_0 = arith.constant 0 : i32
    %c0_i32_1 = arith.constant 0 : i32
    return %c0_i32, %c0_i32_0 : i32, i32
  }
  func.func @transform_2(%arg0: i32) -> (i32, i32, i32) {
    %c0_i32 = arith.constant 0 : i32
    %c0_i32_0 = arith.constant 0 : i32
    %c0_i32_1 = arith.constant 0 : i32
    %c0_i32_2 = arith.constant 0 : i32
    return %c0_i32, %c0_i32_0, %c0_i32_1 : i32, i32, i32
  }
  func.func @transform_3(%arg0: i32) -> (i32, i32, i32) {
    %c0_i32 = arith.constant 0 : i32
    %c0_i32_0 = arith.constant 0 : i32
    %c0_i32_1 = arith.constant 0 : i32
    %c0_i32_2 = arith.constant 0 : i32
    return %c0_i32, %c0_i32_0, %c0_i32_1 : i32, i32, i32
  }
  func.func @transform_4(%arg0: i32) -> (i32, i32) {
    %c0_i32 = arith.constant 0 : i32
    %c0_i32_0 = arith.constant 0 : i32
    return %arg0, %c0_i32 : i32, i32
  }
}

</mosaic_0001>

<bundles_post_ra>
// kernel: tpu_custom_call.1
= control target key start
LH: loop header
LB: loop body
LE: loop exit
PB: predicated region body
PF: predicated region fallthrough
CT: control target
= control target key end

     0   :  { %s17038_s0 = inlined_call_operand.vmem [shape: s32[16,1], index: 0, kind: input, shape index: {}]   ;;  %s17039_s1 = inlined_call_operand.vmem [shape: f32[472,16], index: 1, kind: input, shape index: {}]   ;;  %s17040_s2 = inlined_call_operand.vmem [shape: f32[4,16,2048], index: 2, kind: input, shape index: {}]   ;;  %s17041_s3 = inlined_call_operand.vmem [shape: f32[4,2048,4], index: 3, kind: input, shape index: {}]   ;;  %s17042_s4 = inlined_call_operand.hbm [shape: f32[2,8], index: 4, kind: output, shape index: {}]  }
   0x1   :  { %v18_v0 = vld [vmem:[%s17038_s0] sm:$0xff] }
   0x2   :  { %9 = vsyncpa [#allocation3], 0  ;;  %v12754_v1 = vmov 0   ;;  %v34_v2 = vld [vmem:[%s17039_s1] sm:$0xff]  ;;  %v35_v3 = vld [vmem:[%s17039_s1 + $0x8] sm:$0xff]  ;;  %v20_v6 = vlaneseq  ;;  %vm36_vm0 = vcmask 130048  }
   0x3   :  { %12602 = vset.pattern.permute.xlu0 %v12754_v1  ;;  %v11558_v4 = vpack.c.bf16 %v35_v3, %v34_v2  ;;  %v19_v5 = vld [vmem:[%s17038_s0 + $0x8] sm:$0xff]  ;;  %v12755_v9 = vmov 0.0   ;;  %v118_v13 = vld [vmem:[%s17039_s1 + $0x10] sm:$0xf]  ;;  %vm131_vm3 = vcmask 1043456   ;;  %vm124_vm4 = vcmask 31744  }
   0x4   :  { %23 = vperm.xlu0 %12602, %v18_v0   ;;  %v12802_v7 = vand.u32 127, %v20_v6  ;;  %11469 = vmatprep.subr.msk.mxu1 %vm131_vm3, %v118_v13  ;;  %v9147_v16 = vld [vmem:[%s17039_s1 + $0x18] ss:$0 sm:$0xff]  ;;  %s12756_s26 = smov 124   ;;  %v264_v53 = vld [vmem:[%s17039_s1 + $0x20] sm:$0xf] }
   0x5   :  { %11559 = vmatprep.subr.bf16.mxu0 %v11558_v4  ;;  %11470 = vmatpush3.msk.msra.mxu1 %vm131_vm3, %v118_v13  ;;  %s12757_s29 = smov 120   ;;  %vm12759_vm5 = vmmov 0   ;;  %s12760_s19 = smov 4   ;;  %vm8867_vm6 = vcmask 64512   ;;  %vm8870_vm7 = vcmask 97280   ;;  %vm9115_vm11 = vcmask 58368  }
   0x6   :  { %11561 = vmatpush3.bf16.msra.mxu0 %v11558_v4  ;;  %11474 = vmatprep.subr.msk.mxu1 %vm131_vm3, %v264_v53  ;;  %v9151_v4 = vld [vmem:[%s17039_s1 + $0x28] ss:$0 sm:$0xff]  ;;  %s12761_s20 = smov 8   ;;  %s12762_s21 = smov 12  }
   0x7   :  { %s12763_s27 = smov [#allocation2]  }
   0x8   :  { %26 = vperm.xlu0 %12602, %v19_v5   ;;  %s9123_s28 = sshll.u32 %s12763_s27, 4  ;;  %s9124_s28 = int_to_ptr.vmem [resolvable:$true] %s9123_s28 }
   0x9   :  { %s12730_s30 = scalar_lea.vmem %s9124_s28, 32  ;;  %p12735_p1 = scmp.lt.s32.totalorder %s9124_s28, %s9124_s28 }
   0xa   :  { %p12731_p0 = scmp.ne.s32.totalorder %s9124_s28, %s12730_s30  ;;  %p12736_p2 = scmp.lt.s32.totalorder %s12730_s30, %s12730_s30 }
   0xc   :  { %p12737_p3 = por %p12736_p2, %p12735_p1 }
   0xe   :  { %p12738_p4 = pnand %p12737_p3, %p12731_p0 }
  0x83   :  { %v24_v8 = vpop.permute.xlu0 %23 }
  0x84   :  { %vm28_vm1 = vcmp.eq.s32.totalorder %v24_v8, %v12802_v7 }
  0x85   :  { %v9143_v10 = vsel %vm28_vm1, 1.0, %v12755_v9 }
  0x86   :  { %11466 = vmatprep.mubr.msk.f32.mxu0 %vm36_vm0, %v9143_v10 }
  0x87   :  { %v27_v11 = vpop.permute.xlu0 %26 }
  0x88   :  { %vm29_vm2 = vcmp.eq.s32.totalorder %v27_v11, %v12802_v7 }
  0x89   :  { %v9144_v12 = vsel %vm29_vm2, 1.0, %v12755_v9 }
  0x8a   :  { %11467 = vmatmul.mubr.msk.f32.vlgmr.msra.gmra.mrb[0].mxu0 %vm36_vm0, %v9144_v12 }
  0x8b   :  { %511 = vmatprep.mubr.f32.mxu0 %v12755_v9 }
 0x15d   :  { %v12816_v14 = vpop.f32.mrb[0].mxu0 }
 0x15e   :  { %v12818_v15 = vpop.f32.mrb[1].mxu0 }
 0x15f   :  { %11471 = vmatprep.mubr.msk.f32.mxu1 %vm124_vm4, %v12818_v15 }
 0x160   :  { %11472 = vmatmul.mubr.msk.f32.vlgmr.msra.gmra.mrb[0].mxu1 %vm124_vm4, %v12816_v14 }
 0x161   :  { %11475 = vmatpush3.msk.msra.mxu1 %vm131_vm3, %v264_v53  ;;  %v673_v53 = vld [vmem:[%s17040_s2 + $0x20] sm:$0xf] }
 0x233   :  { %v11473_v17 = vpop.f32.mrb[0].mxu1 }
 0x234   :  { %v201_v18 = vpop.f32.mrb[1].mxu1  ;;  %v207_v20 = vadd.f32 %v11473_v17, %v9147_v16 }
 0x235   :  { %v202_v19 = vadd.f32 %v9147_v16, %v201_v18 }
 0x237   :  { %211 = vrot.lane.b32.xlu1 %v202_v19, %s12756_s26 }
 0x23b   :  { %220 = vrot.lane.b32.xlu1 %v207_v20, %s12756_s26 }
 0x2a9   :  { %v212_v21 = vpop.permute.xlu1 %211 }
 0x2aa   :  { %v214_v22 = vmul.f32 %v212_v21, %v202_v19  ;;  %v241_v23 = vmul.f32 %v212_v21, %v207_v20 }
 0x2ac   :  { %v215_v24 = vsel %vm124_vm4, %v214_v22, 0.0  ;;  %v242_v28 = vsel %vm124_vm4, %v241_v23, 0.0 }
 0x2ad   :  { %216 = vadd.xlane.f32.xlu0 %v215_v24  ;;  %v221_v25 = vpop.permute.xlu1 %220 }
 0x2ae   :  { %v223_v26 = vmul.f32 %v221_v25, %v202_v19  ;;  %v246_v27 = vmul.f32 %v221_v25, %v207_v20 }
 0x2b0   :  { %v224_v29 = vsel %vm124_vm4, %v223_v26, 0.0  ;;  %v247_v30 = vsel %vm124_vm4, %v246_v27, 0.0 }
 0x2b1   :  { %243 = vadd.xlane.f32.xlu0 %v242_v28  ;;  %225 = vadd.xlane.f32.xlu1 %v224_v29  ;;  %v403_v28 = vld [vmem:[%s17040_s2 + $0x8] sm:$0xf]  ;;  %v405_v29 = vld [vmem:[%s17040_s2 + $0x18] sm:$0xf] }
 0x2b2   :  { %9158 = vmatprep.subr.msk.mxu0 %vm131_vm3, %v403_v28  ;;  %9162 = vmatprep.subr.msk.mxu1 %vm131_vm3, %v405_v29  ;;  %v897_v28 = vld [vmem:[%s17041_s3 + $0x2b8] sm:$0xff]  ;;  %v928_v29 = vld [vmem:[%s17041_s3 + $0x3b0] sm:$0xff] }
 0x2b5   :  { %248 = vadd.xlane.f32.xlu0 %v247_v30  ;;  %v402_v30 = vld [vmem:[%s17040_s2] sm:$0xf] }
 0x2b6   :  { %9159 = vmatpush1.msk.msra.mxu0 %vm131_vm3, %v402_v30  ;;  %v929_v30 = vld [vmem:[%s17041_s3 + $0x3b8] sm:$0xff] }
 0x33a   :  { %v217_v31 = vpop.xlane.xlu0 %216 }
 0x33b   :  { %v218_v34 = vmul.f32 0.5, %v217_v31  ;;  %v404_v31 = vld [vmem:[%s17040_s2 + $0x10] sm:$0xf] }
 0x33e   :  { %v244_v32 = vpop.xlane.xlu0 %243  ;;  %v226_v33 = vpop.xlane.xlu1 %225 }
 0x33f   :  { %v227_v35 = vmul.f32 0.5, %v226_v33  ;;  %v245_v38 = vmul.f32 0.5, %v244_v32  ;;  %v674_v32 = vld [vmem:[%s17040_s2 + $0x28] sm:$0xf]  ;;  %v676_v33 = vld [vmem:[%s17040_s2 + $0x38] sm:$0xf] }
 0x340   :  { %9167 = vmatprep.subr.msk.mxu0 %vm131_vm3, %v674_v32 }
 0x341   :  { %v228_v36 = vmax.f32 %v218_v34, %v227_v35 }
 0x342   :  { %v249_v37 = vpop.xlane.xlu0 %248 }
 0x343   :  { %v229_v39 = vsub.f32 %v218_v34, %v228_v36  ;;  %v232_v40 = vsub.f32 %v227_v35, %v228_v36  ;;  %v250_v41 = vmul.f32 0.5, %v249_v37 }
 0x345   :  { %v230_v42 = vmul.f32 1.442695, %v229_v39  ;;  %v233_v43 = vmul.f32 1.442695, %v232_v40  ;;  %v251_v44 = vmax.f32 %v245_v38, %v250_v41 }
 0x347   :  { %12618 = vpow2.f32 %v230_v42  ;;  %v252_v45 = vsub.f32 %v245_v38, %v251_v44  ;;  %v255_v46 = vsub.f32 %v250_v41, %v251_v44  ;;  %v9155_v42 = vld [vmem:[%s17039_s1 + $0x30] ss:$0 sm:$0xff] }
 0x348   :  { %12620 = vpow2.f32 %v233_v43 }
 0x349   :  { %v253_v47 = vmul.f32 1.442695, %v252_v45  ;;  %v256_v48 = vmul.f32 1.442695, %v255_v46  ;;  %v9156_v45 = vld [vmem:[%s17039_s1 + $0x38] ss:$0 sm:$0xff] }
 0x34a   :  { %v890_v46 = vld [vmem:[%s17041_s3 + $0x280] sm:$0xff] }
 0x34b   :  { %12622 = vpow2.f32 %v253_v47 }
 0x34c   :  { %12624 = vpow2.f32 %v256_v48  ;;  %v891_v48 = vld [vmem:[%s17041_s3 + $0x288] sm:$0xff] }
 0x351   :  { %v12619_v49 = vpop.eup %12618 }
 0x352   :  { %v12621_v50 = vpop.eup %12620  ;;  %v236_v56 = vmul.f32 %v12619_v49, %v202_v19 }
 0x353   :  { %v235_v51 = vadd.f32 %v12621_v50, %v12619_v49  ;;  %v237_v57 = vmul.f32 %v12621_v50, %v207_v20  ;;  %v922_v49 = vld [vmem:[%s17041_s3 + $0x380] sm:$0xff]  ;;  %v923_v50 = vld [vmem:[%s17041_s3 + $0x388] sm:$0xff] }
 0x355   :  { %v12623_v52 = vpop.eup %12622  ;;  %12626 = vrcp.f32 %v235_v51  ;;  %v238_v58 = vadd.f32 %v237_v57, %v236_v56  ;;  %v11594_v56 = vpack.c.bf16 %v923_v50, %v922_v49  ;;  %v914_v49 = vld [vmem:[%s17041_s3 + $0x340] sm:$0xff]  ;;  %v915_v50 = vld [vmem:[%s17041_s3 + $0x348] sm:$0xff] }
 0x356   :  { %v12625_v54 = vpop.eup %12624  ;;  %v259_v59 = vmul.f32 %v12623_v52, %v202_v19 }
 0x357   :  { %v258_v55 = vadd.f32 %v12625_v54, %v12623_v52  ;;  %v260_v60 = vmul.f32 %v12625_v54, %v207_v20  ;;  %v675_v54 = vld [vmem:[%s17040_s2 + $0x30] sm:$0xf] }
 0x359   :  { %12628 = vrcp.f32 %v258_v55  ;;  %v261_v63 = vadd.f32 %v260_v60, %v259_v59  ;;  %v11562_v55 = vpack.c.bf16 %v891_v48, %v890_v46  ;;  %v875_v59 = vld [vmem:[%s17041_s3 + $0x208] sm:$0xff]  ;;  %v906_v60 = vld [vmem:[%s17041_s3 + $0x300] sm:$0xff] }
 0x35a   :  { %v883_v48 = vld [vmem:[%s17041_s3 + $0x248] sm:$0xff] }
 0x35f   :  { %v12627_v61 = vpop.eup %12626 }
 0x360   :  { %v240_v62 = vmul.f32 %v12627_v61, %v238_v58  ;;  %v874_v58 = vld [vmem:[%s17041_s3 + $0x200] sm:$0xff]  ;;  %v907_v61 = vld [vmem:[%s17041_s3 + $0x308] sm:$0xff] }
 0x362   :  { %272 = vrot.lane.b32.xlu1 %v240_v62, %s12757_s29  ;;  %v892_v62 = vld [vmem:[%s17041_s3 + $0x290] sm:$0xff] }
 0x363   :  { %v12629_v0 = vpop.eup %12628 }
 0x364   :  { %v263_v1 = vmul.f32 %v12629_v0, %v261_v63  ;;  %v893_v63 = vld [vmem:[%s17041_s3 + $0x298] sm:$0xff]  ;;  %v924_v0 = vld [vmem:[%s17041_s3 + $0x390] sm:$0xff] }
 0x366   :  { %274 = vrot.lane.b32.xlu0 %v263_v1, %s12757_s29  ;;  %v925_v1 = vld [vmem:[%s17041_s3 + $0x398] sm:$0xff] }
 0x3d4   :  { %v273_v2 = vpop.permute.xlu1 %272 }
 0x3d5   :  { %11476 = vmatprep.mubr.msk.f32.mxu1 %vm124_vm4, %v273_v2  ;;  %v11564_v2 = vpack.c.bf16 %v875_v59, %v874_v58  ;;  %v933_v59 = vld [vmem:[%s17041_s3 + $0x3d8] sm:$0xff] }
 0x3d8   :  { %v275_v3 = vpop.permute.xlu0 %274 }
 0x3d9   :  { %11477 = vmatmul.mubr.msk.f32.vlgmr.msra.gmra.mrb[2].mxu1 %vm124_vm4, %v275_v3  ;;  %v11596_v3 = vpack.c.bf16 %v907_v61, %v906_v60  ;;  %v884_v60 = vld [vmem:[%s17041_s3 + $0x250] sm:$0xff]  ;;  %v885_v61 = vld [vmem:[%s17041_s3 + $0x258] sm:$0xff] }
 0x3da   :  { %588 = vmatprep.mubr.f32.mxu1 %v12755_v9  ;;  %9163 = vmatpush1.msk.msra.mxu1 %vm131_vm3, %v404_v31 }
 0x3db   :  { %9171 = vmatprep.subr.msk.mxu1 %vm131_vm3, %v676_v33  ;;  %v880_v33 = vld [vmem:[%s17041_s3 + $0x230] sm:$0xff] }
 0x4ac   :  { %v11478_v5 = vpop.f32.mrb[2].mxu1 }
 0x4ad   :  { %v355_v8 = vadd.f32 %v11478_v5, %v9151_v4  ;;  %v349_v10 = vpop.f32.mrb[3].mxu1  ;;  %v877_v5 = vld [vmem:[%s17041_s3 + $0x218] sm:$0xff] }
 0x4ae   :  { %v350_v11 = vadd.f32 %v9151_v4, %v349_v10  ;;  %v876_v4 = vld [vmem:[%s17041_s3 + $0x210] sm:$0xff]  ;;  %v11598_v10 = vpack.c.bf16 %v925_v1, %v924_v0  ;;  %v917_v1 = vld [vmem:[%s17041_s3 + $0x358] sm:$0xff] }
 0x4af   :  { %v359_v12 = vadd.f32 %v12816_v14, %v355_v8  ;;  %v11566_v8 = vpack.c.bf16 %v893_v63, %v892_v62  ;;  %v11584_v63 = vpack.c.bf16 %v885_v61, %v884_v60  ;;  %v916_v0 = vld [vmem:[%s17041_s3 + $0x350] sm:$0xff] }
 0x4b0   :  { %v358_v13 = vadd.f32 %v350_v11, %v12818_v15  ;;  %v908_v11 = vld [vmem:[%s17041_s3 + $0x310] sm:$0xff] }
 0x4b1   :  { %v365_v16 = vsel %vm124_vm4, %v359_v12, 0.0 }
 0x4b2   :  { %366 = vadd.xlane.f32.xlu0 %v365_v16  ;;  %v362_v17 = vsel %vm124_vm4, %v358_v13, 0.0  ;;  %v895_v16 = vld [vmem:[%s17041_s3 + $0x2a8] sm:$0xff] }
 0x4b3   :  { %363 = vadd.xlane.f32.xlu1 %v362_v17  ;;  %v926_v17 = vld [vmem:[%s17041_s3 + $0x3a0] sm:$0xff] }
 0x53f   :  { %v367_v18 = vpop.xlane.xlu0 %366 }
 0x540   :  { %v370_v19 = vmul.f32 0.25, %v367_v18  ;;  %v364_v20 = vpop.xlane.xlu1 %363  ;;  %v927_v18 = vld [vmem:[%s17041_s3 + $0x3a8] sm:$0xff] }
 0x541   :  { %v369_v21 = vmul.f32 0.25, %v364_v20 }
 0x542   :  { %v372_v22 = vsub.f32 %v359_v12, %v370_v19  ;;  %v909_v12 = vld [vmem:[%s17041_s3 + $0x318] sm:$0xff]  ;;  %v11568_v19 = vpack.c.bf16 %v877_v5, %v876_v4  ;;  %v903_v4 = vld [vmem:[%s17041_s3 + $0x2e8] sm:$0xff]  ;;  %v934_v5 = vld [vmem:[%s17041_s3 + $0x3e0] sm:$0xff] }
 0x543   :  { %v371_v23 = vsub.f32 %v358_v13, %v369_v21  ;;  %v894_v13 = vld [vmem:[%s17041_s3 + $0x2a0] sm:$0xff]  ;;  %v11600_v20 = vpack.c.bf16 %v909_v12, %v908_v11  ;;  %v887_v12 = vld [vmem:[%s17041_s3 + $0x268] sm:$0xff] }
 0x544   :  { %v374_v24 = vmul.f32 %v372_v22, %v372_v22  ;;  %v878_v21 = vld [vmem:[%s17041_s3 + $0x220] sm:$0xff] }
 0x545   :  { %v373_v25 = vmul.f32 %v371_v23, %v371_v23  ;;  %v886_v11 = vld [vmem:[%s17041_s3 + $0x260] sm:$0xff] }
 0x546   :  { %v378_v26 = vsel %vm124_vm4, %v374_v24, 0.0  ;;  %v11602_v24 = vpack.c.bf16 %v927_v18, %v926_v17  ;;  %v918_v17 = vld [vmem:[%s17041_s3 + $0x360] sm:$0xff]  ;;  %v919_v18 = vld [vmem:[%s17041_s3 + $0x368] sm:$0xff] }
 0x547   :  { %379 = vadd.xlane.f32.xlu0 %v378_v26  ;;  %v375_v27 = vsel %vm124_vm4, %v373_v25, 0.0  ;;  %v910_v25 = vld [vmem:[%s17041_s3 + $0x320] sm:$0xff]  ;;  %v911_v26 = vld [vmem:[%s17041_s3 + $0x328] sm:$0xff] }
 0x548   :  { %376 = vadd.xlane.f32.xlu1 %v375_v27  ;;  %v896_v27 = vld [vmem:[%s17041_s3 + $0x2b0] sm:$0xff]  ;;  %v11604_v32 = vpack.c.bf16 %v911_v26, %v910_v25  ;;  %v889_v26 = vld [vmem:[%s17041_s3 + $0x278] sm:$0xff] }
 0x549   :  { %v888_v25 = vld [vmem:[%s17041_s3 + $0x270] sm:$0xff] }
 0x5d4   :  { %v380_v34 = vpop.xlane.xlu0 %379 }
 0x5d5   :  { %v382_v35 = vmul.f32 0.25, %v380_v34  ;;  %v377_v36 = vpop.xlane.xlu1 %376  ;;  %v881_v34 = vld [vmem:[%s17041_s3 + $0x238] sm:$0xff] }
 0x5d6   :  { %v381_v37 = vmul.f32 0.25, %v377_v36  ;;  %v11606_v36 = vpack.c.bf16 %v929_v30, %v928_v29  ;;  %v920_v29 = vld [vmem:[%s17041_s3 + $0x370] sm:$0xff]  ;;  %v921_v30 = vld [vmem:[%s17041_s3 + $0x378] sm:$0xff] }
 0x5d7   :  { %v384_v38 = vadd.f32 1e-05, %v382_v35  ;;  %v11574_v35 = vpack.c.bf16 %v897_v28, %v896_v27  ;;  %v11592_v28 = vpack.c.bf16 %v889_v26, %v888_v25  ;;  %v611_v25 = vld [vmem:[%s17041_s3 + $0x10] sm:$0xff]  ;;  %v612_v26 = vld [vmem:[%s17041_s3 + $0x18] sm:$0xff] }
 0x5d8   :  { %v383_v39 = vadd.f32 1e-05, %v381_v37  ;;  %v912_v37 = vld [vmem:[%s17041_s3 + $0x330] sm:$0xff] }
 0x5d9   :  { %12630 = vrsqrt.f32 %v384_v38  ;;  %v913_v38 = vld [vmem:[%s17041_s3 + $0x338] sm:$0xff] }
 0x5da   :  { %12632 = vrsqrt.f32 %v383_v39  ;;  %v898_v39 = vld [vmem:[%s17041_s3 + $0x2c0] sm:$0xff] }
 0x5e3   :  { %v12631_v40 = vpop.eup %12630 }
 0x5e4   :  { %v12633_v41 = vpop.eup %12632  ;;  %v388_v43 = vmul.f32 %v12631_v40, %v372_v22  ;;  %v879_v22 = vld [vmem:[%s17041_s3 + $0x228] sm:$0xff] }
 0x5e5   :  { %v387_v44 = vmul.f32 %v12633_v41, %v371_v23  ;;  %v11570_v23 = vpack.c.bf16 %v895_v16, %v894_v13  ;;  %v11572_v31 = vpack.c.bf16 %v879_v22, %v878_v21  ;;  %v899_v40 = vld [vmem:[%s17041_s3 + $0x2c8] sm:$0xff]  ;;  %v930_v41 = vld [vmem:[%s17041_s3 + $0x3c0] sm:$0xff]  ;;  %v11588_v16 = vpack.c.bf16 %v887_v12, %v886_v11  ;;  %v905_v21 = vld [vmem:[%s17041_s3 + $0x2f8] sm:$0xff] }
 0x5e6   :  { %v394_v51 = vmul.f32 %v9155_v42, %v388_v43  ;;  %v11576_v43 = vpack.c.bf16 %v881_v34, %v880_v33  ;;  %v11578_v46 = vpack.c.bf16 %v899_v40, %v898_v39  ;;  %v936_v22 = vld [vmem:[%s17041_s3 + $0x3f0] sm:$0xff]  ;;  %v626_v33 = vld [vmem:[%s17041_s3 + $0x88] sm:$0xff]  ;;  %v657_v34 = vld [vmem:[%s17041_s3 + $0x180] sm:$0xff] }
 0x5e7   :  { %v393_v47 = vmul.f32 %v9155_v42, %v387_v44  ;;  %v931_v42 = vld [vmem:[%s17041_s3 + $0x3c8] sm:$0xff]  ;;  %v11608_v44 = vpack.c.bf16 %v913_v38, %v912_v37  ;;  %v13121_v38 = vshrl.u32 %v20_v6, 7 }
 0x5e8   :  { %v12908_v57 = vadd.f32 %v9156_v45, %v394_v51 }
 0x5e9   :  { %v12894_v52 = vadd.f32 %v9156_v45, %v393_v47  ;;  %v882_v45 = vld [vmem:[%s17041_s3 + $0x240] sm:$0xff]  ;;  %v11610_v47 = vpack.c.bf16 %v931_v42, %v930_v41  ;;  %v13140_v6 = vsub.s32 3, %v13121_v38 }
 0x5ea   :  { %v11580_v51 = vpack.c.bf16 %v883_v48, %v882_v45  ;;  %v13134_v45 = vsub.s32 2, %v13121_v38 }
 0x5eb   :  { %9160 = vmatmul.mubr.msk.f32.vlgmr.msra.gmra.mrb[2].mxu0 %vm124_vm4, %v12894_v52  ;;  %9164 = vmatmul.mubr.msk.f32.vlgmr.msra.gmra.mrb[4].mxu1 %vm124_vm4, %v12894_v52 }
 0x5ec   :  { %517 = vmatprep.mubr.f32.mxu0 %v12755_v9  ;;  %594 = vmatprep.mubr.f32.mxu1 %v12755_v9 }
 0x5ed   :  { %9168 = vmatpush1.msk.msra.mxu0 %vm131_vm3, %v673_v53  ;;  %9172 = vmatpush1.msk.msra.mxu1 %vm131_vm3, %v675_v54  ;;  %v11612_v53 = vpack.c.bf16 %v915_v50, %v914_v49  ;;  %v900_v54 = vld [vmem:[%s17041_s3 + $0x2d0] sm:$0xff] }
 0x5ee   :  { %11563 = vmatprep.subr.bf16.mxu0 %v11562_v55  ;;  %11595 = vmatprep.subr.bf16.mxu1 %v11594_v56  ;;  %v901_v55 = vld [vmem:[%s17041_s3 + $0x2d8] sm:$0xff]  ;;  %v932_v56 = vld [vmem:[%s17041_s3 + $0x3d0] sm:$0xff] }
 0x5ef   :  { %9161 = vmatmul.mubr.msk.f32.gmra.mrb[4].mxu0 %vm124_vm4, %v12908_v57  ;;  %9165 = vmatmul.mubr.msk.f32.gmra.mrb[6].mxu1 %vm124_vm4, %v12908_v57  ;;  %v11582_v58 = vpack.c.bf16 %v901_v55, %v900_v54  ;;  %v11614_v62 = vpack.c.bf16 %v933_v59, %v932_v56  ;;  %v13157_v56 = vld [vmem:[%s17040_s2 + $0x80] ss:$8 sm:$0xf] }
 0x5f0   :  { %776 = vmatprep.mubr.f32.mxu0 %v12755_v9  ;;  %853 = vmatprep.mubr.f32.mxu1 %v12755_v9  ;;  %v610_v59 = vld [vmem:[%s17041_s3 + $0x8] sm:$0xff] }
 0x5f3   :  { %9169 = vmatmul.mubr.msk.f32.vlgmr.msra.gmra.mrb[6].mxu0 %vm124_vm4, %v12894_v52  ;;  %9173 = vmatmul.mubr.msk.f32.vlgmr.msra.gmra.mrb[8].mxu1 %vm124_vm4, %v12894_v52 }
 0x5f4   :  { %782 = vmatprep.mubr.f32.mxu0 %v12755_v9  ;;  %859 = vmatprep.mubr.f32.mxu1 %v12755_v9 }
 0x5f5   :  { %11565 = vmatpush3.bf16.msra.mxu0 %v11564_v2  ;;  %11597 = vmatpush3.bf16.msra.mxu1 %v11596_v3  ;;  %v11616_v2 = vpack.c.bf16 %v917_v1, %v916_v0  ;;  %v902_v3 = vld [vmem:[%s17041_s3 + $0x2e0] sm:$0xff]  ;;  %v627_v0 = vld [vmem:[%s17041_s3 + $0x90] sm:$0xff] }
 0x5f6   :  { %11567 = vmatprep.subr.bf16.mxu0 %v11566_v8  ;;  %11599 = vmatprep.subr.bf16.mxu1 %v11598_v10  ;;  %v11586_v8 = vpack.c.bf16 %v903_v4, %v902_v3  ;;  %v935_v10 = vld [vmem:[%s17041_s3 + $0x3e8] sm:$0xff] }
 0x5f7   :  { %9170 = vmatmul.mubr.msk.f32.gmra.mrb[8].mxu0 %vm124_vm4, %v12908_v57  ;;  %9174 = vmatmul.mubr.msk.f32.gmra.mrb[10].mxu1 %vm124_vm4, %v12908_v57  ;;  %v11618_v13 = vpack.c.bf16 %v935_v10, %v934_v5  ;;  %v628_v5 = vld [vmem:[%s17041_s3 + $0x98] sm:$0xff] }
 0x5f8   :  { %v660_v10 = vld [vmem:[%s17041_s3 + $0x198] sm:$0xff] }
 0x5f9   :  { %11569 = vmatpush3.bf16.msra.mxu0 %v11568_v19  ;;  %11601 = vmatpush3.bf16.msra.mxu1 %v11600_v20  ;;  %v11620_v19 = vpack.c.bf16 %v919_v18, %v918_v17  ;;  %v904_v20 = vld [vmem:[%s17041_s3 + $0x2f0] sm:$0xff] }
 0x5fa   :  { %11571 = vmatprep.subr.bf16.mxu0 %v11570_v23  ;;  %11603 = vmatprep.subr.bf16.mxu1 %v11602_v24  ;;  %v11590_v23 = vpack.c.bf16 %v905_v21, %v904_v20  ;;  %v937_v24 = vld [vmem:[%s17041_s3 + $0x3f8] sm:$0xff] }
 0x5fb   :  { %v11622_v27 = vpack.c.bf16 %v937_v24, %v936_v22 }
 0x5fd   :  { %11573 = vmatpush3.bf16.msra.mxu0 %v11572_v31  ;;  %11605 = vmatpush3.bf16.msra.mxu1 %v11604_v32  ;;  %v11624_v31 = vpack.c.bf16 %v921_v30, %v920_v29  ;;  %v625_v32 = vld [vmem:[%s17041_s3 + $0x80] sm:$0xff] }
 0x5fe   :  { %11575 = vmatprep.subr.bf16.mxu0 %v11574_v35  ;;  %11607 = vmatprep.subr.bf16.mxu1 %v11606_v36  ;;  %v11626_v35 = vpack.c.bf16 %v626_v33, %v625_v32  ;;  %v658_v36 = vld [vmem:[%s17041_s3 + $0x188] sm:$0xff]  ;;  %v643_v33 = vld [vmem:[%s17041_s3 + $0x110] sm:$0xff] }
 0x5ff   :  { %v11658_v37 = vpack.c.bf16 %v658_v36, %v657_v34  ;;  %v644_v34 = vld [vmem:[%s17041_s3 + $0x118] sm:$0xff] }
 0x601   :  { %11577 = vmatpush3.bf16.msra.mxu0 %v11576_v43  ;;  %11609 = vmatpush3.bf16.msra.mxu1 %v11608_v44  ;;  %v9166_v43 = vld [vmem:[%s17040_s2 + $0xa0] ss:$8 sm:$0xf]  ;;  %v13131_v44 = vsub.s32 0, %v13121_v38 }
 0x602   :  { %11579 = vmatprep.subr.bf16.mxu0 %v11578_v46  ;;  %11611 = vmatprep.subr.bf16.mxu1 %v11610_v47  ;;  %v13137_v46 = vsub.s32 1, %v13121_v38  ;;  %v695_v55 = vrot.slane %v9166_v43, %v13140_v6 }
 0x604   :  { %v687_v54 = vrot.slane %v9166_v43, %v13137_v46 }
 0x605   :  { %11581 = vmatpush3.bf16.msra.mxu0 %v11580_v51  ;;  %11613 = vmatpush3.bf16.msra.mxu1 %v11612_v53  ;;  %v683_v51 = vrot.slane %v9166_v43, %v13131_v44  ;;  %v691_v53 = vrot.slane %v9166_v43, %v13134_v45 }
 0x606   :  { %11583 = vmatprep.subr.bf16.mxu0 %v11582_v58  ;;  %11615 = vmatprep.subr.bf16.mxu1 %v11614_v62  ;;  %v609_v58 = vld [vmem:[%s17041_s3] sm:$0xff] }
 0x607   :  { %v641_v62 = vld [vmem:[%s17041_s3 + $0x100] sm:$0xff]  ;;  %v11628_v17 = vpack.c.bf16 %v610_v59, %v609_v58 }
 0x609   :  { %11585 = vmatpush3.bf16.msra.mxu0 %v11584_v63  ;;  %11617 = vmatpush3.bf16.msra.mxu1 %v11616_v2  ;;  %v642_v63 = vld [vmem:[%s17041_s3 + $0x108] sm:$0xff] }
 0x60a   :  { %11587 = vmatprep.subr.bf16.mxu0 %v11586_v8  ;;  %11619 = vmatprep.subr.bf16.mxu1 %v11618_v13  ;;  %v659_v8 = vld [vmem:[%s17041_s3 + $0x190] sm:$0xff]  ;;  %v13185_v13 = vrot.slane %v13157_v56, %v13137_v46  ;;  %v11660_v18 = vpack.c.bf16 %v642_v63, %v641_v62 }
 0x60b   :  { %v11662_v24 = vpack.c.bf16 %v660_v10, %v659_v8  ;;  %v663_v8 = vld [vmem:[%s17041_s3 + $0x1b0] sm:$0xff]  ;;  %v664_v10 = vld [vmem:[%s17041_s3 + $0x1b8] sm:$0xff] }
 0x60d   :  { %11589 = vmatpush3.bf16.msra.mxu0 %v11588_v16  ;;  %11621 = vmatpush3.bf16.msra.mxu1 %v11620_v19  ;;  %v13189_v16 = vrot.slane %v13157_v56, %v13140_v6 }
 0x60e   :  { %11591 = vmatprep.subr.bf16.mxu0 %v11590_v23  ;;  %11623 = vmatprep.subr.bf16.mxu1 %v11622_v27  ;;  %v11630_v23 = vpack.c.bf16 %v628_v5, %v627_v0  ;;  %v645_v0 = vld [vmem:[%s17041_s3 + $0x120] sm:$0xff]  ;;  %v632_v5 = vld [vmem:[%s17041_s3 + $0xb8] sm:$0xff] }
 0x611   :  { %11593 = vmatpush3.bf16.msra.mxu0 %v11592_v28  ;;  %11625 = vmatpush3.bf16.msra.mxu1 %v11624_v31 }
 0x612   :  { %11627 = vmatprep.subr.bf16.mxu0 %v11626_v35  ;;  %11659 = vmatprep.subr.bf16.mxu1 %v11658_v37  ;;  %v629_v37 = vld [vmem:[%s17041_s3 + $0xa0] sm:$0xff] }
 0x6be   :  { %v13123_v39 = vpop.f32.mrb[2].mxu0  ;;  %v13125_v40 = vpop.f32.mrb[4].mxu1 }
 0x6bf   :  { %v515_v41 = vpop.f32.mrb[3].mxu0  ;;  %v592_v42 = vpop.f32.mrb[5].mxu1 }
 0x6c0   :  { %v516_v43 = vadd.f32 %v515_v41, %v13185_v13  ;;  %v11632_v41 = vpack.c.bf16 %v612_v26, %v611_v25  ;;  %v633_v25 = vld [vmem:[%s17041_s3 + $0xc0] sm:$0xff]  ;;  %v634_v26 = vld [vmem:[%s17041_s3 + $0xc8] sm:$0xff] }
 0x6c2   :  { %v13142_v47 = vpop.f32.mrb[4].mxu0  ;;  %v13144_v48 = vpop.f32.mrb[6].mxu1 }
 0x6c3   :  { %v13146_v49 = vpop.f32.mrb[5].mxu0  ;;  %v13148_v50 = vpop.f32.mrb[7].mxu1 }
 0x6c6   :  { %v778_v60 = vpop.f32.mrb[6].mxu0  ;;  %v855_v61 = vpop.f32.mrb[8].mxu1 }
 0x6c7   :  { %v779_v1 = vadd.f32 %v778_v60, %v683_v51  ;;  %v856_v2 = vadd.f32 %v855_v61, %v691_v53  ;;  %v780_v3 = vpop.f32.mrb[7].mxu0  ;;  %v857_v4 = vpop.f32.mrb[9].mxu1  ;;  %v613_v60 = vld [vmem:[%s17041_s3 + $0x20] sm:$0xff]  ;;  %v614_v61 = vld [vmem:[%s17041_s3 + $0x28] sm:$0xff] }
 0x6c8   :  { %v781_v11 = vadd.f32 %v780_v3, %v687_v54  ;;  %v858_v12 = vadd.f32 %v857_v4, %v695_v55 }
 0x6c9   :  { %v866_v27 = vmax.f32 %v779_v1, 0.0  ;;  %v868_v28 = vmax.f32 %v856_v2, 0.0  ;;  %v646_v1 = vld [vmem:[%s17041_s3 + $0x128] sm:$0xff]  ;;  %v631_v2 = vld [vmem:[%s17041_s3 + $0xb0] sm:$0xff] }
 0x6ca   :  { %v867_v19 = vmax.f32 %v781_v11, 0.0  ;;  %v869_v20 = vmax.f32 %v858_v12, 0.0  ;;  %v784_v21 = vpop.f32.mrb[8].mxu0  ;;  %v861_v22 = vpop.f32.mrb[10].mxu1  ;;  %v602_v11 = vmax.f32 %v516_v43, 0.0  ;;  %v636_v43 = vld [vmem:[%s17041_s3 + $0xd8] sm:$0xff] }
 0x6cb   :  { %v785_v29 = vadd.f32 %v784_v21, %v683_v51  ;;  %v862_v30 = vadd.f32 %v861_v22, %v691_v53  ;;  %v786_v31 = vpop.f32.mrb[9].mxu0  ;;  %v863_v32 = vpop.f32.mrb[11].mxu1  ;;  %v593_v51 = vadd.f32 %v592_v42, %v13189_v16  ;;  %v630_v53 = vld [vmem:[%s17041_s3 + $0xa8] sm:$0xff]  ;;  %v11664_v42 = vpack.c.bf16 %v644_v34, %v643_v33 }
 0x6cc   :  { %v787_v35 = vadd.f32 %v786_v31, %v687_v54  ;;  %v864_v36 = vadd.f32 %v863_v32, %v695_v55  ;;  %1002 = vmatprep.mubr.f32.mxu0 %v867_v19  ;;  %1077 = vmatprep.mubr.f32.mxu1 %v869_v20  ;;  %v661_v54 = vld [vmem:[%s17041_s3 + $0x1a0] sm:$0xff]  ;;  %v662_v55 = vld [vmem:[%s17041_s3 + $0x1a8] sm:$0xff]  ;;  %v11634_v3 = vpack.c.bf16 %v630_v53, %v629_v37  ;;  %v615_v19 = vld [vmem:[%s17041_s3 + $0x30] sm:$0xff] }
 0x6cd   :  { %1003 = vmatmul.mubr.f32.vlgmr.msra.gmra.mrb[10].mxu0 %v866_v27  ;;  %1078 = vmatmul.mubr.f32.vlgmr.msra.gmra.mrb[12].mxu1 %v868_v28  ;;  %v870_v62 = vmax.f32 %v785_v29, 0.0  ;;  %v872_v63 = vmax.f32 %v862_v30, 0.0  ;;  %v11666_v4 = vpack.c.bf16 %v662_v55, %v661_v54  ;;  %v604_v12 = vmax.f32 %v593_v51, 0.0  ;;  %v616_v20 = vld [vmem:[%s17041_s3 + $0x38] sm:$0xff]  ;;  %v665_v27 = vld [vmem:[%s17041_s3 + $0x1c0] sm:$0xff]  ;;  %v666_v28 = vld [vmem:[%s17041_s3 + $0x1c8] sm:$0xff] }
 0x6ce   :  { %v871_v58 = vmax.f32 %v787_v35, 0.0  ;;  %v873_v59 = vmax.f32 %v864_v36, 0.0  ;;  %11629 = vmatpush3.bf16.msra.mxu0 %v11628_v17  ;;  %11661 = vmatpush3.bf16.msra.mxu1 %v11660_v18  ;;  %v11636_v17 = vpack.c.bf16 %v614_v61, %v613_v60  ;;  %v11668_v18 = vpack.c.bf16 %v646_v1, %v645_v0  ;;  %v617_v31 = vld [vmem:[%s17041_s3 + $0x40] sm:$0xff]  ;;  %v618_v32 = vld [vmem:[%s17041_s3 + $0x48] sm:$0xff]  ;;  %v635_v37 = vld [vmem:[%s17041_s3 + $0xd0] sm:$0xff] }
 0x6cf   :  { %11631 = vmatprep.subr.bf16.mxu0 %v11630_v23  ;;  %11663 = vmatprep.subr.bf16.mxu1 %v11662_v24  ;;  %v11638_v21 = vpack.c.bf16 %v632_v5, %v631_v2  ;;  %v11670_v22 = vpack.c.bf16 %v664_v10, %v663_v8  ;;  %v647_v23 = vld [vmem:[%s17041_s3 + $0x130] sm:$0xff]  ;;  %v648_v24 = vld [vmem:[%s17041_s3 + $0x138] sm:$0xff]  ;;  %v11640_v29 = vpack.c.bf16 %v616_v20, %v615_v19  ;;  %v649_v35 = vld [vmem:[%s17041_s3 + $0x140] sm:$0xff] }
 0x6d0   :  { %1007 = vmatprep.mubr.f32.mxu0 %v871_v58  ;;  %1082 = vmatprep.mubr.f32.mxu1 %v873_v59  ;;  %v11672_v30 = vpack.c.bf16 %v648_v24, %v647_v23  ;;  %v11642_v33 = vpack.c.bf16 %v634_v26, %v633_v25  ;;  %v11674_v34 = vpack.c.bf16 %v666_v28, %v665_v27  ;;  %v650_v36 = vld [vmem:[%s17041_s3 + $0x148] sm:$0xff]  ;;  %v667_v51 = vld [vmem:[%s17041_s3 + $0x1d0] sm:$0xff]  ;;  %v668_v53 = vld [vmem:[%s17041_s3 + $0x1d8] sm:$0xff] }
 0x6d1   :  { %1008 = vmatmul.mubr.f32.gmra.mrb[12].mxu0 %v870_v62  ;;  %1083 = vmatmul.mubr.f32.gmra.mrb[14].mxu1 %v872_v63  ;;  %v11644_v54 = vpack.c.bf16 %v618_v32, %v617_v31  ;;  %v11676_v55 = vpack.c.bf16 %v650_v36, %v649_v35  ;;  %v619_v58 = vld [vmem:[%s17041_s3 + $0x50] sm:$0xff]  ;;  %v620_v59 = vld [vmem:[%s17041_s3 + $0x58] sm:$0xff]  ;;  %v637_v62 = vld [vmem:[%s17041_s3 + $0xe0] sm:$0xff]  ;;  %v420_v25 = vrot.slane %v13157_v56, %v13134_v45 }
 0x6d2   :  { %11633 = vmatpush3.bf16.msra.mxu0 %v11632_v41  ;;  %11665 = vmatpush3.bf16.msra.mxu1 %v11664_v42  ;;  %v11646_v41 = vpack.c.bf16 %v636_v43, %v635_v37  ;;  %v11678_v42 = vpack.c.bf16 %v668_v53, %v667_v51  ;;  %v651_v60 = vld [vmem:[%s17041_s3 + $0x150] sm:$0xff]  ;;  %v652_v61 = vld [vmem:[%s17041_s3 + $0x158] sm:$0xff]  ;;  %v638_v63 = vld [vmem:[%s17041_s3 + $0xe8] sm:$0xff]  ;;  %v11648_v2 = vpack.c.bf16 %v620_v59, %v619_v58 }
 0x6d3   :  { %1152 = vmatprep.mubr.f32.mxu0 %v602_v11  ;;  %1227 = vmatprep.mubr.f32.mxu1 %v604_v12  ;;  %v669_v0 = vld [vmem:[%s17041_s3 + $0x1e0] sm:$0xff]  ;;  %v670_v1 = vld [vmem:[%s17041_s3 + $0x1e8] sm:$0xff]  ;;  %v11650_v8 = vpack.c.bf16 %v638_v63, %v637_v62  ;;  %v671_v19 = vld [vmem:[%s17041_s3 + $0x1f0] sm:$0xff]  ;;  %v599_v35 = vadd.f32 %v13148_v50, %v13189_v16  ;;  %v597_v51 = vadd.f32 %v13144_v48, %v420_v25 }
 0x6d4   :  { %11635 = vmatprep.subr.bf16.mxu0 %v11634_v3  ;;  %11667 = vmatprep.subr.bf16.mxu1 %v11666_v4  ;;  %v11680_v3 = vpack.c.bf16 %v652_v61, %v651_v60  ;;  %v621_v4 = vld [vmem:[%s17041_s3 + $0x60] sm:$0xff]  ;;  %v622_v5 = vld [vmem:[%s17041_s3 + $0x68] sm:$0xff]  ;;  %v11682_v10 = vpack.c.bf16 %v670_v1, %v669_v0  ;;  %v672_v20 = vld [vmem:[%s17041_s3 + $0x1f8] sm:$0xff] }
 0x6d5   :  { %v653_v11 = vld [vmem:[%s17041_s3 + $0x160] sm:$0xff]  ;;  %v654_v12 = vld [vmem:[%s17041_s3 + $0x168] sm:$0xff]  ;;  %v623_v24 = vld [vmem:[%s17041_s3 + $0x70] sm:$0xff]  ;;  %v11686_v27 = vpack.c.bf16 %v672_v20, %v671_v19  ;;  %v608_v50 = vmax.f32 %v599_v35, 0.0  ;;  %v607_v48 = vmax.f32 %v597_v51, 0.0 }
 0x6d6   :  { %11637 = vmatpush3.bf16.msra.mxu0 %v11636_v17  ;;  %11669 = vmatpush3.bf16.msra.mxu1 %v11668_v18  ;;  %v639_v17 = vld [vmem:[%s17041_s3 + $0xf0] sm:$0xff]  ;;  %v640_v18 = vld [vmem:[%s17041_s3 + $0xf8] sm:$0xff]  ;;  %v11684_v23 = vpack.c.bf16 %v654_v12, %v653_v11  ;;  %v1239_v36 = vld [vmem:[%s17040_s2 + $0x48] sm:$0xf] }
 0x6d7   :  { %11639 = vmatprep.subr.bf16.mxu0 %v11638_v21  ;;  %11671 = vmatprep.subr.bf16.mxu1 %v11670_v22  ;;  %v412_v21 = vrot.slane %v13157_v56, %v13131_v44  ;;  %v11652_v22 = vpack.c.bf16 %v622_v5, %v621_v4  ;;  %v11654_v26 = vpack.c.bf16 %v640_v18, %v639_v17  ;;  %v624_v28 = vld [vmem:[%s17041_s3 + $0x78] sm:$0xff]  ;;  %v1240_v16 = vld [vmem:[%s17040_s2 + $0x50] sm:$0xf]  ;;  %v1455_v53 = vld [vmem:[%s17041_s3 + $0x480] sm:$0xff] }
 0x6d8   :  { %v11656_v31 = vpack.c.bf16 %v624_v28, %v623_v24  ;;  %v1241_v37 = vld [vmem:[%s17040_s2 + $0x58] sm:$0xf]  ;;  %v1488_v59 = vld [vmem:[%s17041_s3 + $0x588] sm:$0xff]  ;;  %v1471_v62 = vld [vmem:[%s17041_s3 + $0x500] sm:$0xff] }
 0x6d9   :  { %v514_v32 = vadd.f32 %v13123_v39, %v412_v21  ;;  %v520_v43 = vadd.f32 %v13142_v47, %v412_v21  ;;  %v1472_v63 = vld [vmem:[%s17041_s3 + $0x508] sm:$0xff]  ;;  %v1457_v0 = vld [vmem:[%s17041_s3 + $0x490] sm:$0xff]  ;;  %v1490_v4 = vld [vmem:[%s17041_s3 + $0x598] sm:$0xff] }
 0x6da   :  { %11641 = vmatpush3.bf16.msra.mxu0 %v11640_v29  ;;  %11673 = vmatpush3.bf16.msra.mxu1 %v11672_v30  ;;  %v655_v29 = vld [vmem:[%s17041_s3 + $0x170] sm:$0xff]  ;;  %v656_v30 = vld [vmem:[%s17041_s3 + $0x178] sm:$0xff]  ;;  %v11724_v1 = vpack.c.bf16 %v1472_v63, %v1471_v62  ;;  %v1459_v19 = vld [vmem:[%s17041_s3 + $0x4a0] sm:$0xff] }
 0x6db   :  { %11643 = vmatprep.subr.bf16.mxu0 %v11642_v33  ;;  %11675 = vmatprep.subr.bf16.mxu1 %v11674_v34  ;;  %v11688_v56 = vpack.c.bf16 %v656_v30, %v655_v29  ;;  %v591_v33 = vadd.f32 %v13125_v40, %v420_v25  ;;  %v522_v34 = vadd.f32 %v13146_v49, %v13185_v13  ;;  %v601_v39 = vmax.f32 %v514_v32, 0.0  ;;  %v1238_v13 = vld [vmem:[%s17040_s2 + $0x40] sm:$0xf]  ;;  %v1442_v11 = vld [vmem:[%s17041_s3 + $0x418] sm:$0xff]  ;;  %v1473_v12 = vld [vmem:[%s17041_s3 + $0x510] sm:$0xff] }
 0x6dc   :  { %v605_v47 = vmax.f32 %v520_v43, 0.0  ;;  %v1474_v18 = vld [vmem:[%s17041_s3 + $0x518] sm:$0xff]  ;;  %v1460_v20 = vld [vmem:[%s17041_s3 + $0x4a8] sm:$0xff]  ;;  %v1443_v25 = vld [vmem:[%s17041_s3 + $0x420] sm:$0xff] }
 0x6dd   :  { %v603_v40 = vmax.f32 %v591_v33, 0.0  ;;  %v606_v49 = vmax.f32 %v522_v34, 0.0  ;;  %v11728_v21 = vpack.c.bf16 %v1474_v18, %v1473_v12  ;;  %v1492_v24 = vld [vmem:[%s17041_s3 + $0x5a8] sm:$0xff]  ;;  %v1475_v28 = vld [vmem:[%s17041_s3 + $0x520] sm:$0xff]  ;;  %v1493_v32 = vld [vmem:[%s17041_s3 + $0x5b0] sm:$0xff] }
 0x6de   :  { %11645 = vmatpush3.bf16.msra.mxu0 %v11644_v54  ;;  %11677 = vmatpush3.bf16.msra.mxu1 %v11676_v55  ;;  %v1456_v54 = vld [vmem:[%s17041_s3 + $0x488] sm:$0xff]  ;;  %v1487_v55 = vld [vmem:[%s17041_s3 + $0x580] sm:$0xff]  ;;  %v1494_v35 = vld [vmem:[%s17041_s3 + $0x5b8] sm:$0xff] }
 0x6df   :  { %11647 = vmatprep.subr.bf16.mxu0 %v11646_v41  ;;  %11679 = vmatprep.subr.bf16.mxu1 %v11678_v42  ;;  %v11690_v58 = vpack.c.bf16 %v1456_v54, %v1455_v53  ;;  %v1439_v41 = vld [vmem:[%s17041_s3 + $0x400] sm:$0xff]  ;;  %v1440_v42 = vld [vmem:[%s17041_s3 + $0x408] sm:$0xff]  ;;  %v11722_v60 = vpack.c.bf16 %v1488_v59, %v1487_v55  ;;  %v1478_v43 = vld [vmem:[%s17041_s3 + $0x538] sm:$0xff] }
 0x6e0   :  { %v11692_v61 = vpack.c.bf16 %v1440_v42, %v1439_v41  ;;  %v1476_v29 = vld [vmem:[%s17041_s3 + $0x528] sm:$0xff]  ;;  %v1463_v51 = vld [vmem:[%s17041_s3 + $0x4c0] sm:$0xff]  ;;  %v1497_v62 = vld [vmem:[%s17041_s3 + $0x5d0] sm:$0xff] }
 0x6e1   :  { %v11732_v33 = vpack.c.bf16 %v1476_v29, %v1475_v28  ;;  %v1447_v54 = vld [vmem:[%s17041_s3 + $0x440] sm:$0xff]  ;;  %v1448_v55 = vld [vmem:[%s17041_s3 + $0x448] sm:$0xff]  ;;  %v1470_v28 = vld [vmem:[%s17041_s3 + $0x4f8] sm:$0xff] }
 0x6e2   :  { %11649 = vmatpush3.bf16.msra.mxu0 %v11648_v2  ;;  %11681 = vmatpush3.bf16.msra.mxu1 %v11680_v3  ;;  %v1458_v2 = vld [vmem:[%s17041_s3 + $0x498] sm:$0xff]  ;;  %v1489_v3 = vld [vmem:[%s17041_s3 + $0x590] sm:$0xff]  ;;  %v11708_v59 = vpack.c.bf16 %v1448_v55, %v1447_v54  ;;  %v1480_v41 = vld [vmem:[%s17041_s3 + $0x548] sm:$0xff] }
 0x6e3   :  { %11651 = vmatprep.subr.bf16.mxu0 %v11650_v8  ;;  %11683 = vmatprep.subr.bf16.mxu1 %v11682_v10  ;;  %v11694_v5 = vpack.c.bf16 %v1458_v2, %v1457_v0  ;;  %v11726_v8 = vpack.c.bf16 %v1490_v4, %v1489_v3  ;;  %v1441_v10 = vld [vmem:[%s17041_s3 + $0x410] sm:$0xff]  ;;  %v1498_v0 = vld [vmem:[%s17041_s3 + $0x5d8] sm:$0xff]  ;;  %v1468_v12 = vld [vmem:[%s17041_s3 + $0x4e8] sm:$0xff] }
 0x6e4   :  { %v11696_v17 = vpack.c.bf16 %v1442_v11, %v1441_v10  ;;  %v1450_v2 = vld [vmem:[%s17041_s3 + $0x458] sm:$0xff]  ;;  %v11742_v3 = vpack.c.bf16 %v1498_v0, %v1497_v62  ;;  %v1467_v11 = vld [vmem:[%s17041_s3 + $0x4e0] sm:$0xff]  ;;  %v1501_v29 = vld [vmem:[%s17041_s3 + $0x5f0] sm:$0xff] }
 0x6e5   :  { %v11714_v18 = vpack.c.bf16 %v1468_v12, %v1467_v11 }
 0x6e6   :  { %11653 = vmatpush3.bf16.msra.mxu0 %v11652_v22  ;;  %11685 = vmatpush3.bf16.msra.mxu1 %v11684_v23  ;;  %v11698_v22 = vpack.c.bf16 %v1460_v20, %v1459_v19  ;;  %v1491_v23 = vld [vmem:[%s17041_s3 + $0x5a0] sm:$0xff]  ;;  %v1500_v19 = vld [vmem:[%s17041_s3 + $0x5e8] sm:$0xff] }
 0x6e7   :  { %11655 = vmatprep.subr.bf16.mxu0 %v11654_v26  ;;  %11687 = vmatprep.subr.bf16.mxu1 %v11686_v27  ;;  %v11730_v26 = vpack.c.bf16 %v1492_v24, %v1491_v23  ;;  %v1444_v27 = vld [vmem:[%s17041_s3 + $0x428] sm:$0xff]  ;;  %v1451_v20 = vld [vmem:[%s17041_s3 + $0x460] sm:$0xff] }
 0x6e8   :  { %v11700_v30 = vpack.c.bf16 %v1444_v27, %v1443_v25  ;;  %v1483_v24 = vld [vmem:[%s17041_s3 + $0x560] sm:$0xff]  ;;  %v1484_v25 = vld [vmem:[%s17041_s3 + $0x568] sm:$0xff]  ;;  %v1469_v27 = vld [vmem:[%s17041_s3 + $0x4f0] sm:$0xff] }
 0x6ea   :  { %11657 = vmatpush3.bf16.msra.mxu0 %v11656_v31  ;;  %11689 = vmatpush3.bf16.msra.mxu1 %v11688_v56  ;;  %v1461_v31 = vld [vmem:[%s17041_s3 + $0x4b0] sm:$0xff]  ;;  %v1462_v56 = vld [vmem:[%s17041_s3 + $0x4b8] sm:$0xff] }
 0x6eb   :  { %9176 = vmatprep.subr.msk.mxu0 %vm131_vm3, %v1239_v36  ;;  %9180 = vmatprep.subr.msk.mxu1 %vm131_vm3, %v1241_v37  ;;  %v11702_v34 = vpack.c.bf16 %v1462_v56, %v1461_v31  ;;  %v1445_v36 = vld [vmem:[%s17041_s3 + $0x430] sm:$0xff]  ;;  %v1446_v37 = vld [vmem:[%s17041_s3 + $0x438] sm:$0xff] }
 0x6ec   :  { %v1502_v31 = vld [vmem:[%s17041_s3 + $0x5f8] sm:$0xff]  ;;  %v1453_v56 = vld [vmem:[%s17041_s3 + $0x470] sm:$0xff] }
 0x6ed   :  { %1153 = vmatmul.mubr.f32.vlgmr.msra.gmra.mrb[14].mxu0 %v601_v39  ;;  %1228 = vmatmul.mubr.f32.vlgmr.msra.gmra.mrb[16].mxu1 %v603_v40  ;;  %v11734_v39 = vpack.c.bf16 %v1494_v35, %v1493_v32  ;;  %v1477_v40 = vld [vmem:[%s17041_s3 + $0x530] sm:$0xff]  ;;  %v1454_v32 = vld [vmem:[%s17041_s3 + $0x478] sm:$0xff] }
 0x6ee   :  { %1157 = vmatprep.mubr.f32.mxu0 %v606_v49  ;;  %1232 = vmatprep.mubr.f32.mxu1 %v608_v50  ;;  %v1464_v49 = vld [vmem:[%s17041_s3 + $0x4c8] sm:$0xff]  ;;  %v1495_v50 = vld [vmem:[%s17041_s3 + $0x5c0] sm:$0xff]  ;;  %v1485_v35 = vld [vmem:[%s17041_s3 + $0x570] sm:$0xff] }
 0x6ef   :  { %9177 = vmatpush1.msk.msra.mxu0 %vm131_vm3, %v1238_v13  ;;  %9181 = vmatpush1.msk.msra.mxu1 %vm131_vm3, %v1240_v16  ;;  %v1496_v13 = vld [vmem:[%s17041_s3 + $0x5c8] sm:$0xff]  ;;  %v11704_v16 = vpack.c.bf16 %v1446_v37, %v1445_v36  ;;  %v1486_v36 = vld [vmem:[%s17041_s3 + $0x578] sm:$0xff] }
 0x6f0   :  { %11691 = vmatprep.subr.bf16.mxu0 %v11690_v58  ;;  %11723 = vmatprep.subr.bf16.mxu1 %v11722_v60  ;;  %v11738_v53 = vpack.c.bf16 %v1496_v13, %v1495_v50  ;;  %v1479_v58 = vld [vmem:[%s17041_s3 + $0x540] sm:$0xff]  ;;  %v1465_v60 = vld [vmem:[%s17041_s3 + $0x4d0] sm:$0xff]  ;;  %v11752_v37 = vpack.c.bf16 %v1486_v36, %v1485_v35 }
 0x6f1   :  { %1158 = vmatmul.mubr.f32.gmra.mrb[16].mxu0 %v605_v47  ;;  %1233 = vmatmul.mubr.f32.gmra.mrb[18].mxu1 %v607_v48  ;;  %v11736_v47 = vpack.c.bf16 %v1478_v43, %v1477_v40  ;;  %v11706_v48 = vpack.c.bf16 %v1464_v49, %v1463_v51  ;;  %v11740_v42 = vpack.c.bf16 %v1480_v41, %v1479_v58  ;;  %v1658_v40 = vld [vmem:[%s17040_s2 + $0x78] sm:$0xf] }
 0x6f2   :  { %1341 = vmatprep.mubr.f32.mxu0 %v12755_v9  ;;  %1418 = vmatprep.mubr.f32.mxu1 %v12755_v9 }
 0x6f5   :  { %9178 = vmatmul.mubr.msk.f32.vlgmr.msra.gmra.mrb[18].mxu0 %vm124_vm4, %v12894_v52  ;;  %9182 = vmatmul.mubr.msk.f32.vlgmr.msra.gmra.mrb[20].mxu1 %vm124_vm4, %v12894_v52 }
 0x6f6   :  { %1347 = vmatprep.mubr.f32.mxu0 %v12755_v9  ;;  %1424 = vmatprep.mubr.f32.mxu1 %v12755_v9 }
 0x6f7   :  { %11693 = vmatpush3.bf16.msra.mxu0 %v11692_v61  ;;  %11725 = vmatpush3.bf16.msra.mxu1 %v11724_v1  ;;  %v1466_v61 = vld [vmem:[%s17041_s3 + $0x4d8] sm:$0xff]  ;;  %v1449_v1 = vld [vmem:[%s17041_s3 + $0x450] sm:$0xff] }
 0x6f8   :  { %11695 = vmatprep.subr.bf16.mxu0 %v11694_v5  ;;  %11727 = vmatprep.subr.bf16.mxu1 %v11726_v8  ;;  %v11710_v63 = vpack.c.bf16 %v1466_v61, %v1465_v60  ;;  %v11712_v4 = vpack.c.bf16 %v1450_v2, %v1449_v1  ;;  %v1481_v5 = vld [vmem:[%s17041_s3 + $0x550] sm:$0xff]  ;;  %v1482_v8 = vld [vmem:[%s17041_s3 + $0x558] sm:$0xff] }
 0x6f9   :  { %9179 = vmatmul.mubr.msk.f32.gmra.mrb[20].mxu0 %vm124_vm4, %v12908_v57  ;;  %9183 = vmatmul.mubr.msk.f32.gmra.mrb[22].mxu1 %vm124_vm4, %v12908_v57  ;;  %v11744_v10 = vpack.c.bf16 %v1482_v8, %v1481_v5  ;;  %v9175_v1 = vld [vmem:[%s17040_s2 + $0xc0] ss:$8 sm:$0xf] }
 0x6fa   :  { %v1256_v11 = vrot.slane %v9175_v1, %v13134_v45  ;;  %v1252_v12 = vrot.slane %v9175_v1, %v13137_v46 }
 0x6fb   :  { %11697 = vmatpush3.bf16.msra.mxu0 %v11696_v17  ;;  %11729 = vmatpush3.bf16.msra.mxu1 %v11728_v21  ;;  %v1499_v17 = vld [vmem:[%s17041_s3 + $0x5e0] sm:$0xff]  ;;  %v1452_v21 = vld [vmem:[%s17041_s3 + $0x468] sm:$0xff] }
 0x6fc   :  { %11699 = vmatprep.subr.bf16.mxu0 %v11698_v22  ;;  %11731 = vmatprep.subr.bf16.mxu1 %v11730_v26  ;;  %v11746_v22 = vpack.c.bf16 %v1500_v19, %v1499_v17  ;;  %v11716_v23 = vpack.c.bf16 %v1452_v21, %v1451_v20  ;;  %v11748_v26 = vpack.c.bf16 %v1484_v25, %v1483_v24  ;;  %v1872_v24 = vld [vmem:[%s17041_s3 + $0x680] sm:$0xff] }
 0x6fd   :  { %v1260_v20 = vrot.slane %v9175_v1, %v13140_v6 }
 0x6ff   :  { %11701 = vmatpush3.bf16.msra.mxu0 %v11700_v30  ;;  %11733 = vmatpush3.bf16.msra.mxu1 %v11732_v33  ;;  %v11718_v30 = vpack.c.bf16 %v1470_v28, %v1469_v27  ;;  %v11750_v33 = vpack.c.bf16 %v1502_v31, %v1501_v29  ;;  %v1873_v29 = vld [vmem:[%s17041_s3 + $0x688] sm:$0xff] }
 0x700   :  { %11703 = vmatprep.subr.bf16.mxu0 %v11702_v34  ;;  %11735 = vmatprep.subr.bf16.mxu1 %v11734_v39  ;;  %v11720_v34 = vpack.c.bf16 %v1454_v32, %v1453_v56  ;;  %v1656_v39 = vld [vmem:[%s17040_s2 + $0x68] sm:$0xf] }
 0x701   :  { %v1905_v31 = vld [vmem:[%s17041_s3 + $0x788] sm:$0xff] }
 0x703   :  { %11705 = vmatpush3.bf16.msra.mxu0 %v11704_v16  ;;  %11737 = vmatpush3.bf16.msra.mxu1 %v11736_v47 }
 0x704   :  { %11707 = vmatprep.subr.bf16.mxu0 %v11706_v48  ;;  %11739 = vmatprep.subr.bf16.mxu1 %v11738_v53 }
 0x707   :  { %11709 = vmatpush3.bf16.msra.mxu0 %v11708_v59  ;;  %11741 = vmatpush3.bf16.msra.mxu1 %v11740_v42 }
 0x708   :  { %11711 = vmatprep.subr.bf16.mxu0 %v11710_v63  ;;  %11743 = vmatprep.subr.bf16.mxu1 %v11742_v3 }
 0x70b   :  { %11713 = vmatpush3.bf16.msra.mxu0 %v11712_v4  ;;  %11745 = vmatpush3.bf16.msra.mxu1 %v11744_v10  ;;  %v1248_v10 = vrot.slane %v9175_v1, %v13131_v44  ;;  %v1906_v1 = vld [vmem:[%s17041_s3 + $0x790] sm:$0xff] }
 0x70c   :  { %11715 = vmatprep.subr.bf16.mxu0 %v11714_v18  ;;  %11747 = vmatprep.subr.bf16.mxu1 %v11746_v22 }
 0x70f   :  { %11717 = vmatpush3.bf16.msra.mxu0 %v11716_v23  ;;  %11749 = vmatpush3.bf16.msra.mxu1 %v11748_v26 }
 0x710   :  { %11719 = vmatprep.subr.bf16.mxu0 %v11718_v30  ;;  %11751 = vmatprep.subr.bf16.mxu1 %v11750_v33  ;;  %v1904_v30 = vld [vmem:[%s17041_s3 + $0x780] sm:$0xff] }
 0x713   :  { %11721 = vmatpush3.bf16.msra.mxu0 %v11720_v34  ;;  %11753 = vmatpush3.bf16.msra.mxu1 %v11752_v37 }
 0x714   :  { %9185 = vmatprep.subr.msk.mxu0 %vm131_vm3, %v1656_v39  ;;  %9189 = vmatprep.subr.msk.mxu1 %vm131_vm3, %v1658_v40  ;;  %v1655_v39 = vld [vmem:[%s17040_s2 + $0x60] sm:$0xf]  ;;  %v11754_v40 = vpack.c.bf16 %v1873_v29, %v1872_v24 }
 0x715   :  { %v1892_v29 = vld [vmem:[%s17041_s3 + $0x720] sm:$0xff] }
 0x7a0   :  { %v10234_v43 = vpop.f32.mrb[10].mxu0  ;;  %v10272_v51 = vpop.f32.mrb[12].mxu1 }
 0x7a1   :  { %v10235_v49 = vpop.f32.mrb[11].mxu0  ;;  %v10273_v50 = vpop.f32.mrb[13].mxu1 }
 0x7a2   :  { %v10236_v13 = vadd.f32 %v10235_v49, %v10234_v43  ;;  %v10274_v16 = vadd.f32 %v10273_v50, %v10272_v51  ;;  %v11786_v43 = vpack.c.bf16 %v1905_v31, %v1904_v30  ;;  %v1893_v30 = vld [vmem:[%s17041_s3 + $0x728] sm:$0xff]  ;;  %v1878_v31 = vld [vmem:[%s17041_s3 + $0x6b0] sm:$0xff] }
 0x7a4   :  { %v1080_v47 = vadd.f32 %v10274_v16, %v10236_v13  ;;  %v10237_v48 = vpop.f32.mrb[12].mxu0  ;;  %v10275_v53 = vpop.f32.mrb[14].mxu1 }
 0x7a5   :  { %v10238_v54 = vpop.f32.mrb[13].mxu0  ;;  %v10276_v55 = vpop.f32.mrb[15].mxu1 }
 0x7a6   :  { %v10239_v58 = vadd.f32 %v10238_v54, %v10237_v48  ;;  %v10277_v59 = vadd.f32 %v10276_v55, %v10275_v53  ;;  %v1657_v48 = vld [vmem:[%s17040_s2 + $0x70] sm:$0xf] }
 0x7a8   :  { %v1085_v41 = vadd.f32 %v10277_v59, %v10239_v58 }
 0x7c0   :  { %v10310_v42 = vpop.f32.mrb[14].mxu0  ;;  %v10348_v60 = vpop.f32.mrb[16].mxu1 }
 0x7c1   :  { %v10311_v61 = vpop.f32.mrb[15].mxu0  ;;  %v10349_v62 = vpop.f32.mrb[17].mxu1 }
 0x7c2   :  { %v10312_v63 = vadd.f32 %v10311_v61, %v10310_v42  ;;  %v10350_v0 = vadd.f32 %v10349_v62, %v10348_v60  ;;  %v1856_v42 = vld [vmem:[%s17041_s3 + $0x600] sm:$0xff]  ;;  %v1857_v60 = vld [vmem:[%s17041_s3 + $0x608] sm:$0xff] }
 0x7c3   :  { %v1888_v61 = vld [vmem:[%s17041_s3 + $0x700] sm:$0xff]  ;;  %v1889_v62 = vld [vmem:[%s17041_s3 + $0x708] sm:$0xff] }
 0x7c4   :  { %v1155_v2 = vadd.f32 %v10312_v63, %v1080_v47  ;;  %v10313_v3 = vpop.f32.mrb[16].mxu0  ;;  %v10351_v4 = vpop.f32.mrb[18].mxu1  ;;  %v1874_v63 = vld [vmem:[%s17041_s3 + $0x690] sm:$0xff] }
 0x7c5   :  { %v10314_v5 = vpop.f32.mrb[17].mxu0  ;;  %v10352_v8 = vpop.f32.mrb[19].mxu1 }
 0x7c6   :  { %v13595_v17 = vadd.f32 %v10350_v0, %v1155_v2  ;;  %v10315_v18 = vadd.f32 %v10314_v5, %v10313_v3  ;;  %v10353_v19 = vadd.f32 %v10352_v8, %v10351_v4  ;;  %v1875_v0 = vld [vmem:[%s17041_s3 + $0x698] sm:$0xff]  ;;  %v11756_v3 = vpack.c.bf16 %v1857_v60, %v1856_v42  ;;  %v1858_v5 = vld [vmem:[%s17041_s3 + $0x610] sm:$0xff]  ;;  %v1897_v60 = vld [vmem:[%s17041_s3 + $0x748] sm:$0xff] }
 0x7c7   :  { %v1907_v2 = vld [vmem:[%s17041_s3 + $0x798] sm:$0xff]  ;;  %v11788_v4 = vpack.c.bf16 %v1889_v62, %v1888_v61  ;;  %v1882_v62 = vld [vmem:[%s17041_s3 + $0x6d0] sm:$0xff] }
 0x7c8   :  { %v1160_v21 = vadd.f32 %v10315_v18, %v1085_v41  ;;  %v1343_v22 = vpop.f32.mrb[18].mxu0  ;;  %v1420_v23 = vpop.f32.mrb[20].mxu1  ;;  %v1859_v8 = vld [vmem:[%s17041_s3 + $0x618] sm:$0xff] }
 0x7c9   :  { %v1344_v25 = vadd.f32 %v1343_v22, %v1248_v10  ;;  %v1421_v26 = vadd.f32 %v1420_v23, %v1256_v11  ;;  %v1345_v27 = vpop.f32.mrb[19].mxu0  ;;  %v1422_v28 = vpop.f32.mrb[21].mxu1  ;;  %v1891_v18 = vld [vmem:[%s17041_s3 + $0x718] sm:$0xff]  ;;  %v1909_v22 = vld [vmem:[%s17041_s3 + $0x7a8] sm:$0xff]  ;;  %v11760_v23 = vpack.c.bf16 %v1859_v8, %v1858_v5 }
 0x7ca   :  { %v13610_v56 = vadd.f32 %v10353_v19, %v1160_v21  ;;  %v1346_v32 = vadd.f32 %v1345_v27, %v1252_v12  ;;  %v1423_v33 = vadd.f32 %v1422_v28, %v1260_v20  ;;  %v1876_v19 = vld [vmem:[%s17041_s3 + $0x6a0] sm:$0xff] }
 0x7cb   :  { %v1431_v51 = vmax.f32 %v1344_v25, 0.0  ;;  %v1433_v49 = vmax.f32 %v1421_v26, 0.0  ;;  %v1908_v21 = vld [vmem:[%s17041_s3 + $0x7a0] sm:$0xff]  ;;  %v1861_v26 = vld [vmem:[%s17041_s3 + $0x628] sm:$0xff] }
 0x7cc   :  { %v1432_v34 = vmax.f32 %v1346_v32, 0.0  ;;  %v1434_v35 = vmax.f32 %v1423_v33, 0.0  ;;  %v1349_v36 = vpop.f32.mrb[20].mxu0  ;;  %v1426_v37 = vpop.f32.mrb[22].mxu1  ;;  %v1860_v25 = vld [vmem:[%s17041_s3 + $0x620] sm:$0xff]  ;;  %v11794_v28 = vpack.c.bf16 %v1909_v22, %v1908_v21  ;;  %v1879_v32 = vld [vmem:[%s17041_s3 + $0x6b8] sm:$0xff] }
 0x7cd   :  { %v1350_v50 = vadd.f32 %v1349_v36, %v1248_v10  ;;  %v1427_v13 = vadd.f32 %v1426_v37, %v1256_v11  ;;  %v1351_v16 = vpop.f32.mrb[21].mxu0  ;;  %v1428_v47 = vpop.f32.mrb[23].mxu1  ;;  %v11758_v10 = vpack.c.bf16 %v1875_v0, %v1874_v63  ;;  %v11790_v11 = vpack.c.bf16 %v1907_v2, %v1906_v1  ;;  %v1910_v33 = vld [vmem:[%s17041_s3 + $0x7b0] sm:$0xff]  ;;  %v1883_v63 = vld [vmem:[%s17041_s3 + $0x6d8] sm:$0xff]  ;;  %v1917_v22 = vld [vmem:[%s17041_s3 + $0x7e8] sm:$0xff] }
 0x7ce   :  { %v1352_v53 = vadd.f32 %v1351_v16, %v1252_v12  ;;  %v1429_v54 = vadd.f32 %v1428_v47, %v1260_v20  ;;  %1567 = vmatprep.mubr.f32.mxu0 %v1432_v34  ;;  %1642 = vmatprep.mubr.f32.mxu1 %v1434_v35  ;;  %v1890_v12 = vld [vmem:[%s17041_s3 + $0x710] sm:$0xff]  ;;  %v1877_v20 = vld [vmem:[%s17041_s3 + $0x6a8] sm:$0xff]  ;;  %v1911_v34 = vld [vmem:[%s17041_s3 + $0x7b8] sm:$0xff]  ;;  %v11764_v35 = vpack.c.bf16 %v1861_v26, %v1860_v25 }
 0x7cf   :  { %1568 = vmatmul.mubr.f32.vlgmr.msra.gmra.mrb[22].mxu0 %v1431_v51  ;;  %1643 = vmatmul.mubr.f32.vlgmr.msra.gmra.mrb[24].mxu1 %v1433_v49  ;;  %v1435_v59 = vmax.f32 %v1350_v50, 0.0  ;;  %v1437_v41 = vmax.f32 %v1427_v13, 0.0  ;;  %v11792_v24 = vpack.c.bf16 %v1891_v18, %v1890_v12  ;;  %v11762_v27 = vpack.c.bf16 %v1877_v20, %v1876_v19  ;;  %v1862_v37 = vld [vmem:[%s17041_s3 + $0x630] sm:$0xff]  ;;  %v1895_v49 = vld [vmem:[%s17041_s3 + $0x738] sm:$0xff]  ;;  %v1880_v50 = vld [vmem:[%s17041_s3 + $0x6c0] sm:$0xff] }
 0x7d0   :  { %v1436_v55 = vmax.f32 %v1352_v53, 0.0  ;;  %v1438_v58 = vmax.f32 %v1429_v54, 0.0  ;;  %9186 = vmatpush1.msk.msra.mxu0 %vm131_vm3, %v1655_v39  ;;  %9190 = vmatpush1.msk.msra.mxu1 %vm131_vm3, %v1657_v48  ;;  %v11796_v36 = vpack.c.bf16 %v1893_v30, %v1892_v29  ;;  %v1863_v39 = vld [vmem:[%s17041_s3 + $0x638] sm:$0xff]  ;;  %v1894_v51 = vld [vmem:[%s17041_s3 + $0x730] sm:$0xff]  ;;  %v1881_v13 = vld [vmem:[%s17041_s3 + $0x6c8] sm:$0xff]  ;;  %v11774_v1 = vpack.c.bf16 %v1883_v63, %v1882_v62 }
 0x7d1   :  { %11755 = vmatprep.subr.bf16.mxu0 %v11754_v40  ;;  %11787 = vmatprep.subr.bf16.mxu1 %v11786_v43  ;;  %v11766_v40 = vpack.c.bf16 %v1879_v32, %v1878_v31  ;;  %v11798_v43 = vpack.c.bf16 %v1911_v34, %v1910_v33  ;;  %v1912_v16 = vld [vmem:[%s17041_s3 + $0x7c0] sm:$0xff]  ;;  %v1913_v47 = vld [vmem:[%s17041_s3 + $0x7c8] sm:$0xff]  ;;  %v11768_v48 = vpack.c.bf16 %v1863_v39, %v1862_v37  ;;  %v1914_v0 = vld [vmem:[%s17041_s3 + $0x7d0] sm:$0xff] }
 0x7d2   :  { %1572 = vmatprep.mubr.f32.mxu0 %v1436_v55  ;;  %1647 = vmatprep.mubr.f32.mxu1 %v1438_v58  ;;  %v11800_v53 = vpack.c.bf16 %v1895_v49, %v1894_v51  ;;  %v11770_v54 = vpack.c.bf16 %v1881_v13, %v1880_v50  ;;  %v11802_v55 = vpack.c.bf16 %v1913_v47, %v1912_v16  ;;  %v1864_v58 = vld [vmem:[%s17041_s3 + $0x640] sm:$0xff]  ;;  %v1915_v2 = vld [vmem:[%s17041_s3 + $0x7d8] sm:$0xff]  ;;  %v1885_v19 = vld [vmem:[%s17041_s3 + $0x6e8] sm:$0xff] }
 0x7d3   :  { %1573 = vmatmul.mubr.f32.gmra.mrb[24].mxu0 %v1435_v59  ;;  %1648 = vmatmul.mubr.f32.gmra.mrb[26].mxu1 %v1437_v41  ;;  %v1865_v59 = vld [vmem:[%s17041_s3 + $0x648] sm:$0xff]  ;;  %v1896_v41 = vld [vmem:[%s17041_s3 + $0x740] sm:$0xff]  ;;  %v11806_v5 = vpack.c.bf16 %v1915_v2, %v1914_v0  ;;  %v1886_v30 = vld [vmem:[%s17041_s3 + $0x6f0] sm:$0xff] }
 0x7d4   :  { %1758 = vmatprep.mubr.f32.mxu0 %v12755_v9  ;;  %1835 = vmatprep.mubr.f32.mxu1 %v12755_v9  ;;  %v11772_v42 = vpack.c.bf16 %v1865_v59, %v1864_v58  ;;  %v11804_v61 = vpack.c.bf16 %v1897_v60, %v1896_v41  ;;  %v1884_v18 = vld [vmem:[%s17041_s3 + $0x6e0] sm:$0xff]  ;;  %v1887_v31 = vld [vmem:[%s17041_s3 + $0x6f8] sm:$0xff]  ;;  %v1918_v32 = vld [vmem:[%s17041_s3 + $0x7f0] sm:$0xff] }
 0x7d5   :  { %v1916_v20 = vld [vmem:[%s17041_s3 + $0x7e0] sm:$0xff]  ;;  %v11778_v21 = vpack.c.bf16 %v1885_v19, %v1884_v18  ;;  %v11782_v33 = vpack.c.bf16 %v1887_v31, %v1886_v30  ;;  %v1919_v34 = vld [vmem:[%s17041_s3 + $0x7f8] sm:$0xff] }
 0x7d6   :  { %v11810_v25 = vpack.c.bf16 %v1917_v22, %v1916_v20  ;;  %v11814_v37 = vpack.c.bf16 %v1919_v34, %v1918_v32 }
 0x7d7   :  { %9187 = vmatmul.mubr.msk.f32.vlgmr.msra.gmra.mrb[26].mxu0 %vm124_vm4, %v12894_v52  ;;  %9191 = vmatmul.mubr.msk.f32.vlgmr.msra.gmra.mrb[28].mxu1 %vm124_vm4, %v12894_v52 }
 0x7d8   :  { %1764 = vmatprep.mubr.f32.mxu0 %v12755_v9  ;;  %1841 = vmatprep.mubr.f32.mxu1 %v12755_v9 }
 0x7d9   :  { %11757 = vmatpush3.bf16.msra.mxu0 %v11756_v3  ;;  %11789 = vmatpush3.bf16.msra.mxu1 %v11788_v4  ;;  %v1866_v3 = vld [vmem:[%s17041_s3 + $0x650] sm:$0xff]  ;;  %v1867_v4 = vld [vmem:[%s17041_s3 + $0x658] sm:$0xff] }
 0x7da   :  { %11759 = vmatprep.subr.bf16.mxu0 %v11758_v10  ;;  %11791 = vmatprep.subr.bf16.mxu1 %v11790_v11  ;;  %v11776_v8 = vpack.c.bf16 %v1867_v4, %v1866_v3  ;;  %v1898_v10 = vld [vmem:[%s17041_s3 + $0x750] sm:$0xff]  ;;  %v1899_v11 = vld [vmem:[%s17041_s3 + $0x758] sm:$0xff] }
 0x7db   :  { %9188 = vmatmul.mubr.msk.f32.gmra.mrb[28].mxu0 %vm124_vm4, %v12908_v57  ;;  %9192 = vmatmul.mubr.msk.f32.gmra.mrb[30].mxu1 %vm124_vm4, %v12908_v57  ;;  %v11808_v12 = vpack.c.bf16 %v1899_v11, %v1898_v10 }
 0x7dd   :  { %11761 = vmatpush3.bf16.msra.mxu0 %v11760_v23  ;;  %11793 = vmatpush3.bf16.msra.mxu1 %v11792_v24  ;;  %v1868_v23 = vld [vmem:[%s17041_s3 + $0x660] sm:$0xff]  ;;  %v1869_v24 = vld [vmem:[%s17041_s3 + $0x668] sm:$0xff] }
 0x7de   :  { %11763 = vmatprep.subr.bf16.mxu0 %v11762_v27  ;;  %11795 = vmatprep.subr.bf16.mxu1 %v11794_v28  ;;  %v11780_v26 = vpack.c.bf16 %v1869_v24, %v1868_v23  ;;  %v1900_v27 = vld [vmem:[%s17041_s3 + $0x760] sm:$0xff]  ;;  %v1901_v28 = vld [vmem:[%s17041_s3 + $0x768] sm:$0xff] }
 0x7df   :  { %v11812_v29 = vpack.c.bf16 %v1901_v28, %v1900_v27 }
 0x7e1   :  { %11765 = vmatpush3.bf16.msra.mxu0 %v11764_v35  ;;  %11797 = vmatpush3.bf16.msra.mxu1 %v11796_v36  ;;  %v1870_v35 = vld [vmem:[%s17041_s3 + $0x670] sm:$0xff]  ;;  %v1871_v36 = vld [vmem:[%s17041_s3 + $0x678] sm:$0xff] }
 0x7e2   :  { %11767 = vmatprep.subr.bf16.mxu0 %v11766_v40  ;;  %11799 = vmatprep.subr.bf16.mxu1 %v11798_v43  ;;  %v11784_v39 = vpack.c.bf16 %v1871_v36, %v1870_v35  ;;  %v1902_v40 = vld [vmem:[%s17041_s3 + $0x770] sm:$0xff]  ;;  %v1903_v43 = vld [vmem:[%s17041_s3 + $0x778] sm:$0xff] }
 0x7e3   :  { %v11816_v51 = vpack.c.bf16 %v1903_v43, %v1902_v40 }
 0x7e5   :  { %11769 = vmatpush3.bf16.msra.mxu0 %v11768_v48  ;;  %11801 = vmatpush3.bf16.msra.mxu1 %v11800_v53  ;;  %v9184_v53 = vld [vmem:[%s17040_s2 + $0xe0] ss:$8 sm:$0xf] }
 0x7e6   :  { %11771 = vmatprep.subr.bf16.mxu0 %v11770_v54  ;;  %11803 = vmatprep.subr.bf16.mxu1 %v11802_v55  ;;  %v1673_v60 = vrot.slane %v9184_v53, %v13134_v45 }
 0x7e9   :  { %11773 = vmatpush3.bf16.msra.mxu0 %v11772_v42  ;;  %11805 = vmatpush3.bf16.msra.mxu1 %v11804_v61  ;;  %v1665_v42 = vrot.slane %v9184_v53, %v13131_v44  ;;  %v1669_v61 = vrot.slane %v9184_v53, %v13137_v46 }
 0x7ea   :  { %11775 = vmatprep.subr.bf16.mxu0 %v11774_v1  ;;  %11807 = vmatprep.subr.bf16.mxu1 %v11806_v5  ;;  %v1677_v1 = vrot.slane %v9184_v53, %v13140_v6 }
 0x7ed   :  { %11777 = vmatpush3.bf16.msra.mxu0 %v11776_v8  ;;  %11809 = vmatpush3.bf16.msra.mxu1 %v11808_v12 }
 0x7ee   :  { %11779 = vmatprep.subr.bf16.mxu0 %v11778_v21  ;;  %11811 = vmatprep.subr.bf16.mxu1 %v11810_v25 }
 0x7f1   :  { %11781 = vmatpush3.bf16.msra.mxu0 %v11780_v26  ;;  %11813 = vmatpush3.bf16.msra.mxu1 %v11812_v29 }
 0x7f2   :  { %11783 = vmatprep.subr.bf16.mxu0 %v11782_v33  ;;  %11815 = vmatprep.subr.bf16.mxu1 %v11814_v37 }
 0x7f5   :  { %11785 = vmatpush3.bf16.msra.mxu0 %v11784_v39  ;;  %11817 = vmatpush3.bf16.msra.mxu1 %v11816_v51 }
 0x8a2   :  { %v10386_v49 = vpop.f32.mrb[22].mxu0  ;;  %v10424_v50 = vpop.f32.mrb[24].mxu1 }
 0x8a3   :  { %v10387_v13 = vpop.f32.mrb[23].mxu0  ;;  %v10425_v16 = vpop.f32.mrb[25].mxu1 }
 0x8a4   :  { %v10388_v47 = vadd.f32 %v10387_v13, %v10386_v49  ;;  %v10426_v48 = vadd.f32 %v10425_v16, %v10424_v50  ;;  %v9193_v16 = vld [vmem:[%s17039_s1 + $0x40] ss:$0 sm:$0xff] }
 0x8a6   :  { %v1645_v54 = vadd.f32 %v10426_v48, %v10388_v47  ;;  %v10389_v55 = vpop.f32.mrb[24].mxu0  ;;  %v10427_v58 = vpop.f32.mrb[26].mxu1 }
 0x8a7   :  { %v10390_v59 = vpop.f32.mrb[25].mxu0  ;;  %v10428_v41 = vpop.f32.mrb[27].mxu1 }
 0x8a8   :  { %v1653_v62 = vadd.f32 %v1645_v54, %v13595_v17  ;;  %v10391_v63 = vadd.f32 %v10390_v59, %v10389_v55  ;;  %v10429_v0 = vadd.f32 %v10428_v41, %v10427_v58 }
 0x8aa   :  { %v1650_v2 = vadd.f32 %v10429_v0, %v10391_v63  ;;  %v1760_v3 = vpop.f32.mrb[26].mxu0  ;;  %v1837_v4 = vpop.f32.mrb[28].mxu1 }
 0x8ab   :  { %v1761_v5 = vadd.f32 %v1760_v3, %v1665_v42  ;;  %v1838_v8 = vadd.f32 %v1837_v4, %v1673_v60  ;;  %v1762_v10 = vpop.f32.mrb[27].mxu0  ;;  %v1839_v11 = vpop.f32.mrb[29].mxu1 }
 0x8ac   :  { %v1654_v12 = vadd.f32 %v1650_v2, %v13610_v56  ;;  %v1763_v18 = vadd.f32 %v1762_v10, %v1669_v61  ;;  %v1840_v19 = vadd.f32 %v1839_v11, %v1677_v1 }
 0x8ad   :  { %v1848_v17 = vmax.f32 %v1761_v5, 0.0  ;;  %v1850_v24 = vmax.f32 %v1838_v8, 0.0 }
 0x8ae   :  { %v1849_v20 = vmax.f32 %v1763_v18, 0.0  ;;  %v1851_v21 = vmax.f32 %v1840_v19, 0.0  ;;  %v1766_v22 = vpop.f32.mrb[28].mxu0  ;;  %v1843_v23 = vpop.f32.mrb[30].mxu1 }
 0x8af   :  { %v1767_v25 = vadd.f32 %v1766_v22, %v1665_v42  ;;  %v1844_v26 = vadd.f32 %v1843_v23, %v1673_v60  ;;  %v1768_v27 = vpop.f32.mrb[29].mxu0  ;;  %v1845_v28 = vpop.f32.mrb[31].mxu1  ;;  %v9194_v22 = vld [vmem:[%s17039_s1 + $0x48] ss:$0 sm:$0xff] }
 0x8b0   :  { %v1769_v29 = vadd.f32 %v1768_v27, %v1669_v61  ;;  %v1846_v30 = vadd.f32 %v1845_v28, %v1677_v1  ;;  %1984 = vmatprep.mubr.f32.mxu0 %v1849_v20  ;;  %2059 = vmatprep.mubr.f32.mxu1 %v1851_v21 }
 0x8b1   :  { %1985 = vmatmul.mubr.f32.vlgmr.msra.gmra.mrb[30].mxu0 %v1848_v17  ;;  %2060 = vmatmul.mubr.f32.vlgmr.msra.gmra.mrb[32].mxu1 %v1850_v24  ;;  %v1852_v32 = vmax.f32 %v1767_v25, 0.0  ;;  %v1854_v33 = vmax.f32 %v1844_v26, 0.0  ;;  %v9195_v17 = vld [vmem:[%s17039_s1 + $0x50] ss:$0 sm:$0xff] }
 0x8b2   :  { %v1853_v31 = vmax.f32 %v1769_v29, 0.0  ;;  %v1855_v56 = vmax.f32 %v1846_v30, 0.0  ;;  %v9196_v30 = vld [vmem:[%s17039_s1 + $0x60] ss:$0 sm:$0xff] }
 0x8b4   :  { %1989 = vmatprep.mubr.f32.mxu0 %v1853_v31  ;;  %2064 = vmatprep.mubr.f32.mxu1 %v1855_v56 }
 0x8b5   :  { %1990 = vmatmul.mubr.f32.gmra.mrb[32].mxu0 %v1852_v32  ;;  %2065 = vmatmul.mubr.f32.gmra.mrb[34].mxu1 %v1854_v33 }
 0x984   :  { %v10462_v34 = vpop.f32.mrb[30].mxu0  ;;  %v10500_v35 = vpop.f32.mrb[32].mxu1 }
 0x985   :  { %v10463_v36 = vpop.f32.mrb[31].mxu0  ;;  %v10501_v37 = vpop.f32.mrb[33].mxu1 }
 0x986   :  { %v10464_v39 = vadd.f32 %v10463_v36, %v10462_v34  ;;  %v10502_v40 = vadd.f32 %v10501_v37, %v10500_v35 }
 0x988   :  { %v2062_v43 = vadd.f32 %v10502_v40, %v10464_v39  ;;  %v10465_v51 = vpop.f32.mrb[32].mxu0  ;;  %v10503_v49 = vpop.f32.mrb[34].mxu1 }
 0x989   :  { %v10466_v50 = vpop.f32.mrb[33].mxu0  ;;  %v10504_v13 = vpop.f32.mrb[35].mxu1 }
 0x98a   :  { %v2070_v47 = vadd.f32 %v2062_v43, %v1653_v62  ;;  %v10467_v48 = vadd.f32 %v10466_v50, %v10465_v51  ;;  %v10505_v53 = vadd.f32 %v10504_v13, %v10503_v49 }
 0x98c   :  { %v2067_v54 = vadd.f32 %v10505_v53, %v10467_v48  ;;  %v2076_v55 = vadd.f32 %v9193_v16, %v2070_v47 }
 0x98e   :  { %v2071_v58 = vadd.f32 %v2067_v54, %v1654_v12  ;;  %v2078_v59 = vadd.f32 %v2076_v55, %v12894_v52 }
 0x990   :  { %v2082_v41 = vsel %vm124_vm4, %v2078_v59, 0.0  ;;  %v2077_v42 = vadd.f32 %v9193_v16, %v2071_v58 }
 0x991   :  { %2083 = vadd.xlane.f32.xlu1 %v2082_v41 }
 0x992   :  { %v2079_v60 = vadd.f32 %v2077_v42, %v12908_v57  ;;  %v2120_v57 = vld [vmem:[%s17039_s1 + $0x58] sm:$0xf] }
 0x993   :  { %11479 = vmatprep.subr.msk.mxu0 %vm131_vm3, %v2120_v57 }
 0x994   :  { %v2085_v61 = vsel %vm124_vm4, %v2079_v60, 0.0  ;;  %11480 = vmatpush3.msk.msra.mxu0 %vm131_vm3, %v2120_v57 }
 0x995   :  { %2086 = vadd.xlane.f32.xlu0 %v2085_v61 }
 0xa1e   :  { %v2084_v63 = vpop.xlane.xlu1 %2083 }
 0xa1f   :  { %v2088_v0 = vmul.f32 0.25, %v2084_v63 }
 0xa21   :  { %v2090_v1 = vsub.f32 %v2078_v59, %v2088_v0 }
 0xa22   :  { %v2087_v62 = vpop.xlane.xlu0 %2086 }
 0xa23   :  { %v2089_v2 = vmul.f32 0.25, %v2087_v62  ;;  %v2092_v3 = vmul.f32 %v2090_v1, %v2090_v1 }
 0xa25   :  { %v2091_v4 = vsub.f32 %v2079_v60, %v2089_v2  ;;  %v2094_v5 = vsel %vm124_vm4, %v2092_v3, 0.0 }
 0xa26   :  { %2095 = vadd.xlane.f32.xlu1 %v2094_v5 }
 0xa27   :  { %v2093_v52 = vmul.f32 %v2091_v4, %v2091_v4 }
 0xa29   :  { %v2097_v8 = vsel %vm124_vm4, %v2093_v52, 0.0  ;;  %v2264_v52 = vld [vmem:[%s17039_s1 + $0x68] sm:$0xf] }
 0xa2a   :  { %2098 = vadd.xlane.f32.xlu0 %v2097_v8  ;;  %11484 = vmatprep.subr.msk.mxu1 %vm131_vm3, %v2264_v52 }
 0xa2b   :  { %11485 = vmatpush3.msk.msra.mxu1 %vm131_vm3, %v2264_v52  ;;  %v9313_v52 = vld [vmem:[%s17041_s3 + $0xa88] sm:$0xff] }
 0xab3   :  { %v2096_v10 = vpop.xlane.xlu1 %2095 }
 0xab4   :  { %v2100_v11 = vmul.f32 0.25, %v2096_v10 }
 0xab6   :  { %v2102_v12 = vadd.f32 1e-05, %v2100_v11 }
 0xab7   :  { %v2099_v18 = vpop.xlane.xlu0 %2098 }
 0xab8   :  { %12634 = vrsqrt.f32 %v2102_v12  ;;  %v2101_v19 = vmul.f32 0.25, %v2099_v18 }
 0xaba   :  { %v2103_v20 = vadd.f32 1e-05, %v2101_v19 }
 0xabc   :  { %12636 = vrsqrt.f32 %v2103_v20 }
 0xac2   :  { %v12635_v21 = vpop.eup %12634 }
 0xac3   :  { %v2106_v23 = vmul.f32 %v12635_v21, %v2090_v1 }
 0xac5   :  { %v2112_v24 = vmul.f32 %v9194_v22, %v2106_v23 }
 0xac6   :  { %v12637_v25 = vpop.eup %12636 }
 0xac7   :  { %v2107_v26 = vmul.f32 %v12637_v25, %v2091_v4  ;;  %v13841_v27 = vadd.f32 %v9195_v17, %v2112_v24 }
 0xac9   :  { %v2113_v28 = vmul.f32 %v9194_v22, %v2107_v26  ;;  %11481 = vmatprep.mubr.msk.f32.mxu0 %vm124_vm4, %v13841_v27 }
 0xacb   :  { %v13845_v29 = vadd.f32 %v9195_v17, %v2113_v28  ;;  %v9200_v28 = vld [vmem:[%s17039_s1 + $0x70] ss:$0 sm:$0xff] }
 0xacd   :  { %11482 = vmatmul.mubr.msk.f32.vlgmr.msra.gmra.mrb[34].mxu0 %vm124_vm4, %v13845_v29 }
 0xace   :  { %2511 = vmatprep.mubr.f32.mxu0 %v12755_v9 }
 0xba0   :  { %v11483_v31 = vpop.f32.mrb[34].mxu0 }
 0xba1   :  { %v2207_v56 = vadd.f32 %v11483_v31, %v9196_v30  ;;  %v2201_v32 = vpop.f32.mrb[35].mxu0 }
 0xba2   :  { %v2202_v33 = vadd.f32 %v9196_v30, %v2201_v32 }
 0xba3   :  { %2220 = vrot.lane.b32.xlu0 %v2207_v56, %s12756_s26 }
 0xba4   :  { %2211 = vrot.lane.b32.xlu1 %v2202_v33, %s12756_s26 }
 0xc15   :  { %v2221_v34 = vpop.permute.xlu0 %2220 }
 0xc16   :  { %v2223_v35 = vmul.f32 %v2221_v34, %v2202_v33  ;;  %v2212_v36 = vpop.permute.xlu1 %2211  ;;  %v2246_v39 = vmul.f32 %v2221_v34, %v2207_v56 }
 0xc17   :  { %v2214_v37 = vmul.f32 %v2212_v36, %v2202_v33  ;;  %v2241_v43 = vmul.f32 %v2212_v36, %v2207_v56 }
 0xc18   :  { %v2224_v40 = vsel %vm124_vm4, %v2223_v35, 0.0  ;;  %v2247_v49 = vsel %vm124_vm4, %v2246_v39, 0.0 }
 0xc19   :  { %2225 = vadd.xlane.f32.xlu0 %v2224_v40  ;;  %v2215_v51 = vsel %vm124_vm4, %v2214_v37, 0.0  ;;  %v2242_v50 = vsel %vm124_vm4, %v2241_v43, 0.0 }
 0xc1a   :  { %2216 = vadd.xlane.f32.xlu1 %v2215_v51 }
 0xc1d   :  { %2248 = vadd.xlane.f32.xlu0 %v2247_v49 }
 0xc1e   :  { %2243 = vadd.xlane.f32.xlu1 %v2242_v50 }
 0xca6   :  { %v2226_v13 = vpop.xlane.xlu0 %2225 }
 0xca7   :  { %v2227_v16 = vmul.f32 0.5, %v2226_v13  ;;  %v2217_v47 = vpop.xlane.xlu1 %2216 }
 0xca8   :  { %v2218_v48 = vmul.f32 0.5, %v2217_v47  ;;  %v9209_v47 = vld [vmem:[%s17040_s2 + $0x118] sm:$0xf] }
 0xca9   :  { %9215 = vmatprep.subr.msk.mxu1 %vm131_vm3, %v9209_v47  ;;  %v9332_v47 = vld [vmem:[%s17041_s3 + $0xb20] sm:$0xff] }
 0xcaa   :  { %v2228_v53 = vmax.f32 %v2218_v48, %v2227_v16  ;;  %v2249_v54 = vpop.xlane.xlu0 %2248 }
 0xcab   :  { %v2250_v55 = vmul.f32 0.5, %v2249_v54  ;;  %v2244_v58 = vpop.xlane.xlu1 %2243  ;;  %v9284_v54 = vld [vmem:[%s17040_s2 + $0x128] sm:$0xf] }
 0xcac   :  { %v2229_v59 = vsub.f32 %v2218_v48, %v2228_v53  ;;  %v2232_v41 = vsub.f32 %v2227_v16, %v2228_v53  ;;  %v2245_v42 = vmul.f32 0.5, %v2244_v58  ;;  %v9206_v48 = vld [vmem:[%s17040_s2 + $0x100] sm:$0xf]  ;;  %v9208_v53 = vld [vmem:[%s17040_s2 + $0x110] sm:$0xf] }
 0xcae   :  { %v2230_v60 = vmul.f32 1.442695, %v2229_v59  ;;  %v2233_v61 = vmul.f32 1.442695, %v2232_v41  ;;  %v2251_v63 = vmax.f32 %v2245_v42, %v2250_v55 }
 0xcb0   :  { %12638 = vpow2.f32 %v2230_v60  ;;  %v2252_v0 = vsub.f32 %v2245_v42, %v2251_v63  ;;  %v2255_v1 = vsub.f32 %v2250_v55, %v2251_v63  ;;  %v9286_v55 = vld [vmem:[%s17040_s2 + $0x138] sm:$0xf] }
 0xcb1   :  { %12640 = vpow2.f32 %v2233_v61 }
 0xcb2   :  { %v2253_v62 = vmul.f32 1.442695, %v2252_v0  ;;  %v2256_v2 = vmul.f32 1.442695, %v2255_v1  ;;  %v9204_v1 = vld [vmem:[%s17039_s1 + $0x78] ss:$0 sm:$0xff] }
 0xcb4   :  { %12642 = vpow2.f32 %v2253_v62 }
 0xcb5   :  { %12644 = vpow2.f32 %v2256_v2 }
 0xcba   :  { %v12639_v3 = vpop.eup %12638 }
 0xcbb   :  { %v12641_v4 = vpop.eup %12640  ;;  %v2236_v11 = vmul.f32 %v12639_v3, %v2202_v33 }
 0xcbc   :  { %v2235_v5 = vadd.f32 %v12641_v4, %v12639_v3  ;;  %v2237_v12 = vmul.f32 %v12641_v4, %v2207_v56  ;;  %v9205_v3 = vld [vmem:[%s17039_s1 + $0x80] ss:$0 sm:$0xff] }
 0xcbd   :  { %v9312_v4 = vld [vmem:[%s17041_s3 + $0xa80] sm:$0xff] }
 0xcbe   :  { %v12643_v8 = vpop.eup %12642  ;;  %12646 = vrcp.f32 %v2235_v5  ;;  %v2238_v18 = vadd.f32 %v2237_v12, %v2236_v11  ;;  %v9283_v12 = vld [vmem:[%s17040_s2 + $0x120] sm:$0xf] }
 0xcbf   :  { %v12645_v57 = vpop.eup %12644  ;;  %v2259_v19 = vmul.f32 %v12643_v8, %v2202_v33 }
 0xcc0   :  { %v2258_v10 = vadd.f32 %v12645_v57, %v12643_v8  ;;  %v2260_v20 = vmul.f32 %v12645_v57, %v2207_v56  ;;  %v9344_v8 = vld [vmem:[%s17041_s3 + $0xb80] sm:$0xff]  ;;  %v9345_v57 = vld [vmem:[%s17041_s3 + $0xb88] sm:$0xff] }
 0xcc2   :  { %12648 = vrcp.f32 %v2258_v10  ;;  %v2261_v23 = vadd.f32 %v2260_v20, %v2259_v19  ;;  %v11818_v19 = vpack.c.bf16 %v9313_v52, %v9312_v4  ;;  %v11850_v20 = vpack.c.bf16 %v9345_v57, %v9344_v8  ;;  %v9353_v4 = vld [vmem:[%s17041_s3 + $0xbc8] sm:$0xff]  ;;  %v9304_v8 = vld [vmem:[%s17041_s3 + $0xa40] sm:$0xff] }
 0xcc8   :  { %v12647_v21 = vpop.eup %12646 }
 0xcc9   :  { %v2240_v22 = vmul.f32 %v12647_v21, %v2238_v18  ;;  %v9285_v18 = vld [vmem:[%s17040_s2 + $0x130] sm:$0xf] }
 0xccb   :  { %2272 = vrot.lane.b32.xlu1 %v2240_v22, %s12757_s29  ;;  %v9296_v22 = vld [vmem:[%s17041_s3 + $0xa00] sm:$0xff] }
 0xccc   :  { %v12649_v17 = vpop.eup %12648 }
 0xccd   :  { %v2263_v24 = vmul.f32 %v12649_v17, %v2261_v23  ;;  %v9297_v23 = vld [vmem:[%s17041_s3 + $0xa08] sm:$0xff]  ;;  %v9328_v17 = vld [vmem:[%s17041_s3 + $0xb00] sm:$0xff] }
 0xccf   :  { %2274 = vrot.lane.b32.xlu0 %v2263_v24, %s12757_s29  ;;  %v9329_v24 = vld [vmem:[%s17041_s3 + $0xb08] sm:$0xff] }
 0xd3d   :  { %v2273_v25 = vpop.permute.xlu1 %2272 }
 0xd3e   :  { %11486 = vmatprep.mubr.msk.f32.mxu1 %vm124_vm4, %v2273_v25  ;;  %v9314_v25 = vld [vmem:[%s17041_s3 + $0xa90] sm:$0xff] }
 0xd41   :  { %v2275_v26 = vpop.permute.xlu0 %2274 }
 0xd42   :  { %11487 = vmatmul.mubr.msk.f32.vlgmr.msra.gmra.mrb[36].mxu1 %vm124_vm4, %v2275_v26  ;;  %v9315_v26 = vld [vmem:[%s17041_s3 + $0xa98] sm:$0xff] }
 0xd43   :  { %2588 = vmatprep.mubr.f32.mxu1 %v12755_v9  ;;  %9216 = vmatpush1.msk.msra.mxu1 %vm131_vm3, %v9208_v53  ;;  %v9318_v53 = vld [vmem:[%s17041_s3 + $0xab0] sm:$0xff] }
 0xd44   :  { %9292 = vmatprep.subr.msk.mxu1 %vm131_vm3, %v9286_v55  ;;  %v9350_v55 = vld [vmem:[%s17041_s3 + $0xbb0] sm:$0xff] }
 0xe15   :  { %v11488_v30 = vpop.f32.mrb[36].mxu1 }
 0xe16   :  { %v2355_v31 = vadd.f32 %v11488_v30, %v9200_v28  ;;  %v2349_v56 = vpop.f32.mrb[37].mxu1  ;;  %v9347_v30 = vld [vmem:[%s17041_s3 + $0xb98] sm:$0xff] }
 0xe17   :  { %v2350_v32 = vadd.f32 %v9200_v28, %v2349_v56  ;;  %v9346_v28 = vld [vmem:[%s17041_s3 + $0xb90] sm:$0xff]  ;;  %v11852_v56 = vpack.c.bf16 %v9329_v24, %v9328_v17  ;;  %v9323_v17 = vld [vmem:[%s17041_s3 + $0xad8] sm:$0xff] }
 0xe18   :  { %v2359_v33 = vadd.f32 %v2355_v31, %v13845_v29  ;;  %v11820_v31 = vpack.c.bf16 %v9297_v23, %v9296_v22  ;;  %v9322_v23 = vld [vmem:[%s17041_s3 + $0xad0] sm:$0xff] }
 0xe19   :  { %v2358_v34 = vadd.f32 %v2350_v32, %v13841_v27  ;;  %v9207_v27 = vld [vmem:[%s17040_s2 + $0x108] sm:$0xf]  ;;  %v9298_v32 = vld [vmem:[%s17041_s3 + $0xa10] sm:$0xff] }
 0xe1a   :  { %v2365_v35 = vsel %vm124_vm4, %v2359_v33, 0.0  ;;  %9211 = vmatprep.subr.msk.mxu0 %vm131_vm3, %v9207_v27  ;;  %v9354_v24 = vld [vmem:[%s17041_s3 + $0xbd0] sm:$0xff] }
 0xe1b   :  { %2366 = vadd.xlane.f32.xlu0 %v2365_v35  ;;  %v2362_v36 = vsel %vm124_vm4, %v2358_v34, 0.0  ;;  %9212 = vmatpush1.msk.msra.mxu0 %vm131_vm3, %v9206_v48  ;;  %v11854_v35 = vpack.c.bf16 %v9347_v30, %v9346_v28  ;;  %v9333_v48 = vld [vmem:[%s17041_s3 + $0xb28] sm:$0xff]  ;;  %v9306_v28 = vld [vmem:[%s17041_s3 + $0xa50] sm:$0xff]  ;;  %v9307_v30 = vld [vmem:[%s17041_s3 + $0xa58] sm:$0xff] }
 0xe1c   :  { %2363 = vadd.xlane.f32.xlu1 %v2362_v36  ;;  %9288 = vmatprep.subr.msk.mxu0 %vm131_vm3, %v9284_v54  ;;  %v9330_v36 = vld [vmem:[%s17041_s3 + $0xb10] sm:$0xff]  ;;  %v9319_v54 = vld [vmem:[%s17041_s3 + $0xab8] sm:$0xff] }
 0xea8   :  { %v2367_v37 = vpop.xlane.xlu0 %2366 }
 0xea9   :  { %v2369_v39 = vmul.f32 0.25, %v2367_v37  ;;  %v2364_v40 = vpop.xlane.xlu1 %2363  ;;  %v9331_v37 = vld [vmem:[%s17041_s3 + $0xb18] sm:$0xff] }
 0xeaa   :  { %v2368_v43 = vmul.f32 0.25, %v2364_v40  ;;  %v9317_v40 = vld [vmem:[%s17041_s3 + $0xaa8] sm:$0xff] }
 0xeab   :  { %v2371_v51 = vsub.f32 %v2359_v33, %v2369_v39  ;;  %v9299_v33 = vld [vmem:[%s17041_s3 + $0xa18] sm:$0xff]  ;;  %v9316_v39 = vld [vmem:[%s17041_s3 + $0xaa0] sm:$0xff] }
 0xeac   :  { %v2370_v49 = vsub.f32 %v2358_v34, %v2368_v43  ;;  %v11822_v34 = vpack.c.bf16 %v9315_v26, %v9314_v25  ;;  %v9348_v43 = vld [vmem:[%s17041_s3 + $0xba0] sm:$0xff]  ;;  %v11838_v25 = vpack.c.bf16 %v9323_v17, %v9322_v23  ;;  %v9355_v26 = vld [vmem:[%s17041_s3 + $0xbd8] sm:$0xff] }
 0xead   :  { %v2373_v50 = vmul.f32 %v2371_v51, %v2371_v51 }
 0xeae   :  { %v2372_v13 = vmul.f32 %v2370_v49, %v2370_v49 }
 0xeaf   :  { %v2377_v16 = vsel %vm124_vm4, %v2373_v50, 0.0  ;;  %v11856_v50 = vpack.c.bf16 %v9331_v37, %v9330_v36  ;;  %v9325_v36 = vld [vmem:[%s17041_s3 + $0xae8] sm:$0xff]  ;;  %v9356_v37 = vld [vmem:[%s17041_s3 + $0xbe0] sm:$0xff] }
 0xeb0   :  { %2378 = vadd.xlane.f32.xlu0 %v2377_v16  ;;  %v2374_v29 = vsel %vm124_vm4, %v2372_v13, 0.0  ;;  %v9300_v13 = vld [vmem:[%s17041_s3 + $0xa20] sm:$0xff]  ;;  %v9301_v16 = vld [vmem:[%s17041_s3 + $0xa28] sm:$0xff] }
 0xeb1   :  { %2375 = vadd.xlane.f32.xlu1 %v2374_v29  ;;  %v11826_v29 = vpack.c.bf16 %v9317_v40, %v9316_v39  ;;  %v9357_v40 = vld [vmem:[%s17041_s3 + $0xbe8] sm:$0xff] }
 0xf3d   :  { %v2379_v58 = vpop.xlane.xlu0 %2378 }
 0xf3e   :  { %v2381_v59 = vmul.f32 0.25, %v2379_v58  ;;  %v2376_v41 = vpop.xlane.xlu1 %2375  ;;  %v9351_v58 = vld [vmem:[%s17041_s3 + $0xbb8] sm:$0xff] }
 0xf3f   :  { %v2380_v42 = vmul.f32 0.25, %v2376_v41  ;;  %v11860_v41 = vpack.c.bf16 %v9333_v48, %v9332_v47  ;;  %v9327_v47 = vld [vmem:[%s17041_s3 + $0xaf8] sm:$0xff]  ;;  %v9358_v48 = vld [vmem:[%s17041_s3 + $0xbf0] sm:$0xff] }
 0xf40   :  { %v2383_v60 = vadd.f32 1e-05, %v2381_v59  ;;  %v11828_v59 = vpack.c.bf16 %v9301_v16, %v9300_v13  ;;  %v9340_v13 = vld [vmem:[%s17041_s3 + $0xb60] sm:$0xff]  ;;  %v9341_v16 = vld [vmem:[%s17041_s3 + $0xb68] sm:$0xff] }
 0xf41   :  { %v2382_v61 = vadd.f32 1e-05, %v2380_v42  ;;  %v9302_v42 = vld [vmem:[%s17041_s3 + $0xa30] sm:$0xff] }
 0xf42   :  { %12650 = vrsqrt.f32 %v2383_v60  ;;  %v9303_v60 = vld [vmem:[%s17041_s3 + $0xa38] sm:$0xff] }
 0xf43   :  { %12652 = vrsqrt.f32 %v2382_v61  ;;  %v11830_v61 = vpack.c.bf16 %v9319_v54, %v9318_v53  ;;  %v9359_v54 = vld [vmem:[%s17041_s3 + $0xbf8] sm:$0xff] }
 0xf4c   :  { %v12651_v63 = vpop.eup %12650 }
 0xf4d   :  { %v12653_v0 = vpop.eup %12652  ;;  %v2387_v62 = vmul.f32 %v12651_v63, %v2371_v51  ;;  %v9349_v51 = vld [vmem:[%s17041_s3 + $0xba8] sm:$0xff]  ;;  %v11862_v63 = vpack.c.bf16 %v9351_v58, %v9350_v55  ;;  %v9310_v55 = vld [vmem:[%s17041_s3 + $0xa70] sm:$0xff]  ;;  %v9311_v58 = vld [vmem:[%s17041_s3 + $0xa78] sm:$0xff] }
 0xf4e   :  { %v2386_v2 = vmul.f32 %v12653_v0, %v2370_v49  ;;  %v11824_v49 = vpack.c.bf16 %v9299_v33, %v9298_v32  ;;  %v11858_v27 = vpack.c.bf16 %v9349_v51, %v9348_v43  ;;  %v9334_v0 = vld [vmem:[%s17041_s3 + $0xb30] sm:$0xff]  ;;  %v9339_v33 = vld [vmem:[%s17041_s3 + $0xb58] sm:$0xff]  ;;  %v9308_v43 = vld [vmem:[%s17041_s3 + $0xa60] sm:$0xff] }
 0xf4f   :  { %v2393_v10 = vmul.f32 %v9204_v1, %v2387_v62  ;;  %v9320_v62 = vld [vmem:[%s17041_s3 + $0xac0] sm:$0xff]  ;;  %v9338_v32 = vld [vmem:[%s17041_s3 + $0xb50] sm:$0xff]  ;;  %v9309_v51 = vld [vmem:[%s17041_s3 + $0xa68] sm:$0xff] }
 0xf50   :  { %v2392_v5 = vmul.f32 %v9204_v1, %v2386_v2  ;;  %v9335_v1 = vld [vmem:[%s17041_s3 + $0xb38] sm:$0xff]  ;;  %v9321_v2 = vld [vmem:[%s17041_s3 + $0xac8] sm:$0xff] }
 0xf51   :  { %v13934_v21 = vadd.f32 %v9205_v3, %v2393_v10  ;;  %v11864_v52 = vpack.c.bf16 %v9335_v1, %v9334_v0  ;;  %v11834_v57 = vpack.c.bf16 %v9321_v2, %v9320_v62  ;;  %v9236_v0 = vld [vmem:[%s17041_s3 + $0x888] sm:$0xff]  ;;  %v9267_v1 = vld [vmem:[%s17041_s3 + $0x980] sm:$0xff] }
 0xf52   :  { %v13920_v11 = vadd.f32 %v9205_v3, %v2392_v5  ;;  %v9352_v3 = vld [vmem:[%s17041_s3 + $0xbc0] sm:$0xff]  ;;  %v11832_v5 = vpack.c.bf16 %v9303_v60, %v9302_v42  ;;  %v9342_v42 = vld [vmem:[%s17041_s3 + $0xb70] sm:$0xff]  ;;  %v9343_v60 = vld [vmem:[%s17041_s3 + $0xb78] sm:$0xff] }
 0xf53   :  { %v11866_v10 = vpack.c.bf16 %v9353_v4, %v9352_v3  ;;  %v9268_v2 = vld [vmem:[%s17041_s3 + $0x988] sm:$0xff] }
 0xf54   :  { %9213 = vmatmul.mubr.msk.f32.vlgmr.msra.gmra.mrb[36].mxu0 %vm124_vm4, %v13920_v11  ;;  %9217 = vmatmul.mubr.msk.f32.vlgmr.msra.gmra.mrb[38].mxu1 %vm124_vm4, %v13920_v11  ;;  %v11914_v3 = vpack.c.bf16 %v9268_v2, %v9267_v1  ;;  %v9254_v1 = vld [vmem:[%s17041_s3 + $0x918] sm:$0xff] }
 0xf55   :  { %2517 = vmatprep.mubr.f32.mxu0 %v12755_v9  ;;  %2594 = vmatprep.mubr.f32.mxu1 %v12755_v9 }
 0xf56   :  { %9289 = vmatpush1.msk.msra.mxu0 %vm131_vm3, %v9283_v12  ;;  %9293 = vmatpush1.msk.msra.mxu1 %vm131_vm3, %v9285_v18  ;;  %v9305_v12 = vld [vmem:[%s17041_s3 + $0xa48] sm:$0xff]  ;;  %v9336_v18 = vld [vmem:[%s17041_s3 + $0xb40] sm:$0xff] }
 0xf57   :  { %11819 = vmatprep.subr.bf16.mxu0 %v11818_v19  ;;  %11851 = vmatprep.subr.bf16.mxu1 %v11850_v20  ;;  %v9337_v19 = vld [vmem:[%s17041_s3 + $0xb48] sm:$0xff]  ;;  %v11836_v20 = vpack.c.bf16 %v9305_v12, %v9304_v8 }
 0xf58   :  { %9214 = vmatmul.mubr.msk.f32.gmra.mrb[38].mxu0 %vm124_vm4, %v13934_v21  ;;  %9218 = vmatmul.mubr.msk.f32.gmra.mrb[40].mxu1 %vm124_vm4, %v13934_v21  ;;  %v11868_v22 = vpack.c.bf16 %v9337_v19, %v9336_v18 }
 0xf59   :  { %2777 = vmatprep.mubr.f32.mxu0 %v12755_v9  ;;  %2854 = vmatprep.mubr.f32.mxu1 %v12755_v9 }
 0xf5c   :  { %9290 = vmatmul.mubr.msk.f32.vlgmr.msra.gmra.mrb[40].mxu0 %vm124_vm4, %v13920_v11  ;;  %9294 = vmatmul.mubr.msk.f32.vlgmr.msra.gmra.mrb[42].mxu1 %vm124_vm4, %v13920_v11 }
 0xf5d   :  { %2783 = vmatprep.mubr.f32.mxu0 %v12755_v9  ;;  %2860 = vmatprep.mubr.f32.mxu1 %v12755_v9 }
 0xf5e   :  { %11821 = vmatpush3.bf16.msra.mxu0 %v11820_v31  ;;  %11853 = vmatpush3.bf16.msra.mxu1 %v11852_v56  ;;  %v11870_v31 = vpack.c.bf16 %v9355_v26, %v9354_v24  ;;  %v11840_v56 = vpack.c.bf16 %v9307_v30, %v9306_v28  ;;  %v14168_v24 = vld [vmem:[%s17040_s2 + $0x180] ss:$8 sm:$0xf] }
 0xf5f   :  { %11823 = vmatprep.subr.bf16.mxu0 %v11822_v34  ;;  %11855 = vmatprep.subr.bf16.mxu1 %v11854_v35  ;;  %v11872_v34 = vpack.c.bf16 %v9339_v33, %v9338_v32  ;;  %v9324_v35 = vld [vmem:[%s17041_s3 + $0xae0] sm:$0xff]  ;;  %v9220_v26 = vld [vmem:[%s17041_s3 + $0x808] sm:$0xff]  ;;  %v9237_v32 = vld [vmem:[%s17041_s3 + $0x890] sm:$0xff] }
 0xf60   :  { %9291 = vmatmul.mubr.msk.f32.gmra.mrb[42].mxu0 %vm124_vm4, %v13934_v21  ;;  %9295 = vmatmul.mubr.msk.f32.gmra.mrb[44].mxu1 %vm124_vm4, %v13934_v21  ;;  %v11842_v39 = vpack.c.bf16 %v9325_v36, %v9324_v35 }
 0xf62   :  { %11825 = vmatpush3.bf16.msra.mxu0 %v11824_v49  ;;  %11857 = vmatpush3.bf16.msra.mxu1 %v11856_v50  ;;  %v11874_v49 = vpack.c.bf16 %v9357_v40, %v9356_v37  ;;  %v11844_v50 = vpack.c.bf16 %v9309_v51, %v9308_v43  ;;  %v9238_v37 = vld [vmem:[%s17041_s3 + $0x898] sm:$0xff] }
 0xf63   :  { %11827 = vmatprep.subr.bf16.mxu0 %v11826_v29  ;;  %11859 = vmatprep.subr.bf16.mxu1 %v11858_v27  ;;  %v11876_v29 = vpack.c.bf16 %v9341_v16, %v9340_v13  ;;  %v9326_v27 = vld [vmem:[%s17041_s3 + $0xaf0] sm:$0xff]  ;;  %v9270_v40 = vld [vmem:[%s17041_s3 + $0x998] sm:$0xff] }
 0xf64   :  { %v11846_v53 = vpack.c.bf16 %v9327_v47, %v9326_v27 }
 0xf66   :  { %11829 = vmatpush3.bf16.msra.mxu0 %v11828_v59  ;;  %11861 = vmatpush3.bf16.msra.mxu1 %v11860_v41  ;;  %v11878_v59 = vpack.c.bf16 %v9359_v54, %v9358_v48  ;;  %v11848_v41 = vpack.c.bf16 %v9311_v58, %v9310_v55  ;;  %v9221_v55 = vld [vmem:[%s17041_s3 + $0x810] sm:$0xff]  ;;  %v9222_v58 = vld [vmem:[%s17041_s3 + $0x818] sm:$0xff] }
 0xf67   :  { %11831 = vmatprep.subr.bf16.mxu0 %v11830_v61  ;;  %11863 = vmatprep.subr.bf16.mxu1 %v11862_v63  ;;  %v11880_v61 = vpack.c.bf16 %v9343_v60, %v9342_v42  ;;  %v9235_v63 = vld [vmem:[%s17041_s3 + $0x880] sm:$0xff] }
 0xf68   :  { %v11882_v62 = vpack.c.bf16 %v9236_v0, %v9235_v63  ;;  %v9253_v0 = vld [vmem:[%s17041_s3 + $0x910] sm:$0xff] }
 0xf6a   :  { %11833 = vmatpush3.bf16.msra.mxu0 %v11832_v5  ;;  %11865 = vmatpush3.bf16.msra.mxu1 %v11864_v52 }
 0xf6b   :  { %11835 = vmatprep.subr.bf16.mxu0 %v11834_v57  ;;  %11867 = vmatprep.subr.bf16.mxu1 %v11866_v10  ;;  %v9287_v57 = vld [vmem:[%s17040_s2 + $0x1a0] ss:$8 sm:$0xf] }
 0xf6c   :  { %v2688_v23 = vrot.slane %v9287_v57, %v13137_v46  ;;  %v2696_v17 = vrot.slane %v9287_v57, %v13140_v6 }
 0xf6e   :  { %11837 = vmatpush3.bf16.msra.mxu0 %v11836_v20  ;;  %11869 = vmatpush3.bf16.msra.mxu1 %v11868_v22  ;;  %v2684_v20 = vrot.slane %v9287_v57, %v13131_v44  ;;  %v2692_v22 = vrot.slane %v9287_v57, %v13134_v45 }
 0xf6f   :  { %11839 = vmatprep.subr.bf16.mxu0 %v11838_v25  ;;  %11871 = vmatprep.subr.bf16.mxu1 %v11870_v31  ;;  %v9219_v25 = vld [vmem:[%s17041_s3 + $0x800] sm:$0xff] }
 0xf70   :  { %v9251_v31 = vld [vmem:[%s17041_s3 + $0x900] sm:$0xff]  ;;  %v11884_v13 = vpack.c.bf16 %v9220_v26, %v9219_v25 }
 0xf72   :  { %11841 = vmatpush3.bf16.msra.mxu0 %v11840_v56  ;;  %11873 = vmatpush3.bf16.msra.mxu1 %v11872_v34  ;;  %v9252_v56 = vld [vmem:[%s17041_s3 + $0x908] sm:$0xff] }
 0xf73   :  { %11843 = vmatprep.subr.bf16.mxu0 %v11842_v39  ;;  %11875 = vmatprep.subr.bf16.mxu1 %v11874_v49  ;;  %v9269_v39 = vld [vmem:[%s17041_s3 + $0x990] sm:$0xff]  ;;  %v14196_v49 = vrot.slane %v14168_v24, %v13137_v46  ;;  %v11916_v16 = vpack.c.bf16 %v9252_v56, %v9251_v31 }
 0xf74   :  { %v11918_v54 = vpack.c.bf16 %v9270_v40, %v9269_v39  ;;  %v9273_v39 = vld [vmem:[%s17041_s3 + $0x9b0] sm:$0xff]  ;;  %v9274_v40 = vld [vmem:[%s17041_s3 + $0x9b8] sm:$0xff] }
 0xf76   :  { %11845 = vmatpush3.bf16.msra.mxu0 %v11844_v50  ;;  %11877 = vmatpush3.bf16.msra.mxu1 %v11876_v29  ;;  %v14200_v50 = vrot.slane %v14168_v24, %v13140_v6 }
 0xf77   :  { %11847 = vmatprep.subr.bf16.mxu0 %v11846_v53  ;;  %11879 = vmatprep.subr.bf16.mxu1 %v11878_v59  ;;  %v11886_v53 = vpack.c.bf16 %v9238_v37, %v9237_v32  ;;  %v9255_v32 = vld [vmem:[%s17041_s3 + $0x920] sm:$0xff]  ;;  %v9242_v37 = vld [vmem:[%s17041_s3 + $0x8b8] sm:$0xff] }
 0xf7a   :  { %11849 = vmatpush3.bf16.msra.mxu0 %v11848_v41  ;;  %11881 = vmatpush3.bf16.msra.mxu1 %v11880_v61 }
 0xf7b   :  { %11883 = vmatprep.subr.bf16.mxu0 %v11882_v62  ;;  %11915 = vmatprep.subr.bf16.mxu1 %v11914_v3  ;;  %v9239_v3 = vld [vmem:[%s17041_s3 + $0x8a0] sm:$0xff] }
0x1027   :  { %v14146_v4 = vpop.f32.mrb[36].mxu0  ;;  %v14148_v5 = vpop.f32.mrb[38].mxu1 }
0x1028   :  { %v2515_v52 = vpop.f32.mrb[37].mxu0  ;;  %v2592_v8 = vpop.f32.mrb[39].mxu1 }
0x1029   :  { %v2516_v57 = vadd.f32 %v2515_v52, %v14196_v49  ;;  %v11888_v52 = vpack.c.bf16 %v9222_v58, %v9221_v55  ;;  %v9243_v55 = vld [vmem:[%s17041_s3 + $0x8c0] sm:$0xff]  ;;  %v9244_v58 = vld [vmem:[%s17041_s3 + $0x8c8] sm:$0xff] }
0x102b   :  { %v14153_v10 = vpop.f32.mrb[38].mxu0  ;;  %v14155_v12 = vpop.f32.mrb[40].mxu1 }
0x102c   :  { %v14157_v18 = vpop.f32.mrb[39].mxu0  ;;  %v14159_v19 = vpop.f32.mrb[41].mxu1 }
0x102f   :  { %v2779_v28 = vpop.f32.mrb[40].mxu0  ;;  %v2856_v30 = vpop.f32.mrb[42].mxu1 }
0x1030   :  { %v2780_v33 = vadd.f32 %v2779_v28, %v2684_v20  ;;  %v2857_v34 = vadd.f32 %v2856_v30, %v2692_v22  ;;  %v2781_v35 = vpop.f32.mrb[41].mxu0  ;;  %v2858_v36 = vpop.f32.mrb[43].mxu1  ;;  %v9223_v28 = vld [vmem:[%s17041_s3 + $0x820] sm:$0xff]  ;;  %v9224_v30 = vld [vmem:[%s17041_s3 + $0x828] sm:$0xff] }
0x1031   :  { %v2782_v43 = vadd.f32 %v2781_v35, %v2688_v23  ;;  %v2859_v51 = vadd.f32 %v2858_v36, %v2696_v17 }
0x1032   :  { %v2867_v59 = vmax.f32 %v2780_v33, 0.0  ;;  %v2869_v41 = vmax.f32 %v2857_v34, 0.0  ;;  %v9256_v33 = vld [vmem:[%s17041_s3 + $0x928] sm:$0xff]  ;;  %v9241_v34 = vld [vmem:[%s17041_s3 + $0x8b0] sm:$0xff] }
0x1033   :  { %v2868_v29 = vmax.f32 %v2782_v43, 0.0  ;;  %v2870_v27 = vmax.f32 %v2859_v51, 0.0  ;;  %v2785_v47 = vpop.f32.mrb[42].mxu0  ;;  %v2862_v48 = vpop.f32.mrb[44].mxu1  ;;  %v2602_v43 = vmax.f32 %v2516_v57, 0.0  ;;  %v9246_v57 = vld [vmem:[%s17041_s3 + $0x8d8] sm:$0xff] }
0x1034   :  { %v2786_v42 = vadd.f32 %v2785_v47, %v2684_v20  ;;  %v2863_v60 = vadd.f32 %v2862_v48, %v2692_v22  ;;  %v2787_v61 = vpop.f32.mrb[43].mxu0  ;;  %v2864_v63 = vpop.f32.mrb[45].mxu1  ;;  %v2593_v20 = vadd.f32 %v2592_v8, %v14200_v50  ;;  %v9240_v22 = vld [vmem:[%s17041_s3 + $0x8a8] sm:$0xff]  ;;  %v11920_v8 = vpack.c.bf16 %v9254_v1, %v9253_v0 }
0x1035   :  { %v2788_v62 = vadd.f32 %v2787_v61, %v2688_v23  ;;  %v2865_v2 = vadd.f32 %v2864_v63, %v2696_v17  ;;  %3003 = vmatprep.mubr.f32.mxu0 %v2868_v29  ;;  %3078 = vmatprep.mubr.f32.mxu1 %v2870_v27  ;;  %v9271_v23 = vld [vmem:[%s17041_s3 + $0x9a0] sm:$0xff]  ;;  %v9272_v17 = vld [vmem:[%s17041_s3 + $0x9a8] sm:$0xff]  ;;  %v11890_v35 = vpack.c.bf16 %v9240_v22, %v9239_v3  ;;  %v9225_v29 = vld [vmem:[%s17041_s3 + $0x830] sm:$0xff] }
0x1036   :  { %3004 = vmatmul.mubr.f32.vlgmr.msra.gmra.mrb[44].mxu0 %v2867_v59  ;;  %3079 = vmatmul.mubr.f32.vlgmr.msra.gmra.mrb[46].mxu1 %v2869_v41  ;;  %v2871_v31 = vmax.f32 %v2786_v42, 0.0  ;;  %v2873_v56 = vmax.f32 %v2863_v60, 0.0  ;;  %v11922_v36 = vpack.c.bf16 %v9272_v17, %v9271_v23  ;;  %v2604_v51 = vmax.f32 %v2593_v20, 0.0  ;;  %v9226_v27 = vld [vmem:[%s17041_s3 + $0x838] sm:$0xff]  ;;  %v9275_v59 = vld [vmem:[%s17041_s3 + $0x9c0] sm:$0xff]  ;;  %v9276_v41 = vld [vmem:[%s17041_s3 + $0x9c8] sm:$0xff] }
0x1037   :  { %v2872_v25 = vmax.f32 %v2788_v62, 0.0  ;;  %v2874_v26 = vmax.f32 %v2865_v2, 0.0  ;;  %11885 = vmatpush3.bf16.msra.mxu0 %v11884_v13  ;;  %11917 = vmatpush3.bf16.msra.mxu1 %v11916_v16  ;;  %v11892_v13 = vpack.c.bf16 %v9224_v30, %v9223_v28  ;;  %v11924_v16 = vpack.c.bf16 %v9256_v33, %v9255_v32  ;;  %v9227_v61 = vld [vmem:[%s17041_s3 + $0x840] sm:$0xff]  ;;  %v9228_v63 = vld [vmem:[%s17041_s3 + $0x848] sm:$0xff]  ;;  %v9245_v3 = vld [vmem:[%s17041_s3 + $0x8d0] sm:$0xff] }
0x1038   :  { %11887 = vmatprep.subr.bf16.mxu0 %v11886_v53  ;;  %11919 = vmatprep.subr.bf16.mxu1 %v11918_v54  ;;  %v11894_v47 = vpack.c.bf16 %v9242_v37, %v9241_v34  ;;  %v11926_v48 = vpack.c.bf16 %v9274_v40, %v9273_v39  ;;  %v9257_v53 = vld [vmem:[%s17041_s3 + $0x930] sm:$0xff]  ;;  %v9258_v54 = vld [vmem:[%s17041_s3 + $0x938] sm:$0xff]  ;;  %v11896_v42 = vpack.c.bf16 %v9226_v27, %v9225_v29  ;;  %v9259_v62 = vld [vmem:[%s17041_s3 + $0x940] sm:$0xff] }
0x1039   :  { %3008 = vmatprep.mubr.f32.mxu0 %v2872_v25  ;;  %3083 = vmatprep.mubr.f32.mxu1 %v2874_v26  ;;  %v11928_v60 = vpack.c.bf16 %v9258_v54, %v9257_v53  ;;  %v11898_v0 = vpack.c.bf16 %v9244_v58, %v9243_v55  ;;  %v11930_v1 = vpack.c.bf16 %v9276_v41, %v9275_v59  ;;  %v9260_v2 = vld [vmem:[%s17041_s3 + $0x948] sm:$0xff]  ;;  %v9277_v20 = vld [vmem:[%s17041_s3 + $0x9d0] sm:$0xff]  ;;  %v9278_v22 = vld [vmem:[%s17041_s3 + $0x9d8] sm:$0xff] }
0x103a   :  { %3009 = vmatmul.mubr.f32.gmra.mrb[46].mxu0 %v2871_v31  ;;  %3084 = vmatmul.mubr.f32.gmra.mrb[48].mxu1 %v2873_v56  ;;  %v11900_v23 = vpack.c.bf16 %v9228_v63, %v9227_v61  ;;  %v11932_v17 = vpack.c.bf16 %v9260_v2, %v9259_v62  ;;  %v9229_v25 = vld [vmem:[%s17041_s3 + $0x850] sm:$0xff]  ;;  %v9230_v26 = vld [vmem:[%s17041_s3 + $0x858] sm:$0xff]  ;;  %v9247_v31 = vld [vmem:[%s17041_s3 + $0x8e0] sm:$0xff]  ;;  %v2420_v55 = vrot.slane %v14168_v24, %v13134_v45 }
0x103b   :  { %11889 = vmatpush3.bf16.msra.mxu0 %v11888_v52  ;;  %11921 = vmatpush3.bf16.msra.mxu1 %v11920_v8  ;;  %v11902_v52 = vpack.c.bf16 %v9246_v57, %v9245_v3  ;;  %v11934_v8 = vpack.c.bf16 %v9278_v22, %v9277_v20  ;;  %v9261_v28 = vld [vmem:[%s17041_s3 + $0x950] sm:$0xff]  ;;  %v9262_v30 = vld [vmem:[%s17041_s3 + $0x958] sm:$0xff]  ;;  %v9248_v56 = vld [vmem:[%s17041_s3 + $0x8e8] sm:$0xff]  ;;  %v11904_v34 = vpack.c.bf16 %v9230_v26, %v9229_v25 }
0x103c   :  { %3153 = vmatprep.mubr.f32.mxu0 %v2602_v43  ;;  %3228 = vmatprep.mubr.f32.mxu1 %v2604_v51  ;;  %v9279_v32 = vld [vmem:[%s17041_s3 + $0x9e0] sm:$0xff]  ;;  %v9280_v33 = vld [vmem:[%s17041_s3 + $0x9e8] sm:$0xff]  ;;  %v11906_v39 = vpack.c.bf16 %v9248_v56, %v9247_v31  ;;  %v9281_v29 = vld [vmem:[%s17041_s3 + $0x9f0] sm:$0xff]  ;;  %v2599_v62 = vadd.f32 %v14159_v19, %v14200_v50  ;;  %v2597_v20 = vadd.f32 %v14155_v12, %v2420_v55 }
0x103d   :  { %11891 = vmatprep.subr.bf16.mxu0 %v11890_v35  ;;  %11923 = vmatprep.subr.bf16.mxu1 %v11922_v36  ;;  %v11936_v35 = vpack.c.bf16 %v9262_v30, %v9261_v28  ;;  %v9231_v36 = vld [vmem:[%s17041_s3 + $0x860] sm:$0xff]  ;;  %v9232_v37 = vld [vmem:[%s17041_s3 + $0x868] sm:$0xff]  ;;  %v11938_v40 = vpack.c.bf16 %v9280_v33, %v9279_v32  ;;  %v9282_v27 = vld [vmem:[%s17041_s3 + $0x9f8] sm:$0xff] }
0x103e   :  { %v9263_v43 = vld [vmem:[%s17041_s3 + $0x960] sm:$0xff]  ;;  %v9264_v51 = vld [vmem:[%s17041_s3 + $0x968] sm:$0xff]  ;;  %v9233_v54 = vld [vmem:[%s17041_s3 + $0x870] sm:$0xff]  ;;  %v11942_v59 = vpack.c.bf16 %v9282_v27, %v9281_v29  ;;  %v2608_v19 = vmax.f32 %v2599_v62, 0.0  ;;  %v2607_v12 = vmax.f32 %v2597_v20, 0.0 }
0x103f   :  { %11893 = vmatpush3.bf16.msra.mxu0 %v11892_v13  ;;  %11925 = vmatpush3.bf16.msra.mxu1 %v11924_v16  ;;  %v9249_v13 = vld [vmem:[%s17041_s3 + $0x8f0] sm:$0xff]  ;;  %v9250_v16 = vld [vmem:[%s17041_s3 + $0x8f8] sm:$0xff]  ;;  %v11940_v53 = vpack.c.bf16 %v9264_v51, %v9263_v43  ;;  %v9361_v2 = vld [vmem:[%s17040_s2 + $0x148] sm:$0xf] }
0x1040   :  { %11895 = vmatprep.subr.bf16.mxu0 %v11894_v47  ;;  %11927 = vmatprep.subr.bf16.mxu1 %v11926_v48  ;;  %v2412_v47 = vrot.slane %v14168_v24, %v13131_v44  ;;  %v11908_v48 = vpack.c.bf16 %v9232_v37, %v9231_v36  ;;  %v11910_v58 = vpack.c.bf16 %v9250_v16, %v9249_v13  ;;  %v9234_v41 = vld [vmem:[%s17041_s3 + $0x878] sm:$0xff]  ;;  %v9362_v50 = vld [vmem:[%s17040_s2 + $0x150] sm:$0xf]  ;;  %v9389_v22 = vld [vmem:[%s17041_s3 + $0xc80] sm:$0xff] }
0x1041   :  { %v11912_v61 = vpack.c.bf16 %v9234_v41, %v9233_v54  ;;  %v9363_v3 = vld [vmem:[%s17040_s2 + $0x158] sm:$0xf]  ;;  %v9422_v26 = vld [vmem:[%s17041_s3 + $0xd88] sm:$0xff]  ;;  %v9405_v31 = vld [vmem:[%s17041_s3 + $0xd00] sm:$0xff] }
0x1042   :  { %v2514_v63 = vadd.f32 %v14146_v4, %v2412_v47  ;;  %v2520_v57 = vadd.f32 %v14153_v10, %v2412_v47  ;;  %v9406_v56 = vld [vmem:[%s17041_s3 + $0xd08] sm:$0xff]  ;;  %v9391_v32 = vld [vmem:[%s17041_s3 + $0xc90] sm:$0xff]  ;;  %v9424_v36 = vld [vmem:[%s17041_s3 + $0xd98] sm:$0xff] }
0x1043   :  { %11897 = vmatpush3.bf16.msra.mxu0 %v11896_v42  ;;  %11929 = vmatpush3.bf16.msra.mxu1 %v11928_v60  ;;  %v9265_v42 = vld [vmem:[%s17041_s3 + $0x970] sm:$0xff]  ;;  %v9266_v60 = vld [vmem:[%s17041_s3 + $0x978] sm:$0xff]  ;;  %v11980_v33 = vpack.c.bf16 %v9406_v56, %v9405_v31  ;;  %v9393_v29 = vld [vmem:[%s17041_s3 + $0xca0] sm:$0xff] }
0x1044   :  { %11899 = vmatprep.subr.bf16.mxu0 %v11898_v0  ;;  %11931 = vmatprep.subr.bf16.mxu1 %v11930_v1  ;;  %v11944_v24 = vpack.c.bf16 %v9266_v60, %v9265_v42  ;;  %v2591_v0 = vadd.f32 %v14148_v5, %v2420_v55  ;;  %v2522_v1 = vadd.f32 %v14157_v18, %v14196_v49  ;;  %v2601_v4 = vmax.f32 %v2514_v63, 0.0  ;;  %v9360_v49 = vld [vmem:[%s17040_s2 + $0x140] sm:$0xf]  ;;  %v9376_v43 = vld [vmem:[%s17041_s3 + $0xc18] sm:$0xff]  ;;  %v9407_v51 = vld [vmem:[%s17041_s3 + $0xd10] sm:$0xff] }
0x1045   :  { %v2605_v10 = vmax.f32 %v2520_v57, 0.0  ;;  %v9408_v16 = vld [vmem:[%s17041_s3 + $0xd18] sm:$0xff]  ;;  %v9394_v27 = vld [vmem:[%s17041_s3 + $0xca8] sm:$0xff]  ;;  %v9377_v55 = vld [vmem:[%s17041_s3 + $0xc20] sm:$0xff] }
0x1046   :  { %v2603_v5 = vmax.f32 %v2591_v0, 0.0  ;;  %v2606_v18 = vmax.f32 %v2522_v1, 0.0  ;;  %v11984_v47 = vpack.c.bf16 %v9408_v16, %v9407_v51  ;;  %v9426_v54 = vld [vmem:[%s17041_s3 + $0xda8] sm:$0xff]  ;;  %v9409_v41 = vld [vmem:[%s17041_s3 + $0xd20] sm:$0xff]  ;;  %v9427_v63 = vld [vmem:[%s17041_s3 + $0xdb0] sm:$0xff] }
0x1047   :  { %11901 = vmatpush3.bf16.msra.mxu0 %v11900_v23  ;;  %11933 = vmatpush3.bf16.msra.mxu1 %v11932_v17  ;;  %v9390_v23 = vld [vmem:[%s17041_s3 + $0xc88] sm:$0xff]  ;;  %v9421_v17 = vld [vmem:[%s17041_s3 + $0xd80] sm:$0xff]  ;;  %v9428_v62 = vld [vmem:[%s17041_s3 + $0xdb8] sm:$0xff] }
0x1048   :  { %11903 = vmatprep.subr.bf16.mxu0 %v11902_v52  ;;  %11935 = vmatprep.subr.bf16.mxu1 %v11934_v8  ;;  %v11946_v25 = vpack.c.bf16 %v9390_v23, %v9389_v22  ;;  %v9373_v52 = vld [vmem:[%s17041_s3 + $0xc00] sm:$0xff]  ;;  %v9374_v8 = vld [vmem:[%s17041_s3 + $0xc08] sm:$0xff]  ;;  %v11978_v28 = vpack.c.bf16 %v9422_v26, %v9421_v17  ;;  %v9412_v57 = vld [vmem:[%s17041_s3 + $0xd38] sm:$0xff] }
0x1049   :  { %v11948_v30 = vpack.c.bf16 %v9374_v8, %v9373_v52  ;;  %v9410_v42 = vld [vmem:[%s17041_s3 + $0xd28] sm:$0xff]  ;;  %v9397_v20 = vld [vmem:[%s17041_s3 + $0xcc0] sm:$0xff]  ;;  %v9431_v31 = vld [vmem:[%s17041_s3 + $0xdd0] sm:$0xff] }
0x104a   :  { %v11988_v0 = vpack.c.bf16 %v9410_v42, %v9409_v41  ;;  %v9381_v23 = vld [vmem:[%s17041_s3 + $0xc40] sm:$0xff]  ;;  %v9382_v17 = vld [vmem:[%s17041_s3 + $0xc48] sm:$0xff]  ;;  %v9404_v41 = vld [vmem:[%s17041_s3 + $0xcf8] sm:$0xff] }
0x104b   :  { %11905 = vmatpush3.bf16.msra.mxu0 %v11904_v34  ;;  %11937 = vmatpush3.bf16.msra.mxu1 %v11936_v35  ;;  %v9392_v34 = vld [vmem:[%s17041_s3 + $0xc98] sm:$0xff]  ;;  %v9423_v35 = vld [vmem:[%s17041_s3 + $0xd90] sm:$0xff]  ;;  %v11964_v26 = vpack.c.bf16 %v9382_v17, %v9381_v23  ;;  %v9414_v52 = vld [vmem:[%s17041_s3 + $0xd48] sm:$0xff] }
0x104c   :  { %11907 = vmatprep.subr.bf16.mxu0 %v11906_v39  ;;  %11939 = vmatprep.subr.bf16.mxu1 %v11938_v40  ;;  %v11950_v37 = vpack.c.bf16 %v9392_v34, %v9391_v32  ;;  %v11982_v39 = vpack.c.bf16 %v9424_v36, %v9423_v35  ;;  %v9375_v40 = vld [vmem:[%s17041_s3 + $0xc10] sm:$0xff]  ;;  %v9432_v32 = vld [vmem:[%s17041_s3 + $0xdd8] sm:$0xff]  ;;  %v9402_v51 = vld [vmem:[%s17041_s3 + $0xce8] sm:$0xff] }
0x104d   :  { %v11952_v13 = vpack.c.bf16 %v9376_v43, %v9375_v40  ;;  %v9384_v34 = vld [vmem:[%s17041_s3 + $0xc58] sm:$0xff]  ;;  %v11998_v35 = vpack.c.bf16 %v9432_v32, %v9431_v31  ;;  %v9401_v43 = vld [vmem:[%s17041_s3 + $0xce0] sm:$0xff]  ;;  %v9435_v42 = vld [vmem:[%s17041_s3 + $0xdf0] sm:$0xff] }
0x104e   :  { %v11970_v16 = vpack.c.bf16 %v9402_v51, %v9401_v43 }
0x104f   :  { %11909 = vmatpush3.bf16.msra.mxu0 %v11908_v48  ;;  %11941 = vmatpush3.bf16.msra.mxu1 %v11940_v53  ;;  %v11954_v48 = vpack.c.bf16 %v9394_v27, %v9393_v29  ;;  %v9425_v53 = vld [vmem:[%s17041_s3 + $0xda0] sm:$0xff]  ;;  %v9434_v29 = vld [vmem:[%s17041_s3 + $0xde8] sm:$0xff] }
0x1050   :  { %11911 = vmatprep.subr.bf16.mxu0 %v11910_v58  ;;  %11943 = vmatprep.subr.bf16.mxu1 %v11942_v59  ;;  %v11986_v58 = vpack.c.bf16 %v9426_v54, %v9425_v53  ;;  %v9378_v59 = vld [vmem:[%s17041_s3 + $0xc28] sm:$0xff]  ;;  %v9385_v27 = vld [vmem:[%s17041_s3 + $0xc60] sm:$0xff] }
0x1051   :  { %v11956_v60 = vpack.c.bf16 %v9378_v59, %v9377_v55  ;;  %v9417_v54 = vld [vmem:[%s17041_s3 + $0xd60] sm:$0xff]  ;;  %v9418_v55 = vld [vmem:[%s17041_s3 + $0xd68] sm:$0xff]  ;;  %v9403_v59 = vld [vmem:[%s17041_s3 + $0xcf0] sm:$0xff] }
0x1053   :  { %11913 = vmatpush3.bf16.msra.mxu0 %v11912_v61  ;;  %11945 = vmatpush3.bf16.msra.mxu1 %v11944_v24  ;;  %v9395_v61 = vld [vmem:[%s17041_s3 + $0xcb0] sm:$0xff]  ;;  %v9396_v24 = vld [vmem:[%s17041_s3 + $0xcb8] sm:$0xff] }
0x1054   :  { %9365 = vmatprep.subr.msk.mxu0 %vm131_vm3, %v9361_v2  ;;  %9369 = vmatprep.subr.msk.mxu1 %vm131_vm3, %v9363_v3  ;;  %v11958_v1 = vpack.c.bf16 %v9396_v24, %v9395_v61  ;;  %v9379_v2 = vld [vmem:[%s17041_s3 + $0xc30] sm:$0xff]  ;;  %v9380_v3 = vld [vmem:[%s17041_s3 + $0xc38] sm:$0xff] }
0x1055   :  { %v9436_v61 = vld [vmem:[%s17041_s3 + $0xdf8] sm:$0xff]  ;;  %v9387_v24 = vld [vmem:[%s17041_s3 + $0xc70] sm:$0xff] }
0x1056   :  { %3154 = vmatmul.mubr.f32.vlgmr.msra.gmra.mrb[48].mxu0 %v2601_v4  ;;  %3229 = vmatmul.mubr.f32.vlgmr.msra.gmra.mrb[50].mxu1 %v2603_v5  ;;  %v11990_v4 = vpack.c.bf16 %v9428_v62, %v9427_v63  ;;  %v9411_v5 = vld [vmem:[%s17041_s3 + $0xd30] sm:$0xff]  ;;  %v9388_v63 = vld [vmem:[%s17041_s3 + $0xc78] sm:$0xff] }
0x1057   :  { %3158 = vmatprep.mubr.f32.mxu0 %v2606_v18  ;;  %3233 = vmatprep.mubr.f32.mxu1 %v2608_v19  ;;  %v9398_v18 = vld [vmem:[%s17041_s3 + $0xcc8] sm:$0xff]  ;;  %v9429_v19 = vld [vmem:[%s17041_s3 + $0xdc0] sm:$0xff]  ;;  %v9419_v62 = vld [vmem:[%s17041_s3 + $0xd70] sm:$0xff] }
0x1058   :  { %9366 = vmatpush1.msk.msra.mxu0 %vm131_vm3, %v9360_v49  ;;  %9370 = vmatpush1.msk.msra.mxu1 %vm131_vm3, %v9362_v50  ;;  %v9430_v49 = vld [vmem:[%s17041_s3 + $0xdc8] sm:$0xff]  ;;  %v11960_v50 = vpack.c.bf16 %v9380_v3, %v9379_v2  ;;  %v9420_v2 = vld [vmem:[%s17041_s3 + $0xd78] sm:$0xff] }
0x1059   :  { %11947 = vmatprep.subr.bf16.mxu0 %v11946_v25  ;;  %11979 = vmatprep.subr.bf16.mxu1 %v11978_v28  ;;  %v11994_v22 = vpack.c.bf16 %v9430_v49, %v9429_v19  ;;  %v9413_v25 = vld [vmem:[%s17041_s3 + $0xd40] sm:$0xff]  ;;  %v9399_v28 = vld [vmem:[%s17041_s3 + $0xcd0] sm:$0xff]  ;;  %v12008_v3 = vpack.c.bf16 %v9420_v2, %v9419_v62 }
0x105a   :  { %3159 = vmatmul.mubr.f32.gmra.mrb[50].mxu0 %v2605_v10  ;;  %3234 = vmatmul.mubr.f32.gmra.mrb[52].mxu1 %v2607_v12  ;;  %v11992_v10 = vpack.c.bf16 %v9412_v57, %v9411_v5  ;;  %v11962_v12 = vpack.c.bf16 %v9398_v18, %v9397_v20  ;;  %v11996_v8 = vpack.c.bf16 %v9414_v52, %v9413_v25  ;;  %v9440_v5 = vld [vmem:[%s17040_s2 + $0x178] sm:$0xf] }
0x105b   :  { %3342 = vmatprep.mubr.f32.mxu0 %v12755_v9  ;;  %3419 = vmatprep.mubr.f32.mxu1 %v12755_v9 }
0x105e   :  { %9367 = vmatmul.mubr.msk.f32.vlgmr.msra.gmra.mrb[52].mxu0 %vm124_vm4, %v13920_v11  ;;  %9371 = vmatmul.mubr.msk.f32.vlgmr.msra.gmra.mrb[54].mxu1 %vm124_vm4, %v13920_v11 }
0x105f   :  { %3348 = vmatprep.mubr.f32.mxu0 %v12755_v9  ;;  %3425 = vmatprep.mubr.f32.mxu1 %v12755_v9 }
0x1060   :  { %11949 = vmatpush3.bf16.msra.mxu0 %v11948_v30  ;;  %11981 = vmatpush3.bf16.msra.mxu1 %v11980_v33  ;;  %v9400_v30 = vld [vmem:[%s17041_s3 + $0xcd8] sm:$0xff]  ;;  %v9383_v33 = vld [vmem:[%s17041_s3 + $0xc50] sm:$0xff] }
0x1061   :  { %11951 = vmatprep.subr.bf16.mxu0 %v11950_v37  ;;  %11983 = vmatprep.subr.bf16.mxu1 %v11982_v39  ;;  %v11966_v56 = vpack.c.bf16 %v9400_v30, %v9399_v28  ;;  %v11968_v36 = vpack.c.bf16 %v9384_v34, %v9383_v33  ;;  %v9415_v37 = vld [vmem:[%s17041_s3 + $0xd50] sm:$0xff]  ;;  %v9416_v39 = vld [vmem:[%s17041_s3 + $0xd58] sm:$0xff] }
0x1062   :  { %9368 = vmatmul.mubr.msk.f32.gmra.mrb[54].mxu0 %vm124_vm4, %v13934_v21  ;;  %9372 = vmatmul.mubr.msk.f32.gmra.mrb[56].mxu1 %vm124_vm4, %v13934_v21  ;;  %v12000_v40 = vpack.c.bf16 %v9416_v39, %v9415_v37  ;;  %v9364_v33 = vld [vmem:[%s17040_s2 + $0x1c0] ss:$8 sm:$0xf] }
0x1063   :  { %v3257_v43 = vrot.slane %v9364_v33, %v13134_v45  ;;  %v3253_v51 = vrot.slane %v9364_v33, %v13137_v46 }
0x1064   :  { %11953 = vmatpush3.bf16.msra.mxu0 %v11952_v13  ;;  %11985 = vmatpush3.bf16.msra.mxu1 %v11984_v47  ;;  %v9433_v13 = vld [vmem:[%s17041_s3 + $0xde0] sm:$0xff]  ;;  %v9386_v47 = vld [vmem:[%s17041_s3 + $0xc68] sm:$0xff] }
0x1065   :  { %11955 = vmatprep.subr.bf16.mxu0 %v11954_v48  ;;  %11987 = vmatprep.subr.bf16.mxu1 %v11986_v58  ;;  %v12002_v48 = vpack.c.bf16 %v9434_v29, %v9433_v13  ;;  %v11972_v53 = vpack.c.bf16 %v9386_v47, %v9385_v27  ;;  %v12004_v58 = vpack.c.bf16 %v9418_v55, %v9417_v54  ;;  %v9466_v54 = vld [vmem:[%s17041_s3 + $0xe80] sm:$0xff] }
0x1066   :  { %v3261_v27 = vrot.slane %v9364_v33, %v13140_v6 }
0x1068   :  { %11957 = vmatpush3.bf16.msra.mxu0 %v11956_v60  ;;  %11989 = vmatpush3.bf16.msra.mxu1 %v11988_v0  ;;  %v11974_v60 = vpack.c.bf16 %v9404_v41, %v9403_v59  ;;  %v12006_v0 = vpack.c.bf16 %v9436_v61, %v9435_v42  ;;  %v9467_v42 = vld [vmem:[%s17041_s3 + $0xe88] sm:$0xff] }
0x1069   :  { %11959 = vmatprep.subr.bf16.mxu0 %v11958_v1  ;;  %11991 = vmatprep.subr.bf16.mxu1 %v11990_v4  ;;  %v11976_v1 = vpack.c.bf16 %v9388_v63, %v9387_v24  ;;  %v9438_v4 = vld [vmem:[%s17040_s2 + $0x168] sm:$0xf] }
0x106a   :  { %v9499_v61 = vld [vmem:[%s17041_s3 + $0xf88] sm:$0xff] }
0x106c   :  { %11961 = vmatpush3.bf16.msra.mxu0 %v11960_v50  ;;  %11993 = vmatpush3.bf16.msra.mxu1 %v11992_v10 }
0x106d   :  { %11963 = vmatprep.subr.bf16.mxu0 %v11962_v12  ;;  %11995 = vmatprep.subr.bf16.mxu1 %v11994_v22 }
0x1070   :  { %11965 = vmatpush3.bf16.msra.mxu0 %v11964_v26  ;;  %11997 = vmatpush3.bf16.msra.mxu1 %v11996_v8 }
0x1071   :  { %11967 = vmatprep.subr.bf16.mxu0 %v11966_v56  ;;  %11999 = vmatprep.subr.bf16.mxu1 %v11998_v35 }
0x1074   :  { %11969 = vmatpush3.bf16.msra.mxu0 %v11968_v36  ;;  %12001 = vmatpush3.bf16.msra.mxu1 %v12000_v40  ;;  %v3249_v40 = vrot.slane %v9364_v33, %v13131_v44  ;;  %v9500_v33 = vld [vmem:[%s17041_s3 + $0xf90] sm:$0xff] }
0x1075   :  { %11971 = vmatprep.subr.bf16.mxu0 %v11970_v16  ;;  %12003 = vmatprep.subr.bf16.mxu1 %v12002_v48 }
0x1078   :  { %11973 = vmatpush3.bf16.msra.mxu0 %v11972_v53  ;;  %12005 = vmatpush3.bf16.msra.mxu1 %v12004_v58 }
0x1079   :  { %11975 = vmatprep.subr.bf16.mxu0 %v11974_v60  ;;  %12007 = vmatprep.subr.bf16.mxu1 %v12006_v0  ;;  %v9498_v60 = vld [vmem:[%s17041_s3 + $0xf80] sm:$0xff] }
0x107c   :  { %11977 = vmatpush3.bf16.msra.mxu0 %v11976_v1  ;;  %12009 = vmatpush3.bf16.msra.mxu1 %v12008_v3 }
0x107d   :  { %9442 = vmatprep.subr.msk.mxu0 %vm131_vm3, %v9438_v4  ;;  %9446 = vmatprep.subr.msk.mxu1 %vm131_vm3, %v9440_v5  ;;  %v9437_v4 = vld [vmem:[%s17040_s2 + $0x160] sm:$0xf]  ;;  %v12010_v5 = vpack.c.bf16 %v9467_v42, %v9466_v54 }
0x107e   :  { %v9486_v42 = vld [vmem:[%s17041_s3 + $0xf20] sm:$0xff] }
0x1109   :  { %v10544_v57 = vpop.f32.mrb[44].mxu0  ;;  %v10582_v20 = vpop.f32.mrb[46].mxu1 }
0x110a   :  { %v10545_v18 = vpop.f32.mrb[45].mxu0  ;;  %v10583_v19 = vpop.f32.mrb[47].mxu1 }
0x110b   :  { %v10546_v49 = vadd.f32 %v10545_v18, %v10544_v57  ;;  %v10584_v50 = vadd.f32 %v10583_v19, %v10582_v20  ;;  %v12042_v57 = vpack.c.bf16 %v9499_v61, %v9498_v60  ;;  %v9487_v60 = vld [vmem:[%s17041_s3 + $0xf28] sm:$0xff]  ;;  %v9472_v61 = vld [vmem:[%s17041_s3 + $0xeb0] sm:$0xff] }
0x110d   :  { %v3081_v10 = vadd.f32 %v10584_v50, %v10546_v49  ;;  %v10547_v12 = vpop.f32.mrb[46].mxu0  ;;  %v10585_v22 = vpop.f32.mrb[48].mxu1 }
0x110e   :  { %v10548_v23 = vpop.f32.mrb[47].mxu0  ;;  %v10586_v17 = vpop.f32.mrb[49].mxu1 }
0x110f   :  { %v10549_v25 = vadd.f32 %v10548_v23, %v10547_v12  ;;  %v10587_v26 = vadd.f32 %v10586_v17, %v10585_v22  ;;  %v9439_v12 = vld [vmem:[%s17040_s2 + $0x170] sm:$0xf] }
0x1111   :  { %v3086_v52 = vadd.f32 %v10587_v26, %v10549_v25 }
0x1129   :  { %v10620_v8 = vpop.f32.mrb[48].mxu0  ;;  %v10658_v28 = vpop.f32.mrb[50].mxu1 }
0x112a   :  { %v10621_v30 = vpop.f32.mrb[49].mxu0  ;;  %v10659_v31 = vpop.f32.mrb[51].mxu1 }
0x112b   :  { %v10622_v56 = vadd.f32 %v10621_v30, %v10620_v8  ;;  %v10660_v32 = vadd.f32 %v10659_v31, %v10658_v28  ;;  %v9450_v8 = vld [vmem:[%s17041_s3 + $0xe00] sm:$0xff]  ;;  %v9451_v28 = vld [vmem:[%s17041_s3 + $0xe08] sm:$0xff] }
0x112c   :  { %v9482_v30 = vld [vmem:[%s17041_s3 + $0xf00] sm:$0xff]  ;;  %v9483_v31 = vld [vmem:[%s17041_s3 + $0xf08] sm:$0xff] }
0x112d   :  { %v3156_v34 = vadd.f32 %v10622_v56, %v3081_v10  ;;  %v10623_v35 = vpop.f32.mrb[50].mxu0  ;;  %v10661_v36 = vpop.f32.mrb[52].mxu1  ;;  %v9468_v56 = vld [vmem:[%s17041_s3 + $0xe90] sm:$0xff] }
0x112e   :  { %v10624_v37 = vpop.f32.mrb[51].mxu0  ;;  %v10662_v39 = vpop.f32.mrb[53].mxu1 }
0x112f   :  { %v14606_v13 = vadd.f32 %v10660_v32, %v3156_v34  ;;  %v10625_v16 = vadd.f32 %v10624_v37, %v10623_v35  ;;  %v10663_v29 = vadd.f32 %v10662_v39, %v10661_v36  ;;  %v9469_v32 = vld [vmem:[%s17041_s3 + $0xe98] sm:$0xff]  ;;  %v12012_v35 = vpack.c.bf16 %v9451_v28, %v9450_v8  ;;  %v9452_v37 = vld [vmem:[%s17041_s3 + $0xe10] sm:$0xff]  ;;  %v9491_v28 = vld [vmem:[%s17041_s3 + $0xf48] sm:$0xff] }
0x1130   :  { %v9501_v34 = vld [vmem:[%s17041_s3 + $0xf98] sm:$0xff]  ;;  %v12044_v36 = vpack.c.bf16 %v9483_v31, %v9482_v30  ;;  %v9476_v31 = vld [vmem:[%s17041_s3 + $0xed0] sm:$0xff] }
0x1131   :  { %v3161_v47 = vadd.f32 %v10625_v16, %v3086_v52  ;;  %v3344_v48 = vpop.f32.mrb[52].mxu0  ;;  %v3421_v53 = vpop.f32.mrb[54].mxu1  ;;  %v9453_v39 = vld [vmem:[%s17041_s3 + $0xe18] sm:$0xff] }
0x1132   :  { %v3345_v55 = vadd.f32 %v3344_v48, %v3249_v40  ;;  %v3422_v58 = vadd.f32 %v3421_v53, %v3257_v43  ;;  %v3346_v59 = vpop.f32.mrb[53].mxu0  ;;  %v3423_v41 = vpop.f32.mrb[55].mxu1  ;;  %v9485_v16 = vld [vmem:[%s17041_s3 + $0xf18] sm:$0xff]  ;;  %v9503_v48 = vld [vmem:[%s17041_s3 + $0xfa8] sm:$0xff]  ;;  %v12016_v53 = vpack.c.bf16 %v9453_v39, %v9452_v37 }
0x1133   :  { %v14621_v24 = vadd.f32 %v10663_v29, %v3161_v47  ;;  %v3347_v63 = vadd.f32 %v3346_v59, %v3253_v51  ;;  %v3424_v0 = vadd.f32 %v3423_v41, %v3261_v27  ;;  %v9470_v29 = vld [vmem:[%s17041_s3 + $0xea0] sm:$0xff] }
0x1134   :  { %v3432_v20 = vmax.f32 %v3345_v55, 0.0  ;;  %v3434_v18 = vmax.f32 %v3422_v58, 0.0  ;;  %v9502_v47 = vld [vmem:[%s17041_s3 + $0xfa0] sm:$0xff]  ;;  %v9455_v58 = vld [vmem:[%s17041_s3 + $0xe28] sm:$0xff] }
0x1135   :  { %v3433_v1 = vmax.f32 %v3347_v63, 0.0  ;;  %v3435_v62 = vmax.f32 %v3424_v0, 0.0  ;;  %v3350_v2 = vpop.f32.mrb[54].mxu0  ;;  %v3427_v3 = vpop.f32.mrb[56].mxu1  ;;  %v9454_v55 = vld [vmem:[%s17041_s3 + $0xe20] sm:$0xff]  ;;  %v12050_v41 = vpack.c.bf16 %v9503_v48, %v9502_v47  ;;  %v9473_v63 = vld [vmem:[%s17041_s3 + $0xeb8] sm:$0xff] }
0x1136   :  { %v3351_v19 = vadd.f32 %v3350_v2, %v3249_v40  ;;  %v3428_v49 = vadd.f32 %v3427_v3, %v3257_v43  ;;  %v3352_v50 = vpop.f32.mrb[55].mxu0  ;;  %v3429_v10 = vpop.f32.mrb[57].mxu1  ;;  %v12014_v40 = vpack.c.bf16 %v9469_v32, %v9468_v56  ;;  %v12046_v43 = vpack.c.bf16 %v9501_v34, %v9500_v33  ;;  %v9504_v0 = vld [vmem:[%s17041_s3 + $0xfb0] sm:$0xff]  ;;  %v9477_v56 = vld [vmem:[%s17041_s3 + $0xed8] sm:$0xff]  ;;  %v9511_v48 = vld [vmem:[%s17041_s3 + $0xfe8] sm:$0xff] }
0x1137   :  { %v3353_v22 = vadd.f32 %v3352_v50, %v3253_v51  ;;  %v3430_v23 = vadd.f32 %v3429_v10, %v3261_v27  ;;  %3568 = vmatprep.mubr.f32.mxu0 %v3433_v1  ;;  %3643 = vmatprep.mubr.f32.mxu1 %v3435_v62  ;;  %v9484_v51 = vld [vmem:[%s17041_s3 + $0xf10] sm:$0xff]  ;;  %v9471_v27 = vld [vmem:[%s17041_s3 + $0xea8] sm:$0xff]  ;;  %v9505_v1 = vld [vmem:[%s17041_s3 + $0xfb8] sm:$0xff]  ;;  %v12020_v62 = vpack.c.bf16 %v9455_v58, %v9454_v55 }
0x1138   :  { %3569 = vmatmul.mubr.f32.vlgmr.msra.gmra.mrb[56].mxu0 %v3432_v20  ;;  %3644 = vmatmul.mubr.f32.vlgmr.msra.gmra.mrb[58].mxu1 %v3434_v18  ;;  %v3436_v26 = vmax.f32 %v3351_v19, 0.0  ;;  %v3438_v52 = vmax.f32 %v3428_v49, 0.0  ;;  %v12048_v54 = vpack.c.bf16 %v9485_v16, %v9484_v51  ;;  %v12018_v59 = vpack.c.bf16 %v9471_v27, %v9470_v29  ;;  %v9456_v3 = vld [vmem:[%s17041_s3 + $0xe30] sm:$0xff]  ;;  %v9489_v18 = vld [vmem:[%s17041_s3 + $0xf38] sm:$0xff]  ;;  %v9474_v19 = vld [vmem:[%s17041_s3 + $0xec0] sm:$0xff] }
0x1139   :  { %v3437_v17 = vmax.f32 %v3353_v22, 0.0  ;;  %v3439_v25 = vmax.f32 %v3430_v23, 0.0  ;;  %9443 = vmatpush1.msk.msra.mxu0 %vm131_vm3, %v9437_v4  ;;  %9447 = vmatpush1.msk.msra.mxu1 %vm131_vm3, %v9439_v12  ;;  %v12052_v2 = vpack.c.bf16 %v9487_v60, %v9486_v42  ;;  %v9457_v4 = vld [vmem:[%s17041_s3 + $0xe38] sm:$0xff]  ;;  %v9488_v20 = vld [vmem:[%s17041_s3 + $0xf30] sm:$0xff]  ;;  %v9475_v49 = vld [vmem:[%s17041_s3 + $0xec8] sm:$0xff]  ;;  %v12030_v33 = vpack.c.bf16 %v9477_v56, %v9476_v31 }
0x113a   :  { %12011 = vmatprep.subr.bf16.mxu0 %v12010_v5  ;;  %12043 = vmatprep.subr.bf16.mxu1 %v12042_v57  ;;  %v12022_v5 = vpack.c.bf16 %v9473_v63, %v9472_v61  ;;  %v12054_v57 = vpack.c.bf16 %v9505_v1, %v9504_v0  ;;  %v9506_v50 = vld [vmem:[%s17041_s3 + $0xfc0] sm:$0xff]  ;;  %v9507_v10 = vld [vmem:[%s17041_s3 + $0xfc8] sm:$0xff]  ;;  %v12024_v12 = vpack.c.bf16 %v9457_v4, %v9456_v3  ;;  %v9508_v32 = vld [vmem:[%s17041_s3 + $0xfd0] sm:$0xff] }
0x113b   :  { %3573 = vmatprep.mubr.f32.mxu0 %v3437_v17  ;;  %3648 = vmatprep.mubr.f32.mxu1 %v3439_v25  ;;  %v12056_v22 = vpack.c.bf16 %v9489_v18, %v9488_v20  ;;  %v12026_v23 = vpack.c.bf16 %v9475_v49, %v9474_v19  ;;  %v12058_v17 = vpack.c.bf16 %v9507_v10, %v9506_v50  ;;  %v9458_v25 = vld [vmem:[%s17041_s3 + $0xe40] sm:$0xff]  ;;  %v9509_v34 = vld [vmem:[%s17041_s3 + $0xfd8] sm:$0xff]  ;;  %v9479_v29 = vld [vmem:[%s17041_s3 + $0xee8] sm:$0xff] }
0x113c   :  { %3574 = vmatmul.mubr.f32.gmra.mrb[58].mxu0 %v3436_v26  ;;  %3649 = vmatmul.mubr.f32.gmra.mrb[60].mxu1 %v3438_v52  ;;  %v9459_v26 = vld [vmem:[%s17041_s3 + $0xe48] sm:$0xff]  ;;  %v9490_v52 = vld [vmem:[%s17041_s3 + $0xf40] sm:$0xff]  ;;  %v12062_v37 = vpack.c.bf16 %v9509_v34, %v9508_v32  ;;  %v9480_v60 = vld [vmem:[%s17041_s3 + $0xef0] sm:$0xff] }
0x113d   :  { %3759 = vmatprep.mubr.f32.mxu0 %v12755_v9  ;;  %3836 = vmatprep.mubr.f32.mxu1 %v12755_v9  ;;  %v12028_v8 = vpack.c.bf16 %v9459_v26, %v9458_v25  ;;  %v12060_v30 = vpack.c.bf16 %v9491_v28, %v9490_v52  ;;  %v9478_v16 = vld [vmem:[%s17041_s3 + $0xee0] sm:$0xff]  ;;  %v9481_v61 = vld [vmem:[%s17041_s3 + $0xef8] sm:$0xff]  ;;  %v9512_v63 = vld [vmem:[%s17041_s3 + $0xff0] sm:$0xff] }
0x113e   :  { %v9510_v27 = vld [vmem:[%s17041_s3 + $0xfe0] sm:$0xff]  ;;  %v12034_v47 = vpack.c.bf16 %v9479_v29, %v9478_v16  ;;  %v12038_v0 = vpack.c.bf16 %v9481_v61, %v9480_v60  ;;  %v9513_v1 = vld [vmem:[%s17041_s3 + $0xff8] sm:$0xff] }
0x113f   :  { %v12066_v55 = vpack.c.bf16 %v9511_v48, %v9510_v27  ;;  %v12070_v3 = vpack.c.bf16 %v9513_v1, %v9512_v63  ;;  %v4121_v18 = vld [vmem:[%s17039_s1 + $0xa0] sm:$0xf] }
0x1140   :  { %9444 = vmatmul.mubr.msk.f32.vlgmr.msra.gmra.mrb[60].mxu0 %vm124_vm4, %v13920_v11  ;;  %9448 = vmatmul.mubr.msk.f32.vlgmr.msra.gmra.mrb[62].mxu1 %vm124_vm4, %v13920_v11 }
0x1141   :  { %3765 = vmatprep.mubr.f32.mxu0 %v12755_v9  ;;  %3842 = vmatprep.mubr.f32.mxu1 %v12755_v9 }
0x1142   :  { %12013 = vmatpush3.bf16.msra.mxu0 %v12012_v35  ;;  %12045 = vmatpush3.bf16.msra.mxu1 %v12044_v36  ;;  %v9460_v35 = vld [vmem:[%s17041_s3 + $0xe50] sm:$0xff]  ;;  %v9461_v36 = vld [vmem:[%s17041_s3 + $0xe58] sm:$0xff] }
0x1143   :  { %12015 = vmatprep.subr.bf16.mxu0 %v12014_v40  ;;  %12047 = vmatprep.subr.bf16.mxu1 %v12046_v43  ;;  %v12032_v39 = vpack.c.bf16 %v9461_v36, %v9460_v35  ;;  %v9492_v40 = vld [vmem:[%s17041_s3 + $0xf50] sm:$0xff]  ;;  %v9493_v43 = vld [vmem:[%s17041_s3 + $0xf58] sm:$0xff] }
0x1144   :  { %9445 = vmatmul.mubr.msk.f32.gmra.mrb[62].mxu0 %vm124_vm4, %v13934_v21  ;;  %9449 = vmatmul.mubr.msk.f32.gmra.mrb[64].mxu1 %vm124_vm4, %v13934_v21  ;;  %v12064_v51 = vpack.c.bf16 %v9493_v43, %v9492_v40 }
0x1146   :  { %12017 = vmatpush3.bf16.msra.mxu0 %v12016_v53  ;;  %12049 = vmatpush3.bf16.msra.mxu1 %v12048_v54  ;;  %v9462_v53 = vld [vmem:[%s17041_s3 + $0xe60] sm:$0xff]  ;;  %v9463_v54 = vld [vmem:[%s17041_s3 + $0xe68] sm:$0xff] }
0x1147   :  { %12019 = vmatprep.subr.bf16.mxu0 %v12018_v59  ;;  %12051 = vmatprep.subr.bf16.mxu1 %v12050_v41  ;;  %v12036_v58 = vpack.c.bf16 %v9463_v54, %v9462_v53  ;;  %v9494_v59 = vld [vmem:[%s17041_s3 + $0xf60] sm:$0xff]  ;;  %v9495_v41 = vld [vmem:[%s17041_s3 + $0xf68] sm:$0xff] }
0x1148   :  { %v12068_v42 = vpack.c.bf16 %v9495_v41, %v9494_v59 }
0x114a   :  { %12021 = vmatpush3.bf16.msra.mxu0 %v12020_v62  ;;  %12053 = vmatpush3.bf16.msra.mxu1 %v12052_v2  ;;  %v9464_v62 = vld [vmem:[%s17041_s3 + $0xe70] sm:$0xff]  ;;  %v9465_v2 = vld [vmem:[%s17041_s3 + $0xe78] sm:$0xff] }
0x114b   :  { %12023 = vmatprep.subr.bf16.mxu0 %v12022_v5  ;;  %12055 = vmatprep.subr.bf16.mxu1 %v12054_v57  ;;  %v12040_v4 = vpack.c.bf16 %v9465_v2, %v9464_v62  ;;  %v9496_v5 = vld [vmem:[%s17041_s3 + $0xf70] sm:$0xff]  ;;  %v9497_v57 = vld [vmem:[%s17041_s3 + $0xf78] sm:$0xff] }
0x114c   :  { %v12072_v20 = vpack.c.bf16 %v9497_v57, %v9496_v5 }
0x114e   :  { %12025 = vmatpush3.bf16.msra.mxu0 %v12024_v12  ;;  %12057 = vmatpush3.bf16.msra.mxu1 %v12056_v22 }
0x114f   :  { %12027 = vmatprep.subr.bf16.mxu0 %v12026_v23  ;;  %12059 = vmatprep.subr.bf16.mxu1 %v12058_v17  ;;  %v9441_v23 = vld [vmem:[%s17040_s2 + $0x1e0] ss:$8 sm:$0xf] }
0x1150   :  { %v3666_v28 = vrot.slane %v9441_v23, %v13131_v44  ;;  %v3670_v31 = vrot.slane %v9441_v23, %v13137_v46  ;;  %v3678_v34 = vrot.slane %v9441_v23, %v13140_v6 }
0x1152   :  { %12029 = vmatpush3.bf16.msra.mxu0 %v12028_v8  ;;  %12061 = vmatpush3.bf16.msra.mxu1 %v12060_v30  ;;  %v3674_v30 = vrot.slane %v9441_v23, %v13134_v45  ;;  %v9517_v23 = vld [vmem:[%s17039_s1 + $0xa8] ss:$0 sm:$0xff] }
0x1153   :  { %12031 = vmatprep.subr.bf16.mxu0 %v12030_v33  ;;  %12063 = vmatprep.subr.bf16.mxu1 %v12062_v37 }
0x1156   :  { %12033 = vmatpush3.bf16.msra.mxu0 %v12032_v39  ;;  %12065 = vmatpush3.bf16.msra.mxu1 %v12064_v51 }
0x1157   :  { %12035 = vmatprep.subr.bf16.mxu0 %v12034_v47  ;;  %12067 = vmatprep.subr.bf16.mxu1 %v12066_v55 }
0x115a   :  { %12037 = vmatpush3.bf16.msra.mxu0 %v12036_v58  ;;  %12069 = vmatpush3.bf16.msra.mxu1 %v12068_v42 }
0x115b   :  { %12039 = vmatprep.subr.bf16.mxu0 %v12038_v0  ;;  %12071 = vmatprep.subr.bf16.mxu1 %v12070_v3 }
0x115e   :  { %12041 = vmatpush3.bf16.msra.mxu0 %v12040_v4  ;;  %12073 = vmatpush3.bf16.msra.mxu1 %v12072_v20 }
0x115f   :  { %11489 = vmatprep.subr.msk.mxu0 %vm131_vm3, %v4121_v18 }
0x120b   :  { %v10696_v19 = vpop.f32.mrb[56].mxu0  ;;  %v10734_v49 = vpop.f32.mrb[58].mxu1 }
0x120c   :  { %v10697_v50 = vpop.f32.mrb[57].mxu0  ;;  %v10735_v10 = vpop.f32.mrb[59].mxu1 }
0x120d   :  { %v10698_v12 = vadd.f32 %v10697_v50, %v10696_v19  ;;  %v10736_v22 = vadd.f32 %v10735_v10, %v10734_v49 }
0x120f   :  { %v3646_v17 = vadd.f32 %v10736_v22, %v10698_v12  ;;  %v10699_v25 = vpop.f32.mrb[58].mxu0  ;;  %v10737_v26 = vpop.f32.mrb[60].mxu1 }
0x1210   :  { %v10700_v52 = vpop.f32.mrb[59].mxu0  ;;  %v10738_v8 = vpop.f32.mrb[61].mxu1 }
0x1211   :  { %v3654_v56 = vadd.f32 %v3646_v17, %v14606_v13  ;;  %v10701_v32 = vadd.f32 %v10700_v52, %v10699_v25  ;;  %v10739_v33 = vadd.f32 %v10738_v8, %v10737_v26 }
0x1213   :  { %v3651_v35 = vadd.f32 %v10739_v33, %v10701_v32  ;;  %v3761_v36 = vpop.f32.mrb[60].mxu0  ;;  %v3838_v37 = vpop.f32.mrb[62].mxu1 }
0x1214   :  { %v3762_v39 = vadd.f32 %v3761_v36, %v3666_v28  ;;  %v3839_v40 = vadd.f32 %v3838_v37, %v3674_v30  ;;  %v3763_v43 = vpop.f32.mrb[61].mxu0  ;;  %v3840_v51 = vpop.f32.mrb[63].mxu1 }
0x1215   :  { %v3655_v16 = vadd.f32 %v3651_v35, %v14621_v24  ;;  %v3764_v29 = vadd.f32 %v3763_v43, %v3670_v31  ;;  %v3841_v27 = vadd.f32 %v3840_v51, %v3678_v34 }
0x1216   :  { %v3849_v13 = vmax.f32 %v3762_v39, 0.0  ;;  %v3851_v55 = vmax.f32 %v3839_v40, 0.0 }
0x1217   :  { %v3850_v47 = vmax.f32 %v3764_v29, 0.0  ;;  %v3852_v48 = vmax.f32 %v3841_v27, 0.0  ;;  %v3767_v53 = vpop.f32.mrb[62].mxu0  ;;  %v3844_v54 = vpop.f32.mrb[64].mxu1 }
0x1218   :  { %v3768_v58 = vadd.f32 %v3767_v53, %v3666_v28  ;;  %v3845_v59 = vadd.f32 %v3844_v54, %v3674_v30  ;;  %v3769_v41 = vpop.f32.mrb[63].mxu0  ;;  %v3846_v42 = vpop.f32.mrb[65].mxu1 }
0x1219   :  { %v3770_v60 = vadd.f32 %v3769_v41, %v3670_v31  ;;  %v3847_v61 = vadd.f32 %v3846_v42, %v3678_v34  ;;  %3985 = vmatprep.mubr.f32.mxu0 %v3850_v47  ;;  %4060 = vmatprep.mubr.f32.mxu1 %v3852_v48 }
0x121a   :  { %3986 = vmatmul.mubr.f32.vlgmr.msra.gmra.mrb[64].mxu0 %v3849_v13  ;;  %4061 = vmatmul.mubr.f32.vlgmr.msra.gmra.mrb[66].mxu1 %v3851_v55  ;;  %v3853_v0 = vmax.f32 %v3768_v58, 0.0  ;;  %v3855_v1 = vmax.f32 %v3845_v59, 0.0 }
0x121b   :  { %v3854_v63 = vmax.f32 %v3770_v60, 0.0  ;;  %v3856_v24 = vmax.f32 %v3847_v61, 0.0  ;;  %11490 = vmatpush3.msk.msra.mxu0 %vm131_vm3, %v4121_v18 }
0x121d   :  { %3990 = vmatprep.mubr.f32.mxu0 %v3854_v63  ;;  %4065 = vmatprep.mubr.f32.mxu1 %v3856_v24 }
0x121e   :  { %3991 = vmatmul.mubr.f32.gmra.mrb[66].mxu0 %v3853_v0  ;;  %4066 = vmatmul.mubr.f32.gmra.mrb[68].mxu1 %v3855_v1  ;;  %v4259_v1 = vld [vmem:[%s17039_s1 + $0xb0] sm:$0xf] }
0x121f   :  { %11491 = vmatprep.mubr.msk.f32.mxu0 %vm124_vm4, %v12818_v15  ;;  %11494 = vmatprep.subr.msk.mxu1 %vm131_vm3, %v4259_v1 }
0x1220   :  { %11495 = vmatpush3.msk.msra.mxu1 %vm131_vm3, %v4259_v1 }
0x1222   :  { %11492 = vmatmul.mubr.msk.f32.vlgmr.msra.gmra.mrb[68].mxu0 %vm124_vm4, %v12816_v14 }
0x12ed   :  { %v10772_v62 = vpop.f32.mrb[64].mxu0  ;;  %v10810_v2 = vpop.f32.mrb[66].mxu1 }
0x12ee   :  { %v10773_v3 = vpop.f32.mrb[65].mxu0  ;;  %v10811_v4 = vpop.f32.mrb[67].mxu1 }
0x12ef   :  { %v10774_v5 = vadd.f32 %v10773_v3, %v10772_v62  ;;  %v10812_v57 = vadd.f32 %v10811_v4, %v10810_v2 }
0x12f1   :  { %v4063_v20 = vadd.f32 %v10812_v57, %v10774_v5  ;;  %v10775_v18 = vpop.f32.mrb[66].mxu0  ;;  %v10813_v19 = vpop.f32.mrb[68].mxu1 }
0x12f2   :  { %v10776_v49 = vpop.f32.mrb[67].mxu0  ;;  %v10814_v50 = vpop.f32.mrb[69].mxu1 }
0x12f3   :  { %v14841_v10 = vadd.f32 %v4063_v20, %v3654_v56  ;;  %v10777_v12 = vadd.f32 %v10776_v49, %v10775_v18  ;;  %v10815_v22 = vadd.f32 %v10814_v50, %v10813_v19 }
0x12f5   :  { %v4068_v17 = vadd.f32 %v10815_v22, %v10777_v12  ;;  %v11493_v25 = vpop.f32.mrb[68].mxu0 }
0x12f6   :  { %v4202_v26 = vadd.f32 %v11493_v25, %v9517_v23  ;;  %v4196_v52 = vpop.f32.mrb[69].mxu0 }
0x12f7   :  { %v14846_v8 = vadd.f32 %v4068_v17, %v3655_v16  ;;  %v4197_v28 = vadd.f32 %v9517_v23, %v4196_v52  ;;  %v9514_v23 = vld [vmem:[%s17039_s1 + $0x88] ss:$0 sm:$0xff] }
0x12f8   :  { %4215 = vrot.lane.b32.xlu0 %v4202_v26, %s12756_s26  ;;  %v4077_v17 = vadd.f32 %v9514_v23, %v14841_v10 }
0x12f9   :  { %4206 = vrot.lane.b32.xlu1 %v4197_v28, %s12756_s26  ;;  %v4078_v52 = vadd.f32 %v9514_v23, %v14846_v8 }
0x12fa   :  { %v4079_v25 = vadd.f32 %v4077_v17, %v13920_v11 }
0x136a   :  { %v4216_v30 = vpop.permute.xlu0 %4215 }
0x136b   :  { %v4218_v31 = vmul.f32 %v4216_v30, %v4197_v28  ;;  %v4207_v56 = vpop.permute.xlu1 %4206  ;;  %v4241_v33 = vmul.f32 %v4216_v30, %v4202_v26 }
0x136c   :  { %v4209_v32 = vmul.f32 %v4207_v56, %v4197_v28  ;;  %v4236_v35 = vmul.f32 %v4207_v56, %v4202_v26 }
0x136d   :  { %v4219_v34 = vsel %vm124_vm4, %v4218_v31, 0.0  ;;  %v4242_v37 = vsel %vm124_vm4, %v4241_v33, 0.0 }
0x136e   :  { %4220 = vadd.xlane.f32.xlu0 %v4219_v34  ;;  %v4210_v36 = vsel %vm124_vm4, %v4209_v32, 0.0  ;;  %v4237_v39 = vsel %vm124_vm4, %v4236_v35, 0.0 }
0x136f   :  { %4211 = vadd.xlane.f32.xlu1 %v4210_v36 }
0x1372   :  { %4243 = vadd.xlane.f32.xlu0 %v4242_v37 }
0x1373   :  { %4238 = vadd.xlane.f32.xlu1 %v4237_v39  ;;  %v4485_v39 = vld [vmem:[%s17039_s1 + $0xe0] sm:$0xf] }
0x1374   :  { %11504 = vmatprep.subr.msk.mxu1 %vm131_vm3, %v4485_v39 }
0x13fb   :  { %v4221_v40 = vpop.xlane.xlu0 %4220 }
0x13fc   :  { %v4222_v43 = vmul.f32 0.5, %v4221_v40  ;;  %v4212_v51 = vpop.xlane.xlu1 %4211 }
0x13fd   :  { %v4213_v16 = vmul.f32 0.5, %v4212_v51  ;;  %v9521_v51 = vld [vmem:[%s17039_s1 + $0xb8] ss:$0 sm:$0xff] }
0x13ff   :  { %v4223_v29 = vmax.f32 %v4213_v16, %v4222_v43  ;;  %v4244_v27 = vpop.xlane.xlu0 %4243 }
0x1400   :  { %v4245_v47 = vmul.f32 0.5, %v4244_v27  ;;  %v4239_v48 = vpop.xlane.xlu1 %4238 }
0x1401   :  { %v4224_v53 = vsub.f32 %v4213_v16, %v4223_v29  ;;  %v4227_v54 = vsub.f32 %v4222_v43, %v4223_v29  ;;  %v4240_v13 = vmul.f32 0.5, %v4239_v48 }
0x1403   :  { %v4225_v55 = vmul.f32 1.442695, %v4224_v53  ;;  %v4228_v58 = vmul.f32 1.442695, %v4227_v54  ;;  %v4246_v59 = vmax.f32 %v4240_v13, %v4245_v47 }
0x1405   :  { %12654 = vpow2.f32 %v4225_v55  ;;  %v4247_v41 = vsub.f32 %v4240_v13, %v4246_v59  ;;  %v4250_v42 = vsub.f32 %v4245_v47, %v4246_v59 }
0x1406   :  { %12656 = vpow2.f32 %v4228_v58 }
0x1407   :  { %v4248_v60 = vmul.f32 1.442695, %v4247_v41  ;;  %v4251_v61 = vmul.f32 1.442695, %v4250_v42 }
0x1409   :  { %12658 = vpow2.f32 %v4248_v60  ;;  %v9515_v60 = vld [vmem:[%s17039_s1 + $0x90] ss:$0 sm:$0xff] }
0x140a   :  { %12660 = vpow2.f32 %v4251_v61 }
0x140f   :  { %v12655_v63 = vpop.eup %12654 }
0x1410   :  { %v12657_v24 = vpop.eup %12656  ;;  %v4231_v4 = vmul.f32 %v12655_v63, %v4197_v28 }
0x1411   :  { %v4230_v0 = vadd.f32 %v12657_v24, %v12655_v63  ;;  %v4232_v5 = vmul.f32 %v12657_v24, %v4202_v26  ;;  %v9516_v63 = vld [vmem:[%s17039_s1 + $0x98] ss:$0 sm:$0xff] }
0x1413   :  { %v12659_v62 = vpop.eup %12658  ;;  %12662 = vrcp.f32 %v4230_v0  ;;  %v4233_v57 = vadd.f32 %v4232_v5, %v4231_v4 }
0x1414   :  { %v12661_v2 = vpop.eup %12660  ;;  %v4254_v20 = vmul.f32 %v12659_v62, %v4197_v28  ;;  %v4080_v28 = vadd.f32 %v4078_v52, %v13934_v21 }
0x1415   :  { %v4253_v3 = vadd.f32 %v12661_v2, %v12659_v62  ;;  %v4255_v18 = vmul.f32 %v12661_v2, %v4202_v26  ;;  %v4083_v26 = vsel %vm124_vm4, %v4079_v25, 0.0 }
0x1416   :  { %v4086_v30 = vsel %vm124_vm4, %v4080_v28, 0.0 }
0x1417   :  { %12664 = vrcp.f32 %v4253_v3  ;;  %v4256_v50 = vadd.f32 %v4255_v18, %v4254_v20 }
0x141d   :  { %v12663_v19 = vpop.eup %12662 }
0x141e   :  { %v4235_v49 = vmul.f32 %v12663_v19, %v4233_v57 }
0x1420   :  { %4267 = vrot.lane.b32.xlu1 %v4235_v49, %s12757_s29 }
0x1421   :  { %v12665_v12 = vpop.eup %12664 }
0x1422   :  { %v4258_v22 = vmul.f32 %v12665_v12, %v4256_v50  ;;  %v4395_v12 = vld [vmem:[%s17039_s1 + $0xd0] sm:$0xf] }
0x1423   :  { %11499 = vmatprep.subr.msk.mxu0 %vm131_vm3, %v4395_v12 }
0x1424   :  { %4269 = vrot.lane.b32.xlu0 %v4258_v22, %s12757_s29  ;;  %11500 = vmatpush3.msk.msra.mxu0 %vm131_vm3, %v4395_v12 }
0x1444   :  { %4084 = vadd.xlane.f32.xlu1 %v4083_v26 }
0x1448   :  { %4087 = vadd.xlane.f32.xlu1 %v4086_v30 }
0x1492   :  { %v4268_v31 = vpop.permute.xlu1 %4267 }
0x1493   :  { %11496 = vmatprep.mubr.msk.f32.mxu1 %vm124_vm4, %v4268_v31 }
0x1496   :  { %v4270_v56 = vpop.permute.xlu0 %4269 }
0x1497   :  { %11497 = vmatmul.mubr.msk.f32.vlgmr.msra.gmra.mrb[70].mxu1 %vm124_vm4, %v4270_v56  ;;  %v9525_v56 = vld [vmem:[%s17039_s1 + $0xc0] ss:$0 sm:$0xff] }
0x1498   :  { %11505 = vmatpush3.msk.msra.mxu1 %vm131_vm3, %v4485_v39 }
0x14d1   :  { %v4085_v32 = vpop.xlane.xlu1 %4084 }
0x14d2   :  { %v4089_v10 = vmul.f32 0.25, %v4085_v32 }
0x14d4   :  { %v4091_v33 = vsub.f32 %v4079_v25, %v4089_v10  ;;  %v9526_v10 = vld [vmem:[%s17039_s1 + $0xc8] ss:$0 sm:$0xff] }
0x14d5   :  { %v4088_v11 = vpop.xlane.xlu1 %4087 }
0x14d6   :  { %v4090_v34 = vmul.f32 0.25, %v4088_v11  ;;  %v4093_v8 = vmul.f32 %v4091_v33, %v4091_v33 }
0x14d8   :  { %v4092_v35 = vsub.f32 %v4080_v28, %v4090_v34  ;;  %v4095_v36 = vsel %vm124_vm4, %v4093_v8, 0.0 }
0x14d9   :  { %4096 = vadd.xlane.f32.xlu1 %v4095_v36 }
0x14da   :  { %v4094_v21 = vmul.f32 %v4092_v35, %v4092_v35 }
0x14dc   :  { %v4098_v37 = vsel %vm124_vm4, %v4094_v21, 0.0  ;;  %v9531_v21 = vld [vmem:[%s17039_s1 + $0xe8] ss:$0 sm:$0xff] }
0x14dd   :  { %4099 = vadd.xlane.f32.xlu1 %v4098_v37  ;;  %v9527_v37 = vld [vmem:[%s17039_s1 + $0xd8] ss:$0 sm:$0xff] }
0x1566   :  { %v4097_v40 = vpop.xlane.xlu1 %4096 }
0x1567   :  { %v4101_v43 = vmul.f32 0.25, %v4097_v40 }
0x1569   :  { %v4103_v16 = vadd.f32 1e-05, %v4101_v43 }
0x156a   :  { %v11498_v29 = vpop.f32.mrb[70].mxu1  ;;  %v4100_v27 = vpop.xlane.xlu1 %4099 }
0x156b   :  { %12666 = vrsqrt.f32 %v4103_v16  ;;  %v4350_v47 = vadd.f32 %v11498_v29, %v9521_v51  ;;  %v4102_v48 = vmul.f32 0.25, %v4100_v27  ;;  %v4344_v53 = vpop.f32.mrb[71].mxu1 }
0x156c   :  { %v4345_v54 = vadd.f32 %v9521_v51, %v4344_v53 }
0x156d   :  { %v4104_v13 = vadd.f32 1e-05, %v4102_v48  ;;  %v4354_v55 = vadd.f32 %v12816_v14, %v4350_v47 }
0x156e   :  { %v4353_v58 = vadd.f32 %v4345_v54, %v12818_v15 }
0x156f   :  { %12668 = vrsqrt.f32 %v4104_v13  ;;  %v4360_v41 = vsel %vm124_vm4, %v4354_v55, 0.0 }
0x1570   :  { %v4357_v59 = vsel %vm124_vm4, %v4353_v58, 0.0 }
0x1571   :  { %4358 = vadd.xlane.f32.xlu0 %v4357_v59 }
0x1575   :  { %v12667_v42 = vpop.eup %12666  ;;  %4361 = vadd.xlane.f32.xlu0 %v4360_v41 }
0x1576   :  { %v4107_v61 = vmul.f32 %v12667_v42, %v4091_v33 }
0x1578   :  { %v4113_v14 = vmul.f32 %v9515_v60, %v4107_v61 }
0x1579   :  { %v12669_v24 = vpop.eup %12668 }
0x157a   :  { %v4108_v15 = vmul.f32 %v12669_v24, %v4092_v35  ;;  %v14892_v0 = vadd.f32 %v9516_v63, %v4113_v14 }
0x157c   :  { %11506 = vmatprep.mubr.msk.f32.mxu1 %vm124_vm4, %v14892_v0  ;;  %v4114_v1 = vmul.f32 %v9515_v60, %v4108_v15 }
0x157e   :  { %v14896_v62 = vadd.f32 %v9516_v63, %v4114_v1 }
0x1580   :  { %11507 = vmatmul.mubr.msk.f32.vlgmr.msra.gmra.mrb[72].mxu1 %vm124_vm4, %v14896_v62 }
0x1581   :  { %4868 = vmatprep.mubr.f32.mxu1 %v12755_v9 }
0x15fe   :  { %v4359_v2 = vpop.xlane.xlu0 %4358 }
0x15ff   :  { %v4363_v3 = vmul.f32 0.25, %v4359_v2 }
0x1601   :  { %v4365_v4 = vsub.f32 %v4353_v58, %v4363_v3 }
0x1602   :  { %v4362_v5 = vpop.xlane.xlu0 %4361 }
0x1603   :  { %v4364_v57 = vmul.f32 0.25, %v4362_v5  ;;  %v4367_v20 = vmul.f32 %v4365_v4, %v4365_v4 }
0x1605   :  { %v4366_v18 = vsub.f32 %v4354_v55, %v4364_v57  ;;  %v4369_v19 = vsel %vm124_vm4, %v4367_v20, 0.0 }
0x1606   :  { %4370 = vadd.xlane.f32.xlu0 %v4369_v19 }
0x1607   :  { %v4368_v49 = vmul.f32 %v4366_v18, %v4366_v18 }
0x1609   :  { %v4372_v50 = vsel %vm124_vm4, %v4368_v49, 0.0 }
0x160a   :  { %4373 = vadd.xlane.f32.xlu0 %v4372_v50 }
0x1653   :  { %v11508_v22 = vpop.f32.mrb[72].mxu1 }
0x1654   :  { %v4566_v23 = vpop.f32.mrb[73].mxu1  ;;  %v4572_v43 = vadd.f32 %v11508_v22, %v9531_v21 }
0x1655   :  { %v4567_v51 = vadd.f32 %v9531_v21, %v4566_v23  ;;  %v4621_v23 = vld [vmem:[%s17039_s1 + $0xf0] sm:$0xf]  ;;  %v9535_v21 = vld [vmem:[%s17039_s1 + $0xf8] ss:$0 sm:$0xff] }
0x1656   :  { %11509 = vmatprep.subr.msk.mxu0 %vm131_vm3, %v4621_v23 }
0x1693   :  { %v4371_v17 = vpop.xlane.xlu0 %4370 }
0x1694   :  { %v4375_v25 = vmul.f32 0.25, %v4371_v17 }
0x1696   :  { %v4377_v52 = vadd.f32 1e-05, %v4375_v25 }
0x1697   :  { %v4374_v26 = vpop.xlane.xlu0 %4373 }
0x1698   :  { %12670 = vrsqrt.f32 %v4377_v52  ;;  %v4376_v28 = vmul.f32 0.25, %v4374_v26 }
0x169a   :  { %v4378_v30 = vadd.f32 1e-05, %v4376_v28 }
0x169c   :  { %12672 = vrsqrt.f32 %v4378_v30 }
0x16a2   :  { %v12671_v31 = vpop.eup %12670 }
0x16a3   :  { %v4381_v32 = vmul.f32 %v12671_v31, %v4365_v4 }
0x16a5   :  { %v4387_v33 = vmul.f32 %v9525_v56, %v4381_v32 }
0x16a6   :  { %v12673_v11 = vpop.eup %12672 }
0x16a7   :  { %v4382_v34 = vmul.f32 %v12673_v11, %v4366_v18  ;;  %v14914_v8 = vadd.f32 %v9526_v10, %v4387_v33 }
0x16a9   :  { %v4388_v35 = vmul.f32 %v9525_v56, %v4382_v34  ;;  %11501 = vmatprep.mubr.msk.f32.mxu0 %vm124_vm4, %v14914_v8 }
0x16ab   :  { %v14918_v36 = vadd.f32 %v9526_v10, %v4388_v35 }
0x16ad   :  { %11502 = vmatmul.mubr.msk.f32.vlgmr.msra.gmra.mrb[70].mxu0 %vm124_vm4, %v14918_v36 }
0x16ae   :  { %11510 = vmatpush3.msk.msra.mxu0 %vm131_vm3, %v4621_v23  ;;  %v9679_v23 = vld [vmem:[%s17041_s3 + $0x1380] sm:$0xff] }
0x1780   :  { %v11503_v39 = vpop.f32.mrb[70].mxu0 }
0x1781   :  { %v4476_v40 = vpop.f32.mrb[71].mxu0  ;;  %v4482_v16 = vadd.f32 %v11503_v39, %v9527_v37 }
0x1782   :  { %v4477_v29 = vadd.f32 %v9527_v37, %v4476_v40 }
0x1783   :  { %v4603_v54 = vmul.f32 %v4572_v43, %v4482_v16  ;;  %v4598_v13 = vmul.f32 %v4567_v51, %v4482_v16 }
0x1784   :  { %v4580_v27 = vmul.f32 %v4572_v43, %v4477_v29  ;;  %v4575_v47 = vmul.f32 %v4567_v51, %v4477_v29 }
0x1785   :  { %v4604_v55 = vsel %vm124_vm4, %v4603_v54, 0.0  ;;  %v4599_v58 = vsel %vm124_vm4, %v4598_v13, 0.0 }
0x1786   :  { %v4581_v48 = vsel %vm124_vm4, %v4580_v27, 0.0  ;;  %v4576_v53 = vsel %vm124_vm4, %v4575_v47, 0.0 }
0x1787   :  { %4582 = vadd.xlane.f32.xlu0 %v4581_v48  ;;  %4577 = vadd.xlane.f32.xlu1 %v4576_v53 }
0x178b   :  { %4605 = vadd.xlane.f32.xlu0 %v4604_v55  ;;  %4600 = vadd.xlane.f32.xlu1 %v4599_v58 }
0x1814   :  { %v4583_v59 = vpop.xlane.xlu0 %4582  ;;  %v4578_v41 = vpop.xlane.xlu1 %4577 }
0x1815   :  { %v4584_v42 = vmul.f32 0.5, %v4583_v59  ;;  %v4579_v60 = vmul.f32 0.5, %v4578_v41 }
0x1817   :  { %v4585_v61 = vmax.f32 %v4579_v60, %v4584_v42 }
0x1818   :  { %v4606_v63 = vpop.xlane.xlu0 %4605  ;;  %v4601_v14 = vpop.xlane.xlu1 %4600 }
0x1819   :  { %v4586_v24 = vsub.f32 %v4579_v60, %v4585_v61  ;;  %v4589_v15 = vsub.f32 %v4584_v42, %v4585_v61  ;;  %v4607_v1 = vmul.f32 0.5, %v4606_v63  ;;  %v4602_v2 = vmul.f32 0.5, %v4601_v14  ;;  %v9544_v42 = vld [vmem:[%s17040_s2 + $0x218] sm:$0xf]  ;;  %v9541_v60 = vld [vmem:[%s17040_s2 + $0x200] sm:$0xf] }
0x181a   :  { %9550 = vmatprep.subr.msk.mxu0 %vm131_vm3, %v9544_v42  ;;  %v9543_v61 = vld [vmem:[%s17040_s2 + $0x210] sm:$0xf]  ;;  %v9619_v63 = vld [vmem:[%s17040_s2 + $0x228] sm:$0xf]  ;;  %v9621_v14 = vld [vmem:[%s17040_s2 + $0x238] sm:$0xf] }
0x181b   :  { %v4587_v3 = vmul.f32 1.442695, %v4586_v24  ;;  %v4590_v4 = vmul.f32 1.442695, %v4589_v15  ;;  %v4608_v5 = vmax.f32 %v4602_v2, %v4607_v1  ;;  %v9667_v42 = vld [vmem:[%s17041_s3 + $0x1320] sm:$0xff] }
0x181d   :  { %12674 = vpow2.f32 %v4587_v3  ;;  %v4609_v57 = vsub.f32 %v4602_v2, %v4608_v5  ;;  %v4612_v20 = vsub.f32 %v4607_v1, %v4608_v5 }
0x181e   :  { %12676 = vpow2.f32 %v4590_v4 }
0x181f   :  { %v4610_v18 = vmul.f32 1.442695, %v4609_v57  ;;  %v4613_v19 = vmul.f32 1.442695, %v4612_v20  ;;  %v9539_v20 = vld [vmem:[%s17039_s1 + $0x100] ss:$0 sm:$0xff] }
0x1821   :  { %12678 = vpow2.f32 %v4610_v18 }
0x1822   :  { %12680 = vpow2.f32 %v4613_v19 }
0x1827   :  { %v12675_v49 = vpop.eup %12674 }
0x1828   :  { %v12677_v50 = vpop.eup %12676  ;;  %v4593_v52 = vmul.f32 %v12675_v49, %v4567_v51 }
0x1829   :  { %v4592_v12 = vadd.f32 %v12677_v50, %v12675_v49  ;;  %v4594_v26 = vmul.f32 %v12677_v50, %v4572_v43  ;;  %v9540_v49 = vld [vmem:[%s17039_s1 + $0x108] ss:$0 sm:$0xff]  ;;  %v9647_v50 = vld [vmem:[%s17041_s3 + $0x1280] sm:$0xff] }
0x182b   :  { %v12679_v22 = vpop.eup %12678  ;;  %12682 = vrcp.f32 %v4592_v12  ;;  %v4595_v28 = vadd.f32 %v4594_v26, %v4593_v52  ;;  %v9618_v26 = vld [vmem:[%s17040_s2 + $0x220] sm:$0xf] }
0x182c   :  { %v12681_v17 = vpop.eup %12680  ;;  %v4616_v30 = vmul.f32 %v12679_v22, %v4567_v51 }
0x182d   :  { %v4615_v25 = vadd.f32 %v12681_v17, %v12679_v22  ;;  %v4617_v31 = vmul.f32 %v12681_v17, %v4572_v43  ;;  %v9648_v22 = vld [vmem:[%s17041_s3 + $0x1288] sm:$0xff] }
0x182e   :  { %v9680_v17 = vld [vmem:[%s17041_s3 + $0x1388] sm:$0xff] }
0x182f   :  { %12684 = vrcp.f32 %v4615_v25  ;;  %v4618_v10 = vadd.f32 %v4617_v31, %v4616_v30  ;;  %v12074_v30 = vpack.c.bf16 %v9648_v22, %v9647_v50  ;;  %v12106_v31 = vpack.c.bf16 %v9680_v17, %v9679_v23  ;;  %v9688_v50 = vld [vmem:[%s17041_s3 + $0x13c8] sm:$0xff]  ;;  %v9639_v23 = vld [vmem:[%s17041_s3 + $0x1240] sm:$0xff] }
0x1835   :  { %v12683_v56 = vpop.eup %12682 }
0x1836   :  { %v4597_v32 = vmul.f32 %v12683_v56, %v4595_v28  ;;  %v9620_v28 = vld [vmem:[%s17040_s2 + $0x230] sm:$0xf] }
0x1838   :  { %4629 = vrot.lane.b32.xlu1 %v4597_v32, %s12756_s26  ;;  %v9631_v32 = vld [vmem:[%s17041_s3 + $0x1200] sm:$0xff] }
0x1839   :  { %v12685_v33 = vpop.eup %12684 }
0x183a   :  { %v4620_v11 = vmul.f32 %v12685_v33, %v4618_v10  ;;  %v9632_v10 = vld [vmem:[%s17041_s3 + $0x1208] sm:$0xff]  ;;  %v9663_v33 = vld [vmem:[%s17041_s3 + $0x1300] sm:$0xff] }
0x183c   :  { %4631 = vrot.lane.b32.xlu0 %v4620_v11, %s12756_s26  ;;  %v9664_v11 = vld [vmem:[%s17041_s3 + $0x1308] sm:$0xff] }
0x18aa   :  { %v4630_v34 = vpop.permute.xlu1 %4629 }
0x18ab   :  { %11511 = vmatprep.mubr.msk.f32.mxu0 %vm124_vm4, %v4630_v34  ;;  %v9649_v34 = vld [vmem:[%s17041_s3 + $0x1290] sm:$0xff] }
0x18ae   :  { %v4632_v35 = vpop.permute.xlu0 %4631 }
0x18af   :  { %11512 = vmatmul.mubr.msk.f32.vlgmr.msra.gmra.mrb[72].mxu0 %vm124_vm4, %v4632_v35  ;;  %v9650_v35 = vld [vmem:[%s17041_s3 + $0x1298] sm:$0xff] }
0x18b0   :  { %4945 = vmatprep.mubr.f32.mxu0 %v12755_v9  ;;  %9551 = vmatpush1.msk.msra.mxu0 %vm131_vm3, %v9543_v61  ;;  %v9653_v61 = vld [vmem:[%s17041_s3 + $0x12b0] sm:$0xff] }
0x18b1   :  { %9627 = vmatprep.subr.msk.mxu0 %vm131_vm3, %v9621_v14  ;;  %v9685_v14 = vld [vmem:[%s17041_s3 + $0x13b0] sm:$0xff] }
0x1982   :  { %v11513_v37 = vpop.f32.mrb[72].mxu0 }
0x1983   :  { %v4712_v39 = vadd.f32 %v11513_v37, %v9535_v21  ;;  %v4706_v40 = vpop.f32.mrb[73].mxu0  ;;  %v9682_v37 = vld [vmem:[%s17041_s3 + $0x1398] sm:$0xff] }
0x1984   :  { %v4707_v43 = vadd.f32 %v9535_v21, %v4706_v40  ;;  %v9681_v21 = vld [vmem:[%s17041_s3 + $0x1390] sm:$0xff]  ;;  %v12108_v40 = vpack.c.bf16 %v9664_v11, %v9663_v33  ;;  %v9658_v33 = vld [vmem:[%s17041_s3 + $0x12d8] sm:$0xff] }
0x1985   :  { %v4716_v51 = vadd.f32 %v4712_v39, %v14918_v36  ;;  %v12076_v39 = vpack.c.bf16 %v9632_v10, %v9631_v32  ;;  %v9657_v10 = vld [vmem:[%s17041_s3 + $0x12d0] sm:$0xff] }
0x1986   :  { %v4715_v16 = vadd.f32 %v4707_v43, %v14914_v8  ;;  %v9542_v8 = vld [vmem:[%s17040_s2 + $0x208] sm:$0xf]  ;;  %v9633_v43 = vld [vmem:[%s17041_s3 + $0x1210] sm:$0xff] }
0x1987   :  { %v4722_v29 = vsel %vm124_vm4, %v4716_v51, 0.0  ;;  %9546 = vmatprep.subr.msk.mxu1 %vm131_vm3, %v9542_v8  ;;  %v9689_v11 = vld [vmem:[%s17041_s3 + $0x13d0] sm:$0xff] }
0x1988   :  { %4723 = vadd.xlane.f32.xlu0 %v4722_v29  ;;  %v4719_v27 = vsel %vm124_vm4, %v4715_v16, 0.0  ;;  %9547 = vmatpush1.msk.msra.mxu1 %vm131_vm3, %v9541_v60  ;;  %v12110_v29 = vpack.c.bf16 %v9682_v37, %v9681_v21  ;;  %v9668_v60 = vld [vmem:[%s17041_s3 + $0x1328] sm:$0xff]  ;;  %v9641_v21 = vld [vmem:[%s17041_s3 + $0x1250] sm:$0xff]  ;;  %v9642_v37 = vld [vmem:[%s17041_s3 + $0x1258] sm:$0xff] }
0x1989   :  { %4720 = vadd.xlane.f32.xlu1 %v4719_v27  ;;  %9623 = vmatprep.subr.msk.mxu1 %vm131_vm3, %v9619_v63  ;;  %v9665_v27 = vld [vmem:[%s17041_s3 + $0x1310] sm:$0xff]  ;;  %v9654_v63 = vld [vmem:[%s17041_s3 + $0x12b8] sm:$0xff] }
0x1a15   :  { %v4724_v47 = vpop.xlane.xlu0 %4723 }
0x1a16   :  { %v4726_v48 = vmul.f32 0.25, %v4724_v47  ;;  %v4721_v53 = vpop.xlane.xlu1 %4720  ;;  %v9666_v47 = vld [vmem:[%s17041_s3 + $0x1318] sm:$0xff] }
0x1a17   :  { %v4725_v54 = vmul.f32 0.25, %v4721_v53  ;;  %v9652_v53 = vld [vmem:[%s17041_s3 + $0x12a8] sm:$0xff] }
0x1a18   :  { %v4728_v13 = vsub.f32 %v4716_v51, %v4726_v48  ;;  %v9634_v51 = vld [vmem:[%s17041_s3 + $0x1218] sm:$0xff]  ;;  %v9651_v48 = vld [vmem:[%s17041_s3 + $0x12a0] sm:$0xff] }
0x1a19   :  { %v4727_v55 = vsub.f32 %v4715_v16, %v4725_v54  ;;  %v12078_v16 = vpack.c.bf16 %v9650_v35, %v9649_v34  ;;  %v9683_v54 = vld [vmem:[%s17041_s3 + $0x13a0] sm:$0xff]  ;;  %v12094_v34 = vpack.c.bf16 %v9658_v33, %v9657_v10  ;;  %v9690_v35 = vld [vmem:[%s17041_s3 + $0x13d8] sm:$0xff] }
0x1a1a   :  { %v4730_v58 = vmul.f32 %v4728_v13, %v4728_v13 }
0x1a1b   :  { %v4729_v59 = vmul.f32 %v4727_v55, %v4727_v55 }
0x1a1c   :  { %v4734_v41 = vsel %vm124_vm4, %v4730_v58, 0.0  ;;  %v12112_v58 = vpack.c.bf16 %v9666_v47, %v9665_v27  ;;  %v9660_v27 = vld [vmem:[%s17041_s3 + $0x12e8] sm:$0xff]  ;;  %v9691_v47 = vld [vmem:[%s17041_s3 + $0x13e0] sm:$0xff] }
0x1a1d   :  { %4735 = vadd.xlane.f32.xlu0 %v4734_v41  ;;  %v4731_v36 = vsel %vm124_vm4, %v4729_v59, 0.0  ;;  %v9635_v59 = vld [vmem:[%s17041_s3 + $0x1220] sm:$0xff]  ;;  %v9636_v41 = vld [vmem:[%s17041_s3 + $0x1228] sm:$0xff] }
0x1a1e   :  { %4732 = vadd.xlane.f32.xlu1 %v4731_v36  ;;  %v12082_v36 = vpack.c.bf16 %v9652_v53, %v9651_v48  ;;  %v9692_v53 = vld [vmem:[%s17041_s3 + $0x13e8] sm:$0xff] }
0x1aaa   :  { %v4736_v24 = vpop.xlane.xlu0 %4735 }
0x1aab   :  { %v4738_v15 = vmul.f32 0.25, %v4736_v24  ;;  %v4733_v1 = vpop.xlane.xlu1 %4732  ;;  %v9686_v24 = vld [vmem:[%s17041_s3 + $0x13b8] sm:$0xff] }
0x1aac   :  { %v4737_v2 = vmul.f32 0.25, %v4733_v1  ;;  %v12116_v1 = vpack.c.bf16 %v9668_v60, %v9667_v42  ;;  %v9662_v42 = vld [vmem:[%s17041_s3 + $0x12f8] sm:$0xff]  ;;  %v9693_v60 = vld [vmem:[%s17041_s3 + $0x13f0] sm:$0xff] }
0x1aad   :  { %v4740_v3 = vadd.f32 1e-05, %v4738_v15  ;;  %v12084_v15 = vpack.c.bf16 %v9636_v41, %v9635_v59  ;;  %v9675_v59 = vld [vmem:[%s17041_s3 + $0x1360] sm:$0xff]  ;;  %v9676_v41 = vld [vmem:[%s17041_s3 + $0x1368] sm:$0xff] }
0x1aae   :  { %v4739_v4 = vadd.f32 1e-05, %v4737_v2  ;;  %v9637_v2 = vld [vmem:[%s17041_s3 + $0x1230] sm:$0xff] }
0x1aaf   :  { %12686 = vrsqrt.f32 %v4740_v3  ;;  %v9638_v3 = vld [vmem:[%s17041_s3 + $0x1238] sm:$0xff] }
0x1ab0   :  { %12688 = vrsqrt.f32 %v4739_v4  ;;  %v12086_v4 = vpack.c.bf16 %v9654_v63, %v9653_v61  ;;  %v9694_v63 = vld [vmem:[%s17041_s3 + $0x13f8] sm:$0xff] }
0x1ab9   :  { %v12687_v5 = vpop.eup %12686 }
0x1aba   :  { %v12689_v57 = vpop.eup %12688  ;;  %v4744_v18 = vmul.f32 %v12687_v5, %v4728_v13  ;;  %v9684_v13 = vld [vmem:[%s17041_s3 + $0x13a8] sm:$0xff]  ;;  %v12118_v5 = vpack.c.bf16 %v9686_v24, %v9685_v14  ;;  %v9645_v14 = vld [vmem:[%s17041_s3 + $0x1270] sm:$0xff]  ;;  %v9646_v24 = vld [vmem:[%s17041_s3 + $0x1278] sm:$0xff] }
0x1abb   :  { %v4743_v19 = vmul.f32 %v12689_v57, %v4727_v55  ;;  %v12080_v55 = vpack.c.bf16 %v9634_v51, %v9633_v43  ;;  %v12114_v8 = vpack.c.bf16 %v9684_v13, %v9683_v54  ;;  %v9669_v57 = vld [vmem:[%s17041_s3 + $0x1330] sm:$0xff]  ;;  %v9674_v51 = vld [vmem:[%s17041_s3 + $0x1358] sm:$0xff]  ;;  %v9643_v54 = vld [vmem:[%s17041_s3 + $0x1260] sm:$0xff] }
0x1abc   :  { %v4750_v25 = vmul.f32 %v9539_v20, %v4744_v18  ;;  %v9655_v18 = vld [vmem:[%s17041_s3 + $0x12c0] sm:$0xff]  ;;  %v9673_v43 = vld [vmem:[%s17041_s3 + $0x1350] sm:$0xff]  ;;  %v9644_v13 = vld [vmem:[%s17041_s3 + $0x1268] sm:$0xff] }
0x1abd   :  { %v4749_v12 = vmul.f32 %v9539_v20, %v4743_v19  ;;  %v9670_v20 = vld [vmem:[%s17041_s3 + $0x1338] sm:$0xff]  ;;  %v9656_v19 = vld [vmem:[%s17041_s3 + $0x12c8] sm:$0xff] }
0x1abe   :  { %v15007_v56 = vadd.f32 %v9540_v49, %v4750_v25  ;;  %v12120_v22 = vpack.c.bf16 %v9670_v20, %v9669_v57  ;;  %v12090_v17 = vpack.c.bf16 %v9656_v19, %v9655_v18  ;;  %v9571_v57 = vld [vmem:[%s17041_s3 + $0x1088] sm:$0xff]  ;;  %v9602_v20 = vld [vmem:[%s17041_s3 + $0x1180] sm:$0xff] }
0x1abf   :  { %v14993_v52 = vadd.f32 %v9540_v49, %v4749_v12  ;;  %v9687_v49 = vld [vmem:[%s17041_s3 + $0x13c0] sm:$0xff]  ;;  %v12088_v12 = vpack.c.bf16 %v9638_v3, %v9637_v2  ;;  %v9677_v2 = vld [vmem:[%s17041_s3 + $0x1370] sm:$0xff]  ;;  %v9678_v3 = vld [vmem:[%s17041_s3 + $0x1378] sm:$0xff] }
0x1ac0   :  { %v12122_v25 = vpack.c.bf16 %v9688_v50, %v9687_v49  ;;  %v9603_v19 = vld [vmem:[%s17041_s3 + $0x1188] sm:$0xff] }
0x1ac1   :  { %9548 = vmatmul.mubr.msk.f32.vlgmr.msra.gmra.mrb[74].mxu1 %vm124_vm4, %v14993_v52  ;;  %9552 = vmatmul.mubr.msk.f32.vlgmr.msra.gmra.mrb[74].mxu0 %vm124_vm4, %v14993_v52  ;;  %v12170_v49 = vpack.c.bf16 %v9603_v19, %v9602_v20  ;;  %v9589_v20 = vld [vmem:[%s17041_s3 + $0x1118] sm:$0xff] }
0x1ac2   :  { %4874 = vmatprep.mubr.f32.mxu1 %v12755_v9  ;;  %4951 = vmatprep.mubr.f32.mxu0 %v12755_v9 }
0x1ac3   :  { %9624 = vmatpush1.msk.msra.mxu1 %vm131_vm3, %v9618_v26  ;;  %9628 = vmatpush1.msk.msra.mxu0 %vm131_vm3, %v9620_v28  ;;  %v9640_v26 = vld [vmem:[%s17041_s3 + $0x1248] sm:$0xff]  ;;  %v9671_v28 = vld [vmem:[%s17041_s3 + $0x1340] sm:$0xff] }
0x1ac4   :  { %12075 = vmatprep.subr.bf16.mxu1 %v12074_v30  ;;  %12107 = vmatprep.subr.bf16.mxu0 %v12106_v31  ;;  %v9672_v30 = vld [vmem:[%s17041_s3 + $0x1348] sm:$0xff]  ;;  %v12092_v31 = vpack.c.bf16 %v9640_v26, %v9639_v23 }
0x1ac5   :  { %9549 = vmatmul.mubr.msk.f32.gmra.mrb[76].mxu1 %vm124_vm4, %v15007_v56  ;;  %9553 = vmatmul.mubr.msk.f32.gmra.mrb[76].mxu0 %vm124_vm4, %v15007_v56  ;;  %v12124_v32 = vpack.c.bf16 %v9672_v30, %v9671_v28 }
0x1ac6   :  { %5134 = vmatprep.mubr.f32.mxu1 %v12755_v9  ;;  %5211 = vmatprep.mubr.f32.mxu0 %v12755_v9 }
0x1ac9   :  { %9625 = vmatmul.mubr.msk.f32.vlgmr.msra.gmra.mrb[78].mxu1 %vm124_vm4, %v14993_v52  ;;  %9629 = vmatmul.mubr.msk.f32.vlgmr.msra.gmra.mrb[78].mxu0 %vm124_vm4, %v14993_v52 }
0x1aca   :  { %5140 = vmatprep.mubr.f32.mxu1 %v12755_v9  ;;  %5217 = vmatprep.mubr.f32.mxu0 %v12755_v9 }
0x1acb   :  { %12077 = vmatpush3.bf16.msra.mxu1 %v12076_v39  ;;  %12109 = vmatpush3.bf16.msra.mxu0 %v12108_v40  ;;  %v12126_v39 = vpack.c.bf16 %v9690_v35, %v9689_v11  ;;  %v12096_v40 = vpack.c.bf16 %v9642_v37, %v9641_v21  ;;  %v15241_v11 = vld [vmem:[%s17040_s2 + $0x280] ss:$8 sm:$0xf] }
0x1acc   :  { %12079 = vmatprep.subr.bf16.mxu1 %v12078_v16  ;;  %12111 = vmatprep.subr.bf16.mxu0 %v12110_v29  ;;  %v12128_v16 = vpack.c.bf16 %v9674_v51, %v9673_v43  ;;  %v9659_v29 = vld [vmem:[%s17041_s3 + $0x12e0] sm:$0xff]  ;;  %v9555_v35 = vld [vmem:[%s17041_s3 + $0x1008] sm:$0xff]  ;;  %v9572_v43 = vld [vmem:[%s17041_s3 + $0x1090] sm:$0xff] }
0x1acd   :  { %9626 = vmatmul.mubr.msk.f32.gmra.mrb[80].mxu1 %vm124_vm4, %v15007_v56  ;;  %9630 = vmatmul.mubr.msk.f32.gmra.mrb[80].mxu0 %vm124_vm4, %v15007_v56  ;;  %v12098_v48 = vpack.c.bf16 %v9660_v27, %v9659_v29 }
0x1acf   :  { %12081 = vmatpush3.bf16.msra.mxu1 %v12080_v55  ;;  %12113 = vmatpush3.bf16.msra.mxu0 %v12112_v58  ;;  %v12130_v55 = vpack.c.bf16 %v9692_v53, %v9691_v47  ;;  %v12100_v58 = vpack.c.bf16 %v9644_v13, %v9643_v54  ;;  %v9573_v47 = vld [vmem:[%s17041_s3 + $0x1098] sm:$0xff] }
0x1ad0   :  { %12083 = vmatprep.subr.bf16.mxu1 %v12082_v36  ;;  %12115 = vmatprep.subr.bf16.mxu0 %v12114_v8  ;;  %v12132_v36 = vpack.c.bf16 %v9676_v41, %v9675_v59  ;;  %v9661_v8 = vld [vmem:[%s17041_s3 + $0x12f0] sm:$0xff]  ;;  %v9605_v53 = vld [vmem:[%s17041_s3 + $0x1198] sm:$0xff] }
0x1ad1   :  { %v12102_v61 = vpack.c.bf16 %v9662_v42, %v9661_v8 }
0x1ad3   :  { %12085 = vmatpush3.bf16.msra.mxu1 %v12084_v15  ;;  %12117 = vmatpush3.bf16.msra.mxu0 %v12116_v1  ;;  %v12134_v15 = vpack.c.bf16 %v9694_v63, %v9693_v60  ;;  %v12104_v1 = vpack.c.bf16 %v9646_v24, %v9645_v14  ;;  %v9556_v14 = vld [vmem:[%s17041_s3 + $0x1010] sm:$0xff]  ;;  %v9557_v24 = vld [vmem:[%s17041_s3 + $0x1018] sm:$0xff] }
0x1ad4   :  { %12087 = vmatprep.subr.bf16.mxu1 %v12086_v4  ;;  %12119 = vmatprep.subr.bf16.mxu0 %v12118_v5  ;;  %v12136_v4 = vpack.c.bf16 %v9678_v3, %v9677_v2  ;;  %v9570_v5 = vld [vmem:[%s17041_s3 + $0x1080] sm:$0xff] }
0x1ad5   :  { %v12138_v18 = vpack.c.bf16 %v9571_v57, %v9570_v5  ;;  %v9588_v57 = vld [vmem:[%s17041_s3 + $0x1110] sm:$0xff] }
0x1ad7   :  { %12089 = vmatpush3.bf16.msra.mxu1 %v12088_v12  ;;  %12121 = vmatpush3.bf16.msra.mxu0 %v12120_v22 }
0x1ad8   :  { %12091 = vmatprep.subr.bf16.mxu1 %v12090_v17  ;;  %12123 = vmatprep.subr.bf16.mxu0 %v12122_v25  ;;  %v9622_v17 = vld [vmem:[%s17040_s2 + $0x2a0] ss:$8 sm:$0xf] }
0x1ad9   :  { %v5045_v10 = vrot.slane %v9622_v17, %v13137_v46  ;;  %v5053_v33 = vrot.slane %v9622_v17, %v13140_v6 }
0x1adb   :  { %12093 = vmatpush3.bf16.msra.mxu1 %v12092_v31  ;;  %12125 = vmatpush3.bf16.msra.mxu0 %v12124_v32  ;;  %v5041_v31 = vrot.slane %v9622_v17, %v13131_v44  ;;  %v5049_v32 = vrot.slane %v9622_v17, %v13134_v45 }
0x1adc   :  { %12095 = vmatprep.subr.bf16.mxu1 %v12094_v34  ;;  %12127 = vmatprep.subr.bf16.mxu0 %v12126_v39  ;;  %v9554_v34 = vld [vmem:[%s17041_s3 + $0x1000] sm:$0xff] }
0x1add   :  { %v9586_v39 = vld [vmem:[%s17041_s3 + $0x1100] sm:$0xff]  ;;  %v12140_v59 = vpack.c.bf16 %v9555_v35, %v9554_v34 }
0x1adf   :  { %12097 = vmatpush3.bf16.msra.mxu1 %v12096_v40  ;;  %12129 = vmatpush3.bf16.msra.mxu0 %v12128_v16  ;;  %v9587_v40 = vld [vmem:[%s17041_s3 + $0x1108] sm:$0xff] }
0x1ae0   :  { %12099 = vmatprep.subr.bf16.mxu1 %v12098_v48  ;;  %12131 = vmatprep.subr.bf16.mxu0 %v12130_v55  ;;  %v9604_v48 = vld [vmem:[%s17041_s3 + $0x1190] sm:$0xff]  ;;  %v15269_v55 = vrot.slane %v15241_v11, %v13137_v46  ;;  %v12172_v41 = vpack.c.bf16 %v9587_v40, %v9586_v39 }
0x1ae1   :  { %v12174_v63 = vpack.c.bf16 %v9605_v53, %v9604_v48  ;;  %v9608_v48 = vld [vmem:[%s17041_s3 + $0x11b0] sm:$0xff]  ;;  %v9609_v53 = vld [vmem:[%s17041_s3 + $0x11b8] sm:$0xff] }
0x1ae3   :  { %12101 = vmatpush3.bf16.msra.mxu1 %v12100_v58  ;;  %12133 = vmatpush3.bf16.msra.mxu0 %v12132_v36  ;;  %v15273_v58 = vrot.slane %v15241_v11, %v13140_v6 }
0x1ae4   :  { %12103 = vmatprep.subr.bf16.mxu1 %v12102_v61  ;;  %12135 = vmatprep.subr.bf16.mxu0 %v12134_v15  ;;  %v12142_v61 = vpack.c.bf16 %v9573_v47, %v9572_v43  ;;  %v9590_v43 = vld [vmem:[%s17041_s3 + $0x1120] sm:$0xff]  ;;  %v9577_v47 = vld [vmem:[%s17041_s3 + $0x10b8] sm:$0xff] }
0x1ae7   :  { %12105 = vmatpush3.bf16.msra.mxu1 %v12104_v1  ;;  %12137 = vmatpush3.bf16.msra.mxu0 %v12136_v4 }
0x1ae8   :  { %12139 = vmatprep.subr.bf16.mxu1 %v12138_v18  ;;  %12171 = vmatprep.subr.bf16.mxu0 %v12170_v49  ;;  %v9574_v49 = vld [vmem:[%s17041_s3 + $0x10a0] sm:$0xff] }
0x1b94   :  { %v15219_v50 = vpop.f32.mrb[74].mxu1  ;;  %v15221_v12 = vpop.f32.mrb[74].mxu0 }
0x1b95   :  { %v4872_v22 = vpop.f32.mrb[75].mxu1  ;;  %v4949_v23 = vpop.f32.mrb[75].mxu0 }
0x1b96   :  { %v4873_v17 = vadd.f32 %v4872_v22, %v15269_v55  ;;  %v12144_v22 = vpack.c.bf16 %v9557_v24, %v9556_v14  ;;  %v9578_v14 = vld [vmem:[%s17041_s3 + $0x10c0] sm:$0xff]  ;;  %v9579_v24 = vld [vmem:[%s17041_s3 + $0x10c8] sm:$0xff] }
0x1b98   :  { %v15226_v25 = vpop.f32.mrb[76].mxu1  ;;  %v15228_v26 = vpop.f32.mrb[76].mxu0 }
0x1b99   :  { %v15230_v28 = vpop.f32.mrb[77].mxu1  ;;  %v15232_v30 = vpop.f32.mrb[77].mxu0 }
0x1b9c   :  { %v5136_v21 = vpop.f32.mrb[78].mxu1  ;;  %v5213_v37 = vpop.f32.mrb[78].mxu0 }
0x1b9d   :  { %v5137_v51 = vadd.f32 %v5136_v21, %v5041_v31  ;;  %v5214_v16 = vadd.f32 %v5213_v37, %v5049_v32  ;;  %v5138_v29 = vpop.f32.mrb[79].mxu1  ;;  %v5215_v27 = vpop.f32.mrb[79].mxu0  ;;  %v9558_v21 = vld [vmem:[%s17041_s3 + $0x1020] sm:$0xff]  ;;  %v9559_v37 = vld [vmem:[%s17041_s3 + $0x1028] sm:$0xff] }
0x1b9e   :  { %v5139_v54 = vadd.f32 %v5138_v29, %v5045_v10  ;;  %v5216_v13 = vadd.f32 %v5215_v27, %v5053_v33 }
0x1b9f   :  { %v5224_v15 = vmax.f32 %v5137_v51, 0.0  ;;  %v5226_v1 = vmax.f32 %v5214_v16, 0.0  ;;  %v9591_v51 = vld [vmem:[%s17041_s3 + $0x1128] sm:$0xff]  ;;  %v9576_v16 = vld [vmem:[%s17041_s3 + $0x10b0] sm:$0xff] }
0x1ba0   :  { %v5225_v36 = vmax.f32 %v5139_v54, 0.0  ;;  %v5227_v8 = vmax.f32 %v5216_v13, 0.0  ;;  %v5142_v42 = vpop.f32.mrb[80].mxu1  ;;  %v5219_v60 = vpop.f32.mrb[80].mxu0  ;;  %v4959_v54 = vmax.f32 %v4873_v17, 0.0  ;;  %v9581_v17 = vld [vmem:[%s17041_s3 + $0x10d8] sm:$0xff] }
0x1ba1   :  { %v5143_v2 = vadd.f32 %v5142_v42, %v5041_v31  ;;  %v5220_v3 = vadd.f32 %v5219_v60, %v5049_v32  ;;  %v5144_v4 = vpop.f32.mrb[81].mxu1  ;;  %v5221_v5 = vpop.f32.mrb[81].mxu0  ;;  %v4950_v31 = vadd.f32 %v4949_v23, %v15273_v58  ;;  %v9575_v32 = vld [vmem:[%s17041_s3 + $0x10a8] sm:$0xff]  ;;  %v12176_v23 = vpack.c.bf16 %v9589_v20, %v9588_v57 }
0x1ba2   :  { %v5145_v18 = vadd.f32 %v5144_v4, %v5045_v10  ;;  %v5222_v19 = vadd.f32 %v5221_v5, %v5053_v33  ;;  %5360 = vmatprep.mubr.f32.mxu1 %v5225_v36  ;;  %5435 = vmatprep.mubr.f32.mxu0 %v5227_v8  ;;  %v9606_v10 = vld [vmem:[%s17041_s3 + $0x11a0] sm:$0xff]  ;;  %v9607_v33 = vld [vmem:[%s17041_s3 + $0x11a8] sm:$0xff]  ;;  %v12146_v29 = vpack.c.bf16 %v9575_v32, %v9574_v49  ;;  %v9560_v36 = vld [vmem:[%s17041_s3 + $0x1030] sm:$0xff] }
0x1ba3   :  { %5361 = vmatmul.mubr.f32.vlgmr.msra.gmra.mrb[82].mxu1 %v5224_v15  ;;  %5436 = vmatmul.mubr.f32.vlgmr.msra.gmra.mrb[82].mxu0 %v5226_v1  ;;  %v5228_v39 = vmax.f32 %v5143_v2, 0.0  ;;  %v5230_v40 = vmax.f32 %v5220_v3, 0.0  ;;  %v12178_v27 = vpack.c.bf16 %v9607_v33, %v9606_v10  ;;  %v4961_v13 = vmax.f32 %v4950_v31, 0.0  ;;  %v9561_v8 = vld [vmem:[%s17041_s3 + $0x1038] sm:$0xff]  ;;  %v9610_v15 = vld [vmem:[%s17041_s3 + $0x11c0] sm:$0xff]  ;;  %v9611_v1 = vld [vmem:[%s17041_s3 + $0x11c8] sm:$0xff] }
0x1ba4   :  { %v5229_v34 = vmax.f32 %v5145_v18, 0.0  ;;  %v5231_v35 = vmax.f32 %v5222_v19, 0.0  ;;  %12141 = vmatpush3.bf16.msra.mxu1 %v12140_v59  ;;  %12173 = vmatpush3.bf16.msra.mxu0 %v12172_v41  ;;  %v12148_v59 = vpack.c.bf16 %v9559_v37, %v9558_v21  ;;  %v12180_v41 = vpack.c.bf16 %v9591_v51, %v9590_v43  ;;  %v9562_v4 = vld [vmem:[%s17041_s3 + $0x1040] sm:$0xff]  ;;  %v9563_v5 = vld [vmem:[%s17041_s3 + $0x1048] sm:$0xff]  ;;  %v9580_v49 = vld [vmem:[%s17041_s3 + $0x10d0] sm:$0xff] }
0x1ba5   :  { %12143 = vmatprep.subr.bf16.mxu1 %v12142_v61  ;;  %12175 = vmatprep.subr.bf16.mxu0 %v12174_v63  ;;  %v12150_v42 = vpack.c.bf16 %v9577_v47, %v9576_v16  ;;  %v12182_v60 = vpack.c.bf16 %v9609_v53, %v9608_v48  ;;  %v9592_v61 = vld [vmem:[%s17041_s3 + $0x1130] sm:$0xff]  ;;  %v9593_v63 = vld [vmem:[%s17041_s3 + $0x1138] sm:$0xff]  ;;  %v12152_v2 = vpack.c.bf16 %v9561_v8, %v9560_v36  ;;  %v9594_v18 = vld [vmem:[%s17041_s3 + $0x1140] sm:$0xff] }
0x1ba6   :  { %5365 = vmatprep.mubr.f32.mxu1 %v5229_v34  ;;  %5440 = vmatprep.mubr.f32.mxu0 %v5231_v35  ;;  %v12184_v3 = vpack.c.bf16 %v9593_v63, %v9592_v61  ;;  %v12154_v57 = vpack.c.bf16 %v9579_v24, %v9578_v14  ;;  %v12186_v20 = vpack.c.bf16 %v9611_v1, %v9610_v15  ;;  %v9595_v19 = vld [vmem:[%s17041_s3 + $0x1148] sm:$0xff]  ;;  %v9612_v31 = vld [vmem:[%s17041_s3 + $0x11d0] sm:$0xff]  ;;  %v9613_v32 = vld [vmem:[%s17041_s3 + $0x11d8] sm:$0xff] }
0x1ba7   :  { %5366 = vmatmul.mubr.f32.gmra.mrb[84].mxu1 %v5228_v39  ;;  %5441 = vmatmul.mubr.f32.gmra.mrb[84].mxu0 %v5230_v40  ;;  %v12156_v10 = vpack.c.bf16 %v9563_v5, %v9562_v4  ;;  %v12188_v33 = vpack.c.bf16 %v9595_v19, %v9594_v18  ;;  %v9564_v34 = vld [vmem:[%s17041_s3 + $0x1050] sm:$0xff]  ;;  %v9565_v35 = vld [vmem:[%s17041_s3 + $0x1058] sm:$0xff]  ;;  %v9582_v39 = vld [vmem:[%s17041_s3 + $0x10e0] sm:$0xff]  ;;  %v4777_v14 = vrot.slane %v15241_v11, %v13134_v45 }
0x1ba8   :  { %12145 = vmatpush3.bf16.msra.mxu1 %v12144_v22  ;;  %12177 = vmatpush3.bf16.msra.mxu0 %v12176_v23  ;;  %v12158_v22 = vpack.c.bf16 %v9581_v17, %v9580_v49  ;;  %v12190_v23 = vpack.c.bf16 %v9613_v32, %v9612_v31  ;;  %v9596_v21 = vld [vmem:[%s17041_s3 + $0x1150] sm:$0xff]  ;;  %v9597_v37 = vld [vmem:[%s17041_s3 + $0x1158] sm:$0xff]  ;;  %v9583_v40 = vld [vmem:[%s17041_s3 + $0x10e8] sm:$0xff]  ;;  %v12160_v16 = vpack.c.bf16 %v9565_v35, %v9564_v34 }
0x1ba9   :  { %5510 = vmatprep.mubr.f32.mxu1 %v4959_v54  ;;  %5585 = vmatprep.mubr.f32.mxu0 %v4961_v13  ;;  %v9614_v43 = vld [vmem:[%s17041_s3 + $0x11e0] sm:$0xff]  ;;  %v9615_v51 = vld [vmem:[%s17041_s3 + $0x11e8] sm:$0xff]  ;;  %v12162_v48 = vpack.c.bf16 %v9583_v40, %v9582_v39  ;;  %v9616_v36 = vld [vmem:[%s17041_s3 + $0x11f0] sm:$0xff]  ;;  %v4956_v18 = vadd.f32 %v15232_v30, %v15273_v58  ;;  %v4954_v31 = vadd.f32 %v15228_v26, %v4777_v14 }
0x1baa   :  { %12147 = vmatprep.subr.bf16.mxu1 %v12146_v29  ;;  %12179 = vmatprep.subr.bf16.mxu0 %v12178_v27  ;;  %v12192_v29 = vpack.c.bf16 %v9597_v37, %v9596_v21  ;;  %v9566_v27 = vld [vmem:[%s17041_s3 + $0x1060] sm:$0xff]  ;;  %v9567_v47 = vld [vmem:[%s17041_s3 + $0x1068] sm:$0xff]  ;;  %v12194_v53 = vpack.c.bf16 %v9615_v51, %v9614_v43  ;;  %v9617_v8 = vld [vmem:[%s17041_s3 + $0x11f8] sm:$0xff] }
0x1bab   :  { %v9598_v54 = vld [vmem:[%s17041_s3 + $0x1160] sm:$0xff]  ;;  %v9599_v13 = vld [vmem:[%s17041_s3 + $0x1168] sm:$0xff]  ;;  %v9568_v63 = vld [vmem:[%s17041_s3 + $0x1070] sm:$0xff]  ;;  %v12198_v15 = vpack.c.bf16 %v9617_v8, %v9616_v36  ;;  %v4965_v30 = vmax.f32 %v4956_v18, 0.0  ;;  %v4964_v26 = vmax.f32 %v4954_v31, 0.0 }
0x1bac   :  { %12149 = vmatpush3.bf16.msra.mxu1 %v12148_v59  ;;  %12181 = vmatpush3.bf16.msra.mxu0 %v12180_v41  ;;  %v9584_v59 = vld [vmem:[%s17041_s3 + $0x10f0] sm:$0xff]  ;;  %v9585_v41 = vld [vmem:[%s17041_s3 + $0x10f8] sm:$0xff]  ;;  %v12196_v61 = vpack.c.bf16 %v9599_v13, %v9598_v54  ;;  %v9696_v19 = vld [vmem:[%s17040_s2 + $0x248] sm:$0xf] }
0x1bad   :  { %12151 = vmatprep.subr.bf16.mxu1 %v12150_v42  ;;  %12183 = vmatprep.subr.bf16.mxu0 %v12182_v60  ;;  %v4769_v42 = vrot.slane %v15241_v11, %v13131_v44  ;;  %v12164_v60 = vpack.c.bf16 %v9567_v47, %v9566_v27  ;;  %v12166_v24 = vpack.c.bf16 %v9585_v41, %v9584_v59  ;;  %v9569_v1 = vld [vmem:[%s17041_s3 + $0x1078] sm:$0xff]  ;;  %v9697_v58 = vld [vmem:[%s17040_s2 + $0x250] sm:$0xf]  ;;  %v9724_v32 = vld [vmem:[%s17041_s3 + $0x1480] sm:$0xff] }
0x1bae   :  { %v12168_v4 = vpack.c.bf16 %v9569_v1, %v9568_v63  ;;  %v9698_v49 = vld [vmem:[%s17040_s2 + $0x258] sm:$0xf]  ;;  %v9757_v35 = vld [vmem:[%s17041_s3 + $0x1588] sm:$0xff]  ;;  %v9740_v39 = vld [vmem:[%s17041_s3 + $0x1500] sm:$0xff] }
0x1baf   :  { %v4871_v5 = vadd.f32 %v15219_v50, %v4769_v42  ;;  %v4877_v17 = vadd.f32 %v15226_v25, %v4769_v42  ;;  %v9741_v40 = vld [vmem:[%s17041_s3 + $0x1508] sm:$0xff]  ;;  %v9726_v43 = vld [vmem:[%s17041_s3 + $0x1490] sm:$0xff]  ;;  %v9759_v27 = vld [vmem:[%s17041_s3 + $0x1598] sm:$0xff] }
0x1bb0   :  { %12153 = vmatpush3.bf16.msra.mxu1 %v12152_v2  ;;  %12185 = vmatpush3.bf16.msra.mxu0 %v12184_v3  ;;  %v9600_v2 = vld [vmem:[%s17041_s3 + $0x1170] sm:$0xff]  ;;  %v9601_v3 = vld [vmem:[%s17041_s3 + $0x1178] sm:$0xff]  ;;  %v12236_v51 = vpack.c.bf16 %v9741_v40, %v9740_v39  ;;  %v9728_v36 = vld [vmem:[%s17041_s3 + $0x14a0] sm:$0xff] }
0x1bb1   :  { %12155 = vmatprep.subr.bf16.mxu1 %v12154_v57  ;;  %12187 = vmatprep.subr.bf16.mxu0 %v12186_v20  ;;  %v12200_v11 = vpack.c.bf16 %v9601_v3, %v9600_v2  ;;  %v4948_v57 = vadd.f32 %v15221_v12, %v4777_v14  ;;  %v4879_v20 = vadd.f32 %v15230_v28, %v15269_v55  ;;  %v4958_v50 = vmax.f32 %v4871_v5, 0.0  ;;  %v9695_v55 = vld [vmem:[%s17040_s2 + $0x240] sm:$0xf]  ;;  %v9711_v54 = vld [vmem:[%s17041_s3 + $0x1418] sm:$0xff]  ;;  %v9742_v13 = vld [vmem:[%s17041_s3 + $0x1510] sm:$0xff] }
0x1bb2   :  { %v4962_v25 = vmax.f32 %v4877_v17, 0.0  ;;  %v9743_v41 = vld [vmem:[%s17041_s3 + $0x1518] sm:$0xff]  ;;  %v9729_v8 = vld [vmem:[%s17041_s3 + $0x14a8] sm:$0xff]  ;;  %v9712_v14 = vld [vmem:[%s17041_s3 + $0x1420] sm:$0xff] }
0x1bb3   :  { %v4960_v12 = vmax.f32 %v4948_v57, 0.0  ;;  %v4963_v28 = vmax.f32 %v4879_v20, 0.0  ;;  %v12240_v42 = vpack.c.bf16 %v9743_v41, %v9742_v13  ;;  %v9761_v63 = vld [vmem:[%s17041_s3 + $0x15a8] sm:$0xff]  ;;  %v9744_v1 = vld [vmem:[%s17041_s3 + $0x1520] sm:$0xff]  ;;  %v9762_v5 = vld [vmem:[%s17041_s3 + $0x15b0] sm:$0xff] }
0x1bb4   :  { %12157 = vmatpush3.bf16.msra.mxu1 %v12156_v10  ;;  %12189 = vmatpush3.bf16.msra.mxu0 %v12188_v33  ;;  %v9725_v10 = vld [vmem:[%s17041_s3 + $0x1488] sm:$0xff]  ;;  %v9756_v33 = vld [vmem:[%s17041_s3 + $0x1580] sm:$0xff]  ;;  %v9763_v18 = vld [vmem:[%s17041_s3 + $0x15b8] sm:$0xff] }
0x1bb5   :  { %12159 = vmatprep.subr.bf16.mxu1 %v12158_v22  ;;  %12191 = vmatprep.subr.bf16.mxu0 %v12190_v23  ;;  %v12202_v34 = vpack.c.bf16 %v9725_v10, %v9724_v32  ;;  %v9708_v22 = vld [vmem:[%s17041_s3 + $0x1400] sm:$0xff]  ;;  %v9709_v23 = vld [vmem:[%s17041_s3 + $0x1408] sm:$0xff]  ;;  %v12234_v21 = vpack.c.bf16 %v9757_v35, %v9756_v33  ;;  %v9747_v17 = vld [vmem:[%s17041_s3 + $0x1538] sm:$0xff] }
0x1bb6   :  { %v12204_v37 = vpack.c.bf16 %v9709_v23, %v9708_v22  ;;  %v9745_v2 = vld [vmem:[%s17041_s3 + $0x1528] sm:$0xff]  ;;  %v9732_v31 = vld [vmem:[%s17041_s3 + $0x14c0] sm:$0xff]  ;;  %v9766_v39 = vld [vmem:[%s17041_s3 + $0x15d0] sm:$0xff] }
0x1bb7   :  { %v12244_v57 = vpack.c.bf16 %v9745_v2, %v9744_v1  ;;  %v9716_v10 = vld [vmem:[%s17041_s3 + $0x1440] sm:$0xff]  ;;  %v9717_v33 = vld [vmem:[%s17041_s3 + $0x1448] sm:$0xff]  ;;  %v9739_v1 = vld [vmem:[%s17041_s3 + $0x14f8] sm:$0xff] }
0x1bb8   :  { %12161 = vmatpush3.bf16.msra.mxu1 %v12160_v16  ;;  %12193 = vmatpush3.bf16.msra.mxu0 %v12192_v29  ;;  %v9727_v16 = vld [vmem:[%s17041_s3 + $0x1498] sm:$0xff]  ;;  %v9758_v29 = vld [vmem:[%s17041_s3 + $0x1590] sm:$0xff]  ;;  %v12220_v35 = vpack.c.bf16 %v9717_v33, %v9716_v10  ;;  %v9749_v22 = vld [vmem:[%s17041_s3 + $0x1548] sm:$0xff] }
0x1bb9   :  { %12163 = vmatprep.subr.bf16.mxu1 %v12162_v48  ;;  %12195 = vmatprep.subr.bf16.mxu0 %v12194_v53  ;;  %v12206_v47 = vpack.c.bf16 %v9727_v16, %v9726_v43  ;;  %v12238_v48 = vpack.c.bf16 %v9759_v27, %v9758_v29  ;;  %v9710_v53 = vld [vmem:[%s17041_s3 + $0x1410] sm:$0xff]  ;;  %v9767_v43 = vld [vmem:[%s17041_s3 + $0x15d8] sm:$0xff]  ;;  %v9737_v13 = vld [vmem:[%s17041_s3 + $0x14e8] sm:$0xff] }
0x1bba   :  { %v12208_v59 = vpack.c.bf16 %v9711_v54, %v9710_v53  ;;  %v9719_v16 = vld [vmem:[%s17041_s3 + $0x1458] sm:$0xff]  ;;  %v12254_v29 = vpack.c.bf16 %v9767_v43, %v9766_v39  ;;  %v9736_v54 = vld [vmem:[%s17041_s3 + $0x14e0] sm:$0xff]  ;;  %v9770_v2 = vld [vmem:[%s17041_s3 + $0x15f0] sm:$0xff] }
0x1bbb   :  { %v12226_v41 = vpack.c.bf16 %v9737_v13, %v9736_v54 }
0x1bbc   :  { %12165 = vmatpush3.bf16.msra.mxu1 %v12164_v60  ;;  %12197 = vmatpush3.bf16.msra.mxu0 %v12196_v61  ;;  %v12210_v60 = vpack.c.bf16 %v9729_v8, %v9728_v36  ;;  %v9760_v61 = vld [vmem:[%s17041_s3 + $0x15a0] sm:$0xff]  ;;  %v9769_v36 = vld [vmem:[%s17041_s3 + $0x15e8] sm:$0xff] }
0x1bbd   :  { %12167 = vmatprep.subr.bf16.mxu1 %v12166_v24  ;;  %12199 = vmatprep.subr.bf16.mxu0 %v12198_v15  ;;  %v12242_v24 = vpack.c.bf16 %v9761_v63, %v9760_v61  ;;  %v9713_v15 = vld [vmem:[%s17041_s3 + $0x1428] sm:$0xff]  ;;  %v9720_v8 = vld [vmem:[%s17041_s3 + $0x1460] sm:$0xff] }
0x1bbe   :  { %v12212_v3 = vpack.c.bf16 %v9713_v15, %v9712_v14  ;;  %v9752_v63 = vld [vmem:[%s17041_s3 + $0x1560] sm:$0xff]  ;;  %v9753_v14 = vld [vmem:[%s17041_s3 + $0x1568] sm:$0xff]  ;;  %v9738_v15 = vld [vmem:[%s17041_s3 + $0x14f0] sm:$0xff] }
0x1bc0   :  { %12169 = vmatpush3.bf16.msra.mxu1 %v12168_v4  ;;  %12201 = vmatpush3.bf16.msra.mxu0 %v12200_v11  ;;  %v9730_v4 = vld [vmem:[%s17041_s3 + $0x14b0] sm:$0xff]  ;;  %v9731_v11 = vld [vmem:[%s17041_s3 + $0x14b8] sm:$0xff] }
0x1bc1   :  { %9700 = vmatprep.subr.msk.mxu1 %vm131_vm3, %v9696_v19  ;;  %9704 = vmatprep.subr.msk.mxu0 %vm131_vm3, %v9698_v49  ;;  %v12214_v20 = vpack.c.bf16 %v9731_v11, %v9730_v4  ;;  %v9714_v19 = vld [vmem:[%s17041_s3 + $0x1430] sm:$0xff]  ;;  %v9715_v49 = vld [vmem:[%s17041_s3 + $0x1438] sm:$0xff] }
0x1bc2   :  { %v9771_v4 = vld [vmem:[%s17041_s3 + $0x15f8] sm:$0xff]  ;;  %v9722_v11 = vld [vmem:[%s17041_s3 + $0x1470] sm:$0xff] }
0x1bc3   :  { %5511 = vmatmul.mubr.f32.vlgmr.msra.gmra.mrb[86].mxu1 %v4958_v50  ;;  %5586 = vmatmul.mubr.f32.vlgmr.msra.gmra.mrb[86].mxu0 %v4960_v12  ;;  %v12246_v50 = vpack.c.bf16 %v9763_v18, %v9762_v5  ;;  %v9746_v12 = vld [vmem:[%s17041_s3 + $0x1530] sm:$0xff]  ;;  %v9723_v5 = vld [vmem:[%s17041_s3 + $0x1478] sm:$0xff] }
0x1bc4   :  { %5515 = vmatprep.mubr.f32.mxu1 %v4963_v28  ;;  %5590 = vmatprep.mubr.f32.mxu0 %v4965_v30  ;;  %v9733_v28 = vld [vmem:[%s17041_s3 + $0x14c8] sm:$0xff]  ;;  %v9764_v30 = vld [vmem:[%s17041_s3 + $0x15c0] sm:$0xff]  ;;  %v9754_v18 = vld [vmem:[%s17041_s3 + $0x1570] sm:$0xff] }
0x1bc5   :  { %9701 = vmatpush1.msk.msra.mxu1 %vm131_vm3, %v9695_v55  ;;  %9705 = vmatpush1.msk.msra.mxu0 %vm131_vm3, %v9697_v58  ;;  %v9765_v55 = vld [vmem:[%s17041_s3 + $0x15c8] sm:$0xff]  ;;  %v12216_v58 = vpack.c.bf16 %v9715_v49, %v9714_v19  ;;  %v9755_v19 = vld [vmem:[%s17041_s3 + $0x1578] sm:$0xff] }
0x1bc6   :  { %12203 = vmatprep.subr.bf16.mxu1 %v12202_v34  ;;  %12235 = vmatprep.subr.bf16.mxu0 %v12234_v21  ;;  %v12250_v32 = vpack.c.bf16 %v9765_v55, %v9764_v30  ;;  %v9748_v34 = vld [vmem:[%s17041_s3 + $0x1540] sm:$0xff]  ;;  %v9734_v21 = vld [vmem:[%s17041_s3 + $0x14d0] sm:$0xff]  ;;  %v12264_v49 = vpack.c.bf16 %v9755_v19, %v9754_v18 }
0x1bc7   :  { %5516 = vmatmul.mubr.f32.gmra.mrb[88].mxu1 %v4962_v25  ;;  %5591 = vmatmul.mubr.f32.gmra.mrb[88].mxu0 %v4964_v26  ;;  %v12248_v25 = vpack.c.bf16 %v9747_v17, %v9746_v12  ;;  %v12218_v26 = vpack.c.bf16 %v9733_v28, %v9732_v31  ;;  %v12252_v23 = vpack.c.bf16 %v9749_v22, %v9748_v34  ;;  %v9775_v12 = vld [vmem:[%s17040_s2 + $0x278] sm:$0xf] }
0x1bc8   :  { %5699 = vmatprep.mubr.f32.mxu1 %v12755_v9  ;;  %5776 = vmatprep.mubr.f32.mxu0 %v12755_v9 }
0x1bcb   :  { %9702 = vmatmul.mubr.msk.f32.vlgmr.msra.gmra.mrb[90].mxu1 %vm124_vm4, %v14993_v52  ;;  %9706 = vmatmul.mubr.msk.f32.vlgmr.msra.gmra.mrb[90].mxu0 %vm124_vm4, %v14993_v52 }
0x1bcc   :  { %5705 = vmatprep.mubr.f32.mxu1 %v12755_v9  ;;  %5782 = vmatprep.mubr.f32.mxu0 %v12755_v9 }
0x1bcd   :  { %12205 = vmatpush3.bf16.msra.mxu1 %v12204_v37  ;;  %12237 = vmatpush3.bf16.msra.mxu0 %v12236_v51  ;;  %v9735_v37 = vld [vmem:[%s17041_s3 + $0x14d8] sm:$0xff]  ;;  %v9718_v51 = vld [vmem:[%s17041_s3 + $0x1450] sm:$0xff] }
0x1bce   :  { %12207 = vmatprep.subr.bf16.mxu1 %v12206_v47  ;;  %12239 = vmatprep.subr.bf16.mxu0 %v12238_v48  ;;  %v12222_v40 = vpack.c.bf16 %v9735_v37, %v9734_v21  ;;  %v12224_v27 = vpack.c.bf16 %v9719_v16, %v9718_v51  ;;  %v9750_v47 = vld [vmem:[%s17041_s3 + $0x1550] sm:$0xff]  ;;  %v9751_v48 = vld [vmem:[%s17041_s3 + $0x1558] sm:$0xff] }
0x1bcf   :  { %9703 = vmatmul.mubr.msk.f32.gmra.mrb[92].mxu1 %vm124_vm4, %v15007_v56  ;;  %9707 = vmatmul.mubr.msk.f32.gmra.mrb[92].mxu0 %vm124_vm4, %v15007_v56  ;;  %v12256_v53 = vpack.c.bf16 %v9751_v48, %v9750_v47  ;;  %v9699_v51 = vld [vmem:[%s17040_s2 + $0x2c0] ss:$8 sm:$0xf] }
0x1bd0   :  { %v5614_v54 = vrot.slane %v9699_v51, %v13134_v45  ;;  %v5610_v13 = vrot.slane %v9699_v51, %v13137_v46 }
0x1bd1   :  { %12209 = vmatpush3.bf16.msra.mxu1 %v12208_v59  ;;  %12241 = vmatpush3.bf16.msra.mxu0 %v12240_v42  ;;  %v9768_v59 = vld [vmem:[%s17041_s3 + $0x15e0] sm:$0xff]  ;;  %v9721_v42 = vld [vmem:[%s17041_s3 + $0x1468] sm:$0xff] }
0x1bd2   :  { %12211 = vmatprep.subr.bf16.mxu1 %v12210_v60  ;;  %12243 = vmatprep.subr.bf16.mxu0 %v12242_v24  ;;  %v12258_v60 = vpack.c.bf16 %v9769_v36, %v9768_v59  ;;  %v12228_v61 = vpack.c.bf16 %v9721_v42, %v9720_v8  ;;  %v12260_v24 = vpack.c.bf16 %v9753_v14, %v9752_v63  ;;  %v9801_v63 = vld [vmem:[%s17041_s3 + $0x1680] sm:$0xff] }
0x1bd3   :  { %v5618_v8 = vrot.slane %v9699_v51, %v13140_v6 }
0x1bd5   :  { %12213 = vmatpush3.bf16.msra.mxu1 %v12212_v3  ;;  %12245 = vmatpush3.bf16.msra.mxu0 %v12244_v57  ;;  %v12230_v3 = vpack.c.bf16 %v9739_v1, %v9738_v15  ;;  %v12262_v57 = vpack.c.bf16 %v9771_v4, %v9770_v2  ;;  %v9802_v2 = vld [vmem:[%s17041_s3 + $0x1688] sm:$0xff] }
0x1bd6   :  { %12215 = vmatprep.subr.bf16.mxu1 %v12214_v20  ;;  %12247 = vmatprep.subr.bf16.mxu0 %v12246_v50  ;;  %v12232_v20 = vpack.c.bf16 %v9723_v5, %v9722_v11  ;;  %v9773_v50 = vld [vmem:[%s17040_s2 + $0x268] sm:$0xf] }
0x1bd7   :  { %v9834_v4 = vld [vmem:[%s17041_s3 + $0x1788] sm:$0xff] }
0x1bd9   :  { %12217 = vmatpush3.bf16.msra.mxu1 %v12216_v58  ;;  %12249 = vmatpush3.bf16.msra.mxu0 %v12248_v25 }
0x1bda   :  { %12219 = vmatprep.subr.bf16.mxu1 %v12218_v26  ;;  %12251 = vmatprep.subr.bf16.mxu0 %v12250_v32 }
0x1bdd   :  { %12221 = vmatpush3.bf16.msra.mxu1 %v12220_v35  ;;  %12253 = vmatpush3.bf16.msra.mxu0 %v12252_v23 }
0x1bde   :  { %12223 = vmatprep.subr.bf16.mxu1 %v12222_v40  ;;  %12255 = vmatprep.subr.bf16.mxu0 %v12254_v29 }
0x1be1   :  { %12225 = vmatpush3.bf16.msra.mxu1 %v12224_v27  ;;  %12257 = vmatpush3.bf16.msra.mxu0 %v12256_v53  ;;  %v5606_v53 = vrot.slane %v9699_v51, %v13131_v44  ;;  %v9835_v51 = vld [vmem:[%s17041_s3 + $0x1790] sm:$0xff] }
0x1be2   :  { %12227 = vmatprep.subr.bf16.mxu1 %v12226_v41  ;;  %12259 = vmatprep.subr.bf16.mxu0 %v12258_v60 }
0x1be5   :  { %12229 = vmatpush3.bf16.msra.mxu1 %v12228_v61  ;;  %12261 = vmatpush3.bf16.msra.mxu0 %v12260_v24 }
0x1be6   :  { %12231 = vmatprep.subr.bf16.mxu1 %v12230_v3  ;;  %12263 = vmatprep.subr.bf16.mxu0 %v12262_v57  ;;  %v9833_v3 = vld [vmem:[%s17041_s3 + $0x1780] sm:$0xff] }
0x1be9   :  { %12233 = vmatpush3.bf16.msra.mxu1 %v12232_v20  ;;  %12265 = vmatpush3.bf16.msra.mxu0 %v12264_v49 }
0x1bea   :  { %9777 = vmatprep.subr.msk.mxu1 %vm131_vm3, %v9773_v50  ;;  %9781 = vmatprep.subr.msk.mxu0 %vm131_vm3, %v9775_v12  ;;  %v9772_v50 = vld [vmem:[%s17040_s2 + $0x260] sm:$0xf]  ;;  %v12266_v12 = vpack.c.bf16 %v9802_v2, %v9801_v63 }
0x1beb   :  { %v9821_v2 = vld [vmem:[%s17041_s3 + $0x1720] sm:$0xff] }
0x1c76   :  { %v10863_v17 = vpop.f32.mrb[82].mxu1  ;;  %v10901_v31 = vpop.f32.mrb[82].mxu0 }
0x1c77   :  { %v10864_v28 = vpop.f32.mrb[83].mxu1  ;;  %v10902_v30 = vpop.f32.mrb[83].mxu0 }
0x1c78   :  { %v10865_v55 = vadd.f32 %v10864_v28, %v10863_v17  ;;  %v10903_v58 = vadd.f32 %v10902_v30, %v10901_v31  ;;  %v12298_v17 = vpack.c.bf16 %v9834_v4, %v9833_v3  ;;  %v9822_v3 = vld [vmem:[%s17041_s3 + $0x1728] sm:$0xff]  ;;  %v9807_v4 = vld [vmem:[%s17041_s3 + $0x16b0] sm:$0xff] }
0x1c7a   :  { %v5438_v25 = vadd.f32 %v10903_v58, %v10865_v55  ;;  %v10866_v26 = vpop.f32.mrb[84].mxu1  ;;  %v10904_v32 = vpop.f32.mrb[84].mxu0 }
0x1c7b   :  { %v10867_v10 = vpop.f32.mrb[85].mxu1  ;;  %v10905_v33 = vpop.f32.mrb[85].mxu0 }
0x1c7c   :  { %v10868_v34 = vadd.f32 %v10867_v10, %v10866_v26  ;;  %v10906_v35 = vadd.f32 %v10905_v33, %v10904_v32  ;;  %v9774_v26 = vld [vmem:[%s17040_s2 + $0x270] sm:$0xf] }
0x1c7e   :  { %v5443_v22 = vadd.f32 %v10906_v35, %v10868_v34 }
0x1c96   :  { %v10939_v23 = vpop.f32.mrb[86].mxu1  ;;  %v10977_v21 = vpop.f32.mrb[86].mxu0 }
0x1c97   :  { %v10940_v37 = vpop.f32.mrb[87].mxu1  ;;  %v10978_v39 = vpop.f32.mrb[87].mxu0 }
0x1c98   :  { %v10941_v40 = vadd.f32 %v10940_v37, %v10939_v23  ;;  %v10979_v43 = vadd.f32 %v10978_v39, %v10977_v21  ;;  %v9785_v23 = vld [vmem:[%s17041_s3 + $0x1600] sm:$0xff]  ;;  %v9786_v21 = vld [vmem:[%s17041_s3 + $0x1608] sm:$0xff] }
0x1c99   :  { %v9817_v37 = vld [vmem:[%s17041_s3 + $0x1700] sm:$0xff]  ;;  %v9818_v39 = vld [vmem:[%s17041_s3 + $0x1708] sm:$0xff] }
0x1c9a   :  { %v5513_v16 = vadd.f32 %v10941_v40, %v5438_v25  ;;  %v10942_v29 = vpop.f32.mrb[88].mxu1  ;;  %v10980_v27 = vpop.f32.mrb[88].mxu0  ;;  %v9803_v40 = vld [vmem:[%s17041_s3 + $0x1690] sm:$0xff] }
0x1c9b   :  { %v10943_v47 = vpop.f32.mrb[89].mxu1  ;;  %v10981_v48 = vpop.f32.mrb[89].mxu0 }
0x1c9c   :  { %v15679_v59 = vadd.f32 %v10979_v43, %v5513_v16  ;;  %v10944_v41 = vadd.f32 %v10943_v47, %v10942_v29  ;;  %v10982_v36 = vadd.f32 %v10981_v48, %v10980_v27  ;;  %v9804_v43 = vld [vmem:[%s17041_s3 + $0x1698] sm:$0xff]  ;;  %v12268_v29 = vpack.c.bf16 %v9786_v21, %v9785_v23  ;;  %v9787_v47 = vld [vmem:[%s17041_s3 + $0x1610] sm:$0xff]  ;;  %v9826_v21 = vld [vmem:[%s17041_s3 + $0x1748] sm:$0xff] }
0x1c9d   :  { %v9836_v16 = vld [vmem:[%s17041_s3 + $0x1798] sm:$0xff]  ;;  %v12300_v27 = vpack.c.bf16 %v9818_v39, %v9817_v37  ;;  %v9811_v39 = vld [vmem:[%s17041_s3 + $0x16d0] sm:$0xff] }
0x1c9e   :  { %v5518_v42 = vadd.f32 %v10944_v41, %v5443_v22  ;;  %v5701_v60 = vpop.f32.mrb[90].mxu1  ;;  %v5778_v61 = vpop.f32.mrb[90].mxu0  ;;  %v9788_v48 = vld [vmem:[%s17041_s3 + $0x1618] sm:$0xff] }
0x1c9f   :  { %v5702_v14 = vadd.f32 %v5701_v60, %v5606_v53  ;;  %v5779_v24 = vadd.f32 %v5778_v61, %v5614_v54  ;;  %v5703_v15 = vpop.f32.mrb[91].mxu1  ;;  %v5780_v1 = vpop.f32.mrb[91].mxu0  ;;  %v9820_v41 = vld [vmem:[%s17041_s3 + $0x1718] sm:$0xff]  ;;  %v9838_v60 = vld [vmem:[%s17041_s3 + $0x17a8] sm:$0xff]  ;;  %v12272_v61 = vpack.c.bf16 %v9788_v48, %v9787_v47 }
0x1ca0   :  { %v15694_v11 = vadd.f32 %v10982_v36, %v5518_v42  ;;  %v5704_v5 = vadd.f32 %v5703_v15, %v5610_v13  ;;  %v5781_v57 = vadd.f32 %v5780_v1, %v5618_v8  ;;  %v9805_v36 = vld [vmem:[%s17041_s3 + $0x16a0] sm:$0xff] }
0x1ca1   :  { %v5789_v31 = vmax.f32 %v5702_v14, 0.0  ;;  %v5791_v28 = vmax.f32 %v5779_v24, 0.0  ;;  %v9837_v42 = vld [vmem:[%s17041_s3 + $0x17a0] sm:$0xff]  ;;  %v9790_v24 = vld [vmem:[%s17041_s3 + $0x1628] sm:$0xff] }
0x1ca2   :  { %v5790_v20 = vmax.f32 %v5704_v5, 0.0  ;;  %v5792_v18 = vmax.f32 %v5781_v57, 0.0  ;;  %v5707_v19 = vpop.f32.mrb[92].mxu1  ;;  %v5784_v49 = vpop.f32.mrb[92].mxu0  ;;  %v9789_v14 = vld [vmem:[%s17041_s3 + $0x1620] sm:$0xff]  ;;  %v12306_v1 = vpack.c.bf16 %v9838_v60, %v9837_v42  ;;  %v9808_v5 = vld [vmem:[%s17041_s3 + $0x16b8] sm:$0xff] }
0x1ca3   :  { %v5708_v30 = vadd.f32 %v5707_v19, %v5606_v53  ;;  %v5785_v55 = vadd.f32 %v5784_v49, %v5614_v54  ;;  %v5709_v58 = vpop.f32.mrb[93].mxu1  ;;  %v5786_v25 = vpop.f32.mrb[93].mxu0  ;;  %v12270_v53 = vpack.c.bf16 %v9804_v43, %v9803_v40  ;;  %v12302_v54 = vpack.c.bf16 %v9836_v16, %v9835_v51  ;;  %v9839_v57 = vld [vmem:[%s17041_s3 + $0x17b0] sm:$0xff]  ;;  %v9812_v40 = vld [vmem:[%s17041_s3 + $0x16d8] sm:$0xff]  ;;  %v9846_v60 = vld [vmem:[%s17041_s3 + $0x17e8] sm:$0xff] }
0x1ca4   :  { %v5710_v32 = vadd.f32 %v5709_v58, %v5610_v13  ;;  %v5787_v10 = vadd.f32 %v5786_v25, %v5618_v8  ;;  %5925 = vmatprep.mubr.f32.mxu1 %v5790_v20  ;;  %6000 = vmatprep.mubr.f32.mxu0 %v5792_v18  ;;  %v9819_v13 = vld [vmem:[%s17041_s3 + $0x1710] sm:$0xff]  ;;  %v9806_v8 = vld [vmem:[%s17041_s3 + $0x16a8] sm:$0xff]  ;;  %v9840_v20 = vld [vmem:[%s17041_s3 + $0x17b8] sm:$0xff]  ;;  %v12276_v18 = vpack.c.bf16 %v9790_v24, %v9789_v14 }
0x1ca5   :  { %5926 = vmatmul.mubr.f32.vlgmr.msra.gmra.mrb[94].mxu1 %v5789_v31  ;;  %6001 = vmatmul.mubr.f32.vlgmr.msra.gmra.mrb[94].mxu0 %v5791_v28  ;;  %v5793_v35 = vmax.f32 %v5708_v30, 0.0  ;;  %v5795_v22 = vmax.f32 %v5785_v55, 0.0  ;;  %v12304_v63 = vpack.c.bf16 %v9820_v41, %v9819_v13  ;;  %v12274_v15 = vpack.c.bf16 %v9806_v8, %v9805_v36  ;;  %v9791_v49 = vld [vmem:[%s17041_s3 + $0x1630] sm:$0xff]  ;;  %v9824_v28 = vld [vmem:[%s17041_s3 + $0x1738] sm:$0xff]  ;;  %v9809_v30 = vld [vmem:[%s17041_s3 + $0x16c0] sm:$0xff] }
0x1ca6   :  { %v5794_v33 = vmax.f32 %v5710_v32, 0.0  ;;  %v5796_v34 = vmax.f32 %v5787_v10, 0.0  ;;  %9778 = vmatpush1.msk.msra.mxu1 %vm131_vm3, %v9772_v50  ;;  %9782 = vmatpush1.msk.msra.mxu0 %vm131_vm3, %v9774_v26  ;;  %v12308_v19 = vpack.c.bf16 %v9822_v3, %v9821_v2  ;;  %v9792_v50 = vld [vmem:[%s17041_s3 + $0x1638] sm:$0xff]  ;;  %v9823_v31 = vld [vmem:[%s17041_s3 + $0x1730] sm:$0xff]  ;;  %v9810_v55 = vld [vmem:[%s17041_s3 + $0x16c8] sm:$0xff]  ;;  %v12286_v51 = vpack.c.bf16 %v9812_v40, %v9811_v39 }
0x1ca7   :  { %12267 = vmatprep.subr.bf16.mxu1 %v12266_v12  ;;  %12299 = vmatprep.subr.bf16.mxu0 %v12298_v17  ;;  %v12278_v12 = vpack.c.bf16 %v9808_v5, %v9807_v4  ;;  %v12310_v17 = vpack.c.bf16 %v9840_v20, %v9839_v57  ;;  %v9841_v58 = vld [vmem:[%s17041_s3 + $0x17c0] sm:$0xff]  ;;  %v9842_v25 = vld [vmem:[%s17041_s3 + $0x17c8] sm:$0xff]  ;;  %v12280_v26 = vpack.c.bf16 %v9792_v50, %v9791_v49  ;;  %v9843_v43 = vld [vmem:[%s17041_s3 + $0x17d0] sm:$0xff] }
0x1ca8   :  { %5930 = vmatprep.mubr.f32.mxu1 %v5794_v33  ;;  %6005 = vmatprep.mubr.f32.mxu0 %v5796_v34  ;;  %v12312_v32 = vpack.c.bf16 %v9824_v28, %v9823_v31  ;;  %v12282_v10 = vpack.c.bf16 %v9810_v55, %v9809_v30  ;;  %v12314_v33 = vpack.c.bf16 %v9842_v25, %v9841_v58  ;;  %v9793_v34 = vld [vmem:[%s17041_s3 + $0x1640] sm:$0xff]  ;;  %v9844_v16 = vld [vmem:[%s17041_s3 + $0x17d8] sm:$0xff]  ;;  %v9814_v36 = vld [vmem:[%s17041_s3 + $0x16e8] sm:$0xff] }
0x1ca9   :  { %5931 = vmatmul.mubr.f32.gmra.mrb[96].mxu1 %v5793_v35  ;;  %6006 = vmatmul.mubr.f32.gmra.mrb[96].mxu0 %v5795_v22  ;;  %v9794_v35 = vld [vmem:[%s17041_s3 + $0x1648] sm:$0xff]  ;;  %v9825_v22 = vld [vmem:[%s17041_s3 + $0x1740] sm:$0xff]  ;;  %v12318_v47 = vpack.c.bf16 %v9844_v16, %v9843_v43  ;;  %v9815_v3 = vld [vmem:[%s17041_s3 + $0x16f0] sm:$0xff] }
0x1caa   :  { %6116 = vmatprep.mubr.f32.mxu1 %v12755_v9  ;;  %6193 = vmatprep.mubr.f32.mxu0 %v12755_v9  ;;  %v12284_v23 = vpack.c.bf16 %v9794_v35, %v9793_v34  ;;  %v12316_v37 = vpack.c.bf16 %v9826_v21, %v9825_v22  ;;  %v9813_v41 = vld [vmem:[%s17041_s3 + $0x16e0] sm:$0xff]  ;;  %v9816_v4 = vld [vmem:[%s17041_s3 + $0x16f8] sm:$0xff]  ;;  %v9847_v5 = vld [vmem:[%s17041_s3 + $0x17f0] sm:$0xff] }
0x1cab   :  { %v9845_v8 = vld [vmem:[%s17041_s3 + $0x17e0] sm:$0xff]  ;;  %v12290_v42 = vpack.c.bf16 %v9814_v36, %v9813_v41  ;;  %v12294_v57 = vpack.c.bf16 %v9816_v4, %v9815_v3  ;;  %v9848_v20 = vld [vmem:[%s17041_s3 + $0x17f8] sm:$0xff] }
0x1cac   :  { %v12322_v14 = vpack.c.bf16 %v9846_v60, %v9845_v8  ;;  %v12326_v49 = vpack.c.bf16 %v9848_v20, %v9847_v5 }
0x1cad   :  { %9779 = vmatmul.mubr.msk.f32.vlgmr.msra.gmra.mrb[98].mxu1 %vm124_vm4, %v14993_v52  ;;  %9783 = vmatmul.mubr.msk.f32.vlgmr.msra.gmra.mrb[98].mxu0 %vm124_vm4, %v14993_v52 }
0x1cae   :  { %6122 = vmatprep.mubr.f32.mxu1 %v12755_v9  ;;  %6199 = vmatprep.mubr.f32.mxu0 %v12755_v9 }
0x1caf   :  { %12269 = vmatpush3.bf16.msra.mxu1 %v12268_v29  ;;  %12301 = vmatpush3.bf16.msra.mxu0 %v12300_v27  ;;  %v9795_v29 = vld [vmem:[%s17041_s3 + $0x1650] sm:$0xff]  ;;  %v9796_v27 = vld [vmem:[%s17041_s3 + $0x1658] sm:$0xff] }
0x1cb0   :  { %12271 = vmatprep.subr.bf16.mxu1 %v12270_v53  ;;  %12303 = vmatprep.subr.bf16.mxu0 %v12302_v54  ;;  %v12288_v48 = vpack.c.bf16 %v9796_v27, %v9795_v29  ;;  %v9827_v53 = vld [vmem:[%s17041_s3 + $0x1750] sm:$0xff]  ;;  %v9828_v54 = vld [vmem:[%s17041_s3 + $0x1758] sm:$0xff] }
0x1cb1   :  { %9780 = vmatmul.mubr.msk.f32.gmra.mrb[100].mxu1 %vm124_vm4, %v15007_v56  ;;  %9784 = vmatmul.mubr.msk.f32.gmra.mrb[100].mxu0 %vm124_vm4, %v15007_v56  ;;  %v12320_v13 = vpack.c.bf16 %v9828_v54, %v9827_v53 }
0x1cb3   :  { %12273 = vmatpush3.bf16.msra.mxu1 %v12272_v61  ;;  %12305 = vmatpush3.bf16.msra.mxu0 %v12304_v63  ;;  %v9797_v61 = vld [vmem:[%s17041_s3 + $0x1660] sm:$0xff]  ;;  %v9798_v63 = vld [vmem:[%s17041_s3 + $0x1668] sm:$0xff] }
0x1cb4   :  { %12275 = vmatprep.subr.bf16.mxu1 %v12274_v15  ;;  %12307 = vmatprep.subr.bf16.mxu0 %v12306_v1  ;;  %v12292_v24 = vpack.c.bf16 %v9798_v63, %v9797_v61  ;;  %v9829_v15 = vld [vmem:[%s17041_s3 + $0x1760] sm:$0xff]  ;;  %v9830_v1 = vld [vmem:[%s17041_s3 + $0x1768] sm:$0xff] }
0x1cb5   :  { %v12324_v2 = vpack.c.bf16 %v9830_v1, %v9829_v15 }
0x1cb7   :  { %12277 = vmatpush3.bf16.msra.mxu1 %v12276_v18  ;;  %12309 = vmatpush3.bf16.msra.mxu0 %v12308_v19  ;;  %v9799_v18 = vld [vmem:[%s17041_s3 + $0x1670] sm:$0xff]  ;;  %v9800_v19 = vld [vmem:[%s17041_s3 + $0x1678] sm:$0xff] }
0x1cb8   :  { %12279 = vmatprep.subr.bf16.mxu1 %v12278_v12  ;;  %12311 = vmatprep.subr.bf16.mxu0 %v12310_v17  ;;  %v12296_v50 = vpack.c.bf16 %v9800_v19, %v9799_v18  ;;  %v9831_v12 = vld [vmem:[%s17041_s3 + $0x1770] sm:$0xff]  ;;  %v9832_v17 = vld [vmem:[%s17041_s3 + $0x1778] sm:$0xff] }
0x1cb9   :  { %v12328_v31 = vpack.c.bf16 %v9832_v17, %v9831_v12 }
0x1cbb   :  { %12281 = vmatpush3.bf16.msra.mxu1 %v12280_v26  ;;  %12313 = vmatpush3.bf16.msra.mxu0 %v12312_v32  ;;  %v9776_v32 = vld [vmem:[%s17040_s2 + $0x2e0] ss:$8 sm:$0xf] }
0x1cbc   :  { %12283 = vmatprep.subr.bf16.mxu1 %v12282_v10  ;;  %12315 = vmatprep.subr.bf16.mxu0 %v12314_v33  ;;  %v6031_v21 = vrot.slane %v9776_v32, %v13134_v45 }
0x1cbf   :  { %12285 = vmatpush3.bf16.msra.mxu1 %v12284_v23  ;;  %12317 = vmatpush3.bf16.msra.mxu0 %v12316_v37  ;;  %v6023_v23 = vrot.slane %v9776_v32, %v13131_v44  ;;  %v6027_v37 = vrot.slane %v9776_v32, %v13137_v46 }
0x1cc0   :  { %12287 = vmatprep.subr.bf16.mxu1 %v12286_v51  ;;  %12319 = vmatprep.subr.bf16.mxu0 %v12318_v47  ;;  %v6035_v51 = vrot.slane %v9776_v32, %v13140_v6 }
0x1cc3   :  { %12289 = vmatpush3.bf16.msra.mxu1 %v12288_v48  ;;  %12321 = vmatpush3.bf16.msra.mxu0 %v12320_v13 }
0x1cc4   :  { %12291 = vmatprep.subr.bf16.mxu1 %v12290_v42  ;;  %12323 = vmatprep.subr.bf16.mxu0 %v12322_v14 }
0x1cc7   :  { %12293 = vmatpush3.bf16.msra.mxu1 %v12292_v24  ;;  %12325 = vmatpush3.bf16.msra.mxu0 %v12324_v2 }
0x1cc8   :  { %12295 = vmatprep.subr.bf16.mxu1 %v12294_v57  ;;  %12327 = vmatprep.subr.bf16.mxu0 %v12326_v49 }
0x1ccb   :  { %12297 = vmatpush3.bf16.msra.mxu1 %v12296_v50  ;;  %12329 = vmatpush3.bf16.msra.mxu0 %v12328_v31 }
0x1d78   :  { %v11015_v28 = vpop.f32.mrb[94].mxu1  ;;  %v11053_v30 = vpop.f32.mrb[94].mxu0 }
0x1d79   :  { %v11016_v55 = vpop.f32.mrb[95].mxu1  ;;  %v11054_v58 = vpop.f32.mrb[95].mxu0 }
0x1d7a   :  { %v11017_v25 = vadd.f32 %v11016_v55, %v11015_v28  ;;  %v11055_v26 = vadd.f32 %v11054_v58, %v11053_v30  ;;  %v9849_v58 = vld [vmem:[%s17039_s1 + $0x110] ss:$0 sm:$0xff] }
0x1d7c   :  { %v6003_v10 = vadd.f32 %v11055_v26, %v11017_v25  ;;  %v11018_v33 = vpop.f32.mrb[96].mxu1  ;;  %v11056_v34 = vpop.f32.mrb[96].mxu0 }
0x1d7d   :  { %v11019_v35 = vpop.f32.mrb[97].mxu1  ;;  %v11057_v22 = vpop.f32.mrb[97].mxu0 }
0x1d7e   :  { %v6011_v39 = vadd.f32 %v6003_v10, %v15679_v59  ;;  %v11020_v40 = vadd.f32 %v11019_v35, %v11018_v33  ;;  %v11058_v43 = vadd.f32 %v11057_v22, %v11056_v34 }
0x1d80   :  { %v6008_v16 = vadd.f32 %v11058_v43, %v11020_v40  ;;  %v6118_v29 = vpop.f32.mrb[98].mxu1  ;;  %v6195_v27 = vpop.f32.mrb[98].mxu0 }
0x1d81   :  { %v6119_v47 = vadd.f32 %v6118_v29, %v6023_v23  ;;  %v6196_v48 = vadd.f32 %v6195_v27, %v6031_v21  ;;  %v6120_v53 = vpop.f32.mrb[99].mxu1  ;;  %v6197_v54 = vpop.f32.mrb[99].mxu0 }
0x1d82   :  { %v6012_v13 = vadd.f32 %v6008_v16, %v15694_v11  ;;  %v6121_v41 = vadd.f32 %v6120_v53, %v6027_v37  ;;  %v6198_v36 = vadd.f32 %v6197_v54, %v6035_v51 }
0x1d83   :  { %v6206_v59 = vmax.f32 %v6119_v47, 0.0  ;;  %v6208_v63 = vmax.f32 %v6196_v48, 0.0 }
0x1d84   :  { %v6207_v8 = vmax.f32 %v6121_v41, 0.0  ;;  %v6209_v42 = vmax.f32 %v6198_v36, 0.0  ;;  %v6124_v60 = vpop.f32.mrb[100].mxu1  ;;  %v6201_v61 = vpop.f32.mrb[100].mxu0 }
0x1d85   :  { %v6125_v14 = vadd.f32 %v6124_v60, %v6023_v23  ;;  %v6202_v24 = vadd.f32 %v6201_v61, %v6031_v21  ;;  %v6126_v15 = vpop.f32.mrb[101].mxu1  ;;  %v6203_v1 = vpop.f32.mrb[101].mxu0  ;;  %v9850_v60 = vld [vmem:[%s17039_s1 + $0x118] ss:$0 sm:$0xff] }
0x1d86   :  { %v6127_v2 = vadd.f32 %v6126_v15, %v6027_v37  ;;  %v6204_v3 = vadd.f32 %v6203_v1, %v6035_v51  ;;  %6342 = vmatprep.mubr.f32.mxu1 %v6207_v8  ;;  %6417 = vmatprep.mubr.f32.mxu0 %v6209_v42 }
0x1d87   :  { %6343 = vmatmul.mubr.f32.vlgmr.msra.gmra.mrb[102].mxu1 %v6206_v59  ;;  %6418 = vmatmul.mubr.f32.vlgmr.msra.gmra.mrb[102].mxu0 %v6208_v63  ;;  %v6210_v5 = vmax.f32 %v6125_v14, 0.0  ;;  %v6212_v57 = vmax.f32 %v6202_v24, 0.0  ;;  %v9851_v59 = vld [vmem:[%s17039_s1 + $0x120] ss:$0 sm:$0xff] }
0x1d88   :  { %v6211_v4 = vmax.f32 %v6127_v2, 0.0  ;;  %v6213_v11 = vmax.f32 %v6204_v3, 0.0  ;;  %v9852_v3 = vld [vmem:[%s17039_s1 + $0x130] ss:$0 sm:$0xff] }
0x1d8a   :  { %6347 = vmatprep.mubr.f32.mxu1 %v6211_v4  ;;  %6422 = vmatprep.mubr.f32.mxu0 %v6213_v11 }
0x1d8b   :  { %6348 = vmatmul.mubr.f32.gmra.mrb[104].mxu1 %v6210_v5  ;;  %6423 = vmatmul.mubr.f32.gmra.mrb[104].mxu0 %v6212_v57 }
0x1e5a   :  { %v11091_v20 = vpop.f32.mrb[102].mxu1  ;;  %v11129_v18 = vpop.f32.mrb[102].mxu0 }
0x1e5b   :  { %v11092_v19 = vpop.f32.mrb[103].mxu1  ;;  %v11130_v49 = vpop.f32.mrb[103].mxu0 }
0x1e5c   :  { %v11093_v50 = vadd.f32 %v11092_v19, %v11091_v20  ;;  %v11131_v12 = vadd.f32 %v11130_v49, %v11129_v18 }
0x1e5e   :  { %v6420_v17 = vadd.f32 %v11131_v12, %v11093_v50  ;;  %v11094_v31 = vpop.f32.mrb[104].mxu1  ;;  %v11132_v28 = vpop.f32.mrb[104].mxu0 }
0x1e5f   :  { %v11095_v30 = vpop.f32.mrb[105].mxu1  ;;  %v11133_v55 = vpop.f32.mrb[105].mxu0 }
0x1e60   :  { %v6428_v25 = vadd.f32 %v6420_v17, %v6011_v39  ;;  %v11096_v26 = vadd.f32 %v11095_v30, %v11094_v31  ;;  %v11134_v32 = vadd.f32 %v11133_v55, %v11132_v28 }
0x1e62   :  { %v6425_v10 = vadd.f32 %v11134_v32, %v11096_v26  ;;  %v6434_v33 = vadd.f32 %v9849_v58, %v6428_v25 }
0x1e64   :  { %v6429_v34 = vadd.f32 %v6425_v10, %v6012_v13  ;;  %v6436_v35 = vadd.f32 %v6434_v33, %v14993_v52 }
0x1e66   :  { %v6440_v22 = vsel %vm124_vm4, %v6436_v35, 0.0  ;;  %v6435_v23 = vadd.f32 %v9849_v58, %v6429_v34 }
0x1e67   :  { %6441 = vadd.xlane.f32.xlu1 %v6440_v22 }
0x1e68   :  { %v6437_v21 = vadd.f32 %v6435_v23, %v15007_v56  ;;  %v6478_v56 = vld [vmem:[%s17039_s1 + $0x128] sm:$0xf] }
0x1e69   :  { %11514 = vmatprep.subr.msk.mxu1 %vm131_vm3, %v6478_v56 }
0x1e6a   :  { %v6443_v37 = vsel %vm124_vm4, %v6437_v21, 0.0  ;;  %11515 = vmatpush3.msk.msra.mxu1 %vm131_vm3, %v6478_v56 }
0x1e6b   :  { %6444 = vadd.xlane.f32.xlu0 %v6443_v37 }
0x1ef4   :  { %v6442_v40 = vpop.xlane.xlu1 %6441 }
0x1ef5   :  { %v6446_v43 = vmul.f32 0.25, %v6442_v40 }
0x1ef7   :  { %v6448_v51 = vsub.f32 %v6436_v35, %v6446_v43 }
0x1ef8   :  { %v6445_v39 = vpop.xlane.xlu0 %6444 }
0x1ef9   :  { %v6447_v16 = vmul.f32 0.25, %v6445_v39  ;;  %v6450_v29 = vmul.f32 %v6448_v51, %v6448_v51 }
0x1efb   :  { %v6449_v27 = vsub.f32 %v6437_v21, %v6447_v16  ;;  %v6452_v47 = vsel %vm124_vm4, %v6450_v29, 0.0 }
0x1efc   :  { %6453 = vadd.xlane.f32.xlu1 %v6452_v47 }
0x1efd   :  { %v6451_v52 = vmul.f32 %v6449_v27, %v6449_v27 }
0x1eff   :  { %v6455_v48 = vsel %vm124_vm4, %v6451_v52, 0.0  ;;  %v6622_v52 = vld [vmem:[%s17039_s1 + $0x138] sm:$0xf] }
0x1f00   :  { %6456 = vadd.xlane.f32.xlu0 %v6455_v48  ;;  %11519 = vmatprep.subr.msk.mxu0 %vm131_vm3, %v6622_v52 }
0x1f01   :  { %11520 = vmatpush3.msk.msra.mxu0 %vm131_vm3, %v6622_v52  ;;  %v9866_v52 = vld [vmem:[%s17039_s1 + $0x170] ss:$0 sm:$0xff] }
0x1f89   :  { %v6454_v53 = vpop.xlane.xlu1 %6453 }
0x1f8a   :  { %v6458_v54 = vmul.f32 0.25, %v6454_v53 }
0x1f8c   :  { %v6460_v13 = vadd.f32 1e-05, %v6458_v54 }
0x1f8d   :  { %v6457_v41 = vpop.xlane.xlu0 %6456 }
0x1f8e   :  { %12690 = vrsqrt.f32 %v6460_v13  ;;  %v6459_v36 = vmul.f32 0.25, %v6457_v41  ;;  %v6848_v41 = vld [vmem:[%s17039_s1 + $0x168] sm:$0xf] }
0x1f8f   :  { %11529 = vmatprep.subr.msk.mxu0 %vm131_vm3, %v6848_v41 }
0x1f90   :  { %v6461_v8 = vadd.f32 1e-05, %v6459_v36 }
0x1f92   :  { %12692 = vrsqrt.f32 %v6461_v8 }
0x1f98   :  { %v12691_v42 = vpop.eup %12690 }
0x1f99   :  { %v6464_v61 = vmul.f32 %v12691_v42, %v6448_v51 }
0x1f9b   :  { %v6470_v63 = vmul.f32 %v9850_v60, %v6464_v61 }
0x1f9c   :  { %v12693_v14 = vpop.eup %12692 }
0x1f9d   :  { %v6465_v24 = vmul.f32 %v12693_v14, %v6449_v27  ;;  %v15925_v15 = vadd.f32 %v9851_v59, %v6470_v63 }
0x1f9f   :  { %v6471_v1 = vmul.f32 %v9850_v60, %v6465_v24  ;;  %11516 = vmatprep.mubr.msk.f32.mxu1 %vm124_vm4, %v15925_v15 }
0x1fa1   :  { %v15929_v2 = vadd.f32 %v9851_v59, %v6471_v1 }
0x1fa3   :  { %11517 = vmatmul.mubr.msk.f32.vlgmr.msra.gmra.mrb[106].mxu1 %vm124_vm4, %v15929_v2 }
0x2076   :  { %v11518_v4 = vpop.f32.mrb[106].mxu1 }
0x2077   :  { %v6565_v11 = vadd.f32 %v11518_v4, %v9852_v3  ;;  %v6559_v5 = vpop.f32.mrb[107].mxu1 }
0x2078   :  { %v6560_v57 = vadd.f32 %v9852_v3, %v6559_v5  ;;  %v9856_v3 = vld [vmem:[%s17039_s1 + $0x140] ss:$0 sm:$0xff] }
0x2079   :  { %6578 = vrot.lane.b32.xlu0 %v6565_v11, %s12756_s26 }
0x207a   :  { %6569 = vrot.lane.b32.xlu1 %v6560_v57, %s12756_s26 }
0x20eb   :  { %v6579_v20 = vpop.permute.xlu0 %6578 }
0x20ec   :  { %v6581_v18 = vmul.f32 %v6579_v20, %v6560_v57  ;;  %v6570_v19 = vpop.permute.xlu1 %6569  ;;  %v6604_v50 = vmul.f32 %v6579_v20, %v6565_v11 }
0x20ed   :  { %v6572_v49 = vmul.f32 %v6570_v19, %v6560_v57  ;;  %v6599_v17 = vmul.f32 %v6570_v19, %v6565_v11 }
0x20ee   :  { %v6582_v12 = vsel %vm124_vm4, %v6581_v18, 0.0  ;;  %v6605_v28 = vsel %vm124_vm4, %v6604_v50, 0.0 }
0x20ef   :  { %6583 = vadd.xlane.f32.xlu0 %v6582_v12  ;;  %v6573_v31 = vsel %vm124_vm4, %v6572_v49, 0.0  ;;  %v6600_v30 = vsel %vm124_vm4, %v6599_v17, 0.0 }
0x20f0   :  { %6574 = vadd.xlane.f32.xlu1 %v6573_v31 }
0x20f3   :  { %6606 = vadd.xlane.f32.xlu0 %v6605_v28 }
0x20f4   :  { %6601 = vadd.xlane.f32.xlu1 %v6600_v30 }
0x217c   :  { %v6584_v55 = vpop.xlane.xlu0 %6583 }
0x217d   :  { %v6585_v58 = vmul.f32 0.5, %v6584_v55  ;;  %v6575_v25 = vpop.xlane.xlu1 %6574 }
0x217e   :  { %v6576_v26 = vmul.f32 0.5, %v6575_v25 }
0x2180   :  { %v6586_v32 = vmax.f32 %v6576_v26, %v6585_v58  ;;  %v6607_v10 = vpop.xlane.xlu0 %6606 }
0x2181   :  { %v6608_v33 = vmul.f32 0.5, %v6607_v10  ;;  %v6602_v34 = vpop.xlane.xlu1 %6601 }
0x2182   :  { %v6587_v35 = vsub.f32 %v6576_v26, %v6586_v32  ;;  %v6590_v22 = vsub.f32 %v6585_v58, %v6586_v32  ;;  %v6603_v23 = vmul.f32 0.5, %v6602_v34  ;;  %v6758_v32 = vld [vmem:[%s17039_s1 + $0x158] sm:$0xf] }
0x2183   :  { %11524 = vmatprep.subr.msk.mxu1 %vm131_vm3, %v6758_v32 }
0x2184   :  { %v6588_v21 = vmul.f32 1.442695, %v6587_v35  ;;  %v6591_v37 = vmul.f32 1.442695, %v6590_v22  ;;  %v6609_v40 = vmax.f32 %v6603_v23, %v6608_v33  ;;  %11525 = vmatpush3.msk.msra.mxu1 %vm131_vm3, %v6758_v32  ;;  %v6978_v32 = vld [vmem:[%s17039_s1 + $0x178] sm:$0xf] }
0x2185   :  { %11534 = vmatprep.subr.msk.mxu1 %vm131_vm3, %v6978_v32 }
0x2186   :  { %12694 = vpow2.f32 %v6588_v21  ;;  %v6610_v43 = vsub.f32 %v6603_v23, %v6609_v40  ;;  %v6613_v51 = vsub.f32 %v6608_v33, %v6609_v40 }
0x2187   :  { %12696 = vpow2.f32 %v6591_v37  ;;  %v9860_v37 = vld [vmem:[%s17039_s1 + $0x148] ss:$0 sm:$0xff] }
0x2188   :  { %v6611_v39 = vmul.f32 1.442695, %v6610_v43  ;;  %v6614_v16 = vmul.f32 1.442695, %v6613_v51 }
0x218a   :  { %12698 = vpow2.f32 %v6611_v39  ;;  %v9861_v39 = vld [vmem:[%s17039_s1 + $0x150] ss:$0 sm:$0xff] }
0x218b   :  { %12700 = vpow2.f32 %v6614_v16 }
0x2190   :  { %v12695_v29 = vpop.eup %12694 }
0x2191   :  { %v12697_v27 = vpop.eup %12696  ;;  %v6594_v54 = vmul.f32 %v12695_v29, %v6560_v57 }
0x2192   :  { %v6593_v47 = vadd.f32 %v12697_v27, %v12695_v29  ;;  %v6595_v13 = vmul.f32 %v12697_v27, %v6565_v11 }
0x2194   :  { %v12699_v48 = vpop.eup %12698  ;;  %12702 = vrcp.f32 %v6593_v47  ;;  %v6596_v36 = vadd.f32 %v6595_v13, %v6594_v54 }
0x2195   :  { %v12701_v56 = vpop.eup %12700  ;;  %v6617_v8 = vmul.f32 %v12699_v48, %v6560_v57 }
0x2196   :  { %v6616_v53 = vadd.f32 %v12701_v56, %v12699_v48  ;;  %v6618_v42 = vmul.f32 %v12701_v56, %v6565_v11  ;;  %v9862_v48 = vld [vmem:[%s17039_s1 + $0x160] ss:$0 sm:$0xff] }
0x2198   :  { %12704 = vrcp.f32 %v6616_v53  ;;  %v6619_v59 = vadd.f32 %v6618_v42, %v6617_v8 }
0x219e   :  { %v12703_v60 = vpop.eup %12702 }
0x219f   :  { %v6598_v61 = vmul.f32 %v12703_v60, %v6596_v36 }
0x21a1   :  { %6630 = vrot.lane.b32.xlu1 %v6598_v61, %s12757_s29 }
0x21a2   :  { %v12705_v63 = vpop.eup %12704 }
0x21a3   :  { %v6621_v14 = vmul.f32 %v12705_v63, %v6619_v59 }
0x21a5   :  { %6632 = vrot.lane.b32.xlu0 %v6621_v14, %s12757_s29 }
0x2213   :  { %v6631_v24 = vpop.permute.xlu1 %6630 }
0x2214   :  { %11521 = vmatprep.mubr.msk.f32.mxu0 %vm124_vm4, %v6631_v24 }
0x2217   :  { %v6633_v1 = vpop.permute.xlu0 %6632 }
0x2218   :  { %11522 = vmatmul.mubr.msk.f32.vlgmr.msra.gmra.mrb[106].mxu0 %vm124_vm4, %v6633_v1 }
0x2219   :  { %11531 = vmatprep.mubr.msk.f32.mxu0 %vm124_vm4, %v14892_v0  ;;  %11530 = vmatpush3.msk.msra.mxu0 %vm131_vm3, %v6848_v41 }
0x221c   :  { %11532 = vmatmul.mubr.msk.f32.vlgmr.msra.gmra.mrb[108].mxu0 %vm124_vm4, %v14896_v62 }
0x221d   :  { %7225 = vmatprep.mubr.f32.mxu0 %v12755_v9 }
0x22eb   :  { %v11523_v4 = vpop.f32.mrb[106].mxu0 }
0x22ec   :  { %v6713_v11 = vadd.f32 %v11523_v4, %v9856_v3  ;;  %v6707_v5 = vpop.f32.mrb[107].mxu0 }
0x22ed   :  { %v6708_v57 = vadd.f32 %v9856_v3, %v6707_v5 }
0x22ee   :  { %v6717_v20 = vadd.f32 %v6713_v11, %v15929_v2 }
0x22ef   :  { %v11533_v18 = vpop.f32.mrb[108].mxu0  ;;  %v6716_v19 = vadd.f32 %v6708_v57, %v15925_v15 }
0x22f0   :  { %v6923_v49 = vpop.f32.mrb[109].mxu0  ;;  %v6723_v50 = vsel %vm124_vm4, %v6717_v20, 0.0  ;;  %v6929_v54 = vadd.f32 %v11533_v18, %v9866_v52 }
0x22f1   :  { %6724 = vadd.xlane.f32.xlu0 %v6723_v50  ;;  %v6720_v12 = vsel %vm124_vm4, %v6716_v19, 0.0  ;;  %v6924_v13 = vadd.f32 %v9866_v52, %v6923_v49  ;;  %v9870_v52 = vld [vmem:[%s17039_s1 + $0x180] ss:$0 sm:$0xff] }
0x22f2   :  { %6721 = vadd.xlane.f32.xlu1 %v6720_v12 }
0x237e   :  { %v6725_v17 = vpop.xlane.xlu0 %6724 }
0x237f   :  { %v6727_v31 = vmul.f32 0.25, %v6725_v17  ;;  %v6722_v28 = vpop.xlane.xlu1 %6721 }
0x2380   :  { %v6726_v30 = vmul.f32 0.25, %v6722_v28 }
0x2381   :  { %v6729_v55 = vsub.f32 %v6717_v20, %v6727_v31 }
0x2382   :  { %v6728_v58 = vsub.f32 %v6716_v19, %v6726_v30 }
0x2383   :  { %v6731_v25 = vmul.f32 %v6729_v55, %v6729_v55 }
0x2384   :  { %v6730_v26 = vmul.f32 %v6728_v58, %v6728_v58 }
0x2385   :  { %v6735_v2 = vsel %vm124_vm4, %v6731_v25, 0.0 }
0x2386   :  { %6736 = vadd.xlane.f32.xlu0 %v6735_v2  ;;  %v6732_v15 = vsel %vm124_vm4, %v6730_v26, 0.0 }
0x2387   :  { %6733 = vadd.xlane.f32.xlu1 %v6732_v15 }
0x2413   :  { %v6737_v10 = vpop.xlane.xlu0 %6736 }
0x2414   :  { %v6739_v33 = vmul.f32 0.25, %v6737_v10  ;;  %v6734_v34 = vpop.xlane.xlu1 %6733 }
0x2415   :  { %v6738_v35 = vmul.f32 0.25, %v6734_v34 }
0x2416   :  { %v6741_v22 = vadd.f32 1e-05, %v6739_v33 }
0x2417   :  { %v6740_v23 = vadd.f32 1e-05, %v6738_v35 }
0x2418   :  { %12706 = vrsqrt.f32 %v6741_v22 }
0x2419   :  { %12708 = vrsqrt.f32 %v6740_v23 }
0x2422   :  { %v12707_v21 = vpop.eup %12706 }
0x2423   :  { %v12709_v40 = vpop.eup %12708  ;;  %v6745_v43 = vmul.f32 %v12707_v21, %v6729_v55 }
0x2424   :  { %v6744_v51 = vmul.f32 %v12709_v40, %v6728_v58 }
0x2425   :  { %v6751_v16 = vmul.f32 %v9860_v37, %v6745_v43 }
0x2426   :  { %v6750_v29 = vmul.f32 %v9860_v37, %v6744_v51 }
0x2427   :  { %v15983_v47 = vadd.f32 %v9861_v39, %v6751_v16 }
0x2428   :  { %v15981_v27 = vadd.f32 %v9861_v39, %v6750_v29 }
0x242a   :  { %11526 = vmatprep.mubr.msk.f32.mxu1 %vm124_vm4, %v15981_v27 }
0x242b   :  { %11527 = vmatmul.mubr.msk.f32.vlgmr.msra.gmra.mrb[108].mxu1 %vm124_vm4, %v15983_v47 }
0x242c   :  { %11535 = vmatpush3.msk.msra.mxu1 %vm131_vm3, %v6978_v32  ;;  %v10014_v32 = vld [vmem:[%s17041_s3 + $0x1b80] sm:$0xff] }
0x24fe   :  { %v11528_v56 = vpop.f32.mrb[108].mxu1 }
0x24ff   :  { %v6839_v53 = vpop.f32.mrb[109].mxu1  ;;  %v6845_v41 = vadd.f32 %v11528_v56, %v9862_v48 }
0x2500   :  { %v6840_v36 = vadd.f32 %v9862_v48, %v6839_v53 }
0x2501   :  { %v6960_v59 = vmul.f32 %v6929_v54, %v6845_v41  ;;  %v6955_v63 = vmul.f32 %v6924_v13, %v6845_v41 }
0x2502   :  { %v6937_v8 = vmul.f32 %v6929_v54, %v6840_v36  ;;  %v6932_v42 = vmul.f32 %v6924_v13, %v6840_v36 }
0x2503   :  { %v6961_v14 = vsel %vm124_vm4, %v6960_v59, 0.0  ;;  %v6956_v24 = vsel %vm124_vm4, %v6955_v63, 0.0 }
0x2504   :  { %v6938_v60 = vsel %vm124_vm4, %v6937_v8, 0.0  ;;  %v6933_v61 = vsel %vm124_vm4, %v6932_v42, 0.0 }
0x2505   :  { %6939 = vadd.xlane.f32.xlu0 %v6938_v60  ;;  %6934 = vadd.xlane.f32.xlu1 %v6933_v61 }
0x2509   :  { %6962 = vadd.xlane.f32.xlu0 %v6961_v14  ;;  %6957 = vadd.xlane.f32.xlu1 %v6956_v24 }
0x2592   :  { %v6940_v1 = vpop.xlane.xlu0 %6939  ;;  %v6935_v3 = vpop.xlane.xlu1 %6934 }
0x2593   :  { %v6941_v4 = vmul.f32 0.5, %v6940_v1  ;;  %v6936_v11 = vmul.f32 0.5, %v6935_v3 }
0x2595   :  { %v6942_v5 = vmax.f32 %v6936_v11, %v6941_v4 }
0x2596   :  { %v6963_v57 = vpop.xlane.xlu0 %6962  ;;  %v6958_v20 = vpop.xlane.xlu1 %6957 }
0x2597   :  { %v6943_v18 = vsub.f32 %v6936_v11, %v6942_v5  ;;  %v6946_v19 = vsub.f32 %v6941_v4, %v6942_v5  ;;  %v6964_v49 = vmul.f32 0.5, %v6963_v57  ;;  %v6959_v50 = vmul.f32 0.5, %v6958_v20  ;;  %v9879_v4 = vld [vmem:[%s17040_s2 + $0x318] sm:$0xf]  ;;  %v9876_v11 = vld [vmem:[%s17040_s2 + $0x300] sm:$0xf] }
0x2598   :  { %9885 = vmatprep.subr.msk.mxu1 %vm131_vm3, %v9879_v4  ;;  %v9878_v5 = vld [vmem:[%s17040_s2 + $0x310] sm:$0xf]  ;;  %v9954_v57 = vld [vmem:[%s17040_s2 + $0x328] sm:$0xf]  ;;  %v9956_v20 = vld [vmem:[%s17040_s2 + $0x338] sm:$0xf] }
0x2599   :  { %v6944_v12 = vmul.f32 1.442695, %v6943_v18  ;;  %v6947_v17 = vmul.f32 1.442695, %v6946_v19  ;;  %v6965_v31 = vmax.f32 %v6959_v50, %v6964_v49  ;;  %v10002_v4 = vld [vmem:[%s17041_s3 + $0x1b20] sm:$0xff] }
0x259b   :  { %12710 = vpow2.f32 %v6944_v12  ;;  %v6966_v28 = vsub.f32 %v6959_v50, %v6965_v31  ;;  %v6969_v30 = vsub.f32 %v6964_v49, %v6965_v31 }
0x259c   :  { %12712 = vpow2.f32 %v6947_v17 }
0x259d   :  { %v6967_v55 = vmul.f32 1.442695, %v6966_v28  ;;  %v6970_v58 = vmul.f32 1.442695, %v6969_v30  ;;  %v9874_v30 = vld [vmem:[%s17039_s1 + $0x188] ss:$0 sm:$0xff] }
0x259f   :  { %12714 = vpow2.f32 %v6967_v55 }
0x25a0   :  { %12716 = vpow2.f32 %v6970_v58 }
0x25a5   :  { %v12711_v25 = vpop.eup %12710 }
0x25a6   :  { %v12713_v26 = vpop.eup %12712  ;;  %v6950_v34 = vmul.f32 %v12711_v25, %v6924_v13 }
0x25a7   :  { %v6949_v2 = vadd.f32 %v12713_v26, %v12711_v25  ;;  %v6951_v35 = vmul.f32 %v12713_v26, %v6929_v54  ;;  %v9875_v25 = vld [vmem:[%s17039_s1 + $0x190] ss:$0 sm:$0xff]  ;;  %v9982_v26 = vld [vmem:[%s17041_s3 + $0x1a80] sm:$0xff] }
0x25a9   :  { %v12715_v15 = vpop.eup %12714  ;;  %12718 = vrcp.f32 %v6949_v2  ;;  %v6952_v22 = vadd.f32 %v6951_v35, %v6950_v34  ;;  %v9953_v35 = vld [vmem:[%s17040_s2 + $0x320] sm:$0xf] }
0x25aa   :  { %v12717_v10 = vpop.eup %12716  ;;  %v6973_v23 = vmul.f32 %v12715_v15, %v6924_v13 }
0x25ab   :  { %v6972_v33 = vadd.f32 %v12717_v10, %v12715_v15  ;;  %v6974_v21 = vmul.f32 %v12717_v10, %v6929_v54  ;;  %v9983_v15 = vld [vmem:[%s17041_s3 + $0x1a88] sm:$0xff] }
0x25ac   :  { %v10015_v10 = vld [vmem:[%s17041_s3 + $0x1b88] sm:$0xff] }
0x25ad   :  { %12720 = vrcp.f32 %v6972_v33  ;;  %v6975_v43 = vadd.f32 %v6974_v21, %v6973_v23  ;;  %v12330_v23 = vpack.c.bf16 %v9983_v15, %v9982_v26  ;;  %v12362_v21 = vpack.c.bf16 %v10015_v10, %v10014_v32  ;;  %v10023_v26 = vld [vmem:[%s17041_s3 + $0x1bc8] sm:$0xff]  ;;  %v9974_v32 = vld [vmem:[%s17041_s3 + $0x1a40] sm:$0xff] }
0x25b3   :  { %v12719_v37 = vpop.eup %12718 }
0x25b4   :  { %v6954_v40 = vmul.f32 %v12719_v37, %v6952_v22  ;;  %v9955_v22 = vld [vmem:[%s17040_s2 + $0x330] sm:$0xf] }
0x25b6   :  { %6986 = vrot.lane.b32.xlu1 %v6954_v40, %s12756_s26  ;;  %v9966_v40 = vld [vmem:[%s17041_s3 + $0x1a00] sm:$0xff] }
0x25b7   :  { %v12721_v51 = vpop.eup %12720 }
0x25b8   :  { %v6977_v39 = vmul.f32 %v12721_v51, %v6975_v43  ;;  %v9967_v43 = vld [vmem:[%s17041_s3 + $0x1a08] sm:$0xff]  ;;  %v9998_v51 = vld [vmem:[%s17041_s3 + $0x1b00] sm:$0xff] }
0x25ba   :  { %6988 = vrot.lane.b32.xlu0 %v6977_v39, %s12756_s26  ;;  %v9999_v39 = vld [vmem:[%s17041_s3 + $0x1b08] sm:$0xff] }
0x2628   :  { %v6987_v16 = vpop.permute.xlu1 %6986 }
0x2629   :  { %11536 = vmatprep.mubr.msk.f32.mxu1 %vm124_vm4, %v6987_v16  ;;  %v9984_v16 = vld [vmem:[%s17041_s3 + $0x1a90] sm:$0xff] }
0x262c   :  { %v6989_v29 = vpop.permute.xlu0 %6988 }
0x262d   :  { %11537 = vmatmul.mubr.msk.f32.vlgmr.msra.gmra.mrb[110].mxu1 %vm124_vm4, %v6989_v29  ;;  %v9985_v29 = vld [vmem:[%s17041_s3 + $0x1a98] sm:$0xff] }
0x262e   :  { %7302 = vmatprep.mubr.f32.mxu1 %v12755_v9  ;;  %9886 = vmatpush1.msk.msra.mxu1 %vm131_vm3, %v9878_v5  ;;  %v9988_v5 = vld [vmem:[%s17041_s3 + $0x1ab0] sm:$0xff] }
0x262f   :  { %9962 = vmatprep.subr.msk.mxu1 %vm131_vm3, %v9956_v20  ;;  %v10020_v20 = vld [vmem:[%s17041_s3 + $0x1bb0] sm:$0xff] }
0x2700   :  { %v11538_v48 = vpop.f32.mrb[110].mxu1 }
0x2701   :  { %v7069_v56 = vadd.f32 %v11538_v48, %v9870_v52  ;;  %v7063_v53 = vpop.f32.mrb[111].mxu1  ;;  %v10017_v48 = vld [vmem:[%s17041_s3 + $0x1b98] sm:$0xff] }
0x2702   :  { %v7064_v54 = vadd.f32 %v9870_v52, %v7063_v53  ;;  %v10016_v52 = vld [vmem:[%s17041_s3 + $0x1b90] sm:$0xff]  ;;  %v12364_v53 = vpack.c.bf16 %v9999_v39, %v9998_v51  ;;  %v9993_v51 = vld [vmem:[%s17041_s3 + $0x1ad8] sm:$0xff] }
0x2703   :  { %v7073_v13 = vadd.f32 %v7069_v56, %v15983_v47  ;;  %v12332_v56 = vpack.c.bf16 %v9967_v43, %v9966_v40  ;;  %v9992_v43 = vld [vmem:[%s17041_s3 + $0x1ad0] sm:$0xff] }
0x2704   :  { %v7072_v41 = vadd.f32 %v7064_v54, %v15981_v27  ;;  %v9877_v27 = vld [vmem:[%s17040_s2 + $0x308] sm:$0xf]  ;;  %v9968_v54 = vld [vmem:[%s17041_s3 + $0x1a10] sm:$0xff] }
0x2705   :  { %v7079_v36 = vsel %vm124_vm4, %v7073_v13, 0.0  ;;  %9881 = vmatprep.subr.msk.mxu0 %vm131_vm3, %v9877_v27  ;;  %v10024_v39 = vld [vmem:[%s17041_s3 + $0x1bd0] sm:$0xff] }
0x2706   :  { %7080 = vadd.xlane.f32.xlu0 %v7079_v36  ;;  %v7076_v8 = vsel %vm124_vm4, %v7072_v41, 0.0  ;;  %9882 = vmatpush1.msk.msra.mxu0 %vm131_vm3, %v9876_v11  ;;  %v12366_v36 = vpack.c.bf16 %v10017_v48, %v10016_v52  ;;  %v10003_v11 = vld [vmem:[%s17041_s3 + $0x1b28] sm:$0xff]  ;;  %v9976_v52 = vld [vmem:[%s17041_s3 + $0x1a50] sm:$0xff]  ;;  %v9977_v48 = vld [vmem:[%s17041_s3 + $0x1a58] sm:$0xff] }
0x2707   :  { %7077 = vadd.xlane.f32.xlu1 %v7076_v8  ;;  %9958 = vmatprep.subr.msk.mxu0 %vm131_vm3, %v9954_v57  ;;  %v10000_v8 = vld [vmem:[%s17041_s3 + $0x1b10] sm:$0xff]  ;;  %v9989_v57 = vld [vmem:[%s17041_s3 + $0x1ab8] sm:$0xff] }
0x2793   :  { %v7081_v42 = vpop.xlane.xlu0 %7080 }
0x2794   :  { %v7083_v60 = vmul.f32 0.25, %v7081_v42  ;;  %v7078_v61 = vpop.xlane.xlu1 %7077  ;;  %v10001_v42 = vld [vmem:[%s17041_s3 + $0x1b18] sm:$0xff] }
0x2795   :  { %v7082_v59 = vmul.f32 0.25, %v7078_v61  ;;  %v9987_v61 = vld [vmem:[%s17041_s3 + $0x1aa8] sm:$0xff] }
0x2796   :  { %v7085_v63 = vsub.f32 %v7073_v13, %v7083_v60  ;;  %v9969_v13 = vld [vmem:[%s17041_s3 + $0x1a18] sm:$0xff]  ;;  %v9986_v60 = vld [vmem:[%s17041_s3 + $0x1aa0] sm:$0xff] }
0x2797   :  { %v7084_v14 = vsub.f32 %v7072_v41, %v7082_v59  ;;  %v12334_v41 = vpack.c.bf16 %v9985_v29, %v9984_v16  ;;  %v10018_v59 = vld [vmem:[%s17041_s3 + $0x1ba0] sm:$0xff]  ;;  %v12350_v16 = vpack.c.bf16 %v9993_v51, %v9992_v43  ;;  %v10025_v29 = vld [vmem:[%s17041_s3 + $0x1bd8] sm:$0xff] }
0x2798   :  { %v7087_v24 = vmul.f32 %v7085_v63, %v7085_v63 }
0x2799   :  { %v7086_v1 = vmul.f32 %v7084_v14, %v7084_v14 }
0x279a   :  { %v7091_v3 = vsel %vm124_vm4, %v7087_v24, 0.0  ;;  %v12368_v24 = vpack.c.bf16 %v10001_v42, %v10000_v8  ;;  %v9995_v8 = vld [vmem:[%s17041_s3 + $0x1ae8] sm:$0xff]  ;;  %v10026_v42 = vld [vmem:[%s17041_s3 + $0x1be0] sm:$0xff] }
0x279b   :  { %7092 = vadd.xlane.f32.xlu0 %v7091_v3  ;;  %v7088_v47 = vsel %vm124_vm4, %v7086_v1, 0.0  ;;  %v9970_v1 = vld [vmem:[%s17041_s3 + $0x1a20] sm:$0xff]  ;;  %v9971_v3 = vld [vmem:[%s17041_s3 + $0x1a28] sm:$0xff] }
0x279c   :  { %7089 = vadd.xlane.f32.xlu1 %v7088_v47  ;;  %v12338_v47 = vpack.c.bf16 %v9987_v61, %v9986_v60  ;;  %v10027_v61 = vld [vmem:[%s17041_s3 + $0x1be8] sm:$0xff] }
0x2828   :  { %v7093_v18 = vpop.xlane.xlu0 %7092 }
0x2829   :  { %v7095_v19 = vmul.f32 0.25, %v7093_v18  ;;  %v7090_v49 = vpop.xlane.xlu1 %7089  ;;  %v10021_v18 = vld [vmem:[%s17041_s3 + $0x1bb8] sm:$0xff] }
0x282a   :  { %v7094_v50 = vmul.f32 0.25, %v7090_v49  ;;  %v12372_v49 = vpack.c.bf16 %v10003_v11, %v10002_v4  ;;  %v9997_v4 = vld [vmem:[%s17041_s3 + $0x1af8] sm:$0xff]  ;;  %v10028_v11 = vld [vmem:[%s17041_s3 + $0x1bf0] sm:$0xff] }
0x282b   :  { %v7097_v12 = vadd.f32 1e-05, %v7095_v19  ;;  %v12340_v19 = vpack.c.bf16 %v9971_v3, %v9970_v1  ;;  %v10010_v1 = vld [vmem:[%s17041_s3 + $0x1b60] sm:$0xff]  ;;  %v10011_v3 = vld [vmem:[%s17041_s3 + $0x1b68] sm:$0xff] }
0x282c   :  { %v7096_v17 = vadd.f32 1e-05, %v7094_v50  ;;  %v9972_v50 = vld [vmem:[%s17041_s3 + $0x1a30] sm:$0xff] }
0x282d   :  { %12722 = vrsqrt.f32 %v7097_v12  ;;  %v9973_v12 = vld [vmem:[%s17041_s3 + $0x1a38] sm:$0xff] }
0x282e   :  { %12724 = vrsqrt.f32 %v7096_v17  ;;  %v12342_v17 = vpack.c.bf16 %v9989_v57, %v9988_v5  ;;  %v10029_v57 = vld [vmem:[%s17041_s3 + $0x1bf8] sm:$0xff] }
0x2837   :  { %v12723_v31 = vpop.eup %12722 }
0x2838   :  { %v12725_v28 = vpop.eup %12724  ;;  %v7101_v55 = vmul.f32 %v12723_v31, %v7085_v63  ;;  %v10019_v63 = vld [vmem:[%s17041_s3 + $0x1ba8] sm:$0xff]  ;;  %v12374_v31 = vpack.c.bf16 %v10021_v18, %v10020_v20  ;;  %v9980_v20 = vld [vmem:[%s17041_s3 + $0x1a70] sm:$0xff]  ;;  %v9981_v18 = vld [vmem:[%s17041_s3 + $0x1a78] sm:$0xff] }
0x2839   :  { %v7100_v58 = vmul.f32 %v12725_v28, %v7084_v14  ;;  %v12336_v14 = vpack.c.bf16 %v9969_v13, %v9968_v54  ;;  %v12370_v27 = vpack.c.bf16 %v10019_v63, %v10018_v59  ;;  %v10004_v28 = vld [vmem:[%s17041_s3 + $0x1b30] sm:$0xff]  ;;  %v10009_v13 = vld [vmem:[%s17041_s3 + $0x1b58] sm:$0xff]  ;;  %v9978_v59 = vld [vmem:[%s17041_s3 + $0x1a60] sm:$0xff] }
0x283a   :  { %v7107_v33 = vmul.f32 %v9874_v30, %v7101_v55  ;;  %v9990_v55 = vld [vmem:[%s17041_s3 + $0x1ac0] sm:$0xff]  ;;  %v10008_v54 = vld [vmem:[%s17041_s3 + $0x1b50] sm:$0xff]  ;;  %v9979_v63 = vld [vmem:[%s17041_s3 + $0x1a68] sm:$0xff] }
0x283b   :  { %v7106_v2 = vmul.f32 %v9874_v30, %v7100_v58  ;;  %v10005_v30 = vld [vmem:[%s17041_s3 + $0x1b38] sm:$0xff]  ;;  %v9991_v58 = vld [vmem:[%s17041_s3 + $0x1ac8] sm:$0xff] }
0x283c   :  { %v16074_v37 = vadd.f32 %v9875_v25, %v7107_v33  ;;  %v12376_v15 = vpack.c.bf16 %v10005_v30, %v10004_v28  ;;  %v12346_v10 = vpack.c.bf16 %v9991_v58, %v9990_v55  ;;  %v9906_v28 = vld [vmem:[%s17041_s3 + $0x1888] sm:$0xff]  ;;  %v9937_v30 = vld [vmem:[%s17041_s3 + $0x1980] sm:$0xff] }
0x283d   :  { %v16060_v34 = vadd.f32 %v9875_v25, %v7106_v2  ;;  %v10022_v25 = vld [vmem:[%s17041_s3 + $0x1bc0] sm:$0xff]  ;;  %v12344_v2 = vpack.c.bf16 %v9973_v12, %v9972_v50  ;;  %v10012_v50 = vld [vmem:[%s17041_s3 + $0x1b70] sm:$0xff]  ;;  %v10013_v12 = vld [vmem:[%s17041_s3 + $0x1b78] sm:$0xff] }
0x283e   :  { %v12378_v33 = vpack.c.bf16 %v10023_v26, %v10022_v25  ;;  %v9938_v58 = vld [vmem:[%s17041_s3 + $0x1988] sm:$0xff] }
0x283f   :  { %9883 = vmatmul.mubr.msk.f32.vlgmr.msra.gmra.mrb[110].mxu0 %vm124_vm4, %v16060_v34  ;;  %9887 = vmatmul.mubr.msk.f32.vlgmr.msra.gmra.mrb[112].mxu1 %vm124_vm4, %v16060_v34  ;;  %v12426_v25 = vpack.c.bf16 %v9938_v58, %v9937_v30  ;;  %v9924_v30 = vld [vmem:[%s17041_s3 + $0x1918] sm:$0xff] }
0x2840   :  { %7231 = vmatprep.mubr.f32.mxu0 %v12755_v9  ;;  %7308 = vmatprep.mubr.f32.mxu1 %v12755_v9 }
0x2841   :  { %9959 = vmatpush1.msk.msra.mxu0 %vm131_vm3, %v9953_v35  ;;  %9963 = vmatpush1.msk.msra.mxu1 %vm131_vm3, %v9955_v22  ;;  %v9975_v35 = vld [vmem:[%s17041_s3 + $0x1a48] sm:$0xff]  ;;  %v10006_v22 = vld [vmem:[%s17041_s3 + $0x1b40] sm:$0xff] }
0x2842   :  { %12331 = vmatprep.subr.bf16.mxu0 %v12330_v23  ;;  %12363 = vmatprep.subr.bf16.mxu1 %v12362_v21  ;;  %v10007_v23 = vld [vmem:[%s17041_s3 + $0x1b48] sm:$0xff]  ;;  %v12348_v21 = vpack.c.bf16 %v9975_v35, %v9974_v32 }
0x2843   :  { %9884 = vmatmul.mubr.msk.f32.gmra.mrb[112].mxu0 %vm124_vm4, %v16074_v37  ;;  %9888 = vmatmul.mubr.msk.f32.gmra.mrb[114].mxu1 %vm124_vm4, %v16074_v37  ;;  %v12380_v40 = vpack.c.bf16 %v10007_v23, %v10006_v22 }
0x2844   :  { %7491 = vmatprep.mubr.f32.mxu0 %v12755_v9  ;;  %7568 = vmatprep.mubr.f32.mxu1 %v12755_v9 }
0x2847   :  { %9960 = vmatmul.mubr.msk.f32.vlgmr.msra.gmra.mrb[114].mxu0 %vm124_vm4, %v16060_v34  ;;  %9964 = vmatmul.mubr.msk.f32.vlgmr.msra.gmra.mrb[116].mxu1 %vm124_vm4, %v16060_v34 }
0x2848   :  { %7497 = vmatprep.mubr.f32.mxu0 %v12755_v9  ;;  %7574 = vmatprep.mubr.f32.mxu1 %v12755_v9 }
0x2849   :  { %12333 = vmatpush3.bf16.msra.mxu0 %v12332_v56  ;;  %12365 = vmatpush3.bf16.msra.mxu1 %v12364_v53  ;;  %v12382_v56 = vpack.c.bf16 %v10025_v29, %v10024_v39  ;;  %v12352_v53 = vpack.c.bf16 %v9977_v48, %v9976_v52  ;;  %v16308_v39 = vld [vmem:[%s17040_s2 + $0x380] ss:$8 sm:$0xf] }
0x284a   :  { %12335 = vmatprep.subr.bf16.mxu0 %v12334_v41  ;;  %12367 = vmatprep.subr.bf16.mxu1 %v12366_v36  ;;  %v12384_v41 = vpack.c.bf16 %v10009_v13, %v10008_v54  ;;  %v9994_v36 = vld [vmem:[%s17041_s3 + $0x1ae0] sm:$0xff]  ;;  %v9890_v29 = vld [vmem:[%s17041_s3 + $0x1808] sm:$0xff]  ;;  %v9907_v54 = vld [vmem:[%s17041_s3 + $0x1890] sm:$0xff] }
0x284b   :  { %9961 = vmatmul.mubr.msk.f32.gmra.mrb[116].mxu0 %vm124_vm4, %v16074_v37  ;;  %9965 = vmatmul.mubr.msk.f32.gmra.mrb[118].mxu1 %vm124_vm4, %v16074_v37  ;;  %v12354_v60 = vpack.c.bf16 %v9995_v8, %v9994_v36 }
0x284d   :  { %12337 = vmatpush3.bf16.msra.mxu0 %v12336_v14  ;;  %12369 = vmatpush3.bf16.msra.mxu1 %v12368_v24  ;;  %v12386_v14 = vpack.c.bf16 %v10027_v61, %v10026_v42  ;;  %v12356_v24 = vpack.c.bf16 %v9979_v63, %v9978_v59  ;;  %v9908_v42 = vld [vmem:[%s17041_s3 + $0x1898] sm:$0xff] }
0x284e   :  { %12339 = vmatprep.subr.bf16.mxu0 %v12338_v47  ;;  %12371 = vmatprep.subr.bf16.mxu1 %v12370_v27  ;;  %v12388_v47 = vpack.c.bf16 %v10011_v3, %v10010_v1  ;;  %v9996_v27 = vld [vmem:[%s17041_s3 + $0x1af0] sm:$0xff]  ;;  %v9940_v61 = vld [vmem:[%s17041_s3 + $0x1998] sm:$0xff] }
0x284f   :  { %v12358_v5 = vpack.c.bf16 %v9997_v4, %v9996_v27 }
0x2851   :  { %12341 = vmatpush3.bf16.msra.mxu0 %v12340_v19  ;;  %12373 = vmatpush3.bf16.msra.mxu1 %v12372_v49  ;;  %v12390_v19 = vpack.c.bf16 %v10029_v57, %v10028_v11  ;;  %v12360_v49 = vpack.c.bf16 %v9981_v18, %v9980_v20  ;;  %v9891_v20 = vld [vmem:[%s17041_s3 + $0x1810] sm:$0xff]  ;;  %v9892_v18 = vld [vmem:[%s17041_s3 + $0x1818] sm:$0xff] }
0x2852   :  { %12343 = vmatprep.subr.bf16.mxu0 %v12342_v17  ;;  %12375 = vmatprep.subr.bf16.mxu1 %v12374_v31  ;;  %v12392_v17 = vpack.c.bf16 %v10013_v12, %v10012_v50  ;;  %v9905_v31 = vld [vmem:[%s17041_s3 + $0x1880] sm:$0xff] }
0x2853   :  { %v12394_v55 = vpack.c.bf16 %v9906_v28, %v9905_v31  ;;  %v9923_v28 = vld [vmem:[%s17041_s3 + $0x1910] sm:$0xff] }
0x2855   :  { %12345 = vmatpush3.bf16.msra.mxu0 %v12344_v2  ;;  %12377 = vmatpush3.bf16.msra.mxu1 %v12376_v15 }
0x2856   :  { %12347 = vmatprep.subr.bf16.mxu0 %v12346_v10  ;;  %12379 = vmatprep.subr.bf16.mxu1 %v12378_v33  ;;  %v9957_v10 = vld [vmem:[%s17040_s2 + $0x3a0] ss:$8 sm:$0xf] }
0x2857   :  { %v7402_v43 = vrot.slane %v9957_v10, %v13137_v46  ;;  %v7410_v51 = vrot.slane %v9957_v10, %v13140_v6 }
0x2859   :  { %12349 = vmatpush3.bf16.msra.mxu0 %v12348_v21  ;;  %12381 = vmatpush3.bf16.msra.mxu1 %v12380_v40  ;;  %v7398_v21 = vrot.slane %v9957_v10, %v13131_v44  ;;  %v7406_v40 = vrot.slane %v9957_v10, %v13134_v45 }
0x285a   :  { %12351 = vmatprep.subr.bf16.mxu0 %v12350_v16  ;;  %12383 = vmatprep.subr.bf16.mxu1 %v12382_v56  ;;  %v9889_v16 = vld [vmem:[%s17041_s3 + $0x1800] sm:$0xff] }
0x285b   :  { %v9921_v56 = vld [vmem:[%s17041_s3 + $0x1900] sm:$0xff]  ;;  %v12396_v1 = vpack.c.bf16 %v9890_v29, %v9889_v16 }
0x285d   :  { %12353 = vmatpush3.bf16.msra.mxu0 %v12352_v53  ;;  %12385 = vmatpush3.bf16.msra.mxu1 %v12384_v41  ;;  %v9922_v53 = vld [vmem:[%s17041_s3 + $0x1908] sm:$0xff] }
0x285e   :  { %12355 = vmatprep.subr.bf16.mxu0 %v12354_v60  ;;  %12387 = vmatprep.subr.bf16.mxu1 %v12386_v14  ;;  %v9939_v60 = vld [vmem:[%s17041_s3 + $0x1990] sm:$0xff]  ;;  %v16336_v14 = vrot.slane %v16308_v39, %v13137_v46  ;;  %v12428_v3 = vpack.c.bf16 %v9922_v53, %v9921_v56 }
0x285f   :  { %v12430_v57 = vpack.c.bf16 %v9940_v61, %v9939_v60  ;;  %v9943_v60 = vld [vmem:[%s17041_s3 + $0x19b0] sm:$0xff]  ;;  %v9944_v61 = vld [vmem:[%s17041_s3 + $0x19b8] sm:$0xff] }
0x2861   :  { %12357 = vmatpush3.bf16.msra.mxu0 %v12356_v24  ;;  %12389 = vmatpush3.bf16.msra.mxu1 %v12388_v47  ;;  %v16340_v24 = vrot.slane %v16308_v39, %v13140_v6 }
0x2862   :  { %12359 = vmatprep.subr.bf16.mxu0 %v12358_v5  ;;  %12391 = vmatprep.subr.bf16.mxu1 %v12390_v19  ;;  %v12398_v5 = vpack.c.bf16 %v9908_v42, %v9907_v54  ;;  %v9925_v54 = vld [vmem:[%s17041_s3 + $0x1920] sm:$0xff]  ;;  %v9912_v42 = vld [vmem:[%s17041_s3 + $0x18b8] sm:$0xff] }
0x2865   :  { %12361 = vmatpush3.bf16.msra.mxu0 %v12360_v49  ;;  %12393 = vmatpush3.bf16.msra.mxu1 %v12392_v17 }
0x2866   :  { %12395 = vmatprep.subr.bf16.mxu0 %v12394_v55  ;;  %12427 = vmatprep.subr.bf16.mxu1 %v12426_v25  ;;  %v9909_v25 = vld [vmem:[%s17041_s3 + $0x18a0] sm:$0xff] }
0x2912   :  { %v16286_v26 = vpop.f32.mrb[110].mxu0  ;;  %v16288_v2 = vpop.f32.mrb[112].mxu1 }
0x2913   :  { %v7229_v15 = vpop.f32.mrb[111].mxu0  ;;  %v7306_v32 = vpop.f32.mrb[113].mxu1 }
0x2914   :  { %v7230_v10 = vadd.f32 %v7229_v15, %v16336_v14  ;;  %v12400_v15 = vpack.c.bf16 %v9892_v18, %v9891_v20  ;;  %v9913_v20 = vld [vmem:[%s17041_s3 + $0x18c0] sm:$0xff]  ;;  %v9914_v18 = vld [vmem:[%s17041_s3 + $0x18c8] sm:$0xff] }
0x2916   :  { %v16293_v33 = vpop.f32.mrb[112].mxu0  ;;  %v16295_v35 = vpop.f32.mrb[114].mxu1 }
0x2917   :  { %v16297_v22 = vpop.f32.mrb[113].mxu0  ;;  %v16299_v23 = vpop.f32.mrb[115].mxu1 }
0x291a   :  { %v7493_v52 = vpop.f32.mrb[114].mxu0  ;;  %v7570_v48 = vpop.f32.mrb[116].mxu1 }
0x291b   :  { %v7494_v13 = vadd.f32 %v7493_v52, %v7398_v21  ;;  %v7571_v41 = vadd.f32 %v7570_v48, %v7406_v40  ;;  %v7495_v36 = vpop.f32.mrb[115].mxu0  ;;  %v7572_v8 = vpop.f32.mrb[117].mxu1  ;;  %v9893_v52 = vld [vmem:[%s17041_s3 + $0x1820] sm:$0xff]  ;;  %v9894_v48 = vld [vmem:[%s17041_s3 + $0x1828] sm:$0xff] }
0x291c   :  { %v7496_v59 = vadd.f32 %v7495_v36, %v7402_v43  ;;  %v7573_v63 = vadd.f32 %v7572_v8, %v7410_v51 }
0x291d   :  { %v7581_v19 = vmax.f32 %v7494_v13, 0.0  ;;  %v7583_v49 = vmax.f32 %v7571_v41, 0.0  ;;  %v9926_v13 = vld [vmem:[%s17041_s3 + $0x1928] sm:$0xff]  ;;  %v9911_v41 = vld [vmem:[%s17041_s3 + $0x18b0] sm:$0xff] }
0x291e   :  { %v7582_v47 = vmax.f32 %v7496_v59, 0.0  ;;  %v7584_v27 = vmax.f32 %v7573_v63, 0.0  ;;  %v7499_v4 = vpop.f32.mrb[116].mxu0  ;;  %v7576_v11 = vpop.f32.mrb[118].mxu1  ;;  %v7316_v59 = vmax.f32 %v7230_v10, 0.0  ;;  %v9916_v10 = vld [vmem:[%s17041_s3 + $0x18d8] sm:$0xff] }
0x291f   :  { %v7500_v50 = vadd.f32 %v7499_v4, %v7398_v21  ;;  %v7577_v12 = vadd.f32 %v7576_v11, %v7406_v40  ;;  %v7501_v17 = vpop.f32.mrb[117].mxu0  ;;  %v7578_v31 = vpop.f32.mrb[119].mxu1  ;;  %v7307_v21 = vadd.f32 %v7306_v32, %v16340_v24  ;;  %v9910_v40 = vld [vmem:[%s17041_s3 + $0x18a8] sm:$0xff]  ;;  %v12432_v32 = vpack.c.bf16 %v9924_v30, %v9923_v28 }
0x2920   :  { %v7502_v55 = vadd.f32 %v7501_v17, %v7402_v43  ;;  %v7579_v58 = vadd.f32 %v7578_v31, %v7410_v51  ;;  %7717 = vmatprep.mubr.f32.mxu0 %v7582_v47  ;;  %7792 = vmatprep.mubr.f32.mxu1 %v7584_v27  ;;  %v9941_v43 = vld [vmem:[%s17041_s3 + $0x19a0] sm:$0xff]  ;;  %v9942_v51 = vld [vmem:[%s17041_s3 + $0x19a8] sm:$0xff]  ;;  %v12402_v36 = vpack.c.bf16 %v9910_v40, %v9909_v25  ;;  %v9895_v47 = vld [vmem:[%s17041_s3 + $0x1830] sm:$0xff] }
0x2921   :  { %7718 = vmatmul.mubr.f32.vlgmr.msra.gmra.mrb[118].mxu0 %v7581_v19  ;;  %7793 = vmatmul.mubr.f32.vlgmr.msra.gmra.mrb[120].mxu1 %v7583_v49  ;;  %v7585_v56 = vmax.f32 %v7500_v50, 0.0  ;;  %v7587_v53 = vmax.f32 %v7577_v12, 0.0  ;;  %v12434_v8 = vpack.c.bf16 %v9942_v51, %v9941_v43  ;;  %v7318_v63 = vmax.f32 %v7307_v21, 0.0  ;;  %v9896_v27 = vld [vmem:[%s17041_s3 + $0x1838] sm:$0xff]  ;;  %v9945_v19 = vld [vmem:[%s17041_s3 + $0x19c0] sm:$0xff]  ;;  %v9946_v49 = vld [vmem:[%s17041_s3 + $0x19c8] sm:$0xff] }
0x2922   :  { %v7586_v16 = vmax.f32 %v7502_v55, 0.0  ;;  %v7588_v29 = vmax.f32 %v7579_v58, 0.0  ;;  %12397 = vmatpush3.bf16.msra.mxu0 %v12396_v1  ;;  %12429 = vmatpush3.bf16.msra.mxu1 %v12428_v3  ;;  %v12404_v1 = vpack.c.bf16 %v9894_v48, %v9893_v52  ;;  %v12436_v3 = vpack.c.bf16 %v9926_v13, %v9925_v54  ;;  %v9897_v17 = vld [vmem:[%s17041_s3 + $0x1840] sm:$0xff]  ;;  %v9898_v31 = vld [vmem:[%s17041_s3 + $0x1848] sm:$0xff]  ;;  %v9915_v25 = vld [vmem:[%s17041_s3 + $0x18d0] sm:$0xff] }
0x2923   :  { %12399 = vmatprep.subr.bf16.mxu0 %v12398_v5  ;;  %12431 = vmatprep.subr.bf16.mxu1 %v12430_v57  ;;  %v12406_v4 = vpack.c.bf16 %v9912_v42, %v9911_v41  ;;  %v12438_v11 = vpack.c.bf16 %v9944_v61, %v9943_v60  ;;  %v9927_v5 = vld [vmem:[%s17041_s3 + $0x1930] sm:$0xff]  ;;  %v9928_v57 = vld [vmem:[%s17041_s3 + $0x1938] sm:$0xff]  ;;  %v12408_v50 = vpack.c.bf16 %v9896_v27, %v9895_v47  ;;  %v9929_v55 = vld [vmem:[%s17041_s3 + $0x1940] sm:$0xff] }
0x2924   :  { %7722 = vmatprep.mubr.f32.mxu0 %v7586_v16  ;;  %7797 = vmatprep.mubr.f32.mxu1 %v7588_v29  ;;  %v12440_v12 = vpack.c.bf16 %v9928_v57, %v9927_v5  ;;  %v12410_v28 = vpack.c.bf16 %v9914_v18, %v9913_v20  ;;  %v12442_v30 = vpack.c.bf16 %v9946_v49, %v9945_v19  ;;  %v9930_v58 = vld [vmem:[%s17041_s3 + $0x1948] sm:$0xff]  ;;  %v9947_v21 = vld [vmem:[%s17041_s3 + $0x19d0] sm:$0xff]  ;;  %v9948_v40 = vld [vmem:[%s17041_s3 + $0x19d8] sm:$0xff] }
0x2925   :  { %7723 = vmatmul.mubr.f32.gmra.mrb[120].mxu0 %v7585_v56  ;;  %7798 = vmatmul.mubr.f32.gmra.mrb[122].mxu1 %v7587_v53  ;;  %v12412_v43 = vpack.c.bf16 %v9898_v31, %v9897_v17  ;;  %v12444_v51 = vpack.c.bf16 %v9930_v58, %v9929_v55  ;;  %v9899_v16 = vld [vmem:[%s17041_s3 + $0x1850] sm:$0xff]  ;;  %v9900_v29 = vld [vmem:[%s17041_s3 + $0x1858] sm:$0xff]  ;;  %v9917_v56 = vld [vmem:[%s17041_s3 + $0x18e0] sm:$0xff]  ;;  %v7134_v20 = vrot.slane %v16308_v39, %v13134_v45 }
0x2926   :  { %12401 = vmatpush3.bf16.msra.mxu0 %v12400_v15  ;;  %12433 = vmatpush3.bf16.msra.mxu1 %v12432_v32  ;;  %v12414_v15 = vpack.c.bf16 %v9916_v10, %v9915_v25  ;;  %v12446_v32 = vpack.c.bf16 %v9948_v40, %v9947_v21  ;;  %v9931_v52 = vld [vmem:[%s17041_s3 + $0x1950] sm:$0xff]  ;;  %v9932_v48 = vld [vmem:[%s17041_s3 + $0x1958] sm:$0xff]  ;;  %v9918_v53 = vld [vmem:[%s17041_s3 + $0x18e8] sm:$0xff]  ;;  %v12416_v41 = vpack.c.bf16 %v9900_v29, %v9899_v16 }
0x2927   :  { %7867 = vmatprep.mubr.f32.mxu0 %v7316_v59  ;;  %7942 = vmatprep.mubr.f32.mxu1 %v7318_v63  ;;  %v9949_v54 = vld [vmem:[%s17041_s3 + $0x19e0] sm:$0xff]  ;;  %v9950_v13 = vld [vmem:[%s17041_s3 + $0x19e8] sm:$0xff]  ;;  %v12418_v60 = vpack.c.bf16 %v9918_v53, %v9917_v56  ;;  %v9951_v47 = vld [vmem:[%s17041_s3 + $0x19f0] sm:$0xff]  ;;  %v7313_v55 = vadd.f32 %v16299_v23, %v16340_v24  ;;  %v7311_v21 = vadd.f32 %v16295_v35, %v7134_v20 }
0x2928   :  { %12403 = vmatprep.subr.bf16.mxu0 %v12402_v36  ;;  %12435 = vmatprep.subr.bf16.mxu1 %v12434_v8  ;;  %v12448_v36 = vpack.c.bf16 %v9932_v48, %v9931_v52  ;;  %v9901_v8 = vld [vmem:[%s17041_s3 + $0x1860] sm:$0xff]  ;;  %v9902_v42 = vld [vmem:[%s17041_s3 + $0x1868] sm:$0xff]  ;;  %v12450_v61 = vpack.c.bf16 %v9950_v13, %v9949_v54  ;;  %v9952_v27 = vld [vmem:[%s17041_s3 + $0x19f8] sm:$0xff] }
0x2929   :  { %v9933_v59 = vld [vmem:[%s17041_s3 + $0x1960] sm:$0xff]  ;;  %v9934_v63 = vld [vmem:[%s17041_s3 + $0x1968] sm:$0xff]  ;;  %v9903_v57 = vld [vmem:[%s17041_s3 + $0x1870] sm:$0xff]  ;;  %v12454_v19 = vpack.c.bf16 %v9952_v27, %v9951_v47  ;;  %v7322_v23 = vmax.f32 %v7313_v55, 0.0  ;;  %v7321_v35 = vmax.f32 %v7311_v21, 0.0 }
0x292a   :  { %12405 = vmatpush3.bf16.msra.mxu0 %v12404_v1  ;;  %12437 = vmatpush3.bf16.msra.mxu1 %v12436_v3  ;;  %v9919_v1 = vld [vmem:[%s17041_s3 + $0x18f0] sm:$0xff]  ;;  %v9920_v3 = vld [vmem:[%s17041_s3 + $0x18f8] sm:$0xff]  ;;  %v12452_v5 = vpack.c.bf16 %v9934_v63, %v9933_v59  ;;  %v10031_v58 = vld [vmem:[%s17040_s2 + $0x348] sm:$0xf] }
0x292b   :  { %12407 = vmatprep.subr.bf16.mxu0 %v12406_v4  ;;  %12439 = vmatprep.subr.bf16.mxu1 %v12438_v11  ;;  %v7126_v4 = vrot.slane %v16308_v39, %v13131_v44  ;;  %v12420_v11 = vpack.c.bf16 %v9902_v42, %v9901_v8  ;;  %v12422_v18 = vpack.c.bf16 %v9920_v3, %v9919_v1  ;;  %v9904_v49 = vld [vmem:[%s17041_s3 + $0x1878] sm:$0xff]  ;;  %v10032_v24 = vld [vmem:[%s17040_s2 + $0x350] sm:$0xf]  ;;  %v10059_v40 = vld [vmem:[%s17041_s3 + $0x1c80] sm:$0xff] }
0x292c   :  { %v12424_v17 = vpack.c.bf16 %v9904_v49, %v9903_v57  ;;  %v10033_v25 = vld [vmem:[%s17040_s2 + $0x358] sm:$0xf]  ;;  %v10092_v29 = vld [vmem:[%s17041_s3 + $0x1d88] sm:$0xff]  ;;  %v10075_v56 = vld [vmem:[%s17041_s3 + $0x1d00] sm:$0xff] }
0x292d   :  { %v7228_v31 = vadd.f32 %v16286_v26, %v7126_v4  ;;  %v7234_v10 = vadd.f32 %v16293_v33, %v7126_v4  ;;  %v10076_v53 = vld [vmem:[%s17041_s3 + $0x1d08] sm:$0xff]  ;;  %v10061_v54 = vld [vmem:[%s17041_s3 + $0x1c90] sm:$0xff]  ;;  %v10094_v8 = vld [vmem:[%s17041_s3 + $0x1d98] sm:$0xff] }
0x292e   :  { %12409 = vmatpush3.bf16.msra.mxu0 %v12408_v50  ;;  %12441 = vmatpush3.bf16.msra.mxu1 %v12440_v12  ;;  %v9935_v50 = vld [vmem:[%s17041_s3 + $0x1970] sm:$0xff]  ;;  %v9936_v12 = vld [vmem:[%s17041_s3 + $0x1978] sm:$0xff]  ;;  %v12492_v13 = vpack.c.bf16 %v10076_v53, %v10075_v56  ;;  %v10063_v47 = vld [vmem:[%s17041_s3 + $0x1ca0] sm:$0xff] }
0x292f   :  { %12411 = vmatprep.subr.bf16.mxu0 %v12410_v28  ;;  %12443 = vmatprep.subr.bf16.mxu1 %v12442_v30  ;;  %v12456_v39 = vpack.c.bf16 %v9936_v12, %v9935_v50  ;;  %v7305_v28 = vadd.f32 %v16288_v2, %v7134_v20  ;;  %v7236_v30 = vadd.f32 %v16297_v22, %v16336_v14  ;;  %v7315_v26 = vmax.f32 %v7228_v31, 0.0  ;;  %v10030_v14 = vld [vmem:[%s17040_s2 + $0x340] sm:$0xf]  ;;  %v10046_v59 = vld [vmem:[%s17041_s3 + $0x1c18] sm:$0xff]  ;;  %v10077_v63 = vld [vmem:[%s17041_s3 + $0x1d10] sm:$0xff] }
0x2930   :  { %v7319_v33 = vmax.f32 %v7234_v10, 0.0  ;;  %v10078_v3 = vld [vmem:[%s17041_s3 + $0x1d18] sm:$0xff]  ;;  %v10064_v27 = vld [vmem:[%s17041_s3 + $0x1ca8] sm:$0xff]  ;;  %v10047_v20 = vld [vmem:[%s17041_s3 + $0x1c20] sm:$0xff] }
0x2931   :  { %v7317_v2 = vmax.f32 %v7305_v28, 0.0  ;;  %v7320_v22 = vmax.f32 %v7236_v30, 0.0  ;;  %v12496_v4 = vpack.c.bf16 %v10078_v3, %v10077_v63  ;;  %v10096_v57 = vld [vmem:[%s17041_s3 + $0x1da8] sm:$0xff]  ;;  %v10079_v49 = vld [vmem:[%s17041_s3 + $0x1d20] sm:$0xff]  ;;  %v10097_v31 = vld [vmem:[%s17041_s3 + $0x1db0] sm:$0xff] }
0x2932   :  { %12413 = vmatpush3.bf16.msra.mxu0 %v12412_v43  ;;  %12445 = vmatpush3.bf16.msra.mxu1 %v12444_v51  ;;  %v10060_v43 = vld [vmem:[%s17041_s3 + $0x1c88] sm:$0xff]  ;;  %v10091_v51 = vld [vmem:[%s17041_s3 + $0x1d80] sm:$0xff]  ;;  %v10098_v55 = vld [vmem:[%s17041_s3 + $0x1db8] sm:$0xff] }
0x2933   :  { %12415 = vmatprep.subr.bf16.mxu0 %v12414_v15  ;;  %12447 = vmatprep.subr.bf16.mxu1 %v12446_v32  ;;  %v12458_v16 = vpack.c.bf16 %v10060_v43, %v10059_v40  ;;  %v10043_v15 = vld [vmem:[%s17041_s3 + $0x1c00] sm:$0xff]  ;;  %v10044_v32 = vld [vmem:[%s17041_s3 + $0x1c08] sm:$0xff]  ;;  %v12490_v52 = vpack.c.bf16 %v10092_v29, %v10091_v51  ;;  %v10082_v10 = vld [vmem:[%s17041_s3 + $0x1d38] sm:$0xff] }
0x2934   :  { %v12460_v48 = vpack.c.bf16 %v10044_v32, %v10043_v15  ;;  %v10080_v50 = vld [vmem:[%s17041_s3 + $0x1d28] sm:$0xff]  ;;  %v10067_v21 = vld [vmem:[%s17041_s3 + $0x1cc0] sm:$0xff]  ;;  %v10101_v56 = vld [vmem:[%s17041_s3 + $0x1dd0] sm:$0xff] }
0x2935   :  { %v12500_v28 = vpack.c.bf16 %v10080_v50, %v10079_v49  ;;  %v10051_v43 = vld [vmem:[%s17041_s3 + $0x1c40] sm:$0xff]  ;;  %v10052_v51 = vld [vmem:[%s17041_s3 + $0x1c48] sm:$0xff]  ;;  %v10074_v49 = vld [vmem:[%s17041_s3 + $0x1cf8] sm:$0xff] }
0x2936   :  { %12417 = vmatpush3.bf16.msra.mxu0 %v12416_v41  ;;  %12449 = vmatpush3.bf16.msra.mxu1 %v12448_v36  ;;  %v10062_v41 = vld [vmem:[%s17041_s3 + $0x1c98] sm:$0xff]  ;;  %v10093_v36 = vld [vmem:[%s17041_s3 + $0x1d90] sm:$0xff]  ;;  %v12476_v29 = vpack.c.bf16 %v10052_v51, %v10051_v43  ;;  %v10084_v15 = vld [vmem:[%s17041_s3 + $0x1d48] sm:$0xff] }
0x2937   :  { %12419 = vmatprep.subr.bf16.mxu0 %v12418_v60  ;;  %12451 = vmatprep.subr.bf16.mxu1 %v12450_v61  ;;  %v12462_v42 = vpack.c.bf16 %v10062_v41, %v10061_v54  ;;  %v12494_v60 = vpack.c.bf16 %v10094_v8, %v10093_v36  ;;  %v10045_v61 = vld [vmem:[%s17041_s3 + $0x1c10] sm:$0xff]  ;;  %v10102_v54 = vld [vmem:[%s17041_s3 + $0x1dd8] sm:$0xff]  ;;  %v10072_v63 = vld [vmem:[%s17041_s3 + $0x1ce8] sm:$0xff] }
0x2938   :  { %v12464_v1 = vpack.c.bf16 %v10046_v59, %v10045_v61  ;;  %v10054_v41 = vld [vmem:[%s17041_s3 + $0x1c58] sm:$0xff]  ;;  %v12510_v36 = vpack.c.bf16 %v10102_v54, %v10101_v56  ;;  %v10071_v59 = vld [vmem:[%s17041_s3 + $0x1ce0] sm:$0xff]  ;;  %v10105_v50 = vld [vmem:[%s17041_s3 + $0x1df0] sm:$0xff] }
0x2939   :  { %v12482_v3 = vpack.c.bf16 %v10072_v63, %v10071_v59 }
0x293a   :  { %12421 = vmatpush3.bf16.msra.mxu0 %v12420_v11  ;;  %12453 = vmatpush3.bf16.msra.mxu1 %v12452_v5  ;;  %v12466_v11 = vpack.c.bf16 %v10064_v27, %v10063_v47  ;;  %v10095_v5 = vld [vmem:[%s17041_s3 + $0x1da0] sm:$0xff]  ;;  %v10104_v47 = vld [vmem:[%s17041_s3 + $0x1de8] sm:$0xff] }
0x293b   :  { %12423 = vmatprep.subr.bf16.mxu0 %v12422_v18  ;;  %12455 = vmatprep.subr.bf16.mxu1 %v12454_v19  ;;  %v12498_v18 = vpack.c.bf16 %v10096_v57, %v10095_v5  ;;  %v10048_v19 = vld [vmem:[%s17041_s3 + $0x1c28] sm:$0xff]  ;;  %v10055_v27 = vld [vmem:[%s17041_s3 + $0x1c60] sm:$0xff] }
0x293c   :  { %v12468_v12 = vpack.c.bf16 %v10048_v19, %v10047_v20  ;;  %v10087_v57 = vld [vmem:[%s17041_s3 + $0x1d60] sm:$0xff]  ;;  %v10088_v20 = vld [vmem:[%s17041_s3 + $0x1d68] sm:$0xff]  ;;  %v10073_v19 = vld [vmem:[%s17041_s3 + $0x1cf0] sm:$0xff] }
0x293e   :  { %12425 = vmatpush3.bf16.msra.mxu0 %v12424_v17  ;;  %12457 = vmatpush3.bf16.msra.mxu1 %v12456_v39  ;;  %v10065_v17 = vld [vmem:[%s17041_s3 + $0x1cb0] sm:$0xff]  ;;  %v10066_v39 = vld [vmem:[%s17041_s3 + $0x1cb8] sm:$0xff] }
0x293f   :  { %10035 = vmatprep.subr.msk.mxu0 %vm131_vm3, %v10031_v58  ;;  %10039 = vmatprep.subr.msk.mxu1 %vm131_vm3, %v10033_v25  ;;  %v12470_v30 = vpack.c.bf16 %v10066_v39, %v10065_v17  ;;  %v10049_v58 = vld [vmem:[%s17041_s3 + $0x1c30] sm:$0xff]  ;;  %v10050_v25 = vld [vmem:[%s17041_s3 + $0x1c38] sm:$0xff] }
0x2940   :  { %v10106_v17 = vld [vmem:[%s17041_s3 + $0x1df8] sm:$0xff]  ;;  %v10057_v39 = vld [vmem:[%s17041_s3 + $0x1c70] sm:$0xff] }
0x2941   :  { %7868 = vmatmul.mubr.f32.vlgmr.msra.gmra.mrb[122].mxu0 %v7315_v26  ;;  %7943 = vmatmul.mubr.f32.vlgmr.msra.gmra.mrb[124].mxu1 %v7317_v2  ;;  %v12502_v26 = vpack.c.bf16 %v10098_v55, %v10097_v31  ;;  %v10081_v2 = vld [vmem:[%s17041_s3 + $0x1d30] sm:$0xff]  ;;  %v10058_v31 = vld [vmem:[%s17041_s3 + $0x1c78] sm:$0xff] }
0x2942   :  { %7872 = vmatprep.mubr.f32.mxu0 %v7320_v22  ;;  %7947 = vmatprep.mubr.f32.mxu1 %v7322_v23  ;;  %v10068_v22 = vld [vmem:[%s17041_s3 + $0x1cc8] sm:$0xff]  ;;  %v10099_v23 = vld [vmem:[%s17041_s3 + $0x1dc0] sm:$0xff]  ;;  %v10089_v55 = vld [vmem:[%s17041_s3 + $0x1d70] sm:$0xff] }
0x2943   :  { %10036 = vmatpush1.msk.msra.mxu0 %vm131_vm3, %v10030_v14  ;;  %10040 = vmatpush1.msk.msra.mxu1 %vm131_vm3, %v10032_v24  ;;  %v10100_v14 = vld [vmem:[%s17041_s3 + $0x1dc8] sm:$0xff]  ;;  %v12472_v24 = vpack.c.bf16 %v10050_v25, %v10049_v58  ;;  %v10090_v58 = vld [vmem:[%s17041_s3 + $0x1d78] sm:$0xff] }
0x2944   :  { %12459 = vmatprep.subr.bf16.mxu0 %v12458_v16  ;;  %12491 = vmatprep.subr.bf16.mxu1 %v12490_v52  ;;  %v12506_v40 = vpack.c.bf16 %v10100_v14, %v10099_v23  ;;  %v10083_v16 = vld [vmem:[%s17041_s3 + $0x1d40] sm:$0xff]  ;;  %v10069_v52 = vld [vmem:[%s17041_s3 + $0x1cd0] sm:$0xff]  ;;  %v12520_v25 = vpack.c.bf16 %v10090_v58, %v10089_v55 }
0x2945   :  { %7873 = vmatmul.mubr.f32.gmra.mrb[124].mxu0 %v7319_v33  ;;  %7948 = vmatmul.mubr.f32.gmra.mrb[126].mxu1 %v7321_v35  ;;  %v12504_v33 = vpack.c.bf16 %v10082_v10, %v10081_v2  ;;  %v12474_v35 = vpack.c.bf16 %v10068_v22, %v10067_v21  ;;  %v12508_v32 = vpack.c.bf16 %v10084_v15, %v10083_v16  ;;  %v10110_v2 = vld [vmem:[%s17040_s2 + $0x378] sm:$0xf] }
0x2946   :  { %8056 = vmatprep.mubr.f32.mxu0 %v12755_v9  ;;  %8133 = vmatprep.mubr.f32.mxu1 %v12755_v9 }
0x2949   :  { %10037 = vmatmul.mubr.msk.f32.vlgmr.msra.gmra.mrb[126].mxu0 %vm124_vm4, %v16060_v34  ;;  %10041 = vmatmul.mubr.msk.f32.vlgmr.msra.gmra.mrb[128].mxu1 %vm124_vm4, %v16060_v34 }
0x294a   :  { %8062 = vmatprep.mubr.f32.mxu0 %v12755_v9  ;;  %8139 = vmatprep.mubr.f32.mxu1 %v12755_v9 }
0x294b   :  { %12461 = vmatpush3.bf16.msra.mxu0 %v12460_v48  ;;  %12493 = vmatpush3.bf16.msra.mxu1 %v12492_v13  ;;  %v10070_v48 = vld [vmem:[%s17041_s3 + $0x1cd8] sm:$0xff]  ;;  %v10053_v13 = vld [vmem:[%s17041_s3 + $0x1c50] sm:$0xff] }
0x294c   :  { %12463 = vmatprep.subr.bf16.mxu0 %v12462_v42  ;;  %12495 = vmatprep.subr.bf16.mxu1 %v12494_v60  ;;  %v12478_v53 = vpack.c.bf16 %v10070_v48, %v10069_v52  ;;  %v12480_v8 = vpack.c.bf16 %v10054_v41, %v10053_v13  ;;  %v10085_v42 = vld [vmem:[%s17041_s3 + $0x1d50] sm:$0xff]  ;;  %v10086_v60 = vld [vmem:[%s17041_s3 + $0x1d58] sm:$0xff] }
0x294d   :  { %10038 = vmatmul.mubr.msk.f32.gmra.mrb[128].mxu0 %vm124_vm4, %v16074_v37  ;;  %10042 = vmatmul.mubr.msk.f32.gmra.mrb[130].mxu1 %vm124_vm4, %v16074_v37  ;;  %v12512_v61 = vpack.c.bf16 %v10086_v60, %v10085_v42  ;;  %v10034_v13 = vld [vmem:[%s17040_s2 + $0x3c0] ss:$8 sm:$0xf] }
0x294e   :  { %v7971_v59 = vrot.slane %v10034_v13, %v13134_v45  ;;  %v7967_v63 = vrot.slane %v10034_v13, %v13137_v46 }
0x294f   :  { %12465 = vmatpush3.bf16.msra.mxu0 %v12464_v1  ;;  %12497 = vmatpush3.bf16.msra.mxu1 %v12496_v4  ;;  %v10103_v1 = vld [vmem:[%s17041_s3 + $0x1de0] sm:$0xff]  ;;  %v10056_v4 = vld [vmem:[%s17041_s3 + $0x1c68] sm:$0xff] }
0x2950   :  { %12467 = vmatprep.subr.bf16.mxu0 %v12466_v11  ;;  %12499 = vmatprep.subr.bf16.mxu1 %v12498_v18  ;;  %v12514_v11 = vpack.c.bf16 %v10104_v47, %v10103_v1  ;;  %v12484_v5 = vpack.c.bf16 %v10056_v4, %v10055_v27  ;;  %v12516_v18 = vpack.c.bf16 %v10088_v20, %v10087_v57  ;;  %v10136_v57 = vld [vmem:[%s17041_s3 + $0x1e80] sm:$0xff] }
0x2951   :  { %v7975_v27 = vrot.slane %v10034_v13, %v13140_v6 }
0x2953   :  { %12469 = vmatpush3.bf16.msra.mxu0 %v12468_v12  ;;  %12501 = vmatpush3.bf16.msra.mxu1 %v12500_v28  ;;  %v12486_v12 = vpack.c.bf16 %v10074_v49, %v10073_v19  ;;  %v12518_v28 = vpack.c.bf16 %v10106_v17, %v10105_v50  ;;  %v10137_v50 = vld [vmem:[%s17041_s3 + $0x1e88] sm:$0xff] }
0x2954   :  { %12471 = vmatprep.subr.bf16.mxu0 %v12470_v30  ;;  %12503 = vmatprep.subr.bf16.mxu1 %v12502_v26  ;;  %v12488_v30 = vpack.c.bf16 %v10058_v31, %v10057_v39  ;;  %v10108_v26 = vld [vmem:[%s17040_s2 + $0x368] sm:$0xf] }
0x2955   :  { %v10169_v17 = vld [vmem:[%s17041_s3 + $0x1f88] sm:$0xff] }
0x2957   :  { %12473 = vmatpush3.bf16.msra.mxu0 %v12472_v24  ;;  %12505 = vmatpush3.bf16.msra.mxu1 %v12504_v33 }
0x2958   :  { %12475 = vmatprep.subr.bf16.mxu0 %v12474_v35  ;;  %12507 = vmatprep.subr.bf16.mxu1 %v12506_v40 }
0x295b   :  { %12477 = vmatpush3.bf16.msra.mxu0 %v12476_v29  ;;  %12509 = vmatpush3.bf16.msra.mxu1 %v12508_v32 }
0x295c   :  { %12479 = vmatprep.subr.bf16.mxu0 %v12478_v53  ;;  %12511 = vmatprep.subr.bf16.mxu1 %v12510_v36 }
0x295f   :  { %12481 = vmatpush3.bf16.msra.mxu0 %v12480_v8  ;;  %12513 = vmatpush3.bf16.msra.mxu1 %v12512_v61  ;;  %v7963_v61 = vrot.slane %v10034_v13, %v13131_v44  ;;  %v10170_v13 = vld [vmem:[%s17041_s3 + $0x1f90] sm:$0xff] }
0x2960   :  { %12483 = vmatprep.subr.bf16.mxu0 %v12482_v3  ;;  %12515 = vmatprep.subr.bf16.mxu1 %v12514_v11 }
0x2963   :  { %12485 = vmatpush3.bf16.msra.mxu0 %v12484_v5  ;;  %12517 = vmatpush3.bf16.msra.mxu1 %v12516_v18 }
0x2964   :  { %12487 = vmatprep.subr.bf16.mxu0 %v12486_v12  ;;  %12519 = vmatprep.subr.bf16.mxu1 %v12518_v28  ;;  %v10168_v12 = vld [vmem:[%s17041_s3 + $0x1f80] sm:$0xff] }
0x2967   :  { %12489 = vmatpush3.bf16.msra.mxu0 %v12488_v30  ;;  %12521 = vmatpush3.bf16.msra.mxu1 %v12520_v25 }
0x2968   :  { %10112 = vmatprep.subr.msk.mxu0 %vm131_vm3, %v10108_v26  ;;  %10116 = vmatprep.subr.msk.mxu1 %vm131_vm3, %v10110_v2  ;;  %v10107_v26 = vld [vmem:[%s17040_s2 + $0x360] sm:$0xf]  ;;  %v12522_v2 = vpack.c.bf16 %v10137_v50, %v10136_v57 }
0x2969   :  { %v10156_v50 = vld [vmem:[%s17041_s3 + $0x1f20] sm:$0xff] }
0x29f4   :  { %v11182_v10 = vpop.f32.mrb[118].mxu0  ;;  %v11220_v21 = vpop.f32.mrb[120].mxu1 }
0x29f5   :  { %v11183_v22 = vpop.f32.mrb[119].mxu0  ;;  %v11221_v23 = vpop.f32.mrb[121].mxu1 }
0x29f6   :  { %v11184_v14 = vadd.f32 %v11183_v22, %v11182_v10  ;;  %v11222_v24 = vadd.f32 %v11221_v23, %v11220_v21  ;;  %v12554_v10 = vpack.c.bf16 %v10169_v17, %v10168_v12  ;;  %v10157_v12 = vld [vmem:[%s17041_s3 + $0x1f28] sm:$0xff]  ;;  %v10142_v17 = vld [vmem:[%s17041_s3 + $0x1eb0] sm:$0xff] }
0x29f8   :  { %v7795_v33 = vadd.f32 %v11222_v24, %v11184_v14  ;;  %v11185_v35 = vpop.f32.mrb[120].mxu0  ;;  %v11223_v40 = vpop.f32.mrb[122].mxu1 }
0x29f9   :  { %v11186_v43 = vpop.f32.mrb[121].mxu0  ;;  %v11224_v51 = vpop.f32.mrb[123].mxu1 }
0x29fa   :  { %v11187_v16 = vadd.f32 %v11186_v43, %v11185_v35  ;;  %v11225_v29 = vadd.f32 %v11224_v51, %v11223_v40  ;;  %v10109_v35 = vld [vmem:[%s17040_s2 + $0x370] sm:$0xf] }
0x29fc   :  { %v7800_v15 = vadd.f32 %v11225_v29, %v11187_v16 }
0x2a14   :  { %v11258_v32 = vpop.f32.mrb[122].mxu0  ;;  %v11296_v52 = vpop.f32.mrb[124].mxu1 }
0x2a15   :  { %v11259_v48 = vpop.f32.mrb[123].mxu0  ;;  %v11297_v56 = vpop.f32.mrb[125].mxu1 }
0x2a16   :  { %v11260_v53 = vadd.f32 %v11259_v48, %v11258_v32  ;;  %v11298_v54 = vadd.f32 %v11297_v56, %v11296_v52  ;;  %v10120_v32 = vld [vmem:[%s17041_s3 + $0x1e00] sm:$0xff]  ;;  %v10121_v52 = vld [vmem:[%s17041_s3 + $0x1e08] sm:$0xff] }
0x2a17   :  { %v10152_v48 = vld [vmem:[%s17041_s3 + $0x1f00] sm:$0xff]  ;;  %v10153_v56 = vld [vmem:[%s17041_s3 + $0x1f08] sm:$0xff] }
0x2a18   :  { %v7870_v41 = vadd.f32 %v11260_v53, %v7795_v33  ;;  %v11261_v36 = vpop.f32.mrb[124].mxu0  ;;  %v11299_v8 = vpop.f32.mrb[126].mxu1  ;;  %v10138_v53 = vld [vmem:[%s17041_s3 + $0x1e90] sm:$0xff] }
0x2a19   :  { %v11262_v42 = vpop.f32.mrb[125].mxu0  ;;  %v11300_v60 = vpop.f32.mrb[127].mxu1 }
0x2a1a   :  { %v16746_v1 = vadd.f32 %v11298_v54, %v7870_v41  ;;  %v11263_v3 = vadd.f32 %v11262_v42, %v11261_v36  ;;  %v11301_v47 = vadd.f32 %v11300_v60, %v11299_v8  ;;  %v10139_v54 = vld [vmem:[%s17041_s3 + $0x1e98] sm:$0xff]  ;;  %v12524_v36 = vpack.c.bf16 %v10121_v52, %v10120_v32  ;;  %v10122_v42 = vld [vmem:[%s17041_s3 + $0x1e10] sm:$0xff]  ;;  %v10161_v52 = vld [vmem:[%s17041_s3 + $0x1f48] sm:$0xff] }
0x2a1b   :  { %v10171_v41 = vld [vmem:[%s17041_s3 + $0x1f98] sm:$0xff]  ;;  %v12556_v8 = vpack.c.bf16 %v10153_v56, %v10152_v48  ;;  %v10146_v56 = vld [vmem:[%s17041_s3 + $0x1ed0] sm:$0xff] }
0x2a1c   :  { %v7875_v4 = vadd.f32 %v11263_v3, %v7800_v15  ;;  %v8058_v11 = vpop.f32.mrb[126].mxu0  ;;  %v8135_v5 = vpop.f32.mrb[128].mxu1  ;;  %v10123_v60 = vld [vmem:[%s17041_s3 + $0x1e18] sm:$0xff] }
0x2a1d   :  { %v8059_v20 = vadd.f32 %v8058_v11, %v7963_v61  ;;  %v8136_v18 = vadd.f32 %v8135_v5, %v7971_v59  ;;  %v8060_v19 = vpop.f32.mrb[127].mxu0  ;;  %v8137_v49 = vpop.f32.mrb[129].mxu1  ;;  %v10155_v3 = vld [vmem:[%s17041_s3 + $0x1f18] sm:$0xff]  ;;  %v10173_v11 = vld [vmem:[%s17041_s3 + $0x1fa8] sm:$0xff]  ;;  %v12528_v5 = vpack.c.bf16 %v10123_v60, %v10122_v42 }
0x2a1e   :  { %v16761_v39 = vadd.f32 %v11301_v47, %v7875_v4  ;;  %v8061_v31 = vadd.f32 %v8060_v19, %v7967_v63  ;;  %v8138_v28 = vadd.f32 %v8137_v49, %v7975_v27  ;;  %v10140_v47 = vld [vmem:[%s17041_s3 + $0x1ea0] sm:$0xff] }
0x2a1f   :  { %v8146_v21 = vmax.f32 %v8059_v20, 0.0  ;;  %v8148_v22 = vmax.f32 %v8136_v18, 0.0  ;;  %v10172_v4 = vld [vmem:[%s17041_s3 + $0x1fa0] sm:$0xff]  ;;  %v10125_v18 = vld [vmem:[%s17041_s3 + $0x1e28] sm:$0xff] }
0x2a20   :  { %v8147_v30 = vmax.f32 %v8061_v31, 0.0  ;;  %v8149_v55 = vmax.f32 %v8138_v28, 0.0  ;;  %v8064_v58 = vpop.f32.mrb[128].mxu0  ;;  %v8141_v25 = vpop.f32.mrb[130].mxu1  ;;  %v10124_v20 = vld [vmem:[%s17041_s3 + $0x1e20] sm:$0xff]  ;;  %v12562_v49 = vpack.c.bf16 %v10173_v11, %v10172_v4  ;;  %v10143_v31 = vld [vmem:[%s17041_s3 + $0x1eb8] sm:$0xff] }
0x2a21   :  { %v8065_v23 = vadd.f32 %v8064_v58, %v7963_v61  ;;  %v8142_v14 = vadd.f32 %v8141_v25, %v7971_v59  ;;  %v8066_v24 = vpop.f32.mrb[129].mxu0  ;;  %v8143_v33 = vpop.f32.mrb[131].mxu1  ;;  %v12526_v61 = vpack.c.bf16 %v10139_v54, %v10138_v53  ;;  %v12558_v59 = vpack.c.bf16 %v10171_v41, %v10170_v13  ;;  %v10174_v28 = vld [vmem:[%s17041_s3 + $0x1fb0] sm:$0xff]  ;;  %v10147_v53 = vld [vmem:[%s17041_s3 + $0x1ed8] sm:$0xff]  ;;  %v10181_v11 = vld [vmem:[%s17041_s3 + $0x1fe8] sm:$0xff] }
0x2a22   :  { %v8067_v40 = vadd.f32 %v8066_v24, %v7967_v63  ;;  %v8144_v43 = vadd.f32 %v8143_v33, %v7975_v27  ;;  %8282 = vmatprep.mubr.f32.mxu0 %v8147_v30  ;;  %8357 = vmatprep.mubr.f32.mxu1 %v8149_v55  ;;  %v10154_v63 = vld [vmem:[%s17041_s3 + $0x1f10] sm:$0xff]  ;;  %v10141_v27 = vld [vmem:[%s17041_s3 + $0x1ea8] sm:$0xff]  ;;  %v10175_v30 = vld [vmem:[%s17041_s3 + $0x1fb8] sm:$0xff]  ;;  %v12532_v55 = vpack.c.bf16 %v10125_v18, %v10124_v20 }
0x2a23   :  { %8283 = vmatmul.mubr.f32.vlgmr.msra.gmra.mrb[130].mxu0 %v8146_v21  ;;  %8358 = vmatmul.mubr.f32.vlgmr.msra.gmra.mrb[132].mxu1 %v8148_v22  ;;  %v8150_v29 = vmax.f32 %v8065_v23, 0.0  ;;  %v8152_v15 = vmax.f32 %v8142_v14, 0.0  ;;  %v12560_v57 = vpack.c.bf16 %v10155_v3, %v10154_v63  ;;  %v12530_v19 = vpack.c.bf16 %v10141_v27, %v10140_v47  ;;  %v10126_v25 = vld [vmem:[%s17041_s3 + $0x1e30] sm:$0xff]  ;;  %v10159_v22 = vld [vmem:[%s17041_s3 + $0x1f38] sm:$0xff]  ;;  %v10144_v23 = vld [vmem:[%s17041_s3 + $0x1ec0] sm:$0xff] }
0x2a24   :  { %v8151_v51 = vmax.f32 %v8067_v40, 0.0  ;;  %v8153_v16 = vmax.f32 %v8144_v43, 0.0  ;;  %10113 = vmatpush1.msk.msra.mxu0 %vm131_vm3, %v10107_v26  ;;  %10117 = vmatpush1.msk.msra.mxu1 %vm131_vm3, %v10109_v35  ;;  %v12564_v58 = vpack.c.bf16 %v10157_v12, %v10156_v50  ;;  %v10127_v26 = vld [vmem:[%s17041_s3 + $0x1e38] sm:$0xff]  ;;  %v10158_v21 = vld [vmem:[%s17041_s3 + $0x1f30] sm:$0xff]  ;;  %v10145_v14 = vld [vmem:[%s17041_s3 + $0x1ec8] sm:$0xff]  ;;  %v12542_v13 = vpack.c.bf16 %v10147_v53, %v10146_v56 }
0x2a25   :  { %12523 = vmatprep.subr.bf16.mxu0 %v12522_v2  ;;  %12555 = vmatprep.subr.bf16.mxu1 %v12554_v10  ;;  %v12534_v2 = vpack.c.bf16 %v10143_v31, %v10142_v17  ;;  %v12566_v10 = vpack.c.bf16 %v10175_v30, %v10174_v28  ;;  %v10176_v24 = vld [vmem:[%s17041_s3 + $0x1fc0] sm:$0xff]  ;;  %v10177_v33 = vld [vmem:[%s17041_s3 + $0x1fc8] sm:$0xff]  ;;  %v12536_v35 = vpack.c.bf16 %v10127_v26, %v10126_v25  ;;  %v10178_v54 = vld [vmem:[%s17041_s3 + $0x1fd0] sm:$0xff] }
0x2a26   :  { %8287 = vmatprep.mubr.f32.mxu0 %v8151_v51  ;;  %8362 = vmatprep.mubr.f32.mxu1 %v8153_v16  ;;  %v12568_v40 = vpack.c.bf16 %v10159_v22, %v10158_v21  ;;  %v12538_v43 = vpack.c.bf16 %v10145_v14, %v10144_v23  ;;  %v12570_v51 = vpack.c.bf16 %v10177_v33, %v10176_v24  ;;  %v10128_v16 = vld [vmem:[%s17041_s3 + $0x1e40] sm:$0xff]  ;;  %v10179_v41 = vld [vmem:[%s17041_s3 + $0x1fd8] sm:$0xff]  ;;  %v10149_v47 = vld [vmem:[%s17041_s3 + $0x1ee8] sm:$0xff] }
0x2a27   :  { %8288 = vmatmul.mubr.f32.gmra.mrb[132].mxu0 %v8150_v29  ;;  %8363 = vmatmul.mubr.f32.gmra.mrb[134].mxu1 %v8152_v15  ;;  %v10129_v29 = vld [vmem:[%s17041_s3 + $0x1e48] sm:$0xff]  ;;  %v10160_v15 = vld [vmem:[%s17041_s3 + $0x1f40] sm:$0xff]  ;;  %v12574_v42 = vpack.c.bf16 %v10179_v41, %v10178_v54  ;;  %v10150_v12 = vld [vmem:[%s17041_s3 + $0x1ef0] sm:$0xff] }
0x2a28   :  { %8473 = vmatprep.mubr.f32.mxu0 %v12755_v9  ;;  %8550 = vmatprep.mubr.f32.mxu1 %v12755_v9  ;;  %v12540_v32 = vpack.c.bf16 %v10129_v29, %v10128_v16  ;;  %v12572_v48 = vpack.c.bf16 %v10161_v52, %v10160_v15  ;;  %v10148_v3 = vld [vmem:[%s17041_s3 + $0x1ee0] sm:$0xff]  ;;  %v10151_v17 = vld [vmem:[%s17041_s3 + $0x1ef8] sm:$0xff]  ;;  %v10182_v31 = vld [vmem:[%s17041_s3 + $0x1ff0] sm:$0xff] }
0x2a29   :  { %v10180_v27 = vld [vmem:[%s17041_s3 + $0x1fe0] sm:$0xff]  ;;  %v12546_v4 = vpack.c.bf16 %v10149_v47, %v10148_v3  ;;  %v12550_v28 = vpack.c.bf16 %v10151_v17, %v10150_v12  ;;  %v10183_v30 = vld [vmem:[%s17041_s3 + $0x1ff8] sm:$0xff] }
0x2a2a   :  { %v12578_v20 = vpack.c.bf16 %v10181_v11, %v10180_v27  ;;  %v12582_v25 = vpack.c.bf16 %v10183_v30, %v10182_v31 }
0x2a2b   :  { %10114 = vmatmul.mubr.msk.f32.vlgmr.msra.gmra.mrb[134].mxu0 %vm124_vm4, %v16060_v34  ;;  %10118 = vmatmul.mubr.msk.f32.vlgmr.msra.gmra.mrb[136].mxu1 %vm124_vm4, %v16060_v34 }
0x2a2c   :  { %8479 = vmatprep.mubr.f32.mxu0 %v12755_v9  ;;  %8556 = vmatprep.mubr.f32.mxu1 %v12755_v9 }
0x2a2d   :  { %12525 = vmatpush3.bf16.msra.mxu0 %v12524_v36  ;;  %12557 = vmatpush3.bf16.msra.mxu1 %v12556_v8  ;;  %v10130_v36 = vld [vmem:[%s17041_s3 + $0x1e50] sm:$0xff]  ;;  %v10131_v8 = vld [vmem:[%s17041_s3 + $0x1e58] sm:$0xff] }
0x2a2e   :  { %12527 = vmatprep.subr.bf16.mxu0 %v12526_v61  ;;  %12559 = vmatprep.subr.bf16.mxu1 %v12558_v59  ;;  %v12544_v60 = vpack.c.bf16 %v10131_v8, %v10130_v36  ;;  %v10162_v61 = vld [vmem:[%s17041_s3 + $0x1f50] sm:$0xff]  ;;  %v10163_v59 = vld [vmem:[%s17041_s3 + $0x1f58] sm:$0xff] }
0x2a2f   :  { %10115 = vmatmul.mubr.msk.f32.gmra.mrb[136].mxu0 %vm124_vm4, %v16074_v37  ;;  %10119 = vmatmul.mubr.msk.f32.gmra.mrb[138].mxu1 %vm124_vm4, %v16074_v37  ;;  %v12576_v63 = vpack.c.bf16 %v10163_v59, %v10162_v61 }
0x2a31   :  { %12529 = vmatpush3.bf16.msra.mxu0 %v12528_v5  ;;  %12561 = vmatpush3.bf16.msra.mxu1 %v12560_v57  ;;  %v10132_v5 = vld [vmem:[%s17041_s3 + $0x1e60] sm:$0xff]  ;;  %v10133_v57 = vld [vmem:[%s17041_s3 + $0x1e68] sm:$0xff] }
0x2a32   :  { %12531 = vmatprep.subr.bf16.mxu0 %v12530_v19  ;;  %12563 = vmatprep.subr.bf16.mxu1 %v12562_v49  ;;  %v12548_v18 = vpack.c.bf16 %v10133_v57, %v10132_v5  ;;  %v10164_v19 = vld [vmem:[%s17041_s3 + $0x1f60] sm:$0xff]  ;;  %v10165_v49 = vld [vmem:[%s17041_s3 + $0x1f68] sm:$0xff] }
0x2a33   :  { %v12580_v50 = vpack.c.bf16 %v10165_v49, %v10164_v19 }
0x2a35   :  { %12533 = vmatpush3.bf16.msra.mxu0 %v12532_v55  ;;  %12565 = vmatpush3.bf16.msra.mxu1 %v12564_v58  ;;  %v10134_v55 = vld [vmem:[%s17041_s3 + $0x1e70] sm:$0xff]  ;;  %v10135_v58 = vld [vmem:[%s17041_s3 + $0x1e78] sm:$0xff] }
0x2a36   :  { %12535 = vmatprep.subr.bf16.mxu0 %v12534_v2  ;;  %12567 = vmatprep.subr.bf16.mxu1 %v12566_v10  ;;  %v12552_v26 = vpack.c.bf16 %v10135_v58, %v10134_v55  ;;  %v10166_v2 = vld [vmem:[%s17041_s3 + $0x1f70] sm:$0xff]  ;;  %v10167_v10 = vld [vmem:[%s17041_s3 + $0x1f78] sm:$0xff] }
0x2a37   :  { %v12584_v21 = vpack.c.bf16 %v10167_v10, %v10166_v2 }
0x2a39   :  { %12537 = vmatpush3.bf16.msra.mxu0 %v12536_v35  ;;  %12569 = vmatpush3.bf16.msra.mxu1 %v12568_v40  ;;  %v10111_v40 = vld [vmem:[%s17040_s2 + $0x3e0] ss:$8 sm:$0xf] }
0x2a3a   :  { %12539 = vmatprep.subr.bf16.mxu0 %v12538_v43  ;;  %12571 = vmatprep.subr.bf16.mxu1 %v12570_v51  ;;  %v8388_v52 = vrot.slane %v10111_v40, %v13134_v45 }
0x2a3d   :  { %12541 = vmatpush3.bf16.msra.mxu0 %v12540_v32  ;;  %12573 = vmatpush3.bf16.msra.mxu1 %v12572_v48  ;;  %v8380_v32 = vrot.slane %v10111_v40, %v13131_v44  ;;  %v8384_v48 = vrot.slane %v10111_v40, %v13137_v46 }
0x2a3e   :  { %12543 = vmatprep.subr.bf16.mxu0 %v12542_v13  ;;  %12575 = vmatprep.subr.bf16.mxu1 %v12574_v42  ;;  %v8392_v13 = vrot.slane %v10111_v40, %v13140_v6 }
0x2a41   :  { %12545 = vmatpush3.bf16.msra.mxu0 %v12544_v60  ;;  %12577 = vmatpush3.bf16.msra.mxu1 %v12576_v63 }
0x2a42   :  { %12547 = vmatprep.subr.bf16.mxu0 %v12546_v4  ;;  %12579 = vmatprep.subr.bf16.mxu1 %v12578_v20 }
0x2a45   :  { %12549 = vmatpush3.bf16.msra.mxu0 %v12548_v18  ;;  %12581 = vmatpush3.bf16.msra.mxu1 %v12580_v50 }
0x2a46   :  { %12551 = vmatprep.subr.bf16.mxu0 %v12550_v28  ;;  %12583 = vmatprep.subr.bf16.mxu1 %v12582_v25 }
0x2a49   :  { %12553 = vmatpush3.bf16.msra.mxu0 %v12552_v26  ;;  %12585 = vmatpush3.bf16.msra.mxu1 %v12584_v21  ;;  %v10184_v21 = vld [vmem:[%s17039_s1 + $0x198] ss:$0 sm:$0xff] }
0x2af6   :  { %v11334_v22 = vpop.f32.mrb[130].mxu0  ;;  %v11372_v23 = vpop.f32.mrb[132].mxu1 }
0x2af7   :  { %v11335_v14 = vpop.f32.mrb[131].mxu0  ;;  %v11373_v24 = vpop.f32.mrb[133].mxu1 }
0x2af8   :  { %v11336_v33 = vadd.f32 %v11335_v14, %v11334_v22  ;;  %v11374_v35 = vadd.f32 %v11373_v24, %v11372_v23 }
0x2afa   :  { %v8360_v43 = vadd.f32 %v11374_v35, %v11336_v33  ;;  %v11337_v51 = vpop.f32.mrb[132].mxu0  ;;  %v11375_v16 = vpop.f32.mrb[134].mxu1 }
0x2afb   :  { %v11338_v29 = vpop.f32.mrb[133].mxu0  ;;  %v11376_v15 = vpop.f32.mrb[135].mxu1 }
0x2afc   :  { %v8368_v56 = vadd.f32 %v8360_v43, %v16746_v1  ;;  %v11339_v53 = vadd.f32 %v11338_v29, %v11337_v51  ;;  %v11377_v54 = vadd.f32 %v11376_v15, %v11375_v16 }
0x2afe   :  { %v8365_v41 = vadd.f32 %v11377_v54, %v11339_v53  ;;  %v8475_v36 = vpop.f32.mrb[134].mxu0  ;;  %v8552_v8 = vpop.f32.mrb[136].mxu1 }
0x2aff   :  { %v8476_v42 = vadd.f32 %v8475_v36, %v8380_v32  ;;  %v8553_v60 = vadd.f32 %v8552_v8, %v8388_v52  ;;  %v8477_v61 = vpop.f32.mrb[135].mxu0  ;;  %v8554_v59 = vpop.f32.mrb[137].mxu1 }
0x2b00   :  { %v8369_v63 = vadd.f32 %v8365_v41, %v16761_v39  ;;  %v8478_v44 = vadd.f32 %v8477_v61, %v8384_v48  ;;  %v8555_v3 = vadd.f32 %v8554_v59, %v8392_v13 }
0x2b01   :  { %v8563_v1 = vmax.f32 %v8476_v42, 0.0  ;;  %v8565_v4 = vmax.f32 %v8553_v60, 0.0 }
0x2b02   :  { %v8564_v45 = vmax.f32 %v8478_v44, 0.0  ;;  %v8566_v47 = vmax.f32 %v8555_v3, 0.0  ;;  %v8481_v46 = vpop.f32.mrb[136].mxu0  ;;  %v8558_v27 = vpop.f32.mrb[138].mxu1  ;;  %v10186_v3 = vld [vmem:[%s17039_s1 + $0x1a8] ss:$0 sm:$0xff] }
0x2b03   :  { %v8482_v11 = vadd.f32 %v8481_v46, %v8380_v32  ;;  %v8559_v5 = vadd.f32 %v8558_v27, %v8388_v52  ;;  %v8483_v6 = vpop.f32.mrb[137].mxu0  ;;  %v8560_v57 = vpop.f32.mrb[139].mxu1 }
0x2b04   :  { %v8484_v20 = vadd.f32 %v8483_v6, %v8384_v48  ;;  %v8561_v18 = vadd.f32 %v8560_v57, %v8392_v13  ;;  %8699 = vmatprep.mubr.f32.mxu0 %v8564_v45  ;;  %8774 = vmatprep.mubr.f32.mxu1 %v8566_v47 }
0x2b05   :  { %8700 = vmatmul.mubr.f32.vlgmr.msra.gmra.mrb[138].mxu0 %v8563_v1  ;;  %8775 = vmatmul.mubr.f32.vlgmr.msra.gmra.mrb[140].mxu1 %v8565_v4  ;;  %v8567_v49 = vmax.f32 %v8482_v11, 0.0  ;;  %v8569_v50 = vmax.f32 %v8559_v5, 0.0  ;;  %v12758_v4 = vmov 0.0|0.0  }
0x2b06   :  { %v8568_v19 = vmax.f32 %v8484_v20, 0.0  ;;  %v8570_v39 = vmax.f32 %v8561_v18, 0.0  ;;  %12586 = vmatprep.subr.bf16.mxu0 %v12758_v4  ;;  %12589 = vmatprep.subr.bf16.mxu1 %v12758_v4 }
0x2b08   :  { %8704 = vmatprep.mubr.f32.mxu0 %v8568_v19  ;;  %8779 = vmatprep.mubr.f32.mxu1 %v8570_v39  ;;  %v8954_v19 = vld [vmem:[%s17039_s1 + $0x1b0] sm:$0xff]  ;;  %v8955_v39 = vld [vmem:[%s17039_s1 + $0x1b8] sm:$0xff] }
0x2b09   :  { %8705 = vmatmul.mubr.f32.gmra.mrb[140].mxu0 %v8567_v49  ;;  %8780 = vmatmul.mubr.f32.gmra.mrb[142].mxu1 %v8569_v50 }
0x2b0a   :  { %11543 = vmatprep.mubr.msk.f32.mxu0 %vm12759_vm5, %v12755_v9  ;;  %11550 = vmatprep.mubr.msk.f32.mxu1 %vm12759_vm5, %v12755_v9 }
0x2bd8   :  { %v11410_v12 = vpop.f32.mrb[138].mxu0  ;;  %v11448_v17 = vpop.f32.mrb[140].mxu1 }
0x2bd9   :  { %v11411_v31 = vpop.f32.mrb[139].mxu0  ;;  %v11449_v28 = vpop.f32.mrb[141].mxu1 }
0x2bda   :  { %v11412_v30 = vadd.f32 %v11411_v31, %v11410_v12  ;;  %v11450_v55 = vadd.f32 %v11449_v28, %v11448_v17  ;;  %v12590_v17 = vpack.c.bf16 %v8955_v39, %v8954_v19  ;;  %v8875_v28 = vmul.u32 8, %v13121_v38 }
0x2bdc   :  { %v8777_v58 = vadd.f32 %v11450_v55, %v11412_v30  ;;  %v11413_v25 = vpop.f32.mrb[140].mxu0  ;;  %v11451_v26 = vpop.f32.mrb[142].mxu1  ;;  %12591 = vmatpush3.bf16.msra.mxu1 %v12590_v17  ;;  %v8877_v55 = vadd.s32 8, %v8875_v28  ;;  %vm8876_vm8 = vcmp.ge.s32.totalorder %v12802_v7, %v8875_v28 }
0x2bdd   :  { %v11414_v2 = vpop.f32.mrb[141].mxu0  ;;  %v11452_v10 = vpop.f32.mrb[143].mxu1 }
0x2bde   :  { %v8785_v22 = vadd.f32 %v8777_v58, %v8368_v56  ;;  %v11415_v23 = vadd.f32 %v11414_v2, %v11413_v25  ;;  %v11453_v14 = vadd.f32 %v11452_v10, %v11451_v26  ;;  %vm8878_vm9 = vcmp.lt.s32.totalorder %v12802_v7, %v8877_v55 }
0x2bdf   :  { %vm8879_vm10 = vmand %vm8876_vm8, %vm8878_vm9 }
0x2be0   :  { %v8782_v24 = vadd.f32 %v11453_v14, %v11415_v23  ;;  %v8791_v33 = vadd.f32 %v10184_v21, %v8785_v22 }
0x2be2   :  { %v8786_v35 = vadd.f32 %v8782_v24, %v8369_v63  ;;  %v8793_v40 = vadd.f32 %v8791_v33, %v16060_v34  ;;  %v10185_v63 = vld [vmem:[%s17039_s1 + $0x1a0] ss:$0 sm:$0xff] }
0x2be4   :  { %v8797_v43 = vsel %vm124_vm4, %v8793_v40, 0.0  ;;  %v8792_v51 = vadd.f32 %v10184_v21, %v8786_v35 }
0x2be5   :  { %8798 = vadd.xlane.f32.xlu1 %v8797_v43 }
0x2be6   :  { %v8794_v16 = vadd.f32 %v8792_v51, %v16074_v37  ;;  %v9035_v51 = vld [vmem:[%s17039_s1 + $0x1c8] sm:$0xff] }
0x2be8   :  { %v8800_v29 = vsel %vm124_vm4, %v8794_v16, 0.0 }
0x2be9   :  { %8801 = vadd.xlane.f32.xlu0 %v8800_v29 }
0x2c72   :  { %v8799_v15 = vpop.xlane.xlu1 %8798 }
0x2c73   :  { %v8803_v32 = vmul.f32 0.25, %v8799_v15 }
0x2c75   :  { %v8805_v52 = vsub.f32 %v8793_v40, %v8803_v32 }
0x2c76   :  { %v8802_v48 = vpop.xlane.xlu0 %8801 }
0x2c77   :  { %v8804_v56 = vmul.f32 0.25, %v8802_v48  ;;  %v8807_v53 = vmul.f32 %v8805_v52, %v8805_v52 }
0x2c79   :  { %v8806_v54 = vsub.f32 %v8794_v16, %v8804_v56  ;;  %v8809_v13 = vsel %vm124_vm4, %v8807_v53, 0.0  ;;  %v10188_v16 = vld [vmem:[%s17039_s1 + $0x1c0] ss:$0 sm:$0xff] }
0x2c7a   :  { %8810 = vadd.xlane.f32.xlu1 %v8809_v13 }
0x2c7b   :  { %v8808_v34 = vmul.f32 %v8806_v54, %v8806_v54 }
0x2c7d   :  { %v8812_v41 = vsel %vm124_vm4, %v8808_v34, 0.0 }
0x2c7e   :  { %8813 = vadd.xlane.f32.xlu0 %v8812_v41 }
0x2d07   :  { %v8811_v36 = vpop.xlane.xlu1 %8810 }
0x2d08   :  { %v8815_v8 = vmul.f32 0.25, %v8811_v36 }
0x2d0a   :  { %v8817_v37 = vadd.f32 1e-05, %v8815_v8 }
0x2d0b   :  { %v8814_v42 = vpop.xlane.xlu0 %8813 }
0x2d0c   :  { %12726 = vrsqrt.f32 %v8817_v37  ;;  %v8816_v60 = vmul.f32 0.25, %v8814_v42 }
0x2d0e   :  { %v8818_v61 = vadd.f32 1e-05, %v8816_v60 }
0x2d10   :  { %12728 = vrsqrt.f32 %v8818_v61 }
0x2d16   :  { %v12727_v59 = vpop.eup %12726 }
0x2d17   :  { %v8821_v44 = vmul.f32 %v12727_v59, %v8805_v52 }
0x2d19   :  { %v8827_v45 = vmul.f32 %v10185_v63, %v8821_v44 }
0x2d1a   :  { %v12729_v47 = vpop.eup %12728 }
0x2d1b   :  { %v8822_v46 = vmul.f32 %v12729_v47, %v8806_v54  ;;  %v8833_v27 = vadd.f32 %v10186_v3, %v8827_v45 }
0x2d1d   :  { %v8828_v1 = vmul.f32 %v10185_v63, %v8822_v46  ;;  %v8837_v5 = vsub.f32 %v14892_v0, %v8833_v27  ;;  %v8835_v57 = vmul.f32 %v8833_v27, %v14892_v0 }
0x2d1f   :  { %v8834_v11 = vadd.f32 %v10186_v3, %v8828_v1  ;;  %v8839_v50 = vand.u32 2147483647, %v8837_v5 }
0x2d21   :  { %v12603_v6 = vpack.i.bf16 %v8834_v11, %v8833_v27  ;;  %v8836_v20 = vmul.f32 %v8834_v11, %v14896_v62  ;;  %v8838_v18 = vsub.f32 %v14896_v62, %v8834_v11 }
0x2d23   :  { %12604 = vrot.lane.b32.xlu1 %v12603_v6, %s12760_s19  ;;  %v12608_v49 = vpack.i.bf16 %v8836_v20, %v8835_v57  ;;  %v8840_v12 = vand.u32 2147483647, %v8838_v18 }
0x2d25   :  { %12609 = vrot.lane.b32.xlu0 %v12608_v49, %s12761_s20  ;;  %v12613_v31 = vpack.i.bf16 %v8840_v12, %v8839_v50 }
0x2d27   :  { %12614 = vrot.lane.b32.xlu1 %v12613_v31, %s12762_s21 }
0x2d95   :  { %v12605_v30 = vpop.permute.xlu1 %12604 }
0x2d96   :  { %v12607_v58 = vunpack.i.h.bf16 %v12605_v30  ;;  %v12606_v25 = vunpack.i.l.bf16 %v12605_v30 }
0x2d97   :  { %v12610_v26 = vpop.permute.xlu0 %12609 }
0x2d98   :  { %v8866_v2 = vsel %vm124_vm4, %v14896_v62, %v12607_v58  ;;  %v8865_v10 = vsel %vm124_vm4, %v14892_v0, %v12606_v25  ;;  %v12612_v21 = vunpack.i.h.bf16 %v12610_v26  ;;  %v12611_v22 = vunpack.i.l.bf16 %v12610_v26 }
0x2d99   :  { %v12615_v23 = vpop.permute.xlu1 %12614  ;;  %v8880_v0 = vsel %vm8879_vm10, 0.125, %v12755_v9 }
0x2d9a   :  { %v8869_v38 = vsel %vm8867_vm6, %v8866_v2, %v12612_v21  ;;  %v8868_v14 = vsel %vm8867_vm6, %v8865_v10, %v12611_v22  ;;  %v12617_v24 = vunpack.i.h.bf16 %v12615_v23  ;;  %v12616_v33 = vunpack.i.l.bf16 %v12615_v23 }
0x2d9c   :  { %v8871_v35 = vsel %vm8870_vm7, %v8868_v14, %v12616_v33  ;;  %v8872_v40 = vsel %vm8870_vm7, %v8869_v38, %v12617_v24 }
0x2d9d   :  { %v12587_v62 = vpack.c.bf16 %v8872_v40, %v8871_v35 }
0x2d9f   :  { %12588 = vmatpush3.bf16.msra.mxu0 %v12587_v62 }
0x2da0   :  { %11553 = vmatprep.subr.mxu0 %v12755_v9 }
0x2da2   :  { %11544 = vmatmul.mubr.msk.f32.vlgmr.msra.gmra.mrb[142].mxu0 %vm36_vm0, %v8880_v0 }
0x2da3   :  { %11555 = vmatprep.mubr.msk.f32.mxu0 %vm12759_vm5, %v12755_v9  ;;  %11554 = vmatpush3.msra.mxu0 %v9035_v51  ;;  %v10190_v9 = vld [vmem:[%s17039_s1 + $0x1d0] ss:$0 sm:$0xff] }
0x2e75   :  { %v8950_v7 = vpop.f32.mrb[142].mxu0 }
0x2e76   :  { %v11545_v43 = vpop.f32.mrb[143].mxu0  ;;  %11551 = vmatmul.mubr.msk.f32.vlgmr.msra.gmra.mrb[144].mxu1 %vm36_vm0, %v8950_v7 }
0x2f49   :  { %v9030_v29 = vpop.f32.mrb[144].mxu1 }
0x2f4a   :  { %v9031_v15 = vadd.f32 %v10188_v16, %v9030_v29  ;;  %v11552_v32 = vpop.f32.mrb[145].mxu1 }
0x2f4c   :  { %v9034_v52 = vmax.f32 %v9031_v15, 0.0 }
0x2f4e   :  { %11556 = vmatmul.mubr.msk.f32.vlgmr.msra.gmra.mrb[144].mxu0 %vm8867_vm6, %v9034_v52 }
0x3021   :  { %v9110_v48 = vpop.f32.mrb[144].mxu0 }
0x3022   :  { %v9111_v56 = vadd.f32 %v10190_v9, %v9110_v48  ;;  %v11557_v53 = vpop.f32.mrb[145].mxu0 }
0x3024   :  { %v9114_v54 = vmax.f32 %v9111_v56, 0.0 }
0x3026   :  { %9116 = vst.msk [vmem:[#allocation2] sm:$0x3] %vm9115_vm11, %v9114_v54 }
0x3027   :  { %12741 = shalt.err (!%p12738_p4)
}
0x3028   :  { %s12742_s1 = scalar_lea.hbm %s17042_s4, 32 }
0x3029   :  { %p12743_p5 = scmp.ne.s32.totalorder %s17042_s4, %s12742_s1  ;;  %p12746_p6 = scmp.lt.u32.totalorder %s12742_s1, %s17042_s4 }
0x302b   :  { %p12748_p7 = pnand %p12746_p6, %p12743_p5 }
0x302d   :  { %12751 = shalt.err (!%p12748_p7)
}
0x302e   :  { %9126 = dma.vmem_to_hbm [thread:$0]  %s9124_s28, 32, %s17042_s4, [#allocation3]  }
0x302f   :  { %12752 = dma.done.wait [#allocation3], 32  }
0x3030   :  { %12753 = vsyncadd [#allocation3], 4294967264 }
0x3031   :  { %9130 = vsyncpa [#allocation3], 1 }

</bundles_post_ra>
